<compile_context>
chip_gen: v7x
topology: tpu7x:2x2x1
jax: 0.10.0
libtpu: 0.0.40
codegen_flags: <defaults>
</compile_context>

<pallas_src>
import functools
import math

import jax
import jax.numpy as jnp
from jax.experimental import pallas as pl
from jax.experimental.pallas import tpu as pltpu


# ----------------------------------------------------------------------------
# Pallas kernel 1: matmul with fused per-output-channel scale/shift (+ReLU)
#   O[m, n] = act( (A @ W)[m, n] * scale[n] + shift[n] )
# ----------------------------------------------------------------------------
def _mm_bn_act_kernel(a_ref, w_ref, s_ref, t_ref, o_ref, *, relu):
    acc = jnp.dot(a_ref[...], w_ref[...], preferred_element_type=jnp.float32)
    out = acc * s_ref[...] + t_ref[...]
    if relu:
        out = jnp.maximum(out, 0.0)
    o_ref[...] = out.astype(o_ref.dtype)


# ----------------------------------------------------------------------------
# Pallas kernel 2: same matmul + BN + ReLU, then a fused (N, Np) projection
# (the 1x1 classifier applied per output phase) -> logits, all in one kernel.
# ----------------------------------------------------------------------------
def _mm_bn_relu_proj_kernel(a_ref, w_ref, s_ref, t_ref, p_ref, b_ref, o_ref):
    acc = jnp.dot(a_ref[...], w_ref[...], preferred_element_type=jnp.float32)
    h = jnp.maximum(acc * s_ref[...] + t_ref[...], 0.0)
    logit = jnp.dot(h.astype(p_ref.dtype), p_ref[...],
                    preferred_element_type=jnp.float32) + b_ref[...]
    o_ref[...] = logit.astype(o_ref.dtype)


def _tile_m(M):
    # Prefer the largest tile (<=512) that gives at least 2 grid steps
    # (keeps both v7x TensorCores busy); fall back to any divisor; last
    # resort: pad M (replaces the old tm=M single-block VMEM hazard).
    for c in (512, 256, 128, 64, 32, 16, 8):
        if M % c == 0 and M // c >= 2:
            return c, M
    for c in (512, 256, 128, 64, 32, 16, 8):
        if M % c == 0:
            return c, M
    tm = 256
    return tm, ((M + tm - 1) // tm) * tm


def _pad_k128(A, Wm):
    K = A.shape[1]
    pad = (-K) % 128
    if pad:
        A = jnp.pad(A, ((0, 0), (0, pad)))
        Wm = jnp.pad(Wm, ((0, pad), (0, 0)))
    return A, Wm


def matmul_bn_act(A, Wm, scale, shift, *, relu, out_dtype):
    A, Wm = _pad_k128(A, Wm)
    M, K = A.shape
    N = Wm.shape[1]
    tm, Mp = _tile_m(M)
    if Mp != M:
        A = jnp.pad(A, ((0, Mp - M), (0, 0)))
    out = pl.pallas_call(
        functools.partial(_mm_bn_act_kernel, relu=relu),
        out_shape=jax.ShapeDtypeStruct((Mp, N), out_dtype),
        grid=(Mp // tm,),
        in_specs=[
            pl.BlockSpec((tm, K), lambda i: (i, 0)),
            pl.BlockSpec((K, N), lambda i: (0, 0)),
            pl.BlockSpec((1, N), lambda i: (0, 0)),
            pl.BlockSpec((1, N), lambda i: (0, 0)),
        ],
        out_specs=pl.BlockSpec((tm, N), lambda i: (i, 0)),
        compiler_params=pltpu.CompilerParams(dimension_semantics=("parallel",)),
    )(A.astype(jnp.bfloat16), Wm.astype(jnp.bfloat16),
      scale.reshape(1, N).astype(jnp.float32),
      shift.reshape(1, N).astype(jnp.float32))
    return out[:M] if Mp != M else out


def matmul_bn_relu_proj(A, Wm, scale, shift, Wp, bp):
    A, Wm = _pad_k128(A, Wm)
    M, K = A.shape
    N = Wm.shape[1]
    Np = Wp.shape[1]
    tm, Mp = _tile_m(M)
    if Mp != M:
        A = jnp.pad(A, ((0, Mp - M), (0, 0)))
    out = pl.pallas_call(
        _mm_bn_relu_proj_kernel,
        out_shape=jax.ShapeDtypeStruct((Mp, Np), jnp.float32),
        grid=(Mp // tm,),
        in_specs=[
            pl.BlockSpec((tm, K), lambda i: (i, 0)),
            pl.BlockSpec((K, N), lambda i: (0, 0)),
            pl.BlockSpec((1, N), lambda i: (0, 0)),
            pl.BlockSpec((1, N), lambda i: (0, 0)),
            pl.BlockSpec((N, Np), lambda i: (0, 0)),
            pl.BlockSpec((1, Np), lambda i: (0, 0)),
        ],
        out_specs=pl.BlockSpec((tm, Np), lambda i: (i, 0)),
        compiler_params=pltpu.CompilerParams(dimension_semantics=("parallel",)),
    )(A.astype(jnp.bfloat16), Wm.astype(jnp.bfloat16),
      scale.reshape(1, N).astype(jnp.float32),
      shift.reshape(1, N).astype(jnp.float32),
      Wp.astype(jnp.bfloat16), bp.reshape(1, Np).astype(jnp.float32))
    return out[:M] if Mp != M else out


# ----------------------------------------------------------------------------
# Pallas kernel 3: MaxPool2d(kernel=3, stride=1, padding=1)  (NHWC, per-batch)
# ----------------------------------------------------------------------------
def _maxpool3x3_kernel(x_ref, o_ref):
    _, Ho, Wo, _ = o_ref.shape
    x = x_ref[...]
    acc = x[:, 0:Ho, 0:Wo, :]
    for di in range(3):
        for dj in range(3):
            if di == 0 and dj == 0:
                continue
            acc = jnp.maximum(acc, x[:, di:di + Ho, dj:dj + Wo, :])
    o_ref[...] = acc.astype(o_ref.dtype)


def maxpool3x3_s1_p1(x):
    B, H, W, C = x.shape
    xp = jnp.pad(x, ((0, 0), (1, 1), (1, 1), (0, 0)), constant_values=-jnp.inf)
    return pl.pallas_call(
        _maxpool3x3_kernel,
        out_shape=jax.ShapeDtypeStruct((B, H, W, C), x.dtype),
        grid=(B,),
        in_specs=[pl.BlockSpec((1, H + 2, W + 2, C), lambda b: (b, 0, 0, 0))],
        out_specs=pl.BlockSpec((1, H, W, C), lambda b: (b, 0, 0, 0)),
        compiler_params=pltpu.CompilerParams(dimension_semantics=("parallel",)),
    )(xp)


# ----------------------------------------------------------------------------
# Pallas kernel 4: spatial soft-argmax + pixel-coordinate scaling
#   input  logits (B, H, W)  ->  output (B, 2) = (x_pix, y_pix)
# ----------------------------------------------------------------------------
def _soft_argmax_kernel(l_ref, o_ref, *, H, W):
    l = l_ref[...].astype(jnp.float32)                               # (B,H,W)
    m = jnp.max(jnp.max(l, axis=2, keepdims=True), axis=1, keepdims=True)
    e = jnp.exp(l - m)
    z = jnp.sum(jnp.sum(e, axis=2, keepdims=True), axis=1, keepdims=True)
    w = e / z                                                        # softmax over H*W

    lin_w = (jax.lax.broadcasted_iota(jnp.int32, (1, 1, W), 2).astype(jnp.float32)
             * (2.0 / (W - 1)) - 1.0)                                # linspace(-1,1,W)
    lin_h = (jax.lax.broadcasted_iota(jnp.int32, (1, H, 1), 1).astype(jnp.float32)
             * (2.0 / (H - 1)) - 1.0)                                # linspace(-1,1,H)

    x = jnp.sum(jnp.sum(w * lin_w, axis=2, keepdims=True), axis=1, keepdims=True)
    y = jnp.sum(jnp.sum(w * lin_h, axis=2, keepdims=True), axis=1, keepdims=True)

    o_ref[:, 0:1] = (x[:, 0, :] + 1.0) * ((W - 1) * 0.5)             # x_pix
    o_ref[:, 1:2] = (y[:, 0, :] + 1.0) * ((H - 1) * 0.5)             # y_pix


def soft_argmax_pixels(logits):
    B, H, W = logits.shape
    return pl.pallas_call(
        functools.partial(_soft_argmax_kernel, H=H, W=W),
        out_shape=jax.ShapeDtypeStruct((B, 2), jnp.float32),
    )(logits)


# ----------------------------------------------------------------------------
# im2col glue feeding the Pallas matmul kernels.
#   k_pad extra zero channels are appended INSIDE the concat so the K
#   padding costs no extra HBM pass.
# ----------------------------------------------------------------------------
def _im2col(xp, kH, kW, stride, Ho, Wo, k_pad=0):
    cols = []
    for i in range(kH):
        for j in range(kW):
            cols.append(xp[:, i:i + (Ho - 1) * stride + 1:stride,
                           j:j + (Wo - 1) * stride + 1:stride, :])
    if k_pad:
        cols.append(jnp.zeros((xp.shape[0], Ho, Wo, k_pad), xp.dtype))
    return jnp.concatenate(cols, axis=-1)          # (B,Ho,Wo,kH*kW*Cin + k_pad)


def conv2d_fused(x, layer, *, stride, padding, relu=True, out_dtype=jnp.bfloat16):
    B, H, W, Cin = x.shape
    w = layer["w"]
    kH, kW, _, Cout = w.shape
    Ho = (H + 2 * padding - kH) // stride + 1
    Wo = (W + 2 * padding - kW) // stride + 1
    xp = jnp.pad(x, ((0, 0), (padding, padding), (padding, padding), (0, 0)))
    K = kH * kW * Cin
    k_pad = (-K) % 128
    A = _im2col(xp, kH, kW, stride, Ho, Wo, k_pad).reshape(B * Ho * Wo, K + k_pad)
    Wm = w.reshape(K, Cout)
    if k_pad:
        Wm = jnp.pad(Wm, ((0, k_pad), (0, 0)))
    out = matmul_bn_act(A, Wm, layer["scale"], layer["shift"],
                        relu=relu, out_dtype=out_dtype)
    return out.reshape(B, Ho, Wo, Cout)


# ----------------------------------------------------------------------------
# ConvTranspose2d(stride=2, output_padding=1) via sub-pixel (phase) conv:
# one stride-1 matmul producing all 4 phases, then depth-to-space interleave.
# ----------------------------------------------------------------------------
def _phase_geometry(k, padding):
    # Only the configs used by Planner: stride=2, output_padding=1, k=2p+1.
    assert k == 2 * padding + 1, "phase decomposition specialised to k=2p+1, s=2, op=1"
    ph = k - 1 - padding
    per_phase, a_all = {}, []
    for r in (0, 1):
        taps = []
        for kk in range(k):
            if (r + kk - ph) % 2 == 0:
                a = (r + kk - ph) // 2
                taps.append((kk, a))
                a_all.append(a)
        per_phase[r] = taps
    amin, amax = min(a_all), max(a_all)
    Kp = amax - amin + 1
    per_phase = {r: [(kk, a - amin) for kk, a in taps] for r, taps in per_phase.items()}
    return Kp, -amin, amax, per_phase


def _phase_weight_matrix(w_eq, k, padding):
    # w_eq: equivalent direct-conv weight, HWIO (flipped + in/out transposed).
    kH, kW, Cin, Cout = w_eq.shape
    Kp, _, _, per_phase = _phase_geometry(k, padding)
    Wm = jnp.zeros((Kp * Kp * Cin, 4 * Cout), w_eq.dtype)
    for r in (0, 1):
        for s in (0, 1):
            for ky, a in per_phase[r]:
                for kx, b in per_phase[s]:
                    Wm = Wm.at[(a * Kp + b) * Cin:(a * Kp + b + 1) * Cin,
                               (r * 2 + s) * Cout:(r * 2 + s + 1) * Cout].set(w_eq[ky, kx])
    return Wm


def conv_transpose2d_phase(x, layer, *, k, padding, proj=None):
    B, H, W, Cin = x.shape
    Kp, pb, pa, _ = _phase_geometry(k, padding)
    Cout = layer["w"].shape[1] // 4
    xpad = jnp.pad(x, ((0, 0), (pb, pa), (pb, pa), (0, 0)))
    A = _im2col(xpad, Kp, Kp, 1, H, W).reshape(B * H * W, Kp * Kp * Cin)
    if proj is None:
        out = matmul_bn_act(A, layer["w"], layer["scale"], layer["shift"],
                            relu=True, out_dtype=jnp.bfloat16)       # (BHW, 4*Cout)
        out = out.reshape(B, H, W, 2, 2, Cout)
        return jnp.transpose(out, (0, 1, 3, 2, 4, 5)).reshape(B, 2 * H, 2 * W, Cout)
    # fused 1x1 classifier: logits per phase, (BHW, 4) f32
    logits = matmul_bn_relu_proj(A, layer["w"], layer["scale"], layer["shift"],
                                 proj["w"], proj["b"])
    logits = logits.reshape(B, H, W, 2, 2)
    return jnp.transpose(logits, (0, 1, 3, 2, 4)).reshape(B, 2 * H, 2 * W)


# ----------------------------------------------------------------------------
# Deterministic parameter init (synthetic; BN folded to scale/shift)
# ----------------------------------------------------------------------------
def _fold_bn(bias, gamma, beta, mean, var, eps=1e-5):
    s = gamma / jnp.sqrt(var + eps)
    t = (bias - mean) * s + beta
    return s, t


def init_params(key):
    keys = iter(jax.random.split(key, 40))

    def nk():
        return next(keys)

    def conv_w(kH, kW, cin, cout):
        w = jax.random.normal(nk(), (kH, kW, cin, cout), jnp.float32) / math.sqrt(kH * kW * cin)
        b = 0.01 * jax.random.normal(nk(), (cout,), jnp.float32)
        return w, b

    def bn(c):
        gamma = 1.0 + 0.1 * jax.random.normal(nk(), (c,), jnp.float32)
        beta = 0.1 * jax.random.normal(nk(), (c,), jnp.float32)
        mean = 0.1 * jax.random.normal(nk(), (c,), jnp.float32)
        var = 1.0 + 0.1 * jnp.abs(jax.random.normal(nk(), (c,), jnp.float32))
        return gamma, beta, mean, var

    def fwd_layer(k, cin, cout):
        w, b = conv_w(k, k, cin, cout)
        s, t = _fold_bn(b, *bn(cout))
        return {"w": w, "scale": s, "shift": t}

    def trans_layer(k, cin, cout, padding):
        # torch ConvTranspose2d weight layout: (Cin, Cout, kH, kW)
        wt = jax.random.normal(nk(), (cin, cout, k, k), jnp.float32) / math.sqrt(k * k * cin)
        w_eq = jnp.transpose(jnp.flip(wt, axis=(2, 3)), (2, 3, 0, 1))   # HWIO equivalent
        b = 0.01 * jax.random.normal(nk(), (cout,), jnp.float32)
        s, t = _fold_bn(b, *bn(cout))
        return {"w": _phase_weight_matrix(w_eq, k, padding),
                "scale": jnp.tile(s, 4), "shift": jnp.tile(t, 4)}

    P = {
        "start":  fwd_layer(7, 3, 32),
        "layer1": fwd_layer(3, 32, 64),
        "layer2": fwd_layer(3, 64, 128),
        "layer5": trans_layer(3, 128, 128, padding=1),
        "layer6": trans_layer(3, 128, 64, padding=1),
        "final":  trans_layer(7, 64, 32, padding=3),
    }
    # classifier: Conv2d(32, 1, kernel_size=1) -- fused into `final` as a
    # block-diagonal (4*32, 4) per-phase projection.
    wc, bc = conv_w(1, 1, 32, 1)
    wc_vec = wc.reshape(32)
    Wp = jnp.zeros((4 * 32, 4), jnp.float32)
    for p in range(4):
        Wp = Wp.at[p * 32:(p + 1) * 32, p].set(wc_vec)
    P["cls"] = {"w": Wp, "b": jnp.broadcast_to(bc, (4,))}
    return P


# ----------------------------------------------------------------------------
# Forward pass (mirrors Planner.forward)
# ----------------------------------------------------------------------------
def planner_forward(img_nchw, P):
    x = jnp.transpose(img_nchw, (0, 2, 3, 1)).astype(jnp.bfloat16)   # NCHW -> NHWC
    H, W = x.shape[1], x.shape[2]

    x = conv2d_fused(x, P["start"], stride=2, padding=3)             # (B,H/2,W/2,32)
    x = maxpool3x3_s1_p1(x)
    x = conv2d_fused(x, P["layer1"], stride=2, padding=1)            # (B,H/4,W/4,64)
    x = conv2d_fused(x, P["layer2"], stride=2, padding=1)            # (B,H/8,W/8,128)
    x = conv_transpose2d_phase(x, P["layer5"], k=3, padding=1)       # (B,H/4,W/4,128)
    x = conv_transpose2d_phase(x, P["layer6"], k=3, padding=1)       # (B,H/2,W/2,64)
    logits = conv_transpose2d_phase(x, P["final"], k=7, padding=3,
                                    proj=P["cls"])                   # (B,H',W') f32
    logits = logits[:, :H, :W]                                       # crop + squeeze(1)
    return soft_argmax_pixels(logits)                                # (B,2) pixel coords


if __name__ == "__main__":
    key = jax.random.PRNGKey(0)
    pkey, xkey = jax.random.split(key)
    params = init_params(pkey)

    # Small image consistent with the module's (B,3,H,W) contract (H,W % 8 == 0).
    img = jax.random.normal(xkey, (2, 3, 32, 64), jnp.float32)       # NCHW

    out = jax.jit(planner_forward)(img, params)
    out = jax.block_until_ready(out)
    assert out.shape == (2, 2) and out.dtype == jnp.float32
    print("KERNEL_OK")
</pallas_src>

<mosaic_0001>
module attributes {stable_mosaic.version = 11 : i64} {
  func.func @_mm_bn_act_kernel(%arg0: i32, %arg1: memref<512x256xbf16, #tpu.memory_space<vmem>>, %arg2: memref<256x32xbf16, #tpu.memory_space<vmem>>, %arg3: memref<1x32xf32, #tpu.memory_space<vmem>>, %arg4: memref<1x32xf32, #tpu.memory_space<vmem>>, %arg5: memref<512x32xbf16, #tpu.memory_space<vmem>>) attributes {dimension_semantics = [#tpu.dimension_semantics<parallel>], iteration_bounds = array<i64: 2>, scalar_prefetch = 0 : i64, scratch_operands = 0 : i64, tpu.core_type = #tpu.core_type<tc>, window_params = [{transform_indices = @transform_0, window_bounds = array<i64: 512, 256>}, {pipeline_mode = #tpu.pipeline_mode<synchronous>, transform_indices = @transform_1, window_bounds = array<i64: 256, 32>}, {pipeline_mode = #tpu.pipeline_mode<synchronous>, transform_indices = @transform_2, window_bounds = array<i64: 1, 32>}, {pipeline_mode = #tpu.pipeline_mode<synchronous>, transform_indices = @transform_3, window_bounds = array<i64: 1, 32>}, {transform_indices = @transform_4, window_bounds = array<i64: 512, 32>}]} {
    %c0 = arith.constant 0 : index
    %c0_0 = arith.constant 0 : index
    %0 = vector.load %arg1[%c0, %c0_0] : memref<512x256xbf16, #tpu.memory_space<vmem>>, vector<512x256xbf16>
    %c0_1 = arith.constant 0 : index
    %c0_2 = arith.constant 0 : index
    %1 = vector.load %arg2[%c0_1, %c0_2] : memref<256x32xbf16, #tpu.memory_space<vmem>>, vector<256x32xbf16>
    %cst = arith.constant dense<0.000000e+00> : vector<512x32xf32>
    %2 = tpu.matmul %0, %1, %cst {dimension_numbers = #tpu.dot_dimension_numbers<[1], [0], [0], [1], [0, 0, 1, 1], [], []>} : vector<512x256xbf16>, vector<256x32xbf16>, vector<512x32xf32> -> vector<512x32xf32>
    %c0_3 = arith.constant 0 : index
    %c0_4 = arith.constant 0 : index
    %3 = vector.load %arg3[%c0_3, %c0_4] : memref<1x32xf32, #tpu.memory_space<vmem>>, vector<1x32xf32>
    %4 = vector.broadcast %3 : vector<1x32xf32> to vector<512x32xf32>
    %5 = arith.mulf %2, %4 : vector<512x32xf32>
    %c0_5 = arith.constant 0 : index
    %c0_6 = arith.constant 0 : index
    %6 = vector.load %arg4[%c0_5, %c0_6] : memref<1x32xf32, #tpu.memory_space<vmem>>, vector<1x32xf32>
    %7 = vector.broadcast %6 : vector<1x32xf32> to vector<512x32xf32>
    %8 = arith.addf %5, %7 : vector<512x32xf32>
    %cst_7 = arith.constant 0.000000e+00 : f32
    %9 = vector.broadcast %cst_7 : f32 to vector<512x32xf32>
    %10 = arith.maximumf %8, %9 : vector<512x32xf32>
    %11 = arith.truncf %10 : vector<512x32xf32> to vector<512x32xbf16>
    %c0_8 = arith.constant 0 : index
    %c0_9 = arith.constant 0 : index
    %12 = vector.load %arg5[%c0_8, %c0_9] : memref<512x32xbf16, #tpu.memory_space<vmem>>, vector<512x32xbf16>
    tpu.vector_store %arg5[%c0_8, %c0_9], %11 {strides = array<i32>} : memref<512x32xbf16, #tpu.memory_space<vmem>>, vector<512x32xbf16>,
    return
  }
  func.func @transform_0(%arg0: i32) -> (i32, i32) {
    %c0_i32 = arith.constant 0 : i32
    %c0_i32_0 = arith.constant 0 : i32
    return %arg0, %c0_i32 : i32, i32
  }
  func.func @transform_1(%arg0: i32) -> (i32, i32) {
    %c0_i32 = arith.constant 0 : i32
    %c0_i32_0 = arith.constant 0 : i32
    %c0_i32_1 = arith.constant 0 : i32
    return %c0_i32, %c0_i32_0 : i32, i32
  }
  func.func @transform_2(%arg0: i32) -> (i32, i32) {
    %c0_i32 = arith.constant 0 : i32
    %c0_i32_0 = arith.constant 0 : i32
    %c0_i32_1 = arith.constant 0 : i32
    return %c0_i32, %c0_i32_0 : i32, i32
  }
  func.func @transform_3(%arg0: i32) -> (i32, i32) {
    %c0_i32 = arith.constant 0 : i32
    %c0_i32_0 = arith.constant 0 : i32
    %c0_i32_1 = arith.constant 0 : i32
    return %c0_i32, %c0_i32_0 : i32, i32
  }
  func.func @transform_4(%arg0: i32) -> (i32, i32) {
    %c0_i32 = arith.constant 0 : i32
    %c0_i32_0 = arith.constant 0 : i32
    return %arg0, %c0_i32 : i32, i32
  }
}

module attributes {stable_mosaic.version = 11 : i64} {
  func.func @_maxpool3x3_kernel(%arg0: i32, %arg1: memref<1x18x34x32xbf16, #tpu.memory_space<vmem>>, %arg2: memref<1x16x32x32xbf16, #tpu.memory_space<vmem>>) attributes {dimension_semantics = [#tpu.dimension_semantics<parallel>], iteration_bounds = array<i64: 2>, scalar_prefetch = 0 : i64, scratch_operands = 0 : i64, tpu.core_type = #tpu.core_type<tc>, window_params = [{transform_indices = @transform_0, window_bounds = array<i64: 1, 18, 34, 32>}, {transform_indices = @transform_1, window_bounds = array<i64: 1, 16, 32, 32>}]} {
    %c0 = arith.constant 0 : index
    %c0_0 = arith.constant 0 : index
    %c0_1 = arith.constant 0 : index
    %c0_2 = arith.constant 0 : index
    %0 = vector.load %arg1[%c0, %c0_0, %c0_1, %c0_2] : memref<1x18x34x32xbf16, #tpu.memory_space<vmem>>, vector<1x18x34x32xbf16>
    %1 = vector.extract_strided_slice %0 {offsets = [0, 0, 0, 0], sizes = [1, 16, 32, 32], strides = [1, 1, 1, 1]} : vector<1x18x34x32xbf16> to vector<1x16x32x32xbf16>
    %2 = vector.extract_strided_slice %0 {offsets = [0, 0, 1, 0], sizes = [1, 16, 32, 32], strides = [1, 1, 1, 1]} : vector<1x18x34x32xbf16> to vector<1x16x32x32xbf16>
    %3 = arith.maximumf %1, %2 : vector<1x16x32x32xbf16>
    %4 = vector.extract_strided_slice %0 {offsets = [0, 0, 2, 0], sizes = [1, 16, 32, 32], strides = [1, 1, 1, 1]} : vector<1x18x34x32xbf16> to vector<1x16x32x32xbf16>
    %5 = arith.maximumf %3, %4 : vector<1x16x32x32xbf16>
    %6 = vector.extract_strided_slice %0 {offsets = [0, 1, 0, 0], sizes = [1, 16, 32, 32], strides = [1, 1, 1, 1]} : vector<1x18x34x32xbf16> to vector<1x16x32x32xbf16>
    %7 = arith.maximumf %5, %6 : vector<1x16x32x32xbf16>
    %8 = vector.extract_strided_slice %0 {offsets = [0, 1, 1, 0], sizes = [1, 16, 32, 32], strides = [1, 1, 1, 1]} : vector<1x18x34x32xbf16> to vector<1x16x32x32xbf16>
    %9 = arith.maximumf %7, %8 : vector<1x16x32x32xbf16>
    %10 = vector.extract_strided_slice %0 {offsets = [0, 1, 2, 0], sizes = [1, 16, 32, 32], strides = [1, 1, 1, 1]} : vector<1x18x34x32xbf16> to vector<1x16x32x32xbf16>
    %11 = arith.maximumf %9, %10 : vector<1x16x32x32xbf16>
    %12 = vector.extract_strided_slice %0 {offsets = [0, 2, 0, 0], sizes = [1, 16, 32, 32], strides = [1, 1, 1, 1]} : vector<1x18x34x32xbf16> to vector<1x16x32x32xbf16>
    %13 = arith.maximumf %11, %12 : vector<1x16x32x32xbf16>
    %14 = vector.extract_strided_slice %0 {offsets = [0, 2, 1, 0], sizes = [1, 16, 32, 32], strides = [1, 1, 1, 1]} : vector<1x18x34x32xbf16> to vector<1x16x32x32xbf16>
    %15 = arith.maximumf %13, %14 : vector<1x16x32x32xbf16>
    %16 = vector.extract_strided_slice %0 {offsets = [0, 2, 2, 0], sizes = [1, 16, 32, 32], strides = [1, 1, 1, 1]} : vector<1x18x34x32xbf16> to vector<1x16x32x32xbf16>
    %17 = arith.maximumf %15, %16 : vector<1x16x32x32xbf16>
    %c0_3 = arith.constant 0 : index
    %c0_4 = arith.constant 0 : index
    %c0_5 = arith.constant 0 : index
    %c0_6 = arith.constant 0 : index
    %18 = vector.load %arg2[%c0_3, %c0_4, %c0_5, %c0_6] : memref<1x16x32x32xbf16, #tpu.memory_space<vmem>>, vector<1x16x32x32xbf16>
    tpu.vector_store %arg2[%c0_3, %c0_4, %c0_5, %c0_6], %17 {strides = array<i32>} : memref<1x16x32x32xbf16, #tpu.memory_space<vmem>>, vector<1x16x32x32xbf16>,
    return
  }
  func.func @transform_0(%arg0: i32) -> (i32, i32, i32, i32) {
    %c0_i32 = arith.constant 0 : i32
    %c0_i32_0 = arith.constant 0 : i32
    %c0_i32_1 = arith.constant 0 : i32
    %c0_i32_2 = arith.constant 0 : i32
    return %arg0, %c0_i32, %c0_i32_0, %c0_i32_1 : i32, i32, i32, i32
  }
  func.func @transform_1(%arg0: i32) -> (i32, i32, i32, i32) {
    %c0_i32 = arith.constant 0 : i32
    %c0_i32_0 = arith.constant 0 : i32
    %c0_i32_1 = arith.constant 0 : i32
    %c0_i32_2 = arith.constant 0 : i32
    return %arg0, %c0_i32, %c0_i32_0, %c0_i32_1 : i32, i32, i32, i32
  }
}

module attributes {stable_mosaic.version = 11 : i64} {
  func.func @_mm_bn_act_kernel(%arg0: i32, %arg1: memref<128x384xbf16, #tpu.memory_space<vmem>>, %arg2: memref<384x64xbf16, #tpu.memory_space<vmem>>, %arg3: memref<1x64xf32, #tpu.memory_space<vmem>>, %arg4: memref<1x64xf32, #tpu.memory_space<vmem>>, %arg5: memref<128x64xbf16, #tpu.memory_space<vmem>>) attributes {dimension_semantics = [#tpu.dimension_semantics<parallel>], iteration_bounds = array<i64: 2>, scalar_prefetch = 0 : i64, scratch_operands = 0 : i64, tpu.core_type = #tpu.core_type<tc>, window_params = [{transform_indices = @transform_0, window_bounds = array<i64: 128, 384>}, {pipeline_mode = #tpu.pipeline_mode<synchronous>, transform_indices = @transform_1, window_bounds = array<i64: 384, 64>}, {pipeline_mode = #tpu.pipeline_mode<synchronous>, transform_indices = @transform_2, window_bounds = array<i64: 1, 64>}, {pipeline_mode = #tpu.pipeline_mode<synchronous>, transform_indices = @transform_3, window_bounds = array<i64: 1, 64>}, {transform_indices = @transform_4, window_bounds = array<i64: 128, 64>}]} {
    %c0 = arith.constant 0 : index
    %c0_0 = arith.constant 0 : index
    %0 = vector.load %arg1[%c0, %c0_0] : memref<128x384xbf16, #tpu.memory_space<vmem>>, vector<128x384xbf16>
    %c0_1 = arith.constant 0 : index
    %c0_2 = arith.constant 0 : index
    %1 = vector.load %arg2[%c0_1, %c0_2] : memref<384x64xbf16, #tpu.memory_space<vmem>>, vector<384x64xbf16>
    %cst = arith.constant dense<0.000000e+00> : vector<128x64xf32>
    %2 = tpu.matmul %0, %1, %cst {dimension_numbers = #tpu.dot_dimension_numbers<[1], [0], [0], [1], [0, 0, 1, 1], [], []>} : vector<128x384xbf16>, vector<384x64xbf16>, vector<128x64xf32> -> vector<128x64xf32>
    %c0_3 = arith.constant 0 : index
    %c0_4 = arith.constant 0 : index
    %3 = vector.load %arg3[%c0_3, %c0_4] : memref<1x64xf32, #tpu.memory_space<vmem>>, vector<1x64xf32>
    %4 = vector.broadcast %3 : vector<1x64xf32> to vector<128x64xf32>
    %5 = arith.mulf %2, %4 : vector<128x64xf32>
    %c0_5 = arith.constant 0 : index
    %c0_6 = arith.constant 0 : index
    %6 = vector.load %arg4[%c0_5, %c0_6] : memref<1x64xf32, #tpu.memory_space<vmem>>, vector<1x64xf32>
    %7 = vector.broadcast %6 : vector<1x64xf32> to vector<128x64xf32>
    %8 = arith.addf %5, %7 : vector<128x64xf32>
    %cst_7 = arith.constant 0.000000e+00 : f32
    %9 = vector.broadcast %cst_7 : f32 to vector<128x64xf32>
    %10 = arith.maximumf %8, %9 : vector<128x64xf32>
    %11 = arith.truncf %10 : vector<128x64xf32> to vector<128x64xbf16>
    %c0_8 = arith.constant 0 : index
    %c0_9 = arith.constant 0 : index
    %12 = vector.load %arg5[%c0_8, %c0_9] : memref<128x64xbf16, #tpu.memory_space<vmem>>, vector<128x64xbf16>
    tpu.vector_store %arg5[%c0_8, %c0_9], %11 {strides = array<i32>} : memref<128x64xbf16, #tpu.memory_space<vmem>>, vector<128x64xbf16>,
    return
  }
  func.func @transform_0(%arg0: i32) -> (i32, i32) {
    %c0_i32 = arith.constant 0 : i32
    %c0_i32_0 = arith.constant 0 : i32
    return %arg0, %c0_i32 : i32, i32
  }
  func.func @transform_1(%arg0: i32) -> (i32, i32) {
    %c0_i32 = arith.constant 0 : i32
    %c0_i32_0 = arith.constant 0 : i32
    %c0_i32_1 = arith.constant 0 : i32
    return %c0_i32, %c0_i32_0 : i32, i32
  }
  func.func @transform_2(%arg0: i32) -> (i32, i32) {
    %c0_i32 = arith.constant 0 : i32
    %c0_i32_0 = arith.constant 0 : i32
    %c0_i32_1 = arith.constant 0 : i32
    return %c0_i32, %c0_i32_0 : i32, i32
  }
  func.func @transform_3(%arg0: i32) -> (i32, i32) {
    %c0_i32 = arith.constant 0 : i32
    %c0_i32_0 = arith.constant 0 : i32
    %c0_i32_1 = arith.constant 0 : i32
    return %c0_i32, %c0_i32_0 : i32, i32
  }
  func.func @transform_4(%arg0: i32) -> (i32, i32) {
    %c0_i32 = arith.constant 0 : i32
    %c0_i32_0 = arith.constant 0 : i32
    return %arg0, %c0_i32 : i32, i32
  }
}

module attributes {stable_mosaic.version = 11 : i64} {
  func.func @_mm_bn_act_kernel(%arg0: i32, %arg1: memref<32x640xbf16, #tpu.memory_space<vmem>>, %arg2: memref<640x128xbf16, #tpu.memory_space<vmem>>, %arg3: memref<1x128xf32, #tpu.memory_space<vmem>>, %arg4: memref<1x128xf32, #tpu.memory_space<vmem>>, %arg5: memref<32x128xbf16, #tpu.memory_space<vmem>>) attributes {dimension_semantics = [#tpu.dimension_semantics<parallel>], iteration_bounds = array<i64: 2>, scalar_prefetch = 0 : i64, scratch_operands = 0 : i64, tpu.core_type = #tpu.core_type<tc>, window_params = [{transform_indices = @transform_0, window_bounds = array<i64: 32, 640>}, {pipeline_mode = #tpu.pipeline_mode<synchronous>, transform_indices = @transform_1, window_bounds = array<i64: 640, 128>}, {pipeline_mode = #tpu.pipeline_mode<synchronous>, transform_indices = @transform_2, window_bounds = array<i64: 1, 128>}, {pipeline_mode = #tpu.pipeline_mode<synchronous>, transform_indices = @transform_3, window_bounds = array<i64: 1, 128>}, {transform_indices = @transform_4, window_bounds = array<i64: 32, 128>}]} {
    %c0 = arith.constant 0 : index
    %c0_0 = arith.constant 0 : index
    %0 = vector.load %arg1[%c0, %c0_0] : memref<32x640xbf16, #tpu.memory_space<vmem>>, vector<32x640xbf16>
    %c0_1 = arith.constant 0 : index
    %c0_2 = arith.constant 0 : index
    %1 = vector.load %arg2[%c0_1, %c0_2] : memref<640x128xbf16, #tpu.memory_space<vmem>>, vector<640x128xbf16>
    %cst = arith.constant dense<0.000000e+00> : vector<32x128xf32>
    %2 = tpu.matmul %0, %1, %cst {dimension_numbers = #tpu.dot_dimension_numbers<[1], [0], [0], [1], [0, 0, 1, 1], [], []>} : vector<32x640xbf16>, vector<640x128xbf16>, vector<32x128xf32> -> vector<32x128xf32>
    %c0_3 = arith.constant 0 : index
    %c0_4 = arith.constant 0 : index
    %3 = vector.load %arg3[%c0_3, %c0_4] : memref<1x128xf32, #tpu.memory_space<vmem>>, vector<1x128xf32>
    %4 = vector.broadcast %3 : vector<1x128xf32> to vector<32x128xf32>
    %5 = arith.mulf %2, %4 : vector<32x128xf32>
    %c0_5 = arith.constant 0 : index
    %c0_6 = arith.constant 0 : index
    %6 = vector.load %arg4[%c0_5, %c0_6] : memref<1x128xf32, #tpu.memory_space<vmem>>, vector<1x128xf32>
    %7 = vector.broadcast %6 : vector<1x128xf32> to vector<32x128xf32>
    %8 = arith.addf %5, %7 : vector<32x128xf32>
    %cst_7 = arith.constant 0.000000e+00 : f32
    %9 = vector.broadcast %cst_7 : f32 to vector<32x128xf32>
    %10 = arith.maximumf %8, %9 : vector<32x128xf32>
    %11 = arith.truncf %10 : vector<32x128xf32> to vector<32x128xbf16>
    %c0_8 = arith.constant 0 : index
    %c0_9 = arith.constant 0 : index
    %12 = vector.load %arg5[%c0_8, %c0_9] : memref<32x128xbf16, #tpu.memory_space<vmem>>, vector<32x128xbf16>
    tpu.vector_store %arg5[%c0_8, %c0_9], %11 {strides = array<i32>} : memref<32x128xbf16, #tpu.memory_space<vmem>>, vector<32x128xbf16>,
    return
  }
  func.func @transform_0(%arg0: i32) -> (i32, i32) {
    %c0_i32 = arith.constant 0 : i32
    %c0_i32_0 = arith.constant 0 : i32
    return %arg0, %c0_i32 : i32, i32
  }
  func.func @transform_1(%arg0: i32) -> (i32, i32) {
    %c0_i32 = arith.constant 0 : i32
    %c0_i32_0 = arith.constant 0 : i32
    %c0_i32_1 = arith.constant 0 : i32
    return %c0_i32, %c0_i32_0 : i32, i32
  }
  func.func @transform_2(%arg0: i32) -> (i32, i32) {
    %c0_i32 = arith.constant 0 : i32
    %c0_i32_0 = arith.constant 0 : i32
    %c0_i32_1 = arith.constant 0 : i32
    return %c0_i32, %c0_i32_0 : i32, i32
  }
  func.func @transform_3(%arg0: i32) -> (i32, i32) {
    %c0_i32 = arith.constant 0 : i32
    %c0_i32_0 = arith.constant 0 : i32
    %c0_i32_1 = arith.constant 0 : i32
    return %c0_i32, %c0_i32_0 : i32, i32
  }
  func.func @transform_4(%arg0: i32) -> (i32, i32) {
    %c0_i32 = arith.constant 0 : i32
    %c0_i32_0 = arith.constant 0 : i32
    return %arg0, %c0_i32 : i32, i32
  }
}

module attributes {stable_mosaic.version = 11 : i64} {
  func.func @_mm_bn_act_kernel(%arg0: i32, %arg1: memref<32x512xbf16, #tpu.memory_space<vmem>>, %arg2: memref<512x512xbf16, #tpu.memory_space<vmem>>, %arg3: memref<1x512xf32, #tpu.memory_space<vmem>>, %arg4: memref<1x512xf32, #tpu.memory_space<vmem>>, %arg5: memref<32x512xbf16, #tpu.memory_space<vmem>>) attributes {dimension_semantics = [#tpu.dimension_semantics<parallel>], iteration_bounds = array<i64: 2>, scalar_prefetch = 0 : i64, scratch_operands = 0 : i64, tpu.core_type = #tpu.core_type<tc>, window_params = [{transform_indices = @transform_0, window_bounds = array<i64: 32, 512>}, {pipeline_mode = #tpu.pipeline_mode<synchronous>, transform_indices = @transform_1, window_bounds = array<i64: 512, 512>}, {pipeline_mode = #tpu.pipeline_mode<synchronous>, transform_indices = @transform_2, window_bounds = array<i64: 1, 512>}, {pipeline_mode = #tpu.pipeline_mode<synchronous>, transform_indices = @transform_3, window_bounds = array<i64: 1, 512>}, {transform_indices = @transform_4, window_bounds = array<i64: 32, 512>}]} {
    %c0 = arith.constant 0 : index
    %c0_0 = arith.constant 0 : index
    %0 = vector.load %arg1[%c0, %c0_0] : memref<32x512xbf16, #tpu.memory_space<vmem>>, vector<32x512xbf16>
    %c0_1 = arith.constant 0 : index
    %c0_2 = arith.constant 0 : index
    %1 = vector.load %arg2[%c0_1, %c0_2] : memref<512x512xbf16, #tpu.memory_space<vmem>>, vector<512x512xbf16>
    %cst = arith.constant dense<0.000000e+00> : vector<32x512xf32>
    %2 = tpu.matmul %0, %1, %cst {dimension_numbers = #tpu.dot_dimension_numbers<[1], [0], [0], [1], [0, 0, 1, 1], [], []>} : vector<32x512xbf16>, vector<512x512xbf16>, vector<32x512xf32> -> vector<32x512xf32>
    %c0_3 = arith.constant 0 : index
    %c0_4 = arith.constant 0 : index
    %3 = vector.load %arg3[%c0_3, %c0_4] : memref<1x512xf32, #tpu.memory_space<vmem>>, vector<1x512xf32>
    %4 = vector.broadcast %3 : vector<1x512xf32> to vector<32x512xf32>
    %5 = arith.mulf %2, %4 : vector<32x512xf32>
    %c0_5 = arith.constant 0 : index
    %c0_6 = arith.constant 0 : index
    %6 = vector.load %arg4[%c0_5, %c0_6] : memref<1x512xf32, #tpu.memory_space<vmem>>, vector<1x512xf32>
    %7 = vector.broadcast %6 : vector<1x512xf32> to vector<32x512xf32>
    %8 = arith.addf %5, %7 : vector<32x512xf32>
    %cst_7 = arith.constant 0.000000e+00 : f32
    %9 = vector.broadcast %cst_7 : f32 to vector<32x512xf32>
    %10 = arith.maximumf %8, %9 : vector<32x512xf32>
    %11 = arith.truncf %10 : vector<32x512xf32> to vector<32x512xbf16>
    %c0_8 = arith.constant 0 : index
    %c0_9 = arith.constant 0 : index
    %12 = vector.load %arg5[%c0_8, %c0_9] : memref<32x512xbf16, #tpu.memory_space<vmem>>, vector<32x512xbf16>
    tpu.vector_store %arg5[%c0_8, %c0_9], %11 {strides = array<i32>} : memref<32x512xbf16, #tpu.memory_space<vmem>>, vector<32x512xbf16>,
    return
  }
  func.func @transform_0(%arg0: i32) -> (i32, i32) {
    %c0_i32 = arith.constant 0 : i32
    %c0_i32_0 = arith.constant 0 : i32
    return %arg0, %c0_i32 : i32, i32
  }
  func.func @transform_1(%arg0: i32) -> (i32, i32) {
    %c0_i32 = arith.constant 0 : i32
    %c0_i32_0 = arith.constant 0 : i32
    %c0_i32_1 = arith.constant 0 : i32
    return %c0_i32, %c0_i32_0 : i32, i32
  }
  func.func @transform_2(%arg0: i32) -> (i32, i32) {
    %c0_i32 = arith.constant 0 : i32
    %c0_i32_0 = arith.constant 0 : i32
    %c0_i32_1 = arith.constant 0 : i32
    return %c0_i32, %c0_i32_0 : i32, i32
  }
  func.func @transform_3(%arg0: i32) -> (i32, i32) {
    %c0_i32 = arith.constant 0 : i32
    %c0_i32_0 = arith.constant 0 : i32
    %c0_i32_1 = arith.constant 0 : i32
    return %c0_i32, %c0_i32_0 : i32, i32
  }
  func.func @transform_4(%arg0: i32) -> (i32, i32) {
    %c0_i32 = arith.constant 0 : i32
    %c0_i32_0 = arith.constant 0 : i32
    return %arg0, %c0_i32 : i32, i32
  }
}

module attributes {stable_mosaic.version = 11 : i64} {
  func.func @_mm_bn_act_kernel(%arg0: i32, %arg1: memref<128x512xbf16, #tpu.memory_space<vmem>>, %arg2: memref<512x256xbf16, #tpu.memory_space<vmem>>, %arg3: memref<1x256xf32, #tpu.memory_space<vmem>>, %arg4: memref<1x256xf32, #tpu.memory_space<vmem>>, %arg5: memref<128x256xbf16, #tpu.memory_space<vmem>>) attributes {dimension_semantics = [#tpu.dimension_semantics<parallel>], iteration_bounds = array<i64: 2>, scalar_prefetch = 0 : i64, scratch_operands = 0 : i64, tpu.core_type = #tpu.core_type<tc>, window_params = [{transform_indices = @transform_0, window_bounds = array<i64: 128, 512>}, {pipeline_mode = #tpu.pipeline_mode<synchronous>, transform_indices = @transform_1, window_bounds = array<i64: 512, 256>}, {pipeline_mode = #tpu.pipeline_mode<synchronous>, transform_indices = @transform_2, window_bounds = array<i64: 1, 256>}, {pipeline_mode = #tpu.pipeline_mode<synchronous>, transform_indices = @transform_3, window_bounds = array<i64: 1, 256>}, {transform_indices = @transform_4, window_bounds = array<i64: 128, 256>}]} {
    %c0 = arith.constant 0 : index
    %c0_0 = arith.constant 0 : index
    %0 = vector.load %arg1[%c0, %c0_0] : memref<128x512xbf16, #tpu.memory_space<vmem>>, vector<128x512xbf16>
    %c0_1 = arith.constant 0 : index
    %c0_2 = arith.constant 0 : index
    %1 = vector.load %arg2[%c0_1, %c0_2] : memref<512x256xbf16, #tpu.memory_space<vmem>>, vector<512x256xbf16>
    %cst = arith.constant dense<0.000000e+00> : vector<128x256xf32>
    %2 = tpu.matmul %0, %1, %cst {dimension_numbers = #tpu.dot_dimension_numbers<[1], [0], [0], [1], [0, 0, 1, 1], [], []>} : vector<128x512xbf16>, vector<512x256xbf16>, vector<128x256xf32> -> vector<128x256xf32>
    %c0_3 = arith.constant 0 : index
    %c0_4 = arith.constant 0 : index
    %3 = vector.load %arg3[%c0_3, %c0_4] : memref<1x256xf32, #tpu.memory_space<vmem>>, vector<1x256xf32>
    %4 = vector.broadcast %3 : vector<1x256xf32> to vector<128x256xf32>
    %5 = arith.mulf %2, %4 : vector<128x256xf32>
    %c0_5 = arith.constant 0 : index
    %c0_6 = arith.constant 0 : index
    %6 = vector.load %arg4[%c0_5, %c0_6] : memref<1x256xf32, #tpu.memory_space<vmem>>, vector<1x256xf32>
    %7 = vector.broadcast %6 : vector<1x256xf32> to vector<128x256xf32>
    %8 = arith.addf %5, %7 : vector<128x256xf32>
    %cst_7 = arith.constant 0.000000e+00 : f32
    %9 = vector.broadcast %cst_7 : f32 to vector<128x256xf32>
    %10 = arith.maximumf %8, %9 : vector<128x256xf32>
    %11 = arith.truncf %10 : vector<128x256xf32> to vector<128x256xbf16>
    %c0_8 = arith.constant 0 : index
    %c0_9 = arith.constant 0 : index
    %12 = vector.load %arg5[%c0_8, %c0_9] : memref<128x256xbf16, #tpu.memory_space<vmem>>, vector<128x256xbf16>
    tpu.vector_store %arg5[%c0_8, %c0_9], %11 {strides = array<i32>} : memref<128x256xbf16, #tpu.memory_space<vmem>>, vector<128x256xbf16>,
    return
  }
  func.func @transform_0(%arg0: i32) -> (i32, i32) {
    %c0_i32 = arith.constant 0 : i32
    %c0_i32_0 = arith.constant 0 : i32
    return %arg0, %c0_i32 : i32, i32
  }
  func.func @transform_1(%arg0: i32) -> (i32, i32) {
    %c0_i32 = arith.constant 0 : i32
    %c0_i32_0 = arith.constant 0 : i32
    %c0_i32_1 = arith.constant 0 : i32
    return %c0_i32, %c0_i32_0 : i32, i32
  }
  func.func @transform_2(%arg0: i32) -> (i32, i32) {
    %c0_i32 = arith.constant 0 : i32
    %c0_i32_0 = arith.constant 0 : i32
    %c0_i32_1 = arith.constant 0 : i32
    return %c0_i32, %c0_i32_0 : i32, i32
  }
  func.func @transform_3(%arg0: i32) -> (i32, i32) {
    %c0_i32 = arith.constant 0 : i32
    %c0_i32_0 = arith.constant 0 : i32
    %c0_i32_1 = arith.constant 0 : i32
    return %c0_i32, %c0_i32_0 : i32, i32
  }
  func.func @transform_4(%arg0: i32) -> (i32, i32) {
    %c0_i32 = arith.constant 0 : i32
    %c0_i32_0 = arith.constant 0 : i32
    return %arg0, %c0_i32 : i32, i32
  }
}

module attributes {stable_mosaic.version = 11 : i64} {
  func.func @_mm_bn_relu_proj_kernel(%arg0: i32, %arg1: memref<512x1024xbf16, #tpu.memory_space<vmem>>, %arg2: memref<1024x128xbf16, #tpu.memory_space<vmem>>, %arg3: memref<1x128xf32, #tpu.memory_space<vmem>>, %arg4: memref<1x128xf32, #tpu.memory_space<vmem>>, %arg5: memref<128x4xbf16, #tpu.memory_space<vmem>>, %arg6: memref<1x4xf32, #tpu.memory_space<vmem>>, %arg7: memref<512x4xf32, #tpu.memory_space<vmem>>) attributes {dimension_semantics = [#tpu.dimension_semantics<parallel>], iteration_bounds = array<i64: 2>, scalar_prefetch = 0 : i64, scratch_operands = 0 : i64, tpu.core_type = #tpu.core_type<tc>, window_params = [{transform_indices = @transform_0, window_bounds = array<i64: 512, 1024>}, {pipeline_mode = #tpu.pipeline_mode<synchronous>, transform_indices = @transform_1, window_bounds = array<i64: 1024, 128>}, {pipeline_mode = #tpu.pipeline_mode<synchronous>, transform_indices = @transform_2, window_bounds = array<i64: 1, 128>}, {pipeline_mode = #tpu.pipeline_mode<synchronous>, transform_indices = @transform_3, window_bounds = array<i64: 1, 128>}, {pipeline_mode = #tpu.pipeline_mode<synchronous>, transform_indices = @transform_4, window_bounds = array<i64: 128, 4>}, {pipeline_mode = #tpu.pipeline_mode<synchronous>, transform_indices = @transform_5, window_bounds = array<i64: 1, 4>}, {transform_indices = @transform_6, window_bounds = array<i64: 512, 4>}]} {
    %c0 = arith.constant 0 : index
    %c0_0 = arith.constant 0 : index
    %0 = vector.load %arg1[%c0, %c0_0] : memref<512x1024xbf16, #tpu.memory_space<vmem>>, vector<512x1024xbf16>
    %c0_1 = arith.constant 0 : index
    %c0_2 = arith.constant 0 : index
    %1 = vector.load %arg2[%c0_1, %c0_2] : memref<1024x128xbf16, #tpu.memory_space<vmem>>, vector<1024x128xbf16>
    %cst = arith.constant dense<0.000000e+00> : vector<512x128xf32>
    %2 = tpu.matmul %0, %1, %cst {dimension_numbers = #tpu.dot_dimension_numbers<[1], [0], [0], [1], [0, 0, 1, 1], [], []>} : vector<512x1024xbf16>, vector<1024x128xbf16>, vector<512x128xf32> -> vector<512x128xf32>
    %c0_3 = arith.constant 0 : index
    %c0_4 = arith.constant 0 : index
    %3 = vector.load %arg3[%c0_3, %c0_4] : memref<1x128xf32, #tpu.memory_space<vmem>>, vector<1x128xf32>
    %4 = vector.broadcast %3 : vector<1x128xf32> to vector<512x128xf32>
    %5 = arith.mulf %2, %4 : vector<512x128xf32>
    %c0_5 = arith.constant 0 : index
    %c0_6 = arith.constant 0 : index
    %6 = vector.load %arg4[%c0_5, %c0_6] : memref<1x128xf32, #tpu.memory_space<vmem>>, vector<1x128xf32>
    %7 = vector.broadcast %6 : vector<1x128xf32> to vector<512x128xf32>
    %8 = arith.addf %5, %7 : vector<512x128xf32>
    %cst_7 = arith.constant 0.000000e+00 : f32
    %9 = vector.broadcast %cst_7 : f32 to vector<512x128xf32>
    %10 = arith.maximumf %8, %9 : vector<512x128xf32>
    %11 = arith.truncf %10 : vector<512x128xf32> to vector<512x128xbf16>
    %c0_8 = arith.constant 0 : index
    %c0_9 = arith.constant 0 : index
    %12 = vector.load %arg5[%c0_8, %c0_9] : memref<128x4xbf16, #tpu.memory_space<vmem>>, vector<128x4xbf16>
    %cst_10 = arith.constant dense<0.000000e+00> : vector<512x4xf32>
    %13 = tpu.matmul %11, %12, %cst_10 {dimension_numbers = #tpu.dot_dimension_numbers<[1], [0], [0], [1], [0, 0, 1, 1], [], []>} : vector<512x128xbf16>, vector<128x4xbf16>, vector<512x4xf32> -> vector<512x4xf32>
    %c0_11 = arith.constant 0 : index
    %c0_12 = arith.constant 0 : index
    %14 = vector.load %arg6[%c0_11, %c0_12] : memref<1x4xf32, #tpu.memory_space<vmem>>, vector<1x4xf32>
    %15 = vector.broadcast %14 : vector<1x4xf32> to vector<512x4xf32>
    %16 = arith.addf %13, %15 : vector<512x4xf32>
    %c0_13 = arith.constant 0 : index
    %c0_14 = arith.constant 0 : index
    %17 = vector.load %arg7[%c0_13, %c0_14] : memref<512x4xf32, #tpu.memory_space<vmem>>, vector<512x4xf32>
    tpu.vector_store %arg7[%c0_13, %c0_14], %16 {strides = array<i32>} : memref<512x4xf32, #tpu.memory_space<vmem>>, vector<512x4xf32>,
    return
  }
  func.func @transform_0(%arg0: i32) -> (i32, i32) {
    %c0_i32 = arith.constant 0 : i32
    %c0_i32_0 = arith.constant 0 : i32
    return %arg0, %c0_i32 : i32, i32
  }
  func.func @transform_1(%arg0: i32) -> (i32, i32) {
    %c0_i32 = arith.constant 0 : i32
    %c0_i32_0 = arith.constant 0 : i32
    %c0_i32_1 = arith.constant 0 : i32
    return %c0_i32, %c0_i32_0 : i32, i32
  }
  func.func @transform_2(%arg0: i32) -> (i32, i32) {
    %c0_i32 = arith.constant 0 : i32
    %c0_i32_0 = arith.constant 0 : i32
    %c0_i32_1 = arith.constant 0 : i32
    return %c0_i32, %c0_i32_0 : i32, i32
  }
  func.func @transform_3(%arg0: i32) -> (i32, i32) {
    %c0_i32 = arith.constant 0 : i32
    %c0_i32_0 = arith.constant 0 : i32
    %c0_i32_1 = arith.constant 0 : i32
    return %c0_i32, %c0_i32_0 : i32, i32
  }
  func.func @transform_4(%arg0: i32) -> (i32, i32) {
    %c0_i32 = arith.constant 0 : i32
    %c0_i32_0 = arith.constant 0 : i32
    %c0_i32_1 = arith.constant 0 : i32
    return %c0_i32, %c0_i32_0 : i32, i32
  }
  func.func @transform_5(%arg0: i32) -> (i32, i32) {
    %c0_i32 = arith.constant 0 : i32
    %c0_i32_0 = arith.constant 0 : i32
    %c0_i32_1 = arith.constant 0 : i32
    return %c0_i32, %c0_i32_0 : i32, i32
  }
  func.func @transform_6(%arg0: i32) -> (i32, i32) {
    %c0_i32 = arith.constant 0 : i32
    %c0_i32_0 = arith.constant 0 : i32
    return %arg0, %c0_i32 : i32, i32
  }
}

module attributes {stable_mosaic.version = 11 : i64} {
  func.func @_soft_argmax_kernel(%arg0: memref<2x32x64xf32, #tpu.memory_space<vmem>>, %arg1: memref<2x2xf32, #tpu.memory_space<vmem>>) attributes {dimension_semantics = [], scalar_prefetch = 0 : i64, scratch_operands = 0 : i64, tpu.core_type = #tpu.core_type<tc>} {
    %c0 = arith.constant 0 : index
    %c0_0 = arith.constant 0 : index
    %c0_1 = arith.constant 0 : index
    %0 = vector.load %arg0[%c0, %c0_0, %c0_1] : memref<2x32x64xf32, #tpu.memory_space<vmem>>, vector<2x32x64xf32>
    %cst = arith.constant dense<0xFF800000> : vector<2x32xf32>
    %1 = vector.multi_reduction <maximumf>, %0, %cst [2] : vector<2x32x64xf32> to vector<2x32xf32>
    %2 = vector.shape_cast %1 : vector<2x32xf32> to vector<2x32x1xf32>
    %cst_2 = arith.constant dense<0xFF800000> : vector<2x1xf32>
    %3 = vector.multi_reduction <maximumf>, %2, %cst_2 [1] : vector<2x32x1xf32> to vector<2x1xf32>
    %4 = vector.shape_cast %3 : vector<2x1xf32> to vector<2x1x1xf32>
    %5 = vector.broadcast %4 : vector<2x1x1xf32> to vector<2x32x64xf32>
    %6 = arith.subf %0, %5 : vector<2x32x64xf32>
    %7 = math.exp %6 : vector<2x32x64xf32>
    %cst_3 = arith.constant dense<0.000000e+00> : vector<2x32xf32>
    %8 = vector.multi_reduction <add>, %7, %cst_3 [2] : vector<2x32x64xf32> to vector<2x32xf32>
    %9 = vector.shape_cast %8 : vector<2x32xf32> to vector<2x32x1xf32>
    %cst_4 = arith.constant dense<0.000000e+00> : vector<2x1xf32>
    %10 = vector.multi_reduction <add>, %9, %cst_4 [1] : vector<2x32x1xf32> to vector<2x1xf32>
    %11 = vector.shape_cast %10 : vector<2x1xf32> to vector<2x1x1xf32>
    %12 = vector.broadcast %11 : vector<2x1x1xf32> to vector<2x32x64xf32>
    %13 = arith.divf %7, %12 : vector<2x32x64xf32>
    %14 = tpu.iota {dimensions = array<i32: 2>} : vector<1x1x64xi32>
    %15 = arith.sitofp %14 : vector<1x1x64xi32> to vector<1x1x64xf32>
    %cst_5 = arith.constant 0.0317460336 : f32
    %16 = vector.broadcast %cst_5 : f32 to vector<1x1x64xf32>
    %17 = arith.mulf %15, %16 : vector<1x1x64xf32>
    %cst_6 = arith.constant 1.000000e+00 : f32
    %18 = vector.broadcast %cst_6 : f32 to vector<1x1x64xf32>
    %19 = arith.subf %17, %18 : vector<1x1x64xf32>
    %20 = tpu.iota {dimensions = array<i32: 1>} : vector<1x32x1xi32>
    %21 = arith.sitofp %20 : vector<1x32x1xi32> to vector<1x32x1xf32>
    %cst_7 = arith.constant 0.0645161271 : f32
    %22 = vector.broadcast %cst_7 : f32 to vector<1x32x1xf32>
    %23 = arith.mulf %21, %22 : vector<1x32x1xf32>
    %cst_8 = arith.constant 1.000000e+00 : f32
    %24 = vector.broadcast %cst_8 : f32 to vector<1x32x1xf32>
    %25 = arith.subf %23, %24 : vector<1x32x1xf32>
    %26 = vector.broadcast %19 : vector<1x1x64xf32> to vector<2x32x64xf32>
    %27 = arith.mulf %13, %26 : vector<2x32x64xf32>
    %cst_9 = arith.constant dense<0.000000e+00> : vector<2x32xf32>
    %28 = vector.multi_reduction <add>, %27, %cst_9 [2] : vector<2x32x64xf32> to vector<2x32xf32>
    %29 = vector.shape_cast %28 : vector<2x32xf32> to vector<2x32x1xf32>
    %cst_10 = arith.constant dense<0.000000e+00> : vector<2x1xf32>
    %30 = vector.multi_reduction <add>, %29, %cst_10 [1] : vector<2x32x1xf32> to vector<2x1xf32>
    %31 = vector.shape_cast %30 : vector<2x1xf32> to vector<2x1x1xf32>
    %32 = vector.broadcast %25 : vector<1x32x1xf32> to vector<2x32x64xf32>
    %33 = arith.mulf %13, %32 : vector<2x32x64xf32>
    %cst_11 = arith.constant dense<0.000000e+00> : vector<2x32xf32>
    %34 = vector.multi_reduction <add>, %33, %cst_11 [2] : vector<2x32x64xf32> to vector<2x32xf32>
    %35 = vector.shape_cast %34 : vector<2x32xf32> to vector<2x32x1xf32>
    %cst_12 = arith.constant dense<0.000000e+00> : vector<2x1xf32>
    %36 = vector.multi_reduction <add>, %35, %cst_12 [1] : vector<2x32x1xf32> to vector<2x1xf32>
    %37 = vector.shape_cast %36 : vector<2x1xf32> to vector<2x1x1xf32>
    %38 = vector.shape_cast %31 : vector<2x1x1xf32> to vector<2x1xf32>
    %cst_13 = arith.constant 1.000000e+00 : f32
    %39 = vector.broadcast %cst_13 : f32 to vector<2x1xf32>
    %40 = arith.addf %38, %39 : vector<2x1xf32>
    %cst_14 = arith.constant 3.150000e+01 : f32
    %41 = vector.broadcast %cst_14 : f32 to vector<2x1xf32>
    %42 = arith.mulf %40, %41 : vector<2x1xf32>
    %c0_15 = arith.constant 0 : index
    %c0_16 = arith.constant 0 : index
    %43 = vector.load %arg1[%c0_15, %c0_16] : memref<2x2xf32, #tpu.memory_space<vmem>>, vector<2x1xf32>
    tpu.vector_store %arg1[%c0_15, %c0_16], %42 {strides = array<i32>} : memref<2x2xf32, #tpu.memory_space<vmem>>, vector<2x1xf32>,
    %44 = vector.shape_cast %37 : vector<2x1x1xf32> to vector<2x1xf32>
    %cst_17 = arith.constant 1.000000e+00 : f32
    %45 = vector.broadcast %cst_17 : f32 to vector<2x1xf32>
    %46 = arith.addf %44, %45 : vector<2x1xf32>
    %cst_18 = arith.constant 1.550000e+01 : f32
    %47 = vector.broadcast %cst_18 : f32 to vector<2x1xf32>
    %48 = arith.mulf %46, %47 : vector<2x1xf32>
    %c0_19 = arith.constant 0 : index
    %c1 = arith.constant 1 : index
    %49 = vector.load %arg1[%c0_19, %c1] : memref<2x2xf32, #tpu.memory_space<vmem>>, vector<2x1xf32>
    tpu.vector_store %arg1[%c0_19, %c1], %48 {strides = array<i32>} : memref<2x2xf32, #tpu.memory_space<vmem>>, vector<2x1xf32>,
    return
  }
}

</mosaic_0001>

<bundles_post_ra>
// kernel: planner_forward.8
= control target key start
LH: loop header
LB: loop body
LE: loop exit
PB: predicated region body
PF: predicated region fallthrough
CT: control target
= control target key end

     0   :  { %s1999_s15 = smov 0   ;;  %s2434_s0 = inlined_call_operand.vmem [shape: bf16[1024,256], index: 0, kind: input, shape index: {}]   ;;  %s2435_s1 = inlined_call_operand.vmem [shape: bf16[256,32], index: 1, kind: input, shape index: {}]   ;;  %s2436_s2 = inlined_call_operand.vmem [shape: f32[1,32], index: 2, kind: input, shape index: {}]   ;;  %s2437_s3 = inlined_call_operand.vmem [shape: f32[1,32], index: 3, kind: input, shape index: {}]   ;;  %s2438_s4 = inlined_call_operand.vmem [shape: bf16[1024,32], index: 4, kind: output, shape index: {}]  }
   0x1 LB: > { %s1589_s16 = sadd.s32 4294967295, %s1971_s15   ;;  %p1593_p0 = scmp.ge.s32.totalorder %s1971_s15, 1  ;;  %s1971_s15 = sphi %s1999_s15, %s14_s15  }
   0x2   : > { %p164_p1 = scmp.lt.s32.totalorder %s1971_s15, 3 }
   0x4   : > { %p165_p2 = pnand %p1593_p0, %p164_p1 }
   0x5   : > { %v1853_v0 = vld [vmem:[%s2435_s1] sm:$0xff] (!%p165_p2)   ;;  %v1973_v1 = vmov (!%p165_p2), 0   ;;  %s1594_s19 = sshll.u32 (!%p165_p2), %s1589_s16, 6  ;;  %v1854_v2 = vld [vmem:[%s2435_s1 + $0x8] sm:$0xff] (!%p165_p2)   ;;  %v1855_v3 = vld [vmem:[%s2435_s1 + $0x10] sm:$0xff] (!%p165_p2)   ;;  %vm1468_vm0 = vcmask (!%p165_p2), 257024  }
   0x6   : > { %168 = sbr.rel (%p165_p2) target bundleno = 413 (0x19d), region = 36  ;;  %717 = vmatprep.subr.bf16.mxu0 (!%p165_p2), %v1973_v1  ;;  %1812 = vmatprep.subr.bf16.mxu1 (!%p165_p2), %v1973_v1  ;;  %p192_p3 = scmp.lt.s32.totalorder (!%p165_p2), %s1594_s19, 127  ;;  %v1856_v4 = vld [vmem:[%s2435_s1 + $0x18] sm:$0xff] (!%p165_p2)   ;;  %v1857_v5 = vld [vmem:[%s2435_s1 + $0x20] sm:$0xff] (!%p165_p2)   ;;  %v1858_v7 = vld [vmem:[%s2435_s1 + $0x28] sm:$0xff] (!%p165_p2)  }
   0x7   : > { %718 = vmatpush1.bf16.msra.mxu0 (!%p165_p2), %v1853_v0  ;;  %1828 = vmatpush1.bf16.msra.mxu1 (!%p165_p2), %v1853_v0  ;;  %v1859_v9 = vld [vmem:[%s2435_s1 + $0x30] sm:$0xff] (!%p165_p2)   ;;  %v1860_v10 = vld [vmem:[%s2435_s1 + $0x38] sm:$0xff] (!%p165_p2)   ;;  %v1861_v11 = vld [vmem:[%s2435_s1 + $0x40] sm:$0xff] (!%p165_p2)  }
   0x8   : > { %719 = vmatprep.subr.bf16.mxu0 (!%p165_p2), %v1973_v1  ;;  %1813 = vmatprep.subr.bf16.mxu1 (!%p165_p2), %v1973_v1  ;;  %v1862_v12 = vld [vmem:[%s2435_s1 + $0x48] sm:$0xff] (!%p165_p2)   ;;  %v1863_v13 = vld [vmem:[%s2435_s1 + $0x50] sm:$0xff] (!%p165_p2)   ;;  %v1864_v14 = vld [vmem:[%s2435_s1 + $0x58] sm:$0xff] (!%p165_p2)  }
   0x9   : > { %v1865_v15 = vld [vmem:[%s2435_s1 + $0x60] sm:$0xff] (!%p165_p2)   ;;  %v1866_v16 = vld [vmem:[%s2435_s1 + $0x68] sm:$0xff] (!%p165_p2)   ;;  %v1867_v17 = vld [vmem:[%s2435_s1 + $0x70] sm:$0xff] (!%p165_p2)  }
   0xa   : > { %v1868_v18 = vld [vmem:[%s2435_s1 + $0x78] sm:$0xff] (!%p165_p2)  }
   0xb   : > { %720 = vmatpush1.bf16.msra.mxu0 (!%p165_p2), %v1854_v2  ;;  %1829 = vmatpush1.bf16.msra.mxu1 (!%p165_p2), %v1854_v2 }
   0xc   : > { %721 = vmatprep.subr.bf16.mxu0 (!%p165_p2), %v1973_v1  ;;  %1814 = vmatprep.subr.bf16.mxu1 (!%p165_p2), %v1973_v1 }
   0xd   : > { %s2440_s19 = smov (!%p192_p3, %s1594_s19), 127 }
   0xe   : > { %s1747_s26 = sshll.u32 %s2440_s19, 3 }
   0xf   : > { %722 = vmatpush1.bf16.msra.mxu0 %v1855_v3  ;;  %1830 = vmatpush1.bf16.msra.mxu1 %v1855_v3  ;;  %s2036_s5 = scalar_lea.vmem %s2434_s0, %s1747_s26 }
  0x10   : > { %723 = vmatprep.subr.bf16.mxu0 %v1973_v1  ;;  %1815 = vmatprep.subr.bf16.mxu1 %v1973_v1  ;;  %v1871_v6 = vld [vmem:[%s2036_s5 + $0x4] ss:$8 sps:$4 sm:$0xff]   ;;  %v1869_v19 = vld [vmem:[%s2036_s5] ss:$8 sps:$4 sm:$0xff]   ;;  %v1875_v21 = vld [vmem:[%s2036_s5 + $0x14] ss:$8 sps:$4 sm:$0xff]  }
  0x11   : > { %v1874_v8 = vld [vmem:[%s2036_s5 + $0x104] ss:$8 sps:$4 sm:$0xff]   ;;  %749 = vmatprep.mubr.bf16.mxu0 %v1871_v6  ;;  %v1872_v20 = vld [vmem:[%s2036_s5 + $0x100] ss:$8 sps:$4 sm:$0xff]   ;;  %v1877_v22 = vld [vmem:[%s2036_s5 + $0x114] ss:$8 sps:$4 sm:$0xff]  }
  0x12   : > { %877 = vmatprep.mubr.bf16.mxu1 %v1874_v8  ;;  %v1879_v23 = vld [vmem:[%s2036_s5 + $0x10] ss:$8 sps:$4 sm:$0xff]   ;;  %v1881_v25 = vld [vmem:[%s2036_s5 + $0x24] ss:$8 sps:$4 sm:$0xff]   ;;  %v1885_v27 = vld [vmem:[%s2036_s5 + $0x20] ss:$8 sps:$4 sm:$0xff]  }
  0x13   : > { %724 = vmatpush1.bf16.msra.mxu0 %v1856_v4  ;;  %1831 = vmatpush1.bf16.msra.mxu1 %v1856_v4  ;;  %v1880_v24 = vld [vmem:[%s2036_s5 + $0x110] ss:$8 sps:$4 sm:$0xff]   ;;  %v1883_v26 = vld [vmem:[%s2036_s5 + $0x124] ss:$8 sps:$4 sm:$0xff]   ;;  %v1886_v28 = vld [vmem:[%s2036_s5 + $0x120] ss:$8 sps:$4 sm:$0xff]  }
  0x14   : > { %725 = vmatprep.subr.bf16.mxu0 %v1973_v1  ;;  %1816 = vmatprep.subr.bf16.mxu1 %v1973_v1  ;;  %v1887_v29 = vld [vmem:[%s2036_s5 + $0x34] ss:$8 sps:$4 sm:$0xff]   ;;  %v1891_v31 = vld [vmem:[%s2036_s5 + $0x30] ss:$8 sps:$4 sm:$0xff]   ;;  %v1893_v33 = vld [vmem:[%s2036_s5 + $0x44] ss:$8 sps:$4 sm:$0xff]  }
  0x15   : > { %v1889_v30 = vld [vmem:[%s2036_s5 + $0x134] ss:$8 sps:$4 sm:$0xff]   ;;  %v1892_v32 = vld [vmem:[%s2036_s5 + $0x130] ss:$8 sps:$4 sm:$0xff]   ;;  %v1895_v34 = vld [vmem:[%s2036_s5 + $0x144] ss:$8 sps:$4 sm:$0xff]  }
  0x16   : > { %v1897_v35 = vld [vmem:[%s2036_s5 + $0x40] ss:$8 sps:$4 sm:$0xff]   ;;  %v1899_v37 = vld [vmem:[%s2036_s5 + $0x54] ss:$8 sps:$4 sm:$0xff]   ;;  %v1903_v39 = vld [vmem:[%s2036_s5 + $0x50] ss:$8 sps:$4 sm:$0xff]  }
  0x17   : > { %726 = vmatpush1.bf16.msra.mxu0 %v1857_v5  ;;  %1832 = vmatpush1.bf16.msra.mxu1 %v1857_v5  ;;  %v1898_v36 = vld [vmem:[%s2036_s5 + $0x140] ss:$8 sps:$4 sm:$0xff]   ;;  %v1901_v38 = vld [vmem:[%s2036_s5 + $0x154] ss:$8 sps:$4 sm:$0xff]   ;;  %v1904_v40 = vld [vmem:[%s2036_s5 + $0x150] ss:$8 sps:$4 sm:$0xff]  }
  0x18   : > { %727 = vmatprep.subr.bf16.mxu0 %v1973_v1  ;;  %1817 = vmatprep.subr.bf16.mxu1 %v1973_v1  ;;  %v1905_v41 = vld [vmem:[%s2036_s5 + $0x64] ss:$8 sps:$4 sm:$0xff]   ;;  %v1909_v43 = vld [vmem:[%s2036_s5 + $0x60] ss:$8 sps:$4 sm:$0xff]   ;;  %v1911_v45 = vld [vmem:[%s2036_s5 + $0x74] ss:$8 sps:$4 sm:$0xff]  }
  0x19   : > { %v1907_v42 = vld [vmem:[%s2036_s5 + $0x164] ss:$8 sps:$4 sm:$0xff]   ;;  %v1910_v44 = vld [vmem:[%s2036_s5 + $0x160] ss:$8 sps:$4 sm:$0xff]   ;;  %v1913_v46 = vld [vmem:[%s2036_s5 + $0x174] ss:$8 sps:$4 sm:$0xff]  }
  0x1a   : > { %v1915_v47 = vld [vmem:[%s2036_s5 + $0x70] ss:$8 sps:$4 sm:$0xff]   ;;  %v1917_v49 = vld [vmem:[%s2036_s5 + $0x84] ss:$8 sps:$4 sm:$0xff]   ;;  %v1921_v51 = vld [vmem:[%s2036_s5 + $0x80] ss:$8 sps:$4 sm:$0xff]  }
  0x1b   : > { %728 = vmatpush1.bf16.msra.mxu0 %v1858_v7  ;;  %1833 = vmatpush1.bf16.msra.mxu1 %v1858_v7  ;;  %v1916_v48 = vld [vmem:[%s2036_s5 + $0x170] ss:$8 sps:$4 sm:$0xff]   ;;  %v1919_v50 = vld [vmem:[%s2036_s5 + $0x184] ss:$8 sps:$4 sm:$0xff]   ;;  %v1922_v52 = vld [vmem:[%s2036_s5 + $0x180] ss:$8 sps:$4 sm:$0xff]  }
  0x1c   : > { %729 = vmatprep.subr.bf16.mxu0 %v1973_v1  ;;  %1818 = vmatprep.subr.bf16.mxu1 %v1973_v1  ;;  %v1923_v53 = vld [vmem:[%s2036_s5 + $0x94] ss:$8 sps:$4 sm:$0xff]   ;;  %v1927_v55 = vld [vmem:[%s2036_s5 + $0x90] ss:$8 sps:$4 sm:$0xff]   ;;  %v1929_v57 = vld [vmem:[%s2036_s5 + $0xa4] ss:$8 sps:$4 sm:$0xff]  }
  0x1d   : > { %v1925_v54 = vld [vmem:[%s2036_s5 + $0x194] ss:$8 sps:$4 sm:$0xff]   ;;  %v1928_v56 = vld [vmem:[%s2036_s5 + $0x190] ss:$8 sps:$4 sm:$0xff]   ;;  %v1931_v58 = vld [vmem:[%s2036_s5 + $0x1a4] ss:$8 sps:$4 sm:$0xff]  }
  0x1e   : > { %v1933_v59 = vld [vmem:[%s2036_s5 + $0xa0] ss:$8 sps:$4 sm:$0xff]   ;;  %v1935_v61 = vld [vmem:[%s2036_s5 + $0xb4] ss:$8 sps:$4 sm:$0xff]   ;;  %v1939_v63 = vld [vmem:[%s2036_s5 + $0xb0] ss:$8 sps:$4 sm:$0xff]  }
  0x1f   : > { %730 = vmatpush1.bf16.msra.mxu0 %v1859_v9  ;;  %1834 = vmatpush1.bf16.msra.mxu1 %v1859_v9  ;;  %v1934_v60 = vld [vmem:[%s2036_s5 + $0x1a0] ss:$8 sps:$4 sm:$0xff]   ;;  %v1937_v62 = vld [vmem:[%s2036_s5 + $0x1b4] ss:$8 sps:$4 sm:$0xff]   ;;  %v1940_v0 = vld [vmem:[%s2036_s5 + $0x1b0] ss:$8 sps:$4 sm:$0xff]  }
  0x20   : > { %731 = vmatprep.subr.bf16.mxu0 %v1973_v1  ;;  %1819 = vmatprep.subr.bf16.mxu1 %v1973_v1  ;;  %v1943_v2 = vld [vmem:[%s2036_s5 + $0x1c4] ss:$8 sps:$4 sm:$0xff]   ;;  %v1945_v3 = vld [vmem:[%s2036_s5 + $0xc0] ss:$8 sps:$4 sm:$0xff]   ;;  %v1947_v5 = vld [vmem:[%s2036_s5 + $0xd4] ss:$8 sps:$4 sm:$0xff]  }
  0x21   : > { %v1946_v4 = vld [vmem:[%s2036_s5 + $0x1c0] ss:$8 sps:$4 sm:$0xff]   ;;  %v1949_v6 = vld [vmem:[%s2036_s5 + $0x1d4] ss:$8 sps:$4 sm:$0xff]   ;;  %v1951_v7 = vld [vmem:[%s2036_s5 + $0xd0] ss:$8 sps:$4 sm:$0xff]  }
  0x22   : > { %v1952_v8 = vld [vmem:[%s2036_s5 + $0x1d0] ss:$8 sps:$4 sm:$0xff]   ;;  %v1953_v9 = vld [vmem:[%s2036_s5 + $0xe4] ss:$8 sps:$4 sm:$0xff]  }
  0x23   : > { %732 = vmatpush1.bf16.msra.mxu0 %v1860_v10  ;;  %1835 = vmatpush1.bf16.msra.mxu1 %v1860_v10  ;;  %v1955_v10 = vld [vmem:[%s2036_s5 + $0x1e4] ss:$8 sps:$4 sm:$0xff]  }
  0x24   : > { %733 = vmatprep.subr.bf16.mxu0 %v1973_v1  ;;  %1820 = vmatprep.subr.bf16.mxu1 %v1973_v1 }
  0x27   : > { %734 = vmatpush1.bf16.msra.mxu0 %v1861_v11  ;;  %1836 = vmatpush1.bf16.msra.mxu1 %v1861_v11  ;;  %v1957_v11 = vld [vmem:[%s2036_s5 + $0xe0] ss:$8 sps:$4 sm:$0xff]  }
  0x28   : > { %735 = vmatprep.subr.bf16.mxu0 %v1973_v1  ;;  %1821 = vmatprep.subr.bf16.mxu1 %v1973_v1 }
  0x2b   : > { %736 = vmatpush1.bf16.msra.mxu0 %v1862_v12  ;;  %1837 = vmatpush1.bf16.msra.mxu1 %v1862_v12  ;;  %v1958_v12 = vld [vmem:[%s2036_s5 + $0x1e0] ss:$8 sps:$4 sm:$0xff]  }
  0x2c   : > { %737 = vmatprep.subr.bf16.mxu0 %v1973_v1  ;;  %1822 = vmatprep.subr.bf16.mxu1 %v1973_v1 }
  0x2f   : > { %738 = vmatpush1.bf16.msra.mxu0 %v1863_v13  ;;  %1838 = vmatpush1.bf16.msra.mxu1 %v1863_v13  ;;  %v1959_v13 = vld [vmem:[%s2036_s5 + $0xf4] ss:$8 sps:$4 sm:$0xff]  }
  0x30   : > { %739 = vmatprep.subr.bf16.mxu0 %v1973_v1  ;;  %1823 = vmatprep.subr.bf16.mxu1 %v1973_v1 }
  0x33   : > { %740 = vmatpush1.bf16.msra.mxu0 %v1864_v14  ;;  %1839 = vmatpush1.bf16.msra.mxu1 %v1864_v14  ;;  %v1961_v14 = vld [vmem:[%s2036_s5 + $0x1f4] ss:$8 sps:$4 sm:$0xff]  }
  0x34   : > { %741 = vmatprep.subr.bf16.mxu0 %v1973_v1  ;;  %1824 = vmatprep.subr.bf16.mxu1 %v1973_v1 }
  0x37   : > { %742 = vmatpush1.bf16.msra.mxu0 %v1865_v15  ;;  %1840 = vmatpush1.bf16.msra.mxu1 %v1865_v15  ;;  %v1963_v15 = vld [vmem:[%s2036_s5 + $0xf0] ss:$8 sps:$4 sm:$0xff]  }
  0x38   : > { %743 = vmatprep.subr.bf16.mxu0 %v1973_v1  ;;  %1825 = vmatprep.subr.bf16.mxu1 %v1973_v1 }
  0x3b   : > { %744 = vmatpush1.bf16.msra.mxu0 %v1866_v16  ;;  %1841 = vmatpush1.bf16.msra.mxu1 %v1866_v16  ;;  %v1964_v16 = vld [vmem:[%s2036_s5 + $0x1f0] ss:$8 sps:$4 sm:$0xff]  }
  0x3c   : > { %745 = vmatprep.subr.bf16.mxu0 %v1973_v1  ;;  %1826 = vmatprep.subr.bf16.mxu1 %v1973_v1 }
  0x3f   : > { %746 = vmatpush1.bf16.msra.mxu0 %v1867_v17  ;;  %1842 = vmatpush1.bf16.msra.mxu1 %v1867_v17  ;;  %v2162_v17 = vld [vmem:[%s2436_s2] ss:$0 sm:$0xff] }
  0x40   : > { %747 = vmatprep.subr.bf16.mxu0 %v1973_v1  ;;  %1827 = vmatprep.subr.bf16.mxu1 %v1973_v1  ;;  %v1941_v1 = vld [vmem:[%s2036_s5 + $0xc4] ss:$8 sps:$4 sm:$0xff]   ;;  %s1598_s5 = sshll.u32 %s2440_s19, 2 }
  0x41   : > { %s2181_s19 = scalar_lea.vmem %s2438_s4, %s1598_s5 }
  0x43   : > { %748 = vmatpush1.bf16.msra.mxu0 %v1868_v18  ;;  %1843 = vmatpush1.bf16.msra.mxu1 %v1868_v18 }
  0x46   : > { %750 = vmatmul.mubr.bf16.vlgmr.msra.gmra.mrb[0].mxu0 %v1869_v19  ;;  %878 = vmatmul.mubr.bf16.vlgmr.msra.gmra.mrb[0].mxu1 %v1872_v20  ;;  %v2167_v19 = vld [vmem:[%s2437_s3] ss:$0 sm:$0xff] }
  0x47   : > { %757 = vmatprep.mubr.bf16.mxu0 %v1875_v21  ;;  %885 = vmatprep.mubr.bf16.mxu1 %v1877_v22 }
  0x4e   : > { %758 = vmatmul.mubr.bf16.gmra.mrb[4].mxu0 %v1879_v23  ;;  %886 = vmatmul.mubr.bf16.gmra.mrb[4].mxu1 %v1880_v24 }
  0x4f   : > { %765 = vmatprep.mubr.bf16.mxu0 %v1881_v25  ;;  %893 = vmatprep.mubr.bf16.mxu1 %v1883_v26 }
  0x56   : > { %766 = vmatmul.mubr.bf16.gmra.mrb[8].mxu0 %v1885_v27  ;;  %894 = vmatmul.mubr.bf16.gmra.mrb[8].mxu1 %v1886_v28 }
  0x57   : > { %773 = vmatprep.mubr.bf16.mxu0 %v1887_v29  ;;  %901 = vmatprep.mubr.bf16.mxu1 %v1889_v30 }
  0x5e   : > { %774 = vmatmul.mubr.bf16.gmra.mrb[12].mxu0 %v1891_v31  ;;  %902 = vmatmul.mubr.bf16.gmra.mrb[12].mxu1 %v1892_v32 }
  0x5f   : > { %781 = vmatprep.mubr.bf16.mxu0 %v1893_v33  ;;  %909 = vmatprep.mubr.bf16.mxu1 %v1895_v34 }
  0x66   : > { %782 = vmatmul.mubr.bf16.gmra.mrb[16].mxu0 %v1897_v35  ;;  %910 = vmatmul.mubr.bf16.gmra.mrb[16].mxu1 %v1898_v36 }
  0x67   : > { %789 = vmatprep.mubr.bf16.mxu0 %v1899_v37  ;;  %917 = vmatprep.mubr.bf16.mxu1 %v1901_v38 }
  0x6e   : > { %790 = vmatmul.mubr.bf16.gmra.mrb[20].mxu0 %v1903_v39  ;;  %918 = vmatmul.mubr.bf16.gmra.mrb[20].mxu1 %v1904_v40 }
  0x6f   : > { %797 = vmatprep.mubr.bf16.mxu0 %v1905_v41  ;;  %925 = vmatprep.mubr.bf16.mxu1 %v1907_v42 }
  0x76   : > { %798 = vmatmul.mubr.bf16.gmra.mrb[24].mxu0 %v1909_v43  ;;  %926 = vmatmul.mubr.bf16.gmra.mrb[24].mxu1 %v1910_v44 }
  0x77   : > { %805 = vmatprep.mubr.bf16.mxu0 %v1911_v45  ;;  %933 = vmatprep.mubr.bf16.mxu1 %v1913_v46 }
  0x7e   : > { %806 = vmatmul.mubr.bf16.gmra.mrb[28].mxu0 %v1915_v47  ;;  %934 = vmatmul.mubr.bf16.gmra.mrb[28].mxu1 %v1916_v48 }
  0x7f   : > { %813 = vmatprep.mubr.bf16.mxu0 %v1917_v49  ;;  %941 = vmatprep.mubr.bf16.mxu1 %v1919_v50 }
  0x86   : > { %814 = vmatmul.mubr.bf16.gmra.mrb[32].mxu0 %v1921_v51  ;;  %942 = vmatmul.mubr.bf16.gmra.mrb[32].mxu1 %v1922_v52 }
  0x87   : > { %821 = vmatprep.mubr.bf16.mxu0 %v1923_v53  ;;  %949 = vmatprep.mubr.bf16.mxu1 %v1925_v54 }
  0x8e   : > { %822 = vmatmul.mubr.bf16.gmra.mrb[36].mxu0 %v1927_v55  ;;  %950 = vmatmul.mubr.bf16.gmra.mrb[36].mxu1 %v1928_v56 }
  0x8f   : > { %829 = vmatprep.mubr.bf16.mxu0 %v1929_v57  ;;  %957 = vmatprep.mubr.bf16.mxu1 %v1931_v58 }
  0x96   : > { %830 = vmatmul.mubr.bf16.gmra.mrb[40].mxu0 %v1933_v59  ;;  %958 = vmatmul.mubr.bf16.gmra.mrb[40].mxu1 %v1934_v60 }
  0x97   : > { %837 = vmatprep.mubr.bf16.mxu0 %v1935_v61  ;;  %965 = vmatprep.mubr.bf16.mxu1 %v1937_v62 }
  0x9e   : > { %838 = vmatmul.mubr.bf16.gmra.mrb[44].mxu0 %v1939_v63  ;;  %966 = vmatmul.mubr.bf16.gmra.mrb[44].mxu1 %v1940_v0 }
  0x9f   : > { %845 = vmatprep.mubr.bf16.mxu0 %v1941_v1  ;;  %973 = vmatprep.mubr.bf16.mxu1 %v1943_v2 }
  0xa6   : > { %846 = vmatmul.mubr.bf16.gmra.mrb[48].mxu0 %v1945_v3  ;;  %974 = vmatmul.mubr.bf16.gmra.mrb[48].mxu1 %v1946_v4 }
  0xa7   : > { %853 = vmatprep.mubr.bf16.mxu0 %v1947_v5  ;;  %981 = vmatprep.mubr.bf16.mxu1 %v1949_v6 }
  0xae   : > { %854 = vmatmul.mubr.bf16.gmra.mrb[52].mxu0 %v1951_v7  ;;  %982 = vmatmul.mubr.bf16.gmra.mrb[52].mxu1 %v1952_v8 }
  0xaf   : > { %861 = vmatprep.mubr.bf16.mxu0 %v1953_v9  ;;  %989 = vmatprep.mubr.bf16.mxu1 %v1955_v10 }
  0xb6   : > { %862 = vmatmul.mubr.bf16.gmra.mrb[56].mxu0 %v1957_v11  ;;  %990 = vmatmul.mubr.bf16.gmra.mrb[56].mxu1 %v1958_v12 }
  0xb7   : > { %869 = vmatprep.mubr.bf16.mxu0 %v1959_v13  ;;  %997 = vmatprep.mubr.bf16.mxu1 %v1961_v14 }
  0xbe   : > { %870 = vmatmul.mubr.bf16.gmra.mrb[60].mxu0 %v1963_v15  ;;  %998 = vmatmul.mubr.bf16.gmra.mrb[60].mxu1 %v1964_v16 }
 0x119   : > { %v751_v18 = vpop.f32.mrb[0].mxu0  ;;  %v879_v20 = vpop.f32.mrb[0].mxu1 }
 0x11a   : > { %v1013_v21 = vmul.f32 %v2162_v17, %v751_v18  ;;  %v1045_v22 = vmul.f32 %v2162_v17, %v879_v20  ;;  %v753_v23 = vpop.f32.mrb[1].mxu0  ;;  %v881_v24 = vpop.f32.mrb[1].mxu1 }
 0x11b   : > { %v754_v25 = vpop.f32.mrb[2].mxu0  ;;  %v882_v26 = vpop.f32.mrb[2].mxu1 }
 0x11c   : > { %v1084_v27 = vadd.f32 %v2167_v19, %v1013_v21  ;;  %v1116_v28 = vadd.f32 %v2167_v19, %v1045_v22  ;;  %v1014_v29 = vmul.f32 %v2162_v17, %v754_v25  ;;  %v1046_v30 = vmul.f32 %v2162_v17, %v882_v26  ;;  %v756_v31 = vpop.f32.mrb[3].mxu0  ;;  %v884_v32 = vpop.f32.mrb[3].mxu1 }
 0x11e   : > { %v1148_v33 = vmax.f32 %v1084_v27, 0.0  ;;  %v1180_v34 = vmax.f32 %v1116_v28, 0.0  ;;  %v1085_v35 = vadd.f32 %v2167_v19, %v1014_v29  ;;  %v1117_v36 = vadd.f32 %v2167_v19, %v1046_v30 }
 0x120   : > { %v1748_v37 = vpack.c.bf16 %v1148_v33, %v1148_v33  ;;  %v1780_v38 = vpack.c.bf16 %v1180_v34, %v1180_v34  ;;  %v1149_v39 = vmax.f32 %v1085_v35, 0.0  ;;  %v1181_v40 = vmax.f32 %v1117_v36, 0.0 }
 0x121   : > { %v759_v41 = vpop.f32.mrb[4].mxu0  ;;  %v887_v42 = vpop.f32.mrb[4].mxu1 }
 0x122   : > { %1469 = vst.msk [vmem:[%s2181_s19] sm:$0xf] %vm1468_vm0, %v1748_v37  ;;  %1501 = vst.msk [vmem:[%s2181_s19 + $0x80] sm:$0xf] %vm1468_vm0, %v1780_v38  ;;  %v1749_v43 = vpack.c.bf16 %v1149_v39, %v1149_v39  ;;  %v1781_v44 = vpack.c.bf16 %v1181_v40, %v1181_v40  ;;  %v1015_v45 = vmul.f32 %v2162_v17, %v759_v41  ;;  %v761_v47 = vpop.f32.mrb[5].mxu0  ;;  %v889_v48 = vpop.f32.mrb[5].mxu1 }
 0x123   : > { %v1047_v46 = vmul.f32 %v2162_v17, %v887_v42  ;;  %v762_v49 = vpop.f32.mrb[6].mxu0  ;;  %v890_v50 = vpop.f32.mrb[6].mxu1 }
 0x124   : > { %1470 = vst.msk [vmem:[%s2181_s19 + $0x4] sm:$0xf] %vm1468_vm0, %v1749_v43  ;;  %1502 = vst.msk [vmem:[%s2181_s19 + $0x84] sm:$0xf] %vm1468_vm0, %v1781_v44  ;;  %v1086_v51 = vadd.f32 %v2167_v19, %v1015_v45  ;;  %v1016_v53 = vmul.f32 %v2162_v17, %v762_v49  ;;  %v1048_v54 = vmul.f32 %v2162_v17, %v890_v50  ;;  %v764_v55 = vpop.f32.mrb[7].mxu0  ;;  %v892_v56 = vpop.f32.mrb[7].mxu1 }
 0x125   : > { %v1118_v52 = vadd.f32 %v2167_v19, %v1047_v46 }
 0x126   : > { %v1150_v57 = vmax.f32 %v1086_v51, 0.0  ;;  %v1087_v59 = vadd.f32 %v2167_v19, %v1016_v53  ;;  %v1119_v60 = vadd.f32 %v2167_v19, %v1048_v54 }
 0x127   : > { %v1182_v58 = vmax.f32 %v1118_v52, 0.0 }
 0x128   : > { %v1750_v61 = vpack.c.bf16 %v1150_v57, %v1150_v57  ;;  %v1151_v63 = vmax.f32 %v1087_v59, 0.0  ;;  %v1183_v0 = vmax.f32 %v1119_v60, 0.0 }
 0x129   : > { %v1782_v62 = vpack.c.bf16 %v1182_v58, %v1182_v58  ;;  %v767_v1 = vpop.f32.mrb[8].mxu0  ;;  %v895_v2 = vpop.f32.mrb[8].mxu1 }
 0x12a   : > { %1471 = vst.msk [vmem:[%s2181_s19 + $0x8] sm:$0xf] %vm1468_vm0, %v1750_v61  ;;  %v1751_v3 = vpack.c.bf16 %v1151_v63, %v1151_v63  ;;  %v1783_v4 = vpack.c.bf16 %v1183_v0, %v1183_v0  ;;  %v1017_v5 = vmul.f32 %v2162_v17, %v767_v1  ;;  %v1049_v6 = vmul.f32 %v2162_v17, %v895_v2  ;;  %v769_v7 = vpop.f32.mrb[9].mxu0  ;;  %v897_v8 = vpop.f32.mrb[9].mxu1 }
 0x12b   : > { %1503 = vst.msk [vmem:[%s2181_s19 + $0x88] sm:$0xf] %vm1468_vm0, %v1782_v62  ;;  %v770_v9 = vpop.f32.mrb[10].mxu0  ;;  %v898_v10 = vpop.f32.mrb[10].mxu1 }
 0x12c   : > { %1472 = vst.msk [vmem:[%s2181_s19 + $0xc] sm:$0xf] %vm1468_vm0, %v1751_v3  ;;  %1504 = vst.msk [vmem:[%s2181_s19 + $0x8c] sm:$0xf] %vm1468_vm0, %v1783_v4  ;;  %v1088_v11 = vadd.f32 %v2167_v19, %v1017_v5  ;;  %v1120_v12 = vadd.f32 %v2167_v19, %v1049_v6  ;;  %v1018_v13 = vmul.f32 %v2162_v17, %v770_v9  ;;  %v772_v15 = vpop.f32.mrb[11].mxu0  ;;  %v900_v16 = vpop.f32.mrb[11].mxu1 }
 0x12d   : > { %v1050_v14 = vmul.f32 %v2162_v17, %v898_v10 }
 0x12e   : > { %v1152_v18 = vmax.f32 %v1088_v11, 0.0  ;;  %v1184_v20 = vmax.f32 %v1120_v12, 0.0  ;;  %v1089_v21 = vadd.f32 %v2167_v19, %v1018_v13 }
 0x12f   : > { %v1121_v22 = vadd.f32 %v2167_v19, %v1050_v14 }
 0x130   : > { %v1752_v23 = vpack.c.bf16 %v1152_v18, %v1152_v18  ;;  %v1784_v24 = vpack.c.bf16 %v1184_v20, %v1184_v20  ;;  %v1153_v25 = vmax.f32 %v1089_v21, 0.0 }
 0x131   : > { %v1185_v26 = vmax.f32 %v1121_v22, 0.0  ;;  %v775_v27 = vpop.f32.mrb[12].mxu0  ;;  %v903_v28 = vpop.f32.mrb[12].mxu1 }
 0x132   : > { %1473 = vst.msk [vmem:[%s2181_s19 + $0x10] sm:$0xf] %vm1468_vm0, %v1752_v23  ;;  %1505 = vst.msk [vmem:[%s2181_s19 + $0x90] sm:$0xf] %vm1468_vm0, %v1784_v24  ;;  %v1753_v29 = vpack.c.bf16 %v1153_v25, %v1153_v25  ;;  %v1019_v31 = vmul.f32 %v2162_v17, %v775_v27  ;;  %v1051_v32 = vmul.f32 %v2162_v17, %v903_v28  ;;  %v777_v33 = vpop.f32.mrb[13].mxu0  ;;  %v905_v34 = vpop.f32.mrb[13].mxu1 }
 0x133   : > { %v1785_v30 = vpack.c.bf16 %v1185_v26, %v1185_v26  ;;  %v778_v35 = vpop.f32.mrb[14].mxu0  ;;  %v906_v36 = vpop.f32.mrb[14].mxu1 }
 0x134   : > { %1474 = vst.msk [vmem:[%s2181_s19 + $0x14] sm:$0xf] %vm1468_vm0, %v1753_v29  ;;  %v1090_v37 = vadd.f32 %v2167_v19, %v1019_v31  ;;  %v1122_v38 = vadd.f32 %v2167_v19, %v1051_v32  ;;  %v1020_v39 = vmul.f32 %v2162_v17, %v778_v35  ;;  %v1052_v40 = vmul.f32 %v2162_v17, %v906_v36  ;;  %v780_v41 = vpop.f32.mrb[15].mxu0  ;;  %v908_v42 = vpop.f32.mrb[15].mxu1 }
 0x135   : > { %1506 = vst.msk [vmem:[%s2181_s19 + $0x94] sm:$0xf] %vm1468_vm0, %v1785_v30 }
 0x136   : > { %v1154_v43 = vmax.f32 %v1090_v37, 0.0  ;;  %v1186_v44 = vmax.f32 %v1122_v38, 0.0  ;;  %v1091_v45 = vadd.f32 %v2167_v19, %v1020_v39  ;;  %v1123_v46 = vadd.f32 %v2167_v19, %v1052_v40 }
 0x138   : > { %v1754_v47 = vpack.c.bf16 %v1154_v43, %v1154_v43  ;;  %v1786_v48 = vpack.c.bf16 %v1186_v44, %v1186_v44  ;;  %v1155_v49 = vmax.f32 %v1091_v45, 0.0  ;;  %v1187_v50 = vmax.f32 %v1123_v46, 0.0 }
 0x139   : > { %v783_v51 = vpop.f32.mrb[16].mxu0  ;;  %v911_v52 = vpop.f32.mrb[16].mxu1 }
 0x13a   : > { %1475 = vst.msk [vmem:[%s2181_s19 + $0x18] sm:$0xf] %vm1468_vm0, %v1754_v47  ;;  %1507 = vst.msk [vmem:[%s2181_s19 + $0x98] sm:$0xf] %vm1468_vm0, %v1786_v48  ;;  %v1755_v53 = vpack.c.bf16 %v1155_v49, %v1155_v49  ;;  %v1787_v54 = vpack.c.bf16 %v1187_v50, %v1187_v50  ;;  %v1021_v55 = vmul.f32 %v2162_v17, %v783_v51  ;;  %v785_v57 = vpop.f32.mrb[17].mxu0  ;;  %v913_v58 = vpop.f32.mrb[17].mxu1 }
 0x13b   : > { %v1053_v56 = vmul.f32 %v2162_v17, %v911_v52  ;;  %v786_v59 = vpop.f32.mrb[18].mxu0  ;;  %v914_v60 = vpop.f32.mrb[18].mxu1 }
 0x13c   : > { %1476 = vst.msk [vmem:[%s2181_s19 + $0x1c] sm:$0xf] %vm1468_vm0, %v1755_v53  ;;  %1508 = vst.msk [vmem:[%s2181_s19 + $0x9c] sm:$0xf] %vm1468_vm0, %v1787_v54  ;;  %v1092_v61 = vadd.f32 %v2167_v19, %v1021_v55  ;;  %v1022_v63 = vmul.f32 %v2162_v17, %v786_v59  ;;  %v1054_v0 = vmul.f32 %v2162_v17, %v914_v60  ;;  %v788_v1 = vpop.f32.mrb[19].mxu0  ;;  %v916_v2 = vpop.f32.mrb[19].mxu1 }
 0x13d   : > { %v1124_v62 = vadd.f32 %v2167_v19, %v1053_v56 }
 0x13e   : > { %v1156_v3 = vmax.f32 %v1092_v61, 0.0  ;;  %v1093_v5 = vadd.f32 %v2167_v19, %v1022_v63  ;;  %v1125_v6 = vadd.f32 %v2167_v19, %v1054_v0 }
 0x13f   : > { %v1188_v4 = vmax.f32 %v1124_v62, 0.0 }
 0x140   : > { %v1756_v7 = vpack.c.bf16 %v1156_v3, %v1156_v3  ;;  %v1157_v9 = vmax.f32 %v1093_v5, 0.0  ;;  %v1189_v10 = vmax.f32 %v1125_v6, 0.0 }
 0x141   : > { %v1788_v8 = vpack.c.bf16 %v1188_v4, %v1188_v4  ;;  %v791_v11 = vpop.f32.mrb[20].mxu0  ;;  %v919_v12 = vpop.f32.mrb[20].mxu1 }
 0x142   : > { %1477 = vst.msk [vmem:[%s2181_s19 + $0x20] sm:$0xf] %vm1468_vm0, %v1756_v7  ;;  %v1757_v13 = vpack.c.bf16 %v1157_v9, %v1157_v9  ;;  %v1789_v14 = vpack.c.bf16 %v1189_v10, %v1189_v10  ;;  %v1023_v15 = vmul.f32 %v2162_v17, %v791_v11  ;;  %v1055_v16 = vmul.f32 %v2162_v17, %v919_v12  ;;  %v793_v18 = vpop.f32.mrb[21].mxu0  ;;  %v921_v20 = vpop.f32.mrb[21].mxu1 }
 0x143   : > { %1509 = vst.msk [vmem:[%s2181_s19 + $0xa0] sm:$0xf] %vm1468_vm0, %v1788_v8  ;;  %v794_v21 = vpop.f32.mrb[22].mxu0  ;;  %v922_v22 = vpop.f32.mrb[22].mxu1 }
 0x144   : > { %1478 = vst.msk [vmem:[%s2181_s19 + $0x24] sm:$0xf] %vm1468_vm0, %v1757_v13  ;;  %1510 = vst.msk [vmem:[%s2181_s19 + $0xa4] sm:$0xf] %vm1468_vm0, %v1789_v14  ;;  %v1094_v23 = vadd.f32 %v2167_v19, %v1023_v15  ;;  %v1126_v24 = vadd.f32 %v2167_v19, %v1055_v16  ;;  %v1024_v25 = vmul.f32 %v2162_v17, %v794_v21  ;;  %v796_v27 = vpop.f32.mrb[23].mxu0  ;;  %v924_v28 = vpop.f32.mrb[23].mxu1 }
 0x145   : > { %v1056_v26 = vmul.f32 %v2162_v17, %v922_v22 }
 0x146   : > { %v1158_v29 = vmax.f32 %v1094_v23, 0.0  ;;  %v1190_v30 = vmax.f32 %v1126_v24, 0.0  ;;  %v1095_v31 = vadd.f32 %v2167_v19, %v1024_v25 }
 0x147   : > { %v1127_v32 = vadd.f32 %v2167_v19, %v1056_v26 }
 0x148   : > { %v1758_v33 = vpack.c.bf16 %v1158_v29, %v1158_v29  ;;  %v1790_v34 = vpack.c.bf16 %v1190_v30, %v1190_v30  ;;  %v1159_v35 = vmax.f32 %v1095_v31, 0.0 }
 0x149   : > { %v1191_v36 = vmax.f32 %v1127_v32, 0.0  ;;  %v799_v37 = vpop.f32.mrb[24].mxu0  ;;  %v927_v38 = vpop.f32.mrb[24].mxu1 }
 0x14a   : > { %1479 = vst.msk [vmem:[%s2181_s19 + $0x28] sm:$0xf] %vm1468_vm0, %v1758_v33  ;;  %1511 = vst.msk [vmem:[%s2181_s19 + $0xa8] sm:$0xf] %vm1468_vm0, %v1790_v34  ;;  %v1759_v39 = vpack.c.bf16 %v1159_v35, %v1159_v35  ;;  %v1025_v41 = vmul.f32 %v2162_v17, %v799_v37  ;;  %v1057_v42 = vmul.f32 %v2162_v17, %v927_v38  ;;  %v801_v43 = vpop.f32.mrb[25].mxu0  ;;  %v929_v44 = vpop.f32.mrb[25].mxu1 }
 0x14b   : > { %v1791_v40 = vpack.c.bf16 %v1191_v36, %v1191_v36  ;;  %v802_v45 = vpop.f32.mrb[26].mxu0  ;;  %v930_v46 = vpop.f32.mrb[26].mxu1 }
 0x14c   : > { %1480 = vst.msk [vmem:[%s2181_s19 + $0x2c] sm:$0xf] %vm1468_vm0, %v1759_v39  ;;  %v1096_v47 = vadd.f32 %v2167_v19, %v1025_v41  ;;  %v1128_v48 = vadd.f32 %v2167_v19, %v1057_v42  ;;  %v1026_v49 = vmul.f32 %v2162_v17, %v802_v45  ;;  %v1058_v50 = vmul.f32 %v2162_v17, %v930_v46  ;;  %v804_v51 = vpop.f32.mrb[27].mxu0  ;;  %v932_v52 = vpop.f32.mrb[27].mxu1 }
 0x14d   : > { %1512 = vst.msk [vmem:[%s2181_s19 + $0xac] sm:$0xf] %vm1468_vm0, %v1791_v40 }
 0x14e   : > { %v1160_v53 = vmax.f32 %v1096_v47, 0.0  ;;  %v1192_v54 = vmax.f32 %v1128_v48, 0.0  ;;  %v1097_v55 = vadd.f32 %v2167_v19, %v1026_v49  ;;  %v1129_v56 = vadd.f32 %v2167_v19, %v1058_v50 }
 0x150   : > { %v1760_v57 = vpack.c.bf16 %v1160_v53, %v1160_v53  ;;  %v1792_v58 = vpack.c.bf16 %v1192_v54, %v1192_v54  ;;  %v1161_v59 = vmax.f32 %v1097_v55, 0.0  ;;  %v1193_v60 = vmax.f32 %v1129_v56, 0.0 }
 0x151   : > { %v807_v61 = vpop.f32.mrb[28].mxu0  ;;  %v935_v62 = vpop.f32.mrb[28].mxu1 }
 0x152   : > { %1481 = vst.msk [vmem:[%s2181_s19 + $0x30] sm:$0xf] %vm1468_vm0, %v1760_v57  ;;  %1513 = vst.msk [vmem:[%s2181_s19 + $0xb0] sm:$0xf] %vm1468_vm0, %v1792_v58  ;;  %v1761_v63 = vpack.c.bf16 %v1161_v59, %v1161_v59  ;;  %v1793_v0 = vpack.c.bf16 %v1193_v60, %v1193_v60  ;;  %v1027_v1 = vmul.f32 %v2162_v17, %v807_v61  ;;  %v809_v3 = vpop.f32.mrb[29].mxu0  ;;  %v937_v4 = vpop.f32.mrb[29].mxu1 }
 0x153   : > { %v1059_v2 = vmul.f32 %v2162_v17, %v935_v62  ;;  %v810_v5 = vpop.f32.mrb[30].mxu0  ;;  %v938_v6 = vpop.f32.mrb[30].mxu1 }
 0x154   : > { %1482 = vst.msk [vmem:[%s2181_s19 + $0x34] sm:$0xf] %vm1468_vm0, %v1761_v63  ;;  %1514 = vst.msk [vmem:[%s2181_s19 + $0xb4] sm:$0xf] %vm1468_vm0, %v1793_v0  ;;  %v1098_v7 = vadd.f32 %v2167_v19, %v1027_v1  ;;  %v1028_v9 = vmul.f32 %v2162_v17, %v810_v5  ;;  %v1060_v10 = vmul.f32 %v2162_v17, %v938_v6  ;;  %v812_v11 = vpop.f32.mrb[31].mxu0  ;;  %v940_v12 = vpop.f32.mrb[31].mxu1 }
 0x155   : > { %v1130_v8 = vadd.f32 %v2167_v19, %v1059_v2 }
 0x156   : > { %v1162_v13 = vmax.f32 %v1098_v7, 0.0  ;;  %v1099_v15 = vadd.f32 %v2167_v19, %v1028_v9  ;;  %v1131_v16 = vadd.f32 %v2167_v19, %v1060_v10 }
 0x157   : > { %v1194_v14 = vmax.f32 %v1130_v8, 0.0 }
 0x158   : > { %v1762_v18 = vpack.c.bf16 %v1162_v13, %v1162_v13  ;;  %v1163_v21 = vmax.f32 %v1099_v15, 0.0  ;;  %v1195_v22 = vmax.f32 %v1131_v16, 0.0 }
 0x159   : > { %v1794_v20 = vpack.c.bf16 %v1194_v14, %v1194_v14  ;;  %v815_v23 = vpop.f32.mrb[32].mxu0  ;;  %v943_v24 = vpop.f32.mrb[32].mxu1 }
 0x15a   : > { %1483 = vst.msk [vmem:[%s2181_s19 + $0x38] sm:$0xf] %vm1468_vm0, %v1762_v18  ;;  %v1763_v25 = vpack.c.bf16 %v1163_v21, %v1163_v21  ;;  %v1795_v26 = vpack.c.bf16 %v1195_v22, %v1195_v22  ;;  %v1029_v27 = vmul.f32 %v2162_v17, %v815_v23  ;;  %v1061_v28 = vmul.f32 %v2162_v17, %v943_v24  ;;  %v817_v29 = vpop.f32.mrb[33].mxu0  ;;  %v945_v30 = vpop.f32.mrb[33].mxu1 }
 0x15b   : > { %1515 = vst.msk [vmem:[%s2181_s19 + $0xb8] sm:$0xf] %vm1468_vm0, %v1794_v20  ;;  %v818_v31 = vpop.f32.mrb[34].mxu0  ;;  %v946_v32 = vpop.f32.mrb[34].mxu1 }
 0x15c   : > { %1484 = vst.msk [vmem:[%s2181_s19 + $0x3c] sm:$0xf] %vm1468_vm0, %v1763_v25  ;;  %1516 = vst.msk [vmem:[%s2181_s19 + $0xbc] sm:$0xf] %vm1468_vm0, %v1795_v26  ;;  %v1100_v33 = vadd.f32 %v2167_v19, %v1029_v27  ;;  %v1132_v34 = vadd.f32 %v2167_v19, %v1061_v28  ;;  %v1030_v35 = vmul.f32 %v2162_v17, %v818_v31  ;;  %v820_v37 = vpop.f32.mrb[35].mxu0  ;;  %v948_v38 = vpop.f32.mrb[35].mxu1 }
 0x15d   : > { %v1062_v36 = vmul.f32 %v2162_v17, %v946_v32 }
 0x15e   : > { %v1164_v39 = vmax.f32 %v1100_v33, 0.0  ;;  %v1196_v40 = vmax.f32 %v1132_v34, 0.0  ;;  %v1101_v41 = vadd.f32 %v2167_v19, %v1030_v35 }
 0x15f   : > { %v1133_v42 = vadd.f32 %v2167_v19, %v1062_v36 }
 0x160   : > { %v1764_v43 = vpack.c.bf16 %v1164_v39, %v1164_v39  ;;  %v1796_v44 = vpack.c.bf16 %v1196_v40, %v1196_v40  ;;  %v1165_v45 = vmax.f32 %v1101_v41, 0.0 }
 0x161   : > { %v1197_v46 = vmax.f32 %v1133_v42, 0.0  ;;  %v823_v47 = vpop.f32.mrb[36].mxu0  ;;  %v951_v48 = vpop.f32.mrb[36].mxu1 }
 0x162   : > { %1485 = vst.msk [vmem:[%s2181_s19 + $0x40] sm:$0xf] %vm1468_vm0, %v1764_v43  ;;  %1517 = vst.msk [vmem:[%s2181_s19 + $0xc0] sm:$0xf] %vm1468_vm0, %v1796_v44  ;;  %v1765_v49 = vpack.c.bf16 %v1165_v45, %v1165_v45  ;;  %v1031_v51 = vmul.f32 %v2162_v17, %v823_v47  ;;  %v1063_v52 = vmul.f32 %v2162_v17, %v951_v48  ;;  %v825_v53 = vpop.f32.mrb[37].mxu0  ;;  %v953_v54 = vpop.f32.mrb[37].mxu1 }
 0x163   : > { %v1797_v50 = vpack.c.bf16 %v1197_v46, %v1197_v46  ;;  %v826_v55 = vpop.f32.mrb[38].mxu0  ;;  %v954_v56 = vpop.f32.mrb[38].mxu1 }
 0x164   : > { %1486 = vst.msk [vmem:[%s2181_s19 + $0x44] sm:$0xf] %vm1468_vm0, %v1765_v49  ;;  %v1102_v57 = vadd.f32 %v2167_v19, %v1031_v51  ;;  %v1134_v58 = vadd.f32 %v2167_v19, %v1063_v52  ;;  %v1032_v59 = vmul.f32 %v2162_v17, %v826_v55  ;;  %v1064_v60 = vmul.f32 %v2162_v17, %v954_v56  ;;  %v828_v61 = vpop.f32.mrb[39].mxu0  ;;  %v956_v62 = vpop.f32.mrb[39].mxu1 }
 0x165   : > { %1518 = vst.msk [vmem:[%s2181_s19 + $0xc4] sm:$0xf] %vm1468_vm0, %v1797_v50 }
 0x166   : > { %v1166_v63 = vmax.f32 %v1102_v57, 0.0  ;;  %v1198_v0 = vmax.f32 %v1134_v58, 0.0  ;;  %v1103_v1 = vadd.f32 %v2167_v19, %v1032_v59  ;;  %v1135_v2 = vadd.f32 %v2167_v19, %v1064_v60 }
 0x168   : > { %v1766_v3 = vpack.c.bf16 %v1166_v63, %v1166_v63  ;;  %v1798_v4 = vpack.c.bf16 %v1198_v0, %v1198_v0  ;;  %v1167_v5 = vmax.f32 %v1103_v1, 0.0  ;;  %v1199_v6 = vmax.f32 %v1135_v2, 0.0 }
 0x169   : > { %v831_v7 = vpop.f32.mrb[40].mxu0  ;;  %v959_v8 = vpop.f32.mrb[40].mxu1 }
 0x16a   : > { %1487 = vst.msk [vmem:[%s2181_s19 + $0x48] sm:$0xf] %vm1468_vm0, %v1766_v3  ;;  %1519 = vst.msk [vmem:[%s2181_s19 + $0xc8] sm:$0xf] %vm1468_vm0, %v1798_v4  ;;  %v1767_v9 = vpack.c.bf16 %v1167_v5, %v1167_v5  ;;  %v1799_v10 = vpack.c.bf16 %v1199_v6, %v1199_v6  ;;  %v1033_v11 = vmul.f32 %v2162_v17, %v831_v7  ;;  %v833_v13 = vpop.f32.mrb[41].mxu0  ;;  %v961_v14 = vpop.f32.mrb[41].mxu1 }
 0x16b   : > { %v1065_v12 = vmul.f32 %v2162_v17, %v959_v8  ;;  %v834_v15 = vpop.f32.mrb[42].mxu0  ;;  %v962_v16 = vpop.f32.mrb[42].mxu1 }
 0x16c   : > { %1488 = vst.msk [vmem:[%s2181_s19 + $0x4c] sm:$0xf] %vm1468_vm0, %v1767_v9  ;;  %1520 = vst.msk [vmem:[%s2181_s19 + $0xcc] sm:$0xf] %vm1468_vm0, %v1799_v10  ;;  %v1104_v18 = vadd.f32 %v2167_v19, %v1033_v11  ;;  %v1034_v21 = vmul.f32 %v2162_v17, %v834_v15  ;;  %v1066_v22 = vmul.f32 %v2162_v17, %v962_v16  ;;  %v836_v23 = vpop.f32.mrb[43].mxu0  ;;  %v964_v24 = vpop.f32.mrb[43].mxu1 }
 0x16d   : > { %v1136_v20 = vadd.f32 %v2167_v19, %v1065_v12 }
 0x16e   : > { %v1168_v25 = vmax.f32 %v1104_v18, 0.0  ;;  %v1105_v27 = vadd.f32 %v2167_v19, %v1034_v21  ;;  %v1137_v28 = vadd.f32 %v2167_v19, %v1066_v22 }
 0x16f   : > { %v1200_v26 = vmax.f32 %v1136_v20, 0.0 }
 0x170   : > { %v1768_v29 = vpack.c.bf16 %v1168_v25, %v1168_v25  ;;  %v1169_v31 = vmax.f32 %v1105_v27, 0.0  ;;  %v1201_v32 = vmax.f32 %v1137_v28, 0.0 }
 0x171   : > { %v1800_v30 = vpack.c.bf16 %v1200_v26, %v1200_v26  ;;  %v839_v33 = vpop.f32.mrb[44].mxu0  ;;  %v967_v34 = vpop.f32.mrb[44].mxu1 }
 0x172   : > { %1489 = vst.msk [vmem:[%s2181_s19 + $0x50] sm:$0xf] %vm1468_vm0, %v1768_v29  ;;  %v1769_v35 = vpack.c.bf16 %v1169_v31, %v1169_v31  ;;  %v1801_v36 = vpack.c.bf16 %v1201_v32, %v1201_v32  ;;  %v1035_v37 = vmul.f32 %v2162_v17, %v839_v33  ;;  %v1067_v38 = vmul.f32 %v2162_v17, %v967_v34  ;;  %v841_v39 = vpop.f32.mrb[45].mxu0  ;;  %v969_v40 = vpop.f32.mrb[45].mxu1 }
 0x173   : > { %1521 = vst.msk [vmem:[%s2181_s19 + $0xd0] sm:$0xf] %vm1468_vm0, %v1800_v30  ;;  %v842_v41 = vpop.f32.mrb[46].mxu0  ;;  %v970_v42 = vpop.f32.mrb[46].mxu1 }
 0x174   : > { %1490 = vst.msk [vmem:[%s2181_s19 + $0x54] sm:$0xf] %vm1468_vm0, %v1769_v35  ;;  %1522 = vst.msk [vmem:[%s2181_s19 + $0xd4] sm:$0xf] %vm1468_vm0, %v1801_v36  ;;  %v1106_v43 = vadd.f32 %v2167_v19, %v1035_v37  ;;  %v1138_v44 = vadd.f32 %v2167_v19, %v1067_v38  ;;  %v1036_v45 = vmul.f32 %v2162_v17, %v842_v41  ;;  %v844_v47 = vpop.f32.mrb[47].mxu0  ;;  %v972_v48 = vpop.f32.mrb[47].mxu1 }
 0x175   : > { %v1068_v46 = vmul.f32 %v2162_v17, %v970_v42 }
 0x176   : > { %v1170_v49 = vmax.f32 %v1106_v43, 0.0  ;;  %v1202_v50 = vmax.f32 %v1138_v44, 0.0  ;;  %v1107_v51 = vadd.f32 %v2167_v19, %v1036_v45 }
 0x177   : > { %v1139_v52 = vadd.f32 %v2167_v19, %v1068_v46 }
 0x178   : > { %v1770_v53 = vpack.c.bf16 %v1170_v49, %v1170_v49  ;;  %v1802_v54 = vpack.c.bf16 %v1202_v50, %v1202_v50  ;;  %v1171_v55 = vmax.f32 %v1107_v51, 0.0 }
 0x179   : > { %v1203_v56 = vmax.f32 %v1139_v52, 0.0  ;;  %v847_v57 = vpop.f32.mrb[48].mxu0  ;;  %v975_v58 = vpop.f32.mrb[48].mxu1 }
 0x17a   : > { %1491 = vst.msk [vmem:[%s2181_s19 + $0x58] sm:$0xf] %vm1468_vm0, %v1770_v53  ;;  %1523 = vst.msk [vmem:[%s2181_s19 + $0xd8] sm:$0xf] %vm1468_vm0, %v1802_v54  ;;  %v1771_v59 = vpack.c.bf16 %v1171_v55, %v1171_v55  ;;  %v1037_v61 = vmul.f32 %v2162_v17, %v847_v57  ;;  %v1069_v62 = vmul.f32 %v2162_v17, %v975_v58  ;;  %v849_v63 = vpop.f32.mrb[49].mxu0  ;;  %v977_v0 = vpop.f32.mrb[49].mxu1 }
 0x17b   : > { %v1803_v60 = vpack.c.bf16 %v1203_v56, %v1203_v56  ;;  %v850_v1 = vpop.f32.mrb[50].mxu0  ;;  %v978_v2 = vpop.f32.mrb[50].mxu1 }
 0x17c   : > { %1492 = vst.msk [vmem:[%s2181_s19 + $0x5c] sm:$0xf] %vm1468_vm0, %v1771_v59  ;;  %v1108_v3 = vadd.f32 %v2167_v19, %v1037_v61  ;;  %v1140_v4 = vadd.f32 %v2167_v19, %v1069_v62  ;;  %v1038_v5 = vmul.f32 %v2162_v17, %v850_v1  ;;  %v1070_v6 = vmul.f32 %v2162_v17, %v978_v2  ;;  %v852_v7 = vpop.f32.mrb[51].mxu0  ;;  %v980_v8 = vpop.f32.mrb[51].mxu1 }
 0x17d   : > { %1524 = vst.msk [vmem:[%s2181_s19 + $0xdc] sm:$0xf] %vm1468_vm0, %v1803_v60 }
 0x17e   : > { %v1172_v9 = vmax.f32 %v1108_v3, 0.0  ;;  %v1204_v10 = vmax.f32 %v1140_v4, 0.0  ;;  %v1109_v11 = vadd.f32 %v2167_v19, %v1038_v5  ;;  %v1141_v12 = vadd.f32 %v2167_v19, %v1070_v6 }
 0x180   : > { %v1772_v13 = vpack.c.bf16 %v1172_v9, %v1172_v9  ;;  %v1804_v14 = vpack.c.bf16 %v1204_v10, %v1204_v10  ;;  %v1173_v15 = vmax.f32 %v1109_v11, 0.0  ;;  %v1205_v16 = vmax.f32 %v1141_v12, 0.0 }
 0x181   : > { %v855_v18 = vpop.f32.mrb[52].mxu0  ;;  %v983_v20 = vpop.f32.mrb[52].mxu1 }
 0x182   : > { %1493 = vst.msk [vmem:[%s2181_s19 + $0x60] sm:$0xf] %vm1468_vm0, %v1772_v13  ;;  %1525 = vst.msk [vmem:[%s2181_s19 + $0xe0] sm:$0xf] %vm1468_vm0, %v1804_v14  ;;  %v1773_v21 = vpack.c.bf16 %v1173_v15, %v1173_v15  ;;  %v1805_v22 = vpack.c.bf16 %v1205_v16, %v1205_v16  ;;  %v1039_v23 = vmul.f32 %v2162_v17, %v855_v18  ;;  %v857_v25 = vpop.f32.mrb[53].mxu0  ;;  %v985_v26 = vpop.f32.mrb[53].mxu1 }
 0x183   : > { %v1071_v24 = vmul.f32 %v2162_v17, %v983_v20  ;;  %v858_v27 = vpop.f32.mrb[54].mxu0  ;;  %v986_v28 = vpop.f32.mrb[54].mxu1 }
 0x184   : > { %1494 = vst.msk [vmem:[%s2181_s19 + $0x64] sm:$0xf] %vm1468_vm0, %v1773_v21  ;;  %1526 = vst.msk [vmem:[%s2181_s19 + $0xe4] sm:$0xf] %vm1468_vm0, %v1805_v22  ;;  %v1110_v29 = vadd.f32 %v2167_v19, %v1039_v23  ;;  %v1040_v31 = vmul.f32 %v2162_v17, %v858_v27  ;;  %v1072_v32 = vmul.f32 %v2162_v17, %v986_v28  ;;  %v860_v33 = vpop.f32.mrb[55].mxu0  ;;  %v988_v34 = vpop.f32.mrb[55].mxu1 }
 0x185   : > { %v1142_v30 = vadd.f32 %v2167_v19, %v1071_v24 }
 0x186   : > { %v1174_v35 = vmax.f32 %v1110_v29, 0.0  ;;  %v1111_v37 = vadd.f32 %v2167_v19, %v1040_v31  ;;  %v1143_v38 = vadd.f32 %v2167_v19, %v1072_v32 }
 0x187   : > { %v1206_v36 = vmax.f32 %v1142_v30, 0.0 }
 0x188   : > { %v1774_v39 = vpack.c.bf16 %v1174_v35, %v1174_v35  ;;  %v1175_v41 = vmax.f32 %v1111_v37, 0.0  ;;  %v1207_v42 = vmax.f32 %v1143_v38, 0.0 }
 0x189   : > { %v1806_v40 = vpack.c.bf16 %v1206_v36, %v1206_v36  ;;  %v863_v43 = vpop.f32.mrb[56].mxu0  ;;  %v991_v44 = vpop.f32.mrb[56].mxu1 }
 0x18a   : > { %1495 = vst.msk [vmem:[%s2181_s19 + $0x68] sm:$0xf] %vm1468_vm0, %v1774_v39  ;;  %v1775_v45 = vpack.c.bf16 %v1175_v41, %v1175_v41  ;;  %v1807_v46 = vpack.c.bf16 %v1207_v42, %v1207_v42  ;;  %v1041_v47 = vmul.f32 %v2162_v17, %v863_v43  ;;  %v1073_v48 = vmul.f32 %v2162_v17, %v991_v44  ;;  %v865_v49 = vpop.f32.mrb[57].mxu0  ;;  %v993_v50 = vpop.f32.mrb[57].mxu1 }
 0x18b   : > { %1527 = vst.msk [vmem:[%s2181_s19 + $0xe8] sm:$0xf] %vm1468_vm0, %v1806_v40  ;;  %v866_v51 = vpop.f32.mrb[58].mxu0  ;;  %v994_v52 = vpop.f32.mrb[58].mxu1 }
 0x18c   : > { %1496 = vst.msk [vmem:[%s2181_s19 + $0x6c] sm:$0xf] %vm1468_vm0, %v1775_v45  ;;  %1528 = vst.msk [vmem:[%s2181_s19 + $0xec] sm:$0xf] %vm1468_vm0, %v1807_v46  ;;  %v1112_v53 = vadd.f32 %v2167_v19, %v1041_v47  ;;  %v1144_v54 = vadd.f32 %v2167_v19, %v1073_v48  ;;  %v1042_v55 = vmul.f32 %v2162_v17, %v866_v51  ;;  %v868_v57 = vpop.f32.mrb[59].mxu0  ;;  %v996_v58 = vpop.f32.mrb[59].mxu1 }
 0x18d   : > { %v1074_v56 = vmul.f32 %v2162_v17, %v994_v52 }
 0x18e   : > { %v1176_v59 = vmax.f32 %v1112_v53, 0.0  ;;  %v1208_v60 = vmax.f32 %v1144_v54, 0.0  ;;  %v1113_v61 = vadd.f32 %v2167_v19, %v1042_v55 }
 0x18f   : > { %v1145_v62 = vadd.f32 %v2167_v19, %v1074_v56 }
 0x190   : > { %v1776_v63 = vpack.c.bf16 %v1176_v59, %v1176_v59  ;;  %v1808_v0 = vpack.c.bf16 %v1208_v60, %v1208_v60  ;;  %v1177_v1 = vmax.f32 %v1113_v61, 0.0 }
 0x191   : > { %v1209_v2 = vmax.f32 %v1145_v62, 0.0  ;;  %v871_v3 = vpop.f32.mrb[60].mxu0  ;;  %v999_v4 = vpop.f32.mrb[60].mxu1 }
 0x192   : > { %1497 = vst.msk [vmem:[%s2181_s19 + $0x70] sm:$0xf] %vm1468_vm0, %v1776_v63  ;;  %1529 = vst.msk [vmem:[%s2181_s19 + $0xf0] sm:$0xf] %vm1468_vm0, %v1808_v0  ;;  %v1777_v5 = vpack.c.bf16 %v1177_v1, %v1177_v1  ;;  %v1043_v7 = vmul.f32 %v2162_v17, %v871_v3  ;;  %v1075_v8 = vmul.f32 %v2162_v17, %v999_v4  ;;  %v873_v9 = vpop.f32.mrb[61].mxu0  ;;  %v1001_v10 = vpop.f32.mrb[61].mxu1 }
 0x193   : > { %v1809_v6 = vpack.c.bf16 %v1209_v2, %v1209_v2  ;;  %v874_v11 = vpop.f32.mrb[62].mxu0  ;;  %v1002_v12 = vpop.f32.mrb[62].mxu1 }
 0x194   : > { %1498 = vst.msk [vmem:[%s2181_s19 + $0x74] sm:$0xf] %vm1468_vm0, %v1777_v5  ;;  %v1114_v13 = vadd.f32 %v2167_v19, %v1043_v7  ;;  %v1146_v14 = vadd.f32 %v2167_v19, %v1075_v8  ;;  %v1044_v15 = vmul.f32 %v2162_v17, %v874_v11  ;;  %v1076_v16 = vmul.f32 %v2162_v17, %v1002_v12  ;;  %v876_v18 = vpop.f32.mrb[63].mxu0  ;;  %v1004_v20 = vpop.f32.mrb[63].mxu1 }
 0x195   : > { %1530 = vst.msk [vmem:[%s2181_s19 + $0xf4] sm:$0xf] %vm1468_vm0, %v1809_v6 }
 0x196   : > { %v1178_v21 = vmax.f32 %v1114_v13, 0.0  ;;  %v1210_v22 = vmax.f32 %v1146_v14, 0.0  ;;  %v1115_v23 = vadd.f32 %v2167_v19, %v1044_v15  ;;  %v1147_v24 = vadd.f32 %v2167_v19, %v1076_v16 }
 0x198   : > { %v1778_v25 = vpack.c.bf16 %v1178_v21, %v1178_v21  ;;  %v1810_v26 = vpack.c.bf16 %v1210_v22, %v1210_v22  ;;  %v1179_v27 = vmax.f32 %v1115_v23, 0.0  ;;  %v1211_v28 = vmax.f32 %v1147_v24, 0.0 }
 0x19a   : > { %1499 = vst.msk [vmem:[%s2181_s19 + $0x78] sm:$0xf] %vm1468_vm0, %v1778_v25  ;;  %1531 = vst.msk [vmem:[%s2181_s19 + $0xf8] sm:$0xf] %vm1468_vm0, %v1810_v26  ;;  %v1779_v29 = vpack.c.bf16 %v1179_v27, %v1179_v27  ;;  %v1811_v30 = vpack.c.bf16 %v1211_v28, %v1211_v28 }
 0x19c   : > { %1500 = vst.msk [vmem:[%s2181_s19 + $0x7c] sm:$0xf] %vm1468_vm0, %v1779_v29  ;;  %1532 = vst.msk [vmem:[%s2181_s19 + $0xfc] sm:$0xf] %vm1468_vm0, %v1811_v30 }
 0x19d PF: > { %s14_s15 = sadd.s32 1, %s1971_s15  }
 0x19e   : > { %p11_p4 = scmp.ge.s32.totalorder %s14_s15, 4  }
 0x1a0   :  { %13 = sbr.rel (!%p11_p4) target bundleno = 1 (0x1), region = 66 }

// kernel: planner_forward.9
= control target key start
LH: loop header
LB: loop body
LE: loop exit
PB: predicated region body
PF: predicated region fallthrough
CT: control target
= control target key end

     0   :  { %s2161_s6 = smov 0   ;;  %s3801_s0 = inlined_call_operand.vmem [shape: bf16[2,18,34,32], index: 0, kind: input, shape index: {}]   ;;  %s3802_s1 = inlined_call_operand.vmem [shape: bf16[2,16,32,32], index: 1, kind: output, shape index: {}]  }
   0x1 LB: > { %s2105_s7 = sadd.s32 4294967295, %s2149_s6   ;;  %p2109_p0 = scmp.ge.s32.totalorder %s2149_s6, 1  ;;  %s2149_s6 = sphi %s2161_s6, %s11_s6  }
   0x2   : > { %p87_p1 = scmp.lt.s32.totalorder %s2149_s6, 3 }
   0x4   : > { %p88_p2 = pnand %p2109_p0, %p87_p1 }
   0x5   : > { %p107_p3 = scmp.lt.s32.totalorder (!%p88_p2), %s2105_s7, 1  ;;  %vm207_vm0 = vsmask.f32 (!%p88_p2), 3328  ;;  %vm208_vm1 = vsmask.f32 (!%p88_p2), 7440  ;;  %vm1122_vm2 = vcmask (!%p88_p2), 1042432  }
   0x6   : > { %91 = sbr.rel (%p88_p2) target bundleno = 342 (0x156), region = 24  ;;  %vm1123_vm3 = vcmask (!%p88_p2), 1046532   ;;  %vm2204_vm5 = vmor (!%p88_p2), %vm207_vm0, %vm208_vm1  ;;  %vm1985_vm6 = vcmask (!%p88_p2), 257024  }
   0x7   : > { %vm2197_vm4 = vmor (!%p88_p2), %vm1122_vm2, %vm1123_vm3 }
   0xd   : > { %s3808_s7 = smov (!%p107_p3, %s2105_s7), 1 }
   0xe   : > { %s2134_s8 = smul.u32 360, %s3808_s7  ;;  %s2133_s12 = sshll.u32 %s3808_s7, 8 }
   0xf   : > { %s2291_s15 = scalar_lea.vmem %s3802_s1, %s2133_s12 }
  0x10   : > { %s2175_s11 = scalar_lea.vmem %s3801_s0, %s2134_s8 }
  0x11   : > { %v117_v0 = vld [vmem:[%s2175_s11] sm:$0xf]  ;;  %v2179_v1 = vld [vmem:[%s2175_s11 + $0x4] sm:$0xf]  ;;  %v122_v2 = vld [vmem:[%s2175_s11 + $0x14] sm:$0xf] }
  0x12   : > { %v2183_v3 = vld [vmem:[%s2175_s11 + $0x18] sm:$0xf]  ;;  %v2186_v4 = vld [vmem:[%s2175_s11 + $0x28] sm:$0xf]  ;;  %v211_v5 = vshrl.u32 %v117_v0, 16  ;;  %v214_v6 = vshll.u32 %v117_v0, 16 }
  0x13   : > { %v220_v7 = vshll.u32 %v2179_v1, 16  ;;  %v255_v8 = vshrl.u32 %v122_v2, 16  ;;  %v2190_v9 = vld [vmem:[%s2175_s11 + $0x2c] sm:$0xf]  ;;  %v258_v10 = vshll.u32 %v122_v2, 16  ;;  %v299_v11 = vshrl.u32 %v2186_v4, 16 }
  0x14   : > { %v302_v12 = vshll.u32 %v2186_v4, 16  ;;  %v213_v13 = vrot.slane %v211_v5, 4  ;;  %v216_v14 = vrot.slane %v214_v6, 5  ;;  %v264_v16 = vshll.u32 %v2183_v3, 16  ;;  %v2211_v35 = vld [vmem:[%s2175_s11 + $0x8] sm:$0xf] }
  0x15   : > { %v257_v15 = vrot.slane %v255_v8, 4  ;;  %v222_v17 = vrot.slane %v220_v7, 5  ;;  %v260_v18 = vrot.slane %v258_v10, 5  ;;  %v301_v19 = vrot.slane %v299_v11, 4  ;;  %v2221_v42 = vld [vmem:[%s2175_s11 + $0x1c] sm:$0xf] }
  0x16   : > { %v304_v20 = vrot.slane %v302_v12, 5  ;;  %v217_v21 = vor.u32 %v216_v14, %v213_v13  ;;  %v308_v22 = vshll.u32 %v2190_v9, 16  ;;  %v2113_v24 = vrot.slane %v117_v0, 9  ;;  %v2230_v48 = vld [vmem:[%s2175_s11 + $0x30] sm:$0xf] }
  0x17   : > { %v1127_v25 = vrot.slane %v2179_v1, 5  ;;  %v261_v27 = vor.u32 %v260_v18, %v257_v15  ;;  %v2114_v29 = vrot.slane %v122_v2, 9  ;;  %v1140_v30 = vrot.slane %v2183_v3, 5 }
  0x18   : > { %v305_v28 = vor.u32 %v304_v20, %v301_v19  ;;  %v218_v31 = vrot.slane %v217_v21, 4  ;;  %v266_v32 = vrot.slane %v264_v16, 5  ;;  %v310_v33 = vrot.slane %v308_v22, 5 }
  0x19   : > { %v2115_v34 = vrot.slane %v2186_v4, 9  ;;  %v262_v36 = vrot.slane %v261_v27, 4  ;;  %v1128_v38 = vsel %vm2197_vm4, %v2113_v24, %v1127_v25  ;;  %v1141_v39 = vsel %vm2197_vm4, %v2114_v29, %v1140_v30  ;;  %v2263_v27 = vld [vmem:[%s2175_s11 + $0xc] sm:$0xf] }
  0x1a   : > { %v306_v37 = vrot.slane %v305_v28, 4  ;;  %v223_v40 = vsel %vm2204_vm5, %v218_v31, %v222_v17  ;;  %v1153_v41 = vrot.slane %v2190_v9, 5  ;;  %v224_v43 = vshrl.u32 %v2179_v1, 16 }
  0x1b   : > { %v268_v44 = vshrl.u32 %v2183_v3, 16  ;;  %v267_v45 = vsel %vm2204_vm5, %v262_v36, %v266_v32  ;;  %v978_v47 = vmax.bf16 %v223_v40, %v117_v0  ;;  %v230_v49 = vshll.u32 %v2211_v35, 16  ;;  %v2294_v40 = vld [vmem:[%s2175_s11 + $0x3c] sm:$0xf] }
  0x1c   : > { %v311_v46 = vsel %vm2204_vm5, %v306_v37, %v310_v33  ;;  %v982_v50 = vmax.bf16 %v267_v45, %v122_v2  ;;  %v2236_v52 = vsel %vm2197_vm4, %v2115_v34, %v1153_v41  ;;  %v226_v53 = vrot.slane %v224_v43, 4  ;;  %v2278_v34 = vld [vmem:[%s2175_s11 + $0x20] sm:$0xf]  ;;  %v2298_v43 = vld [vmem:[%s2175_s11 + $0x34] sm:$0xf] }
  0x1d   : > { %v986_v51 = vmax.bf16 %v311_v46, %v2186_v4  ;;  %v1397_v54 = vmax.bf16 %v1128_v38, %v978_v47  ;;  %v270_v55 = vrot.slane %v268_v44, 4  ;;  %v274_v56 = vshll.u32 %v2221_v42, 16 }
  0x1e   : > { %v312_v57 = vshrl.u32 %v2190_v9, 16  ;;  %v1401_v58 = vmax.bf16 %v1141_v39, %v982_v50  ;;  %v227_v59 = vor.u32 %v226_v53, %v222_v17  ;;  %v318_v60 = vshll.u32 %v2230_v48, 16 }
  0x1f   : > { %v1461_v61 = vmax.bf16 %v1397_v54, %v122_v2  ;;  %v232_v62 = vrot.slane %v230_v49, 5  ;;  %v271_v63 = vor.u32 %v270_v55, %v266_v32  ;;  %v2242_v5 = vmax.bf16 %v2236_v52, %v986_v51 }
  0x20   : > { %v314_v0 = vrot.slane %v312_v57, 4  ;;  %v1465_v6 = vmax.bf16 %v1401_v58, %v2186_v4  ;;  %v228_v7 = vrot.slane %v227_v59, 4  ;;  %v2245_v8 = vrot.slane %v274_v56, 5  ;;  %v2317_v59 = vld [vmem:[%s2175_s11 + $0x40] sm:$0xf] }
  0x21   : > { %v1573_v10 = vmax.bf16 %v1461_v61, %v267_v45  ;;  %v272_v11 = vrot.slane %v271_v63, 4  ;;  %v1129_v13 = vrot.slane %v1127_v25, 4  ;;  %v2249_v14 = vrot.slane %v318_v60, 5 }
  0x22   : > { %v315_v12 = vor.u32 %v314_v0, %v310_v33  ;;  %v233_v2 = vsel %vm2204_vm5, %v228_v7, %v232_v62  ;;  %v1130_v15 = vrot.slane %v2211_v35, 5  ;;  %v1142_v16 = vrot.slane %v1140_v30, 4 }
  0x23   : > { %v1659_v17 = vmax.bf16 %v1573_v10, %v1141_v39  ;;  %v277_v18 = vsel %vm2204_vm5, %v272_v11, %v2245_v8  ;;  %v979_v20 = vmax.bf16 %v233_v2, %v2179_v1  ;;  %v2256_v21 = vmax.bf16 %v1465_v6, %v311_v46 }
  0x24   : > { %v316_v19 = vrot.slane %v315_v12, 4  ;;  %v983_v22 = vmax.bf16 %v277_v18, %v2183_v3  ;;  %v1131_v24 = vsel %vm2197_vm4, %v1129_v13, %v1130_v15  ;;  %v1143_v25 = vrot.slane %v2221_v42, 5 }
  0x25   : > { %v1723_v28 = vmax.bf16 %v1659_v17, %v2186_v4  ;;  %v1155_v29 = vrot.slane %v1153_v41, 4  ;;  %v1156_v30 = vrot.slane %v2230_v48, 5  ;;  %v1398_v33 = vmax.bf16 %v1131_v24, %v979_v20 }
  0x26   : > { %v2270_v1 = vsel %vm2204_vm5, %v316_v19, %v2249_v14  ;;  %v1144_v32 = vsel %vm2197_vm4, %v1142_v16, %v1143_v25  ;;  %v234_v4 = vshrl.u32 %v2211_v35, 16  ;;  %v240_v39 = vshll.u32 %v2263_v27, 16 }
  0x27   : > { %v987_v31 = vmax.bf16 %v2270_v1, %v2190_v9  ;;  %v1835_v36 = vmax.bf16 %v1723_v28, %v311_v46  ;;  %v2283_v37 = vsel %vm2197_vm4, %v1155_v29, %v1156_v30  ;;  %v2285_v38 = vmax.bf16 %v1144_v32, %v983_v22  ;;  %v126_v28 = vld [vmem:[%s2175_s11 + $0x24] sm:$0x1] }
  0x28   : > { %v1462_v41 = vmax.bf16 %v1398_v33, %v2183_v3  ;;  %v236_v44 = vrot.slane %v234_v4, 4  ;;  %v278_v45 = vshrl.u32 %v2221_v42, 16  ;;  %v1469_v46 = vmax.bf16 %v2242_v5, %v2294_v40 }
  0x29   : > { %v1921_v47 = vmax.bf16 %v1835_v36, %v2236_v52  ;;  %v2305_v49 = vmax.bf16 %v2283_v37, %v987_v31  ;;  %v284_v50 = vshll.u32 %v2278_v34, 16  ;;  %v1663_v51 = vmax.bf16 %v2256_v21, %v2236_v52 }
  0x2a   : > { %v1574_v3 = vmax.bf16 %v1462_v41, %v277_v18  ;;  %v237_v53 = vor.u32 %v236_v44, %v232_v62  ;;  %v280_v54 = vrot.slane %v278_v45, 4  ;;  %v1466_v55 = vmax.bf16 %v2285_v38, %v2190_v9  ;;  %v121_v18 = vld [vmem:[%s2175_s11 + $0x10] sm:$0x1]  ;;  %v131_v38 = vld [vmem:[%s2175_s11 + $0x38] sm:$0x1] }
  0x2b   : > { %1986 = vst.msk [vmem:[%s2291_s15] sm:$0xf] %vm1985_vm6, %v1921_v47  ;;  %v242_v56 = vrot.slane %v240_v39, 5  ;;  %v322_v57 = vshrl.u32 %v2230_v48, 16  ;;  %v328_v58 = vshll.u32 %v2298_v43, 16  ;;  %v1132_v0 = vrot.slane %v1130_v15, 4 }
  0x2c   : > { %v1660_v60 = vmax.bf16 %v1574_v3, %v1144_v32  ;;  %v238_v61 = vrot.slane %v237_v53, 4  ;;  %v281_v63 = vor.u32 %v280_v54, %v2245_v8  ;;  %v1470_v62 = vmax.bf16 %v2305_v49, %v2317_v59 }
  0x2d   : > { %v286_v6 = vrot.slane %v284_v50, 5  ;;  %v324_v7 = vrot.slane %v322_v57, 4  ;;  %v1133_v10 = vrot.slane %v2263_v27, 5  ;;  %v1145_v2 = vrot.slane %v1143_v25, 4 }
  0x2e   : > { %v1724_v11 = vmax.bf16 %v1660_v60, %v2190_v9  ;;  %v243_v12 = vsel %vm2204_vm5, %v238_v61, %v242_v56  ;;  %v282_v13 = vrot.slane %v281_v63, 4  ;;  %v1146_v17 = vrot.slane %v2278_v34, 5 }
  0x2f   : > { %v325_v16 = vor.u32 %v324_v7, %v2249_v14  ;;  %v980_v8 = vmax.bf16 %v243_v12, %v2211_v35  ;;  %v1134_v15 = vsel %vm2197_vm4, %v1132_v0, %v1133_v10  ;;  %v330_v20 = vrot.slane %v328_v58, 5 }
  0x30   : > { %v1836_v19 = vmax.bf16 %v1724_v11, %v2270_v1  ;;  %v287_v9 = vsel %vm2204_vm5, %v282_v13, %v286_v6  ;;  %v1158_v22 = vrot.slane %v1156_v30, 4  ;;  %v1147_v35 = vsel %vm2197_vm4, %v1145_v2, %v1146_v17 }
  0x31   : > { %v326_v24 = vrot.slane %v325_v16, 4  ;;  %v984_v14 = vmax.bf16 %v287_v9, %v2221_v42  ;;  %v1399_v25 = vmax.bf16 %v1134_v15, %v980_v8  ;;  %v1159_v31 = vrot.slane %v2298_v43, 5 }
  0x32   : > { %v1922_v29 = vmax.bf16 %v1836_v19, %v2283_v37  ;;  %v244_v32 = vshrl.u32 %v2263_v27, 16  ;;  %v250_v33 = vshll.u32 %v121_v18, 16  ;;  %v288_v39 = vshrl.u32 %v2278_v34, 16 }
  0x33   : > { %v331_v4 = vsel %vm2204_vm5, %v326_v24, %v330_v20  ;;  %v1403_v36 = vmax.bf16 %v1147_v35, %v984_v14  ;;  %v1463_v30 = vmax.bf16 %v1399_v25, %v2221_v42  ;;  %v2352_v44 = vsel %vm2197_vm4, %v1158_v22, %v1159_v31 }
  0x34   : > { %1987 = vst.msk [vmem:[%s2291_s15 + $0x4] sm:$0xf] %vm1985_vm6, %v1922_v29  ;;  %v988_v41 = vmax.bf16 %v331_v4, %v2230_v48  ;;  %v246_v45 = vrot.slane %v244_v32, 4  ;;  %v294_v47 = vshll.u32 %v126_v28, 16  ;;  %v290_v53 = vrot.slane %v288_v39, 4 }
  0x35   : > { %v1467_v50 = vmax.bf16 %v1403_v36, %v2230_v48  ;;  %v1575_v3 = vmax.bf16 %v1463_v30, %v287_v9  ;;  %v332_v54 = vshrl.u32 %v2298_v43, 16  ;;  %v2357_v42 = vmax.bf16 %v1466_v55, %v2270_v1 }
  0x36   : > { %v247_v57 = vor.u32 %v246_v45, %v242_v56  ;;  %v252_v58 = vrot.slane %v250_v33, 5  ;;  %v338_v60 = vshll.u32 %v131_v38, 16  ;;  %v291_v63 = vor.u32 %v290_v53, %v286_v6 }
  0x37   : > { %v1661_v61 = vmax.bf16 %v1575_v3, %v1147_v35  ;;  %v296_v0 = vrot.slane %v294_v47, 5  ;;  %v334_v7 = vrot.slane %v332_v54, 4  ;;  %v2360_v11 = vmax.bf16 %v2352_v44, %v988_v41  ;;  %v2405_v54 = vld [vmem:[%s2175_s11 + $0x48] sm:$0xf] }
  0x38   : > { %v2362_v12 = vmax.bf16 %v1467_v50, %v331_v4  ;;  %v248_v13 = vrot.slane %v247_v57, 4  ;;  %v1135_v2 = vrot.slane %v1133_v10, 4  ;;  %v292_v8 = vrot.slane %v291_v63, 4 }
  0x39   : > { %v1725_v16 = vmax.bf16 %v1661_v61, %v2230_v48  ;;  %v335_v15 = vor.u32 %v334_v7, %v330_v20  ;;  %v340_v1 = vrot.slane %v338_v60, 5  ;;  %v1136_v56 = vrot.slane %v121_v18, 5 }
  0x3a   : > { %v253_v55 = vsel %vm2204_vm5, %v248_v13, %v252_v58  ;;  %v1148_v19 = vrot.slane %v1146_v17, 4  ;;  %v1149_v6 = vrot.slane %v126_v28, 5  ;;  %v297_v22 = vsel %vm2204_vm5, %v292_v8, %v296_v0 }
  0x3b   : > { %v1837_v9 = vmax.bf16 %v1725_v16, %v331_v4  ;;  %v336_v24 = vrot.slane %v335_v15, 4  ;;  %v981_v14 = vmax.bf16 %v253_v55, %v2263_v27  ;;  %v985_v10 = vmax.bf16 %v297_v22, %v2278_v34 }
  0x3c   : > { %v1137_v48 = vsel %vm2197_vm4, %v1135_v2, %v1136_v56  ;;  %v1150_v20 = vsel %vm2197_vm4, %v1148_v19, %v1149_v6  ;;  %v1161_v18 = vrot.slane %v1159_v31, 4  ;;  %v1162_v25 = vrot.slane %v131_v38, 5  ;;  %v2392_v38 = vld [vmem:[%s2175_s11 + $0x44] sm:$0xf] }
  0x3d   : > { %v1923_v17 = vmax.bf16 %v1837_v9, %v2352_v44  ;;  %v341_v35 = vsel %vm2204_vm5, %v336_v24, %v340_v1  ;;  %v1400_v28 = vmax.bf16 %v1137_v48, %v981_v14  ;;  %v1404_v27 = vmax.bf16 %v1150_v20, %v985_v10 }
  0x3e   : > { %v989_v29 = vmax.bf16 %v341_v35, %v2298_v43  ;;  %v343_v32 = vshrl.u32 %v2294_v40, 16  ;;  %v346_v33 = vshll.u32 %v2294_v40, 16  ;;  %v1664_v4 = vmax.bf16 %v2357_v42, %v2283_v37 }
  0x3f   : > { %1988 = vst.msk [vmem:[%s2291_s15 + $0x8] sm:$0xf] %vm1985_vm6, %v1923_v17  ;;  %v2387_v31 = vsel %vm2197_vm4, %v1161_v18, %v1162_v25  ;;  %v1464_v36 = vmax.bf16 %v1400_v28, %v2278_v34  ;;  %v352_v30 = vshll.u32 %v2317_v59, 16  ;;  %v1468_v41 = vmax.bf16 %v1404_v27, %v2298_v43  ;;  %v136_v18 = vld [vmem:[%s2175_s11 + $0x4c] sm:$0x1] }
  0x40   : > { %v2395_v39 = vmax.bf16 %v2387_v31, %v989_v29  ;;  %v345_v45 = vrot.slane %v343_v32, 4  ;;  %v348_v47 = vrot.slane %v346_v33, 5  ;;  %v1471_v37 = vmax.bf16 %v2360_v11, %v2392_v38 }
  0x41   : > { %v1576_v50 = vmax.bf16 %v1464_v36, %v297_v22  ;;  %v2116_v3 = vrot.slane %v2294_v40, 9  ;;  %v1166_v53 = vrot.slane %v2317_v59, 5  ;;  %v1665_v34 = vmax.bf16 %v2362_v12, %v2352_v44 }
  0x42   : > { %v349_v42 = vor.u32 %v348_v47, %v345_v45  ;;  %v354_v57 = vrot.slane %v352_v30, 5  ;;  %v356_v58 = vshrl.u32 %v2317_v59, 16  ;;  %v1472_v60 = vmax.bf16 %v2395_v39, %v2405_v54 }
  0x43   : > { %v1662_v61 = vmax.bf16 %v1576_v50, %v1150_v20  ;;  %v1727_v63 = vmax.bf16 %v1663_v51, %v2294_v40  ;;  %v362_v0 = vshll.u32 %v2392_v38, 16  ;;  %v1580_v7 = vmax.bf16 %v1468_v41, %v341_v35  ;;  %v2471_v50 = vld [vmem:[%s2175_s11 + $0x54] sm:$0xf] }
  0x44   : > { %v350_v13 = vrot.slane %v349_v42, 4  ;;  %v358_v44 = vrot.slane %v356_v58, 4  ;;  %v1168_v12 = vrot.slane %v1166_v53, 4  ;;  %v2418_v16 = vsel %vm2197_vm4, %v2116_v3, %v1166_v53 }
  0x45   : > { %v1726_v2 = vmax.bf16 %v1662_v61, %v2298_v43  ;;  %v1169_v8 = vrot.slane %v2392_v38, 5  ;;  %v366_v15 = vshrl.u32 %v2392_v38, 16  ;;  %v364_v51 = vrot.slane %v362_v0, 5 }
  0x46   : > { %v355_v52 = vsel %vm2204_vm5, %v350_v13, %v354_v57  ;;  %v359_v21 = vor.u32 %v358_v44, %v354_v57  ;;  %v1728_v1 = vmax.bf16 %v1664_v4, %v2317_v59  ;;  %v372_v19 = vshll.u32 %v2405_v54, 16 }
  0x47   : > { %v1838_v55 = vmax.bf16 %v1726_v2, %v341_v35  ;;  %v990_v56 = vmax.bf16 %v355_v52, %v2294_v40  ;;  %v1839_v43 = vmax.bf16 %v1727_v63, %v355_v52  ;;  %v1666_v6 = vmax.bf16 %v1580_v7, %v2387_v31  ;;  %v2486_v7 = vld [vmem:[%s2175_s11 + $0x58] sm:$0xf] }
  0x48   : > { %v360_v9 = vrot.slane %v359_v21, 4  ;;  %v2430_v22 = vsel %vm2197_vm4, %v1168_v12, %v1169_v8  ;;  %v368_v24 = vrot.slane %v366_v15, 4  ;;  %v1581_v48 = vmax.bf16 %v1469_v46, %v355_v52  ;;  %v2451_v46 = vld [vmem:[%s2175_s11 + $0x50] sm:$0xf] }
  0x49   : > { %v1924_v14 = vmax.bf16 %v1838_v55, %v2387_v31  ;;  %v2434_v10 = vmax.bf16 %v2418_v16, %v990_v56  ;;  %v1925_v20 = vmax.bf16 %v1839_v43, %v2418_v16  ;;  %v1171_v25 = vrot.slane %v1169_v8, 4 }
  0x4a   : > { %v365_v17 = vsel %vm2204_vm5, %v360_v9, %v364_v51  ;;  %v369_v35 = vor.u32 %v368_v24, %v364_v51  ;;  %v1172_v28 = vrot.slane %v2405_v54, 5  ;;  %v374_v5 = vrot.slane %v372_v19, 5 }
  0x4b   : > { %1989 = vst.msk [vmem:[%s2291_s15 + $0xc] sm:$0xf] %vm1985_vm6, %v1924_v14  ;;  %1990 = vst.msk [vmem:[%s2291_s15 + $0x10] sm:$0xf] %vm1985_vm6, %v1925_v20  ;;  %v991_v29 = vmax.bf16 %v365_v17, %v2317_v59  ;;  %v1840_v27 = vmax.bf16 %v1728_v1, %v365_v17  ;;  %v1729_v40 = vmax.bf16 %v1665_v34, %v2392_v38  ;;  %v376_v4 = vshrl.u32 %v2405_v54, 16 }
  0x4c   : > { %v1582_v32 = vmax.bf16 %v1470_v62, %v365_v17  ;;  %v370_v33 = vrot.slane %v369_v35, 4  ;;  %v382_v31 = vshll.u32 %v136_v18, 16  ;;  %v1473_v36 = vmax.bf16 %v2434_v10, %v2451_v46 }
  0x4d   : > { %v1667_v30 = vmax.bf16 %v1581_v48, %v2418_v16  ;;  %v2461_v41 = vmax.bf16 %v2430_v22, %v991_v29  ;;  %v1926_v45 = vmax.bf16 %v1840_v27, %v2430_v22  ;;  %v2468_v49 = vsel %vm2197_vm4, %v1171_v25, %v1172_v28 }
  0x4e   : > { %v375_v47 = vsel %vm2204_vm5, %v370_v33, %v374_v5  ;;  %v378_v59 = vrot.slane %v376_v4, 4  ;;  %v1174_v62 = vrot.slane %v1172_v28, 4  ;;  %v1175_v42 = vrot.slane %v136_v18, 5 }
  0x4f   : > { %1991 = vst.msk [vmem:[%s2291_s15 + $0x14] sm:$0xf] %vm1985_vm6, %v1926_v45  ;;  %v992_v3 = vmax.bf16 %v375_v47, %v2392_v38  ;;  %v2479_v53 = vmax.bf16 %v1471_v37, %v375_v47  ;;  %v1841_v34 = vmax.bf16 %v1729_v40, %v375_v47  ;;  %v1668_v57 = vmax.bf16 %v1582_v32, %v2430_v22  ;;  %v2513_v22 = vld [vmem:[%s2175_s11 + $0x5c] sm:$0xf] }
  0x50   : > { %v379_v58 = vor.u32 %v378_v59, %v374_v5  ;;  %v384_v61 = vrot.slane %v382_v31, 5  ;;  %v387_v63 = vshrl.u32 %v2451_v46, 16  ;;  %v1474_v0 = vmax.bf16 %v2461_v41, %v2471_v50 }
  0x51   : > { %v1927_v13 = vmax.bf16 %v1841_v34, %v2468_v49  ;;  %v1730_v11 = vmax.bf16 %v1666_v6, %v2405_v54  ;;  %v390_v38 = vshll.u32 %v2451_v46, 16  ;;  %v2492_v37 = vmax.bf16 %v2468_v49, %v992_v3  ;;  %v141_v34 = vld [vmem:[%s2175_s11 + $0x60] sm:$0x1] }
  0x52   : > { %v380_v44 = vrot.slane %v379_v58, 4  ;;  %v389_v12 = vrot.slane %v387_v63, 4  ;;  %v396_v2 = vshll.u32 %v2471_v50, 16  ;;  %v1669_v16 = vmax.bf16 %v2479_v53, %v2468_v49 }
  0x53   : > { %1992 = vst.msk [vmem:[%s2291_s15 + $0x18] sm:$0xf] %vm1985_vm6, %v1927_v13  ;;  %v2501_v8 = vsel %vm2197_vm4, %v1174_v62, %v1175_v42  ;;  %v392_v15 = vrot.slane %v390_v38, 5  ;;  %v2117_v52 = vrot.slane %v2451_v46, 9  ;;  %v400_v1 = vshrl.u32 %v2471_v50, 16 }
  0x54   : > { %v385_v21 = vsel %vm2204_vm5, %v380_v44, %v384_v61  ;;  %v398_v51 = vrot.slane %v396_v2, 5  ;;  %v406_v55 = vshll.u32 %v2486_v7, 16  ;;  %v1179_v6 = vrot.slane %v2471_v50, 5  ;;  %v2553_v42 = vld [vmem:[%s2175_s11 + $0x64] sm:$0xf] }
  0x55   : > { %v993_v56 = vmax.bf16 %v385_v21, %v2405_v54  ;;  %v1842_v43 = vmax.bf16 %v1730_v11, %v385_v21  ;;  %v393_v19 = vor.u32 %v392_v15, %v389_v12  ;;  %v1475_v9 = vmax.bf16 %v2492_v37, %v2486_v7 }
  0x56   : > { %v1584_v24 = vmax.bf16 %v1472_v60, %v385_v21  ;;  %v1731_v14 = vmax.bf16 %v1667_v30, %v2451_v46  ;;  %v402_v10 = vrot.slane %v400_v1, 4  ;;  %v2525_v17 = vsel %vm2197_vm4, %v2117_v52, %v1179_v6 }
  0x57   : > { %v2520_v48 = vmax.bf16 %v2501_v8, %v993_v56  ;;  %v1928_v20 = vmax.bf16 %v1842_v43, %v2501_v8  ;;  %v394_v18 = vrot.slane %v393_v19, 4  ;;  %v408_v25 = vrot.slane %v406_v55, 5 }
  0x58   : > { %v403_v35 = vor.u32 %v402_v10, %v398_v51  ;;  %v1182_v28 = vrot.slane %v2486_v7, 5  ;;  %v410_v39 = vshrl.u32 %v2486_v7, 16  ;;  %v1181_v60 = vrot.slane %v1179_v6, 4 }
  0x59   : > { %1993 = vst.msk [vmem:[%s2291_s15 + $0x1c] sm:$0xf] %vm1985_vm6, %v1928_v20  ;;  %v399_v54 = vsel %vm2204_vm5, %v394_v18, %v398_v51  ;;  %v1732_v29 = vmax.bf16 %v1668_v57, %v2471_v50  ;;  %v416_v27 = vshll.u32 %v2513_v22, 16  ;;  %v1476_v4 = vmax.bf16 %v2520_v48, %v2513_v22  ;;  %v2589_v20 = vld [vmem:[%s2175_s11 + $0x6c] sm:$0xf] }
  0x5a   : > { %v994_v5 = vmax.bf16 %v399_v54, %v2451_v46  ;;  %v1585_v40 = vmax.bf16 %v1473_v36, %v399_v54  ;;  %v1843_v32 = vmax.bf16 %v1731_v14, %v399_v54  ;;  %v404_v33 = vrot.slane %v403_v35, 4 }
  0x5b   : > { %v1670_v31 = vmax.bf16 %v1584_v24, %v2501_v8  ;;  %v412_v30 = vrot.slane %v410_v39, 4  ;;  %v1185_v45 = vrot.slane %v2513_v22, 5  ;;  %v1184_v36 = vrot.slane %v1182_v28, 4 }
  0x5c   : > { %v2541_v47 = vmax.bf16 %v2525_v17, %v994_v5  ;;  %v1929_v49 = vmax.bf16 %v1843_v32, %v2525_v17  ;;  %v409_v46 = vsel %vm2204_vm5, %v404_v33, %v408_v25  ;;  %v2549_v62 = vsel %vm2197_vm4, %v1181_v60, %v1182_v28 }
  0x5d   : > { %v995_v59 = vmax.bf16 %v409_v46, %v2471_v50  ;;  %v1844_v3 = vmax.bf16 %v1732_v29, %v409_v46  ;;  %v413_v53 = vor.u32 %v412_v30, %v408_v25  ;;  %v1671_v57 = vmax.bf16 %v1585_v40, %v2525_v17 }
  0x5e   : > { %1994 = vst.msk [vmem:[%s2291_s15 + $0x20] sm:$0xf] %vm1985_vm6, %v1929_v49  ;;  %v418_v58 = vrot.slane %v416_v27, 5  ;;  %v1733_v61 = vmax.bf16 %v1669_v16, %v2486_v7  ;;  %v420_v63 = vshrl.u32 %v2513_v22, 16  ;;  %v1477_v13 = vmax.bf16 %v2541_v47, %v2553_v42  ;;  %v2619_v49 = vld [vmem:[%s2175_s11 + $0x70] sm:$0xf] }
  0x5f   : > { %v1586_v11 = vmax.bf16 %v1474_v0, %v409_v46  ;;  %v1930_v38 = vmax.bf16 %v1844_v3, %v2549_v62  ;;  %v414_v37 = vrot.slane %v413_v53, 4  ;;  %v2567_v44 = vmax.bf16 %v2549_v62, %v995_v59  ;;  %v2579_v0 = vld [vmem:[%s2175_s11 + $0x68] sm:$0xf] }
  0x60   : > { %v2571_v12 = vsel %vm2197_vm4, %v1184_v36, %v1185_v45  ;;  %v422_v2 = vrot.slane %v420_v63, 4  ;;  %v426_v16 = vshll.u32 %v141_v34, 16  ;;  %v1187_v15 = vrot.slane %v1185_v45, 4 }
  0x61   : > { %1995 = vst.msk [vmem:[%s2291_s15 + $0x24] sm:$0xf] %vm1985_vm6, %v1930_v38  ;;  %v419_v8 = vsel %vm2204_vm5, %v414_v37, %v418_v58  ;;  %v1188_v41 = vrot.slane %v141_v34, 5  ;;  %v431_v50 = vshrl.u32 %v2553_v42, 16  ;;  %v1734_v1 = vmax.bf16 %v1670_v31, %v2513_v22 }
  0x62   : > { %v996_v52 = vmax.bf16 %v419_v8, %v2486_v7  ;;  %v1845_v21 = vmax.bf16 %v1733_v61, %v419_v8  ;;  %v423_v51 = vor.u32 %v422_v2, %v418_v58  ;;  %v1587_v55 = vmax.bf16 %v1475_v9, %v419_v8 }
  0x63   : > { %v428_v56 = vrot.slane %v426_v16, 5  ;;  %v433_v43 = vrot.slane %v431_v50, 4  ;;  %v434_v19 = vshll.u32 %v2553_v42, 16  ;;  %v1478_v6 = vmax.bf16 %v2567_v44, %v2579_v0 }
  0x64   : > { %v1672_v24 = vmax.bf16 %v1586_v11, %v2549_v62  ;;  %v1931_v14 = vmax.bf16 %v1845_v21, %v2571_v12  ;;  %v424_v10 = vrot.slane %v423_v51, 4  ;;  %v2592_v7 = vmax.bf16 %v2571_v12, %v996_v52 }
  0x65   : > { %v2596_v9 = vsel %vm2197_vm4, %v1187_v15, %v1188_v41  ;;  %v436_v18 = vrot.slane %v434_v19, 5  ;;  %v440_v17 = vshll.u32 %v2579_v0, 16  ;;  %v2118_v25 = vrot.slane %v2553_v42, 9  ;;  %v146_v15 = vld [vmem:[%s2175_s11 + $0x74] sm:$0x1] }
  0x66   : > { %1996 = vst.msk [vmem:[%s2291_s15 + $0x28] sm:$0xf] %vm1985_vm6, %v1931_v14  ;;  %v429_v35 = vsel %vm2204_vm5, %v424_v10, %v428_v56  ;;  %v1192_v28 = vrot.slane %v2579_v0, 5  ;;  %v444_v39 = vshrl.u32 %v2579_v0, 16  ;;  %v1673_v54 = vmax.bf16 %v1587_v55, %v2571_v12 }
  0x67   : > { %v1846_v60 = vmax.bf16 %v1734_v1, %v429_v35  ;;  %v437_v29 = vor.u32 %v436_v18, %v433_v43  ;;  %v1735_v27 = vmax.bf16 %v1671_v57, %v2553_v42  ;;  %v997_v5 = vmax.bf16 %v429_v35, %v2513_v22  ;;  %v2681_v18 = vld [vmem:[%s2175_s11 + $0x7c] sm:$0xf] }
  0x68   : > { %v442_v40 = vrot.slane %v440_v17, 5  ;;  %v446_v32 = vrot.slane %v444_v39, 4  ;;  %v450_v33 = vshll.u32 %v2589_v20, 16  ;;  %v1479_v31 = vmax.bf16 %v2592_v7, %v2589_v20 }
  0x69   : > { %v2615_v30 = vmax.bf16 %v1476_v4, %v429_v35  ;;  %v1932_v45 = vmax.bf16 %v1846_v60, %v2596_v9  ;;  %v438_v47 = vrot.slane %v437_v29, 4  ;;  %v2623_v46 = vsel %vm2197_vm4, %v2118_v25, %v1192_v28 }
  0x6a   : > { %v447_v36 = vor.u32 %v446_v32, %v442_v40  ;;  %v1194_v59 = vrot.slane %v1192_v28, 4  ;;  %v1195_v62 = vrot.slane %v2589_v20, 5  ;;  %v452_v48 = vrot.slane %v450_v33, 5 }
  0x6b   : > { %1997 = vst.msk [vmem:[%s2291_s15 + $0x2c] sm:$0xf] %vm1985_vm6, %v1932_v45  ;;  %v443_v22 = vsel %vm2204_vm5, %v438_v47, %v442_v40  ;;  %v1736_v4 = vmax.bf16 %v1672_v24, %v2579_v0  ;;  %v454_v3 = vshrl.u32 %v2589_v20, 16  ;;  %v2633_v53 = vmax.bf16 %v2596_v9, %v997_v5 }
  0x6c   : > { %v998_v34 = vmax.bf16 %v443_v22, %v2553_v42  ;;  %v1847_v57 = vmax.bf16 %v1735_v27, %v443_v22  ;;  %v448_v58 = vrot.slane %v447_v36, 4  ;;  %v1589_v61 = vmax.bf16 %v1477_v13, %v443_v22  ;;  %v2691_v27 = vld [vmem:[%s2175_s11 + $0x80] sm:$0xf] }
  0x6d   : > { %v2638_v63 = vsel %vm2197_vm4, %v1194_v59, %v1195_v62  ;;  %v456_v11 = vrot.slane %v454_v3, 4  ;;  %v460_v38 = vshll.u32 %v2619_v49, 16  ;;  %v1197_v12 = vrot.slane %v1195_v62, 4 }
  0x6e   : > { %v2642_v37 = vmax.bf16 %v2623_v46, %v998_v34  ;;  %v1933_v44 = vmax.bf16 %v1847_v57, %v2623_v46  ;;  %v453_v42 = vsel %vm2204_vm5, %v448_v58, %v452_v48  ;;  %v1480_v41 = vmax.bf16 %v2633_v53, %v2619_v49 }
  0x6f   : > { %v999_v2 = vmax.bf16 %v453_v42, %v2579_v0  ;;  %v2648_v13 = vmax.bf16 %v1478_v6, %v453_v42  ;;  %v1848_v16 = vmax.bf16 %v1736_v4, %v453_v42  ;;  %v457_v8 = vor.u32 %v456_v11, %v452_v48  ;;  %v2660_v0 = vld [vmem:[%s2175_s11 + $0x78] sm:$0xf] }
  0x70   : > { %v1674_v50 = vmax.bf16 %v2615_v30, %v2596_v9  ;;  %1998 = vst.msk [vmem:[%s2291_s15 + $0x30] sm:$0xf] %vm1985_vm6, %v1933_v44  ;;  %v1198_v52 = vrot.slane %v2619_v49, 5  ;;  %v1737_v21 = vmax.bf16 %v1673_v54, %v2589_v20  ;;  %v462_v56 = vrot.slane %v460_v38, 5  ;;  %v2718_v38 = vld [vmem:[%s2175_s11 + $0x84] sm:$0xf] }
  0x71   : > { %v2663_v51 = vmax.bf16 %v2638_v63, %v999_v2  ;;  %v1934_v1 = vmax.bf16 %v1848_v16, %v2638_v63  ;;  %v458_v55 = vrot.slane %v457_v8, 4  ;;  %v1481_v43 = vmax.bf16 %v2642_v37, %v2660_v0 }
  0x72   : > { %v1675_v19 = vmax.bf16 %v1589_v61, %v2623_v46  ;;  %v464_v6 = vshrl.u32 %v2619_v49, 16  ;;  %v470_v24 = vshll.u32 %v146_v15, 16  ;;  %v1676_v14 = vmax.bf16 %v2648_v13, %v2638_v63 }
  0x73   : > { %1999 = vst.msk [vmem:[%s2291_s15 + $0x34] sm:$0xf] %vm1985_vm6, %v1934_v1  ;;  %v463_v10 = vsel %vm2204_vm5, %v458_v55, %v462_v56  ;;  %v2678_v7 = vsel %vm2197_vm4, %v1197_v12, %v1198_v52  ;;  %v1200_v9 = vrot.slane %v1198_v52, 4  ;;  %v1201_v28 = vrot.slane %v146_v15, 5 }
  0x74   : > { %v1000_v17 = vmax.bf16 %v463_v10, %v2589_v20  ;;  %v1849_v35 = vmax.bf16 %v1737_v21, %v463_v10  ;;  %v466_v25 = vrot.slane %v464_v6, 4  ;;  %v1482_v39 = vmax.bf16 %v2663_v51, %v2681_v18 }
  0x75   : > { %v2686_v54 = vmax.bf16 %v1479_v31, %v463_v10  ;;  %v475_v60 = vshrl.u32 %v2660_v0, 16  ;;  %v478_v29 = vshll.u32 %v2660_v0, 16  ;;  %v472_v32 = vrot.slane %v470_v24, 5 }
  0x76   : > { %v1935_v5 = vmax.bf16 %v1849_v35, %v2678_v7  ;;  %v467_v40 = vor.u32 %v466_v25, %v462_v56  ;;  %v1738_v20 = vmax.bf16 %v1674_v50, %v2619_v49  ;;  %v2696_v33 = vmax.bf16 %v2678_v7, %v1000_v17  ;;  %v151_v56 = vld [vmem:[%s2175_s11 + $0x88] sm:$0x1] }
  0x77   : > { %v477_v30 = vrot.slane %v475_v60, 4  ;;  %v480_v45 = vrot.slane %v478_v29, 5  ;;  %v484_v31 = vshll.u32 %v2681_v18, 16  ;;  %v2703_v46 = vsel %vm2197_vm4, %v1200_v9, %v1201_v28  ;;  %v2758_v28 = vld [vmem:[%s2175_s11 + $0x8c] sm:$0xf] }
  0x78   : > { %2000 = vst.msk [vmem:[%s2291_s15 + $0x38] sm:$0xf] %vm1985_vm6, %v1935_v5  ;;  %v468_v47 = vrot.slane %v467_v40, 4  ;;  %v2119_v36 = vrot.slane %v2660_v0, 9  ;;  %v1205_v59 = vrot.slane %v2681_v18, 5  ;;  %v1677_v62 = vmax.bf16 %v2686_v54, %v2678_v7 }
  0x79   : > { %v481_v22 = vor.u32 %v480_v45, %v477_v30  ;;  %v488_v48 = vshrl.u32 %v2681_v18, 16  ;;  %v494_v4 = vshll.u32 %v2691_v27, 16  ;;  %v486_v53 = vrot.slane %v484_v31, 5 }
  0x7a   : > { %v473_v3 = vsel %vm2204_vm5, %v468_v47, %v472_v32  ;;  %v1739_v34 = vmax.bf16 %v1675_v19, %v2660_v0  ;;  %v1207_v57 = vrot.slane %v1205_v59, 4  ;;  %v1483_v58 = vmax.bf16 %v2696_v33, %v2691_v27 }
  0x7b   : > { %v1001_v61 = vmax.bf16 %v473_v3, %v2619_v49  ;;  %v1850_v63 = vmax.bf16 %v1738_v20, %v473_v3  ;;  %v482_v11 = vrot.slane %v481_v22, 4  ;;  %v1592_v37 = vmax.bf16 %v1480_v41, %v473_v3 }
  0x7c   : > { %v2722_v44 = vsel %vm2197_vm4, %v2119_v36, %v1205_v59  ;;  %v490_v42 = vrot.slane %v488_v48, 4  ;;  %v1208_v12 = vrot.slane %v2691_v27, 5  ;;  %v496_v16 = vrot.slane %v494_v4, 5  ;;  %v2777_v36 = vld [vmem:[%s2175_s11 + $0x90] sm:$0xf] }
  0x7d   : > { %v2726_v2 = vmax.bf16 %v2703_v46, %v1001_v61  ;;  %v1936_v13 = vmax.bf16 %v1850_v63, %v2703_v46  ;;  %v487_v49 = vsel %vm2204_vm5, %v482_v11, %v486_v53  ;;  %v1740_v21 = vmax.bf16 %v1676_v14, %v2681_v18 }
  0x7e   : > { %v1002_v8 = vmax.bf16 %v487_v49, %v2660_v0  ;;  %v1851_v15 = vmax.bf16 %v1739_v34, %v487_v49  ;;  %v491_v41 = vor.u32 %v490_v42, %v486_v53  ;;  %v2734_v50 = vsel %vm2197_vm4, %v1207_v57, %v1208_v12 }
  0x7f   : > { %2001 = vst.msk [vmem:[%s2291_s15 + $0x3c] sm:$0xf] %vm1985_vm6, %v1936_v13  ;;  %v2738_v52 = vmax.bf16 %v1481_v43, %v487_v49  ;;  %v498_v1 = vshrl.u32 %v2691_v27, 16  ;;  %v504_v55 = vshll.u32 %v2718_v38, 16  ;;  %v1678_v0 = vmax.bf16 %v1592_v37, %v2703_v46  ;;  %v2807_v13 = vld [vmem:[%s2175_s11 + $0x94] sm:$0xf] }
  0x80   : > { %v2746_v19 = vmax.bf16 %v2722_v44, %v1002_v8  ;;  %v1937_v6 = vmax.bf16 %v1851_v15, %v2722_v44  ;;  %v492_v24 = vrot.slane %v491_v41, 4  ;;  %v1484_v43 = vmax.bf16 %v2726_v2, %v2718_v38 }
  0x81   : > { %v500_v10 = vrot.slane %v498_v1, 4  ;;  %v506_v7 = vrot.slane %v504_v55, 5  ;;  %v1210_v14 = vrot.slane %v1208_v12, 4  ;;  %v1211_v17 = vrot.slane %v2718_v38, 5  ;;  %v2824_v55 = vld [vmem:[%s2175_s11 + $0x98] sm:$0xf] }
  0x82   : > { %2002 = vst.msk [vmem:[%s2291_s15 + $0x40] sm:$0xf] %vm1985_vm6, %v1937_v6  ;;  %v497_v9 = vsel %vm2204_vm5, %v492_v24, %v496_v16  ;;  %v508_v35 = vshrl.u32 %v2718_v38, 16  ;;  %v514_v25 = vshll.u32 %v151_v56, 16  ;;  %v1679_v54 = vmax.bf16 %v2738_v52, %v2722_v44 }
  0x83   : > { %v1003_v60 = vmax.bf16 %v497_v9, %v2681_v18  ;;  %v1852_v29 = vmax.bf16 %v1740_v21, %v497_v9  ;;  %v501_v5 = vor.u32 %v500_v10, %v496_v16  ;;  %v1485_v40 = vmax.bf16 %v2746_v19, %v2758_v28 }
  0x84   : > { %v2768_v32 = vmax.bf16 %v1482_v39, %v497_v9  ;;  %v1741_v20 = vmax.bf16 %v1677_v62, %v2691_v27  ;;  %v510_v30 = vrot.slane %v508_v35, 4  ;;  %v2774_v47 = vsel %vm2197_vm4, %v1210_v14, %v1211_v17 }
  0x85   : > { %v1938_v45 = vmax.bf16 %v1852_v29, %v2734_v50  ;;  %v502_v31 = vrot.slane %v501_v5, 4  ;;  %v516_v46 = vrot.slane %v514_v25, 5  ;;  %v1213_v22 = vrot.slane %v1211_v17, 4 }
  0x86   : > { %v511_v59 = vor.u32 %v510_v30, %v506_v7  ;;  %v1214_v48 = vrot.slane %v151_v56, 5  ;;  %v519_v51 = vshrl.u32 %v2758_v28, 16  ;;  %v2781_v18 = vmax.bf16 %v2734_v50, %v1003_v60 }
  0x87   : > { %2003 = vst.msk [vmem:[%s2291_s15 + $0x44] sm:$0xf] %vm1985_vm6, %v1938_v45  ;;  %v507_v39 = vsel %vm2204_vm5, %v502_v31, %v506_v7  ;;  %v1742_v62 = vmax.bf16 %v1678_v0, %v2718_v38  ;;  %v522_v4 = vshll.u32 %v2758_v28, 16  ;;  %v1680_v3 = vmax.bf16 %v2768_v32, %v2734_v50 }
  0x88   : > { %v1004_v53 = vmax.bf16 %v507_v39, %v2691_v27  ;;  %v1853_v34 = vmax.bf16 %v1741_v20, %v507_v39  ;;  %v512_v57 = vrot.slane %v511_v59, 4  ;;  %v1595_v61 = vmax.bf16 %v1483_v58, %v507_v39  ;;  %v156_v20 = vld [vmem:[%s2175_s11 + $0x9c] sm:$0x1] }
  0x89   : > { %v521_v63 = vrot.slane %v519_v51, 4  ;;  %v524_v11 = vrot.slane %v522_v4, 5  ;;  %v528_v37 = vshll.u32 %v2777_v36, 16  ;;  %v2804_v2 = vsel %vm2197_vm4, %v1213_v22, %v1214_v48 }
  0x8a   : > { %v2797_v44 = vmax.bf16 %v2774_v47, %v1004_v53  ;;  %v1939_v42 = vmax.bf16 %v1853_v34, %v2774_v47  ;;  %v517_v12 = vsel %vm2204_vm5, %v512_v57, %v516_v46  ;;  %v1486_v16 = vmax.bf16 %v2781_v18, %v2777_v36 }
  0x8b   : > { %v1005_v27 = vmax.bf16 %v517_v12, %v2718_v38  ;;  %v2810_v33 = vmax.bf16 %v1484_v43, %v517_v12  ;;  %v1854_v58 = vmax.bf16 %v1742_v62, %v517_v12  ;;  %v525_v49 = vor.u32 %v524_v11, %v521_v63 }
  0x8c   : > { %2004 = vst.msk [vmem:[%s2291_s15 + $0x48] sm:$0xf] %vm1985_vm6, %v1939_v42  ;;  %v2120_v8 = vrot.slane %v2758_v28, 9  ;;  %v1218_v15 = vrot.slane %v2777_v36, 5  ;;  %v1743_v41 = vmax.bf16 %v1679_v54, %v2758_v28  ;;  %v1681_v50 = vmax.bf16 %v1595_v61, %v2774_v47  ;;  %v2861_v47 = vld [vmem:[%s2175_s11 + $0xa0] sm:$0xf] }
  0x8d   : > { %v1940_v38 = vmax.bf16 %v1854_v58, %v2804_v2  ;;  %v526_v52 = vrot.slane %v525_v49, 4  ;;  %v530_v21 = vrot.slane %v528_v37, 5  ;;  %v1487_v1 = vmax.bf16 %v2797_v44, %v2807_v13 }
  0x8e   : > { %v2827_v56 = vmax.bf16 %v2804_v2, %v1005_v27  ;;  %v532_v0 = vshrl.u32 %v2777_v36, 16  ;;  %v538_v19 = vshll.u32 %v2807_v13, 16  ;;  %v1682_v6 = vmax.bf16 %v2810_v33, %v2804_v2  ;;  %v2880_v2 = vld [vmem:[%s2175_s11 + $0xa4] sm:$0xf] }
  0x8f   : > { %2005 = vst.msk [vmem:[%s2291_s15 + $0x4c] sm:$0xf] %vm1985_vm6, %v1940_v38  ;;  %v531_v24 = vsel %vm2204_vm5, %v526_v52, %v530_v21  ;;  %v2839_v43 = vsel %vm2197_vm4, %v2120_v8, %v1218_v15  ;;  %v1220_v10 = vrot.slane %v1218_v15, 4  ;;  %v1221_v17 = vrot.slane %v2807_v13, 5 }
  0x90   : > { %v1006_v7 = vmax.bf16 %v531_v24, %v2758_v28  ;;  %v1855_v14 = vmax.bf16 %v1743_v41, %v531_v24  ;;  %v534_v9 = vrot.slane %v532_v0, 4  ;;  %v2843_v35 = vmax.bf16 %v1485_v40, %v531_v24 }
  0x91   : > { %v540_v25 = vrot.slane %v538_v19, 5  ;;  %v542_v54 = vshrl.u32 %v2807_v13, 16  ;;  %v548_v60 = vshll.u32 %v2824_v55, 16  ;;  %v1488_v29 = vmax.bf16 %v2827_v56, %v2824_v55  ;;  %v2908_v19 = vld [vmem:[%s2175_s11 + $0xa8] sm:$0xf] }
  0x92   : > { %v2850_v5 = vmax.bf16 %v2839_v43, %v1006_v7  ;;  %v1941_v28 = vmax.bf16 %v1855_v14, %v2839_v43  ;;  %v535_v32 = vor.u32 %v534_v9, %v530_v21  ;;  %v2856_v30 = vsel %vm2197_vm4, %v1220_v10, %v1221_v17 }
  0x93   : > { %v1744_v40 = vmax.bf16 %v1680_v3, %v2777_v36  ;;  %v544_v45 = vrot.slane %v542_v54, 4  ;;  %v1224_v31 = vrot.slane %v2824_v55, 5  ;;  %v550_v59 = vrot.slane %v548_v60, 5  ;;  %v2925_v54 = vld [vmem:[%s2175_s11 + $0xac] sm:$0xf] }
  0x94   : > { %2006 = vst.msk [vmem:[%s2291_s15 + $0x50] sm:$0xf] %vm1985_vm6, %v1941_v28  ;;  %v536_v46 = vrot.slane %v535_v32, 4  ;;  %v1223_v22 = vrot.slane %v1221_v17, 4  ;;  %v552_v48 = vshrl.u32 %v2824_v55, 16  ;;  %v1489_v51 = vmax.bf16 %v2850_v5, %v2861_v47 }
  0x95   : > { %v1683_v18 = vmax.bf16 %v2843_v35, %v2839_v43  ;;  %v545_v39 = vor.u32 %v544_v45, %v540_v25  ;;  %v558_v62 = vshll.u32 %v156_v20, 16  ;;  %v1745_v3 = vmax.bf16 %v1681_v50, %v2807_v13 }
  0x96   : > { %v541_v4 = vsel %vm2204_vm5, %v536_v46, %v540_v25  ;;  %v554_v53 = vrot.slane %v552_v48, 4  ;;  %v1226_v34 = vrot.slane %v1224_v31, 4  ;;  %v1227_v11 = vrot.slane %v156_v20, 5 }
  0x97   : > { %v1007_v57 = vmax.bf16 %v541_v4, %v2777_v36  ;;  %v1856_v61 = vmax.bf16 %v1744_v40, %v541_v4  ;;  %v546_v63 = vrot.slane %v545_v39, 4  ;;  %v2876_v37 = vsel %vm2197_vm4, %v1223_v22, %v1224_v31 }
  0x98   : > { %v555_v44 = vor.u32 %v554_v53, %v550_v59  ;;  %v560_v42 = vrot.slane %v558_v62, 5  ;;  %v563_v12 = vshrl.u32 %v2861_v47, 16  ;;  %v1598_v27 = vmax.bf16 %v1486_v16, %v541_v4 }
  0x99   : > { %v1942_v33 = vmax.bf16 %v1856_v61, %v2856_v30  ;;  %v551_v36 = vsel %vm2204_vm5, %v546_v63, %v550_v59  ;;  %v1746_v58 = vmax.bf16 %v1682_v6, %v2824_v55  ;;  %v2887_v49 = vmax.bf16 %v2856_v30, %v1007_v57  ;;  %v161_v57 = vld [vmem:[%s2175_s11 + $0xb0] sm:$0x1] }
  0x9a   : > { %v1008_v8 = vmax.bf16 %v551_v36, %v2807_v13  ;;  %v1857_v15 = vmax.bf16 %v1745_v3, %v551_v36  ;;  %v556_v41 = vrot.slane %v555_v44, 4  ;;  %v2892_v50 = vmax.bf16 %v1487_v1, %v551_v36  ;;  %v2967_v36 = vld [vmem:[%s2175_s11 + $0xb4] sm:$0xf] }
  0x9b   : > { %2007 = vst.msk [vmem:[%s2291_s15 + $0x54] sm:$0xf] %vm1985_vm6, %v1942_v33  ;;  %v2896_v16 = vsel %vm2197_vm4, %v1226_v34, %v1227_v11  ;;  %v565_v38 = vrot.slane %v563_v12, 4  ;;  %v566_v52 = vshll.u32 %v2861_v47, 16  ;;  %v572_v0 = vshll.u32 %v2880_v2, 16 }
  0x9c   : > { %v2900_v21 = vmax.bf16 %v2876_v37, %v1008_v8  ;;  %v1943_v56 = vmax.bf16 %v1857_v15, %v2876_v37  ;;  %v561_v13 = vsel %vm2204_vm5, %v556_v41, %v560_v42  ;;  %v1684_v1 = vmax.bf16 %v1598_v27, %v2856_v30 }
  0x9d   : > { %v1009_v6 = vmax.bf16 %v561_v13, %v2824_v55  ;;  %v1858_v24 = vmax.bf16 %v1746_v58, %v561_v13  ;;  %v568_v43 = vrot.slane %v566_v52, 5  ;;  %v1490_v10 = vmax.bf16 %v2887_v49, %v2880_v2  ;;  %v2984_v52 = vld [vmem:[%s2175_s11 + $0xb8] sm:$0xf] }
  0x9e   : > { %2008 = vst.msk [vmem:[%s2291_s15 + $0x58] sm:$0xf] %vm1985_vm6, %v1943_v56  ;;  %v2915_v7 = vmax.bf16 %v1488_v29, %v561_v13  ;;  %v2121_v14 = vrot.slane %v2861_v47, 9  ;;  %v1231_v9 = vrot.slane %v2880_v2, 5  ;;  %v1491_v17 = vmax.bf16 %v2900_v21, %v2908_v19 }
  0x9f   : > { %v1685_v55 = vmax.bf16 %v2892_v50, %v2876_v37  ;;  %v1944_v35 = vmax.bf16 %v1858_v24, %v2896_v16  ;;  %v569_v25 = vor.u32 %v568_v43, %v565_v38  ;;  %v574_v60 = vrot.slane %v572_v0, 5 }
  0xa0   : > { %v1747_v28 = vmax.bf16 %v1683_v18, %v2861_v47  ;;  %v576_v29 = vshrl.u32 %v2880_v2, 16  ;;  %v582_v32 = vshll.u32 %v2908_v19, 16  ;;  %v2931_v20 = vmax.bf16 %v2896_v16, %v1009_v6 }
  0xa1   : > { %2009 = vst.msk [vmem:[%s2291_s15 + $0x5c] sm:$0xf] %vm1985_vm6, %v1944_v35  ;;  %v570_v30 = vrot.slane %v569_v25, 4  ;;  %v1233_v40 = vrot.slane %v1231_v9, 4  ;;  %v1234_v45 = vrot.slane %v2908_v19, 5  ;;  %v1686_v31 = vmax.bf16 %v2915_v7, %v2896_v16 }
  0xa2   : > { %v2940_v46 = vsel %vm2197_vm4, %v2121_v14, %v1231_v9  ;;  %v578_v59 = vrot.slane %v576_v29, 4  ;;  %v586_v22 = vshrl.u32 %v2908_v19, 16  ;;  %v584_v18 = vrot.slane %v582_v32, 5  ;;  %v3010_v32 = vld [vmem:[%s2175_s11 + $0xbc] sm:$0xf] }
  0xa3   : > { %v575_v48 = vsel %vm2204_vm5, %v570_v30, %v574_v60  ;;  %v592_v39 = vshll.u32 %v2925_v54, 16  ;;  %v1236_v62 = vrot.slane %v1234_v45, 4  ;;  %v1492_v61 = vmax.bf16 %v2931_v20, %v2925_v54 }
  0xa4   : > { %v1010_v4 = vmax.bf16 %v575_v48, %v2861_v47  ;;  %v2950_v3 = vmax.bf16 %v1489_v51, %v575_v48  ;;  %v1859_v53 = vmax.bf16 %v1747_v28, %v575_v48  ;;  %v579_v34 = vor.u32 %v578_v59, %v574_v60 }
  0xa5   : > { %v2957_v63 = vsel %vm2197_vm4, %v1233_v40, %v1234_v45  ;;  %v1748_v11 = vmax.bf16 %v1684_v1, %v2880_v2  ;;  %v588_v37 = vrot.slane %v586_v22, 4  ;;  %v1237_v51 = vrot.slane %v2925_v54, 5 }
  0xa6   : > { %v2961_v44 = vmax.bf16 %v2940_v46, %v1010_v4  ;;  %v1945_v5 = vmax.bf16 %v1859_v53, %v2940_v46  ;;  %v580_v47 = vrot.slane %v579_v34, 4  ;;  %v594_v12 = vrot.slane %v592_v39, 5 }
  0xa7   : > { %v589_v42 = vor.u32 %v588_v37, %v584_v18  ;;  %v596_v27 = vshrl.u32 %v2925_v54, 16  ;;  %v602_v33 = vshll.u32 %v161_v57, 16  ;;  %v1687_v58 = vmax.bf16 %v2950_v3, %v2940_v46 }
  0xa8   : > { %2010 = vst.msk [vmem:[%s2291_s15 + $0x60] sm:$0xf] %vm1985_vm6, %v1945_v5  ;;  %v585_v49 = vsel %vm2204_vm5, %v580_v47, %v584_v18  ;;  %v2977_v8 = vsel %vm2197_vm4, %v1236_v62, %v1237_v51  ;;  %v1749_v15 = vmax.bf16 %v1685_v55, %v2908_v19  ;;  %v1493_v41 = vmax.bf16 %v2961_v44, %v2967_v36  ;;  %v3025_v62 = vld [vmem:[%s2175_s11 + $0xc0] sm:$0xf] }
  0xa9   : > { %v1011_v50 = vmax.bf16 %v585_v49, %v2880_v2  ;;  %v1860_v16 = vmax.bf16 %v1748_v11, %v585_v49  ;;  %v590_v38 = vrot.slane %v589_v42, 4  ;;  %v1602_v21 = vmax.bf16 %v1490_v10, %v585_v49 }
  0xaa   : > { %v598_v56 = vrot.slane %v596_v27, 4  ;;  %v1239_v13 = vrot.slane %v1237_v51, 4  ;;  %v1240_v0 = vrot.slane %v161_v57, 5  ;;  %v604_v43 = vrot.slane %v602_v33, 5 }
  0xab   : > { %v2987_v1 = vmax.bf16 %v2957_v63, %v1011_v50  ;;  %v1946_v6 = vmax.bf16 %v1860_v16, %v2957_v63  ;;  %v595_v24 = vsel %vm2204_vm5, %v590_v38, %v594_v12  ;;  %v1750_v10 = vmax.bf16 %v1686_v31, %v2925_v54 }
  0xac   : > { %v1012_v2 = vmax.bf16 %v595_v24, %v2908_v19  ;;  %v2993_v7 = vmax.bf16 %v1491_v17, %v595_v24  ;;  %v1861_v14 = vmax.bf16 %v1749_v15, %v595_v24  ;;  %v599_v9 = vor.u32 %v598_v56, %v594_v12 }
  0xad   : > { %2011 = vst.msk [vmem:[%s2291_s15 + $0x64] sm:$0xf] %vm1985_vm6, %v1946_v6  ;;  %v607_v55 = vshrl.u32 %v2967_v36, 16  ;;  %v610_v35 = vshll.u32 %v2967_v36, 16  ;;  %v616_v25 = vshll.u32 %v2984_v52, 16  ;;  %v1688_v60 = vmax.bf16 %v1602_v21, %v2957_v63 }
  0xae   : > { %v1947_v28 = vmax.bf16 %v1861_v14, %v2977_v8  ;;  %v600_v19 = vrot.slane %v599_v9, 4  ;;  %v3005_v17 = vsel %vm2197_vm4, %v1239_v13, %v1240_v0  ;;  %v1494_v29 = vmax.bf16 %v2987_v1, %v2984_v52  ;;  %v166_v21 = vld [vmem:[%s2175_s11 + $0xc4] sm:$0x1] }
  0xaf   : > { %v3013_v20 = vmax.bf16 %v2977_v8, %v1012_v2  ;;  %v609_v30 = vrot.slane %v607_v55, 4  ;;  %v612_v40 = vrot.slane %v610_v35, 5  ;;  %v1689_v45 = vmax.bf16 %v2993_v7, %v2977_v8  ;;  %v3075_v35 = vld [vmem:[%s2175_s11 + $0xc8] sm:$0xf] }
  0xb0   : > { %2012 = vst.msk [vmem:[%s2291_s15 + $0x68] sm:$0xf] %vm1985_vm6, %v1947_v28  ;;  %v605_v31 = vsel %vm2204_vm5, %v600_v19, %v604_v43  ;;  %v2122_v46 = vrot.slane %v2967_v36, 9  ;;  %v1244_v59 = vrot.slane %v2984_v52, 5  ;;  %v618_v39 = vrot.slane %v616_v25, 5 }
  0xb1   : > { %v1013_v22 = vmax.bf16 %v605_v31, %v2925_v54  ;;  %v1862_v48 = vmax.bf16 %v1750_v10, %v605_v31  ;;  %v613_v18 = vor.u32 %v612_v40, %v609_v30  ;;  %v1604_v4 = vmax.bf16 %v1492_v61, %v605_v31  ;;  %v3088_v40 = vld [vmem:[%s2175_s11 + $0xcc] sm:$0xf] }
  0xb2   : > { %v1751_v3 = vmax.bf16 %v1687_v58, %v2967_v36  ;;  %v620_v53 = vshrl.u32 %v2984_v52, 16  ;;  %v626_v34 = vshll.u32 %v3010_v32, 16  ;;  %v1495_v57 = vmax.bf16 %v3013_v20, %v3010_v32 }
  0xb3   : > { %v3033_v63 = vmax.bf16 %v3005_v17, %v1013_v22  ;;  %v1948_v54 = vmax.bf16 %v1862_v48, %v3005_v17  ;;  %v614_v11 = vrot.slane %v613_v18, 4  ;;  %v3038_v37 = vsel %vm2197_vm4, %v2122_v46, %v1244_v59 }
  0xb4   : > { %v622_v61 = vrot.slane %v620_v53, 4  ;;  %v1246_v5 = vrot.slane %v1244_v59, 4  ;;  %v1247_v47 = vrot.slane %v3010_v32, 5  ;;  %v628_v42 = vrot.slane %v626_v34, 5  ;;  %v3106_v53 = vld [vmem:[%s2175_s11 + $0xd0] sm:$0xf] }
  0xb5   : > { %2013 = vst.msk [vmem:[%s2291_s15 + $0x6c] sm:$0xf] %vm1985_vm6, %v1948_v54  ;;  %v619_v51 = vsel %vm2204_vm5, %v614_v11, %v618_v39  ;;  %v630_v12 = vshrl.u32 %v3010_v32, 16  ;;  %v636_v27 = vshll.u32 %v3025_v62, 16  ;;  %v1690_v33 = vmax.bf16 %v1604_v4, %v3005_v17 }
  0xb6   : > { %v1014_v58 = vmax.bf16 %v619_v51, %v2967_v36  ;;  %v1863_v49 = vmax.bf16 %v1751_v3, %v619_v51  ;;  %v623_v8 = vor.u32 %v622_v61, %v618_v39  ;;  %v1496_v15 = vmax.bf16 %v3033_v63, %v3025_v62 }
  0xb7   : > { %v3054_v50 = vmax.bf16 %v1493_v41, %v619_v51  ;;  %v1752_v16 = vmax.bf16 %v1688_v60, %v2984_v52  ;;  %v632_v38 = vrot.slane %v630_v12, 4  ;;  %v3061_v0 = vsel %vm2197_vm4, %v1246_v5, %v1247_v47 }
  0xb8   : > { %v1949_v56 = vmax.bf16 %v1863_v49, %v3038_v37  ;;  %v624_v13 = vrot.slane %v623_v8, 4  ;;  %v1249_v1 = vrot.slane %v1247_v47, 4  ;;  %v638_v24 = vrot.slane %v636_v27, 5 }
  0xb9   : > { %v633_v6 = vor.u32 %v632_v38, %v628_v42  ;;  %v1250_v43 = vrot.slane %v3025_v62, 5  ;;  %v640_v44 = vshrl.u32 %v3025_v62, 16  ;;  %v3066_v36 = vmax.bf16 %v3038_v37, %v1014_v58 }
  0xba   : > { %2014 = vst.msk [vmem:[%s2291_s15 + $0x70] sm:$0xf] %vm1985_vm6, %v1949_v56  ;;  %v629_v41 = vsel %vm2204_vm5, %v624_v13, %v628_v42  ;;  %v1753_v2 = vmax.bf16 %v1689_v45, %v3010_v32  ;;  %v646_v7 = vshll.u32 %v166_v21, 16  ;;  %v1253_v55 = vrot.slane %v166_v21, 5 }
  0xbb   : > { %v1015_v14 = vmax.bf16 %v629_v41, %v2984_v52  ;;  %v1864_v9 = vmax.bf16 %v1752_v16, %v629_v41  ;;  %v634_v10 = vrot.slane %v633_v6, 4  ;;  %v1606_v25 = vmax.bf16 %v1494_v29, %v629_v41 }
  0xbc   : > { %v3079_v60 = vsel %vm2197_vm4, %v1249_v1, %v1250_v43  ;;  %v642_v28 = vrot.slane %v640_v44, 4  ;;  %v648_v19 = vrot.slane %v646_v7, 5  ;;  %v1252_v30 = vrot.slane %v1250_v43, 4 }
  0xbd   : > { %v3082_v17 = vmax.bf16 %v3061_v0, %v1015_v14  ;;  %v1950_v20 = vmax.bf16 %v1864_v9, %v3061_v0  ;;  %v639_v52 = vsel %vm2204_vm5, %v634_v10, %v638_v24  ;;  %v1497_v59 = vmax.bf16 %v3066_v36, %v3075_v35 }
  0xbe   : > { %v1016_v29 = vmax.bf16 %v639_v52, %v3010_v32  ;;  %v3091_v45 = vmax.bf16 %v1495_v57, %v639_v52  ;;  %v1865_v31 = vmax.bf16 %v1753_v2, %v639_v52  ;;  %v643_v46 = vor.u32 %v642_v28, %v638_v24  ;;  %v171_v52 = vld [vmem:[%s2175_s11 + $0xd8] sm:$0x1] }
  0xbf   : > { %v1691_v22 = vmax.bf16 %v3054_v50, %v3038_v37  ;;  %2015 = vst.msk [vmem:[%s2291_s15 + $0x74] sm:$0xf] %vm1985_vm6, %v1950_v20  ;;  %v1754_v48 = vmax.bf16 %v1690_v33, %v3025_v62  ;;  %v651_v18 = vshrl.u32 %v3075_v35, 16  ;;  %v1498_v32 = vmax.bf16 %v3082_v17, %v3088_v40  ;;  %v3133_v50 = vld [vmem:[%s2175_s11 + $0xd4] sm:$0xf] }
  0xc0   : > { %v1692_v39 = vmax.bf16 %v1606_v25, %v3061_v0  ;;  %v1951_v4 = vmax.bf16 %v1865_v31, %v3079_v60  ;;  %v644_v3 = vrot.slane %v643_v46, 4  ;;  %v3109_v34 = vmax.bf16 %v3079_v60, %v1016_v29 }
  0xc1   : > { %v653_v57 = vrot.slane %v651_v18, 4  ;;  %v654_v63 = vshll.u32 %v3075_v35, 16  ;;  %v660_v54 = vshll.u32 %v3088_v40, 16  ;;  %v1693_v11 = vmax.bf16 %v3091_v45, %v3079_v60 }
  0xc2   : > { %2016 = vst.msk [vmem:[%s2291_s15 + $0x78] sm:$0xf] %vm1985_vm6, %v1951_v4  ;;  %v649_v37 = vsel %vm2204_vm5, %v644_v3, %v648_v19  ;;  %v3121_v61 = vsel %vm2197_vm4, %v1252_v30, %v1253_v55  ;;  %v2123_v5 = vrot.slane %v3075_v35, 9  ;;  %v1257_v12 = vrot.slane %v3088_v40, 5 }
  0xc3   : > { %v1017_v47 = vmax.bf16 %v649_v37, %v3025_v62  ;;  %v1866_v51 = vmax.bf16 %v1754_v48, %v649_v37  ;;  %v656_v42 = vrot.slane %v654_v63, 5  ;;  %v3126_v27 = vmax.bf16 %v1496_v15, %v649_v37  ;;  %v3192_v37 = vld [vmem:[%s2175_s11 + $0xe0] sm:$0xf] }
  0xc4   : > { %v662_v33 = vrot.slane %v660_v54, 5  ;;  %v664_v58 = vshrl.u32 %v3088_v40, 16  ;;  %v670_v49 = vshll.u32 %v3106_v53, 16  ;;  %v1499_v8 = vmax.bf16 %v3109_v34, %v3106_v53 }
  0xc5   : > { %v3136_v16 = vmax.bf16 %v3121_v61, %v1017_v47  ;;  %v1952_v62 = vmax.bf16 %v1866_v51, %v3121_v61  ;;  %v657_v38 = vor.u32 %v656_v42, %v653_v57  ;;  %v3141_v15 = vsel %vm2197_vm4, %v2123_v5, %v1257_v12 }
  0xc6   : > { %v1755_v21 = vmax.bf16 %v1691_v22, %v3075_v35  ;;  %v666_v56 = vrot.slane %v664_v58, 4  ;;  %v1260_v13 = vrot.slane %v3106_v53, 5  ;;  %v672_v1 = vrot.slane %v670_v49, 5 }
  0xc7   : > { %2017 = vst.msk [vmem:[%s2291_s15 + $0x7c] sm:$0xf] %vm1985_vm6, %v1952_v62  ;;  %v658_v0 = vrot.slane %v657_v38, 4  ;;  %v1259_v6 = vrot.slane %v1257_v12, 4  ;;  %v674_v24 = vshrl.u32 %v3106_v53, 16  ;;  %v1500_v43 = vmax.bf16 %v3136_v16, %v3133_v50 }
  0xc8   : > { %v1694_v44 = vmax.bf16 %v3126_v27, %v3121_v61  ;;  %v667_v36 = vor.u32 %v666_v56, %v662_v33  ;;  %v680_v41 = vshll.u32 %v3133_v50, 16  ;;  %v1756_v7 = vmax.bf16 %v1692_v39, %v3088_v40  ;;  %v3223_v56 = vld [vmem:[%s2175_s11 + $0xe4] sm:$0xf] }
  0xc9   : > { %v663_v2 = vsel %vm2204_vm5, %v658_v0, %v662_v33  ;;  %v676_v14 = vrot.slane %v674_v24, 4  ;;  %v1262_v9 = vrot.slane %v1260_v13, 4  ;;  %v3161_v28 = vsel %vm2197_vm4, %v1259_v6, %v1260_v13 }
  0xca   : > { %v1018_v10 = vmax.bf16 %v663_v2, %v3075_v35  ;;  %v3157_v55 = vmax.bf16 %v1497_v59, %v663_v2  ;;  %v1867_v25 = vmax.bf16 %v1755_v21, %v663_v2  ;;  %v668_v60 = vrot.slane %v667_v36, 4  ;;  %v3233_v2 = vld [vmem:[%s2175_s11 + $0xe8] sm:$0xf] }
  0xcb   : > { %v677_v19 = vor.u32 %v676_v14, %v672_v1  ;;  %v1263_v20 = vrot.slane %v3133_v50, 5  ;;  %v684_v30 = vshrl.u32 %v3133_v50, 16  ;;  %v682_v45 = vrot.slane %v680_v41, 5 }
  0xcc   : > { %v1953_v29 = vmax.bf16 %v1867_v25, %v3141_v15  ;;  %v673_v35 = vsel %vm2204_vm5, %v668_v60, %v672_v1  ;;  %v1757_v31 = vmax.bf16 %v1693_v11, %v3106_v53  ;;  %v3171_v46 = vmax.bf16 %v3141_v15, %v1018_v10  ;;  %v3189_v11 = vld [vmem:[%s2175_s11 + $0xdc] sm:$0xf] }
  0xcd   : > { %v1019_v59 = vmax.bf16 %v673_v35, %v3088_v40  ;;  %v1868_v22 = vmax.bf16 %v1756_v7, %v673_v35  ;;  %v678_v48 = vrot.slane %v677_v19, 4  ;;  %v1695_v18 = vmax.bf16 %v3157_v55, %v3141_v15 }
  0xce   : > { %2018 = vst.msk [vmem:[%s2291_s15 + $0x80] sm:$0xf] %vm1985_vm6, %v1953_v29  ;;  %v3180_v39 = vsel %vm2197_vm4, %v1262_v9, %v1263_v20  ;;  %v686_v4 = vrot.slane %v684_v30, 4  ;;  %v690_v3 = vshll.u32 %v171_v52, 16  ;;  %v1610_v34 = vmax.bf16 %v1498_v32, %v673_v35 }
  0xcf   : > { %v1954_v57 = vmax.bf16 %v1868_v22, %v3161_v28  ;;  %v683_v63 = vsel %vm2204_vm5, %v678_v48, %v682_v45  ;;  %v1265_v54 = vrot.slane %v1263_v20, 4  ;;  %v3195_v61 = vmax.bf16 %v3161_v28, %v1019_v59  ;;  %v176_v22 = vld [vmem:[%s2175_s11 + $0xec] sm:$0x1] }
  0xd0   : > { %v1020_v5 = vmax.bf16 %v683_v63, %v3106_v53  ;;  %v1869_v47 = vmax.bf16 %v1757_v31, %v683_v63  ;;  %v687_v51 = vor.u32 %v686_v4, %v682_v45  ;;  %v1501_v17 = vmax.bf16 %v3171_v46, %v3189_v11 }
  0xd1   : > { %2019 = vst.msk [vmem:[%s2291_s15 + $0x84] sm:$0xf] %vm1985_vm6, %v1954_v57  ;;  %v692_v40 = vrot.slane %v690_v3, 5  ;;  %v1266_v32 = vrot.slane %v171_v52, 5  ;;  %v1758_v42 = vmax.bf16 %v1694_v44, %v3133_v50  ;;  %v1611_v27 = vmax.bf16 %v1499_v8, %v683_v63 }
  0xd2   : > { %v3204_v12 = vmax.bf16 %v3180_v39, %v1020_v5  ;;  %v1955_v33 = vmax.bf16 %v1869_v47, %v3180_v39  ;;  %v688_v53 = vrot.slane %v687_v51, 4  ;;  %v1696_v58 = vmax.bf16 %v1610_v34, %v3161_v28 }
  0xd3   : > { %v695_v49 = vshrl.u32 %v3189_v11, 16  ;;  %v698_v16 = vshll.u32 %v3189_v11, 16  ;;  %v704_v62 = vshll.u32 %v3192_v37, 16  ;;  %v1502_v38 = vmax.bf16 %v3195_v61, %v3192_v37 }
  0xd4   : > { %2020 = vst.msk [vmem:[%s2291_s15 + $0x88] sm:$0xf] %vm1985_vm6, %v1955_v33  ;;  %v693_v8 = vsel %vm2204_vm5, %v688_v53, %v692_v40  ;;  %v3219_v15 = vsel %vm2197_vm4, %v1265_v54, %v1266_v32  ;;  %v2124_v21 = vrot.slane %v3189_v11, 9  ;;  %v1503_v24 = vmax.bf16 %v3204_v12, %v3223_v56 }
  0xd5   : > { %v1021_v13 = vmax.bf16 %v693_v8, %v3133_v50  ;;  %v3226_v0 = vmax.bf16 %v1500_v43, %v693_v8  ;;  %v1870_v1 = vmax.bf16 %v1758_v42, %v693_v8  ;;  %v697_v6 = vrot.slane %v695_v49, 4 }
  0xd6   : > { %v1697_v44 = vmax.bf16 %v1611_v27, %v3180_v39  ;;  %v700_v36 = vrot.slane %v698_v16, 5  ;;  %v1270_v41 = vrot.slane %v3192_v37, 5  ;;  %v706_v43 = vrot.slane %v704_v62, 5 }
  0xd7   : > { %v3236_v7 = vmax.bf16 %v3219_v15, %v1021_v13  ;;  %v1956_v50 = vmax.bf16 %v1870_v1, %v3219_v15  ;;  %v708_v14 = vshrl.u32 %v3192_v37, 16  ;;  %v714_v55 = vshll.u32 %v3223_v56, 16 }
  0xd8   : > { %v701_v9 = vor.u32 %v700_v36, %v697_v6  ;;  %v3242_v10 = vsel %vm2197_vm4, %v2124_v21, %v1270_v41  ;;  %v1273_v25 = vrot.slane %v3223_v56, 5  ;;  %v1698_v60 = vmax.bf16 %v3226_v0, %v3219_v15 }
  0xd9   : > { %2021 = vst.msk [vmem:[%s2291_s15 + $0x8c] sm:$0xf] %vm1985_vm6, %v1956_v50  ;;  %v1759_v28 = vmax.bf16 %v1695_v18, %v3189_v11  ;;  %v710_v19 = vrot.slane %v708_v14, 4  ;;  %v718_v20 = vshrl.u32 %v3223_v56, 16  ;;  %v716_v30 = vrot.slane %v714_v55, 5 }
  0xda   : > { %v702_v52 = vrot.slane %v701_v9, 4  ;;  %v1272_v29 = vrot.slane %v1270_v41, 4  ;;  %v724_v35 = vshll.u32 %v3233_v2, 16  ;;  %v1504_v45 = vmax.bf16 %v3236_v7, %v3233_v2  ;;  %v3297_v41 = vld [vmem:[%s2175_s11 + $0xf4] sm:$0xf] }
  0xdb   : > { %v711_v31 = vor.u32 %v710_v19, %v706_v43  ;;  %v1760_v46 = vmax.bf16 %v1696_v58, %v3192_v37  ;;  %v720_v59 = vrot.slane %v718_v20, 4  ;;  %v1275_v39 = vrot.slane %v1273_v25, 4  ;;  %v3277_v58 = vld [vmem:[%s2175_s11 + $0xf0] sm:$0xf] }
  0xdc   : > { %v707_v48 = vsel %vm2204_vm5, %v702_v52, %v706_v43  ;;  %v726_v18 = vrot.slane %v724_v35, 5  ;;  %v728_v4 = vshrl.u32 %v3233_v2, 16  ;;  %v1276_v5 = vrot.slane %v3233_v2, 5 }
  0xdd   : > { %v1022_v3 = vmax.bf16 %v707_v48, %v3189_v11  ;;  %v3261_v34 = vmax.bf16 %v1501_v17, %v707_v48  ;;  %v1871_v57 = vmax.bf16 %v1759_v28, %v707_v48  ;;  %v712_v63 = vrot.slane %v711_v31, 4  ;;  %v3322_v28 = vld [vmem:[%s2175_s11 + $0xf8] sm:$0xf] }
  0xde   : > { %v721_v54 = vor.u32 %v720_v59, %v716_v30  ;;  %v730_v47 = vrot.slane %v728_v4, 4  ;;  %v734_v51 = vshll.u32 %v176_v22, 16  ;;  %v1761_v11 = vmax.bf16 %v1697_v44, %v3223_v56 }
  0xdf   : > { %v3265_v40 = vmax.bf16 %v3242_v10, %v1022_v3  ;;  %v1957_v32 = vmax.bf16 %v1871_v57, %v3242_v10  ;;  %v717_v42 = vsel %vm2204_vm5, %v712_v63, %v716_v30  ;;  %v3274_v27 = vsel %vm2197_vm4, %v1272_v29, %v1273_v25 }
  0xe0   : > { %v1023_v17 = vmax.bf16 %v717_v42, %v3192_v37  ;;  %v1872_v33 = vmax.bf16 %v1760_v46, %v717_v42  ;;  %v722_v53 = vrot.slane %v721_v54, 4  ;;  %v1699_v49 = vmax.bf16 %v3261_v34, %v3242_v10 }
  0xe1   : > { %2022 = vst.msk [vmem:[%s2291_s15 + $0x90] sm:$0xf] %vm1985_vm6, %v1957_v32  ;;  %v3285_v16 = vsel %vm2197_vm4, %v1275_v39, %v1276_v5  ;;  %v731_v62 = vor.u32 %v730_v47, %v726_v18  ;;  %v736_v8 = vrot.slane %v734_v51, 5  ;;  %v1614_v15 = vmax.bf16 %v1502_v38, %v717_v42  ;;  %v181_v47 = vld [vmem:[%s2175_s11 + $0x100] sm:$0x1] }
  0xe2   : > { %v1958_v21 = vmax.bf16 %v1872_v33, %v3274_v27  ;;  %v727_v13 = vsel %vm2204_vm5, %v722_v53, %v726_v18  ;;  %v1278_v0 = vrot.slane %v1276_v5, 4  ;;  %v1505_v1 = vmax.bf16 %v3265_v40, %v3277_v58 }
  0xe3   : > { %v1024_v6 = vmax.bf16 %v727_v13, %v3223_v56  ;;  %v1873_v44 = vmax.bf16 %v1761_v11, %v727_v13  ;;  %v732_v36 = vrot.slane %v731_v62, 4  ;;  %v3300_v37 = vmax.bf16 %v3274_v27, %v1023_v17 }
  0xe4   : > { %2023 = vst.msk [vmem:[%s2291_s15 + $0x94] sm:$0xf] %vm1985_vm6, %v1958_v21  ;;  %v1279_v61 = vrot.slane %v176_v22, 5  ;;  %v1762_v38 = vmax.bf16 %v1698_v60, %v3233_v2  ;;  %v739_v7 = vshrl.u32 %v3277_v58, 16  ;;  %v1615_v43 = vmax.bf16 %v1503_v24, %v727_v13 }
  0xe5   : > { %v3307_v50 = vmax.bf16 %v3285_v16, %v1024_v6  ;;  %v1959_v14 = vmax.bf16 %v1873_v44, %v3285_v16  ;;  %v737_v9 = vsel %vm2204_vm5, %v732_v36, %v736_v8  ;;  %v1700_v10 = vmax.bf16 %v1614_v15, %v3274_v27 }
  0xe6   : > { %v1025_v55 = vmax.bf16 %v737_v9, %v3233_v2  ;;  %v3319_v25 = vsel %vm2197_vm4, %v1278_v0, %v1279_v61  ;;  %v1874_v60 = vmax.bf16 %v1762_v38, %v737_v9  ;;  %v3326_v12 = vmax.bf16 %v1504_v45, %v737_v9  ;;  %v3341_v45 = vld [vmem:[%s2175_s11 + $0xfc] sm:$0xf]  ;;  %v3384_v9 = vld [vmem:[%s2175_s11 + $0x104] sm:$0xf] }
  0xe7   : > { %2024 = vst.msk [vmem:[%s2291_s15 + $0x98] sm:$0xf] %vm1985_vm6, %v1959_v14  ;;  %v741_v56 = vrot.slane %v739_v7, 4  ;;  %v742_v24 = vshll.u32 %v3277_v58, 16  ;;  %v748_v19 = vshll.u32 %v3297_v41, 16  ;;  %v1506_v2 = vmax.bf16 %v3300_v37, %v3297_v41 }
  0xe8   : > { %v3333_v20 = vmax.bf16 %v3319_v25, %v1025_v55  ;;  %v1960_v52 = vmax.bf16 %v1874_v60, %v3319_v25  ;;  %v2125_v30 = vrot.slane %v3277_v58, 9  ;;  %v1507_v29 = vmax.bf16 %v3307_v50, %v3322_v28 }
  0xe9   : > { %v1701_v35 = vmax.bf16 %v1615_v43, %v3285_v16  ;;  %v744_v31 = vrot.slane %v742_v24, 5  ;;  %v1283_v46 = vrot.slane %v3297_v41, 5  ;;  %v750_v59 = vrot.slane %v748_v19, 5 }
  0xea   : > { %2025 = vst.msk [vmem:[%s2291_s15 + $0x9c] sm:$0xf] %vm1985_vm6, %v1960_v52  ;;  %v752_v22 = vshrl.u32 %v3297_v41, 16  ;;  %v758_v48 = vshll.u32 %v3322_v28, 16  ;;  %v1286_v18 = vrot.slane %v3322_v28, 5  ;;  %v1508_v39 = vmax.bf16 %v3333_v20, %v3341_v45 }
  0xeb   : > { %v1702_v4 = vmax.bf16 %v3326_v12, %v3319_v25  ;;  %v745_v3 = vor.u32 %v744_v31, %v741_v56  ;;  %v1763_v34 = vmax.bf16 %v1699_v49, %v3277_v58  ;;  %v3356_v57 = vsel %vm2197_vm4, %v2125_v30, %v1283_v46 }
  0xec   : > { %v754_v63 = vrot.slane %v752_v22, 4  ;;  %v762_v54 = vshrl.u32 %v3322_v28, 16  ;;  %v768_v5 = vshll.u32 %v3341_v45, 16  ;;  %v760_v40 = vrot.slane %v758_v48, 5 }
  0xed   : > { %v746_v51 = vrot.slane %v745_v3, 4  ;;  %v1285_v32 = vrot.slane %v1283_v46, 4  ;;  %v1764_v42 = vmax.bf16 %v1700_v10, %v3297_v41  ;;  %v1288_v27 = vrot.slane %v1286_v18, 4 }
  0xee   : > { %v755_v11 = vor.u32 %v754_v63, %v750_v59  ;;  %v764_v17 = vrot.slane %v762_v54, 4  ;;  %v1289_v33 = vrot.slane %v3341_v45, 5  ;;  %v770_v49 = vrot.slane %v768_v5, 5 }
  0xef   : > { %v751_v53 = vsel %vm2204_vm5, %v746_v51, %v750_v59  ;;  %v772_v16 = vshrl.u32 %v3341_v45, 16  ;;  %v778_v62 = vshll.u32 %v181_v47, 16  ;;  %v3369_v0 = vsel %vm2197_vm4, %v1285_v32, %v1286_v18  ;;  %v3441_v32 = vld [vmem:[%s2175_s11 + $0x110] sm:$0xf] }
  0xf0   : > { %v1026_v8 = vmax.bf16 %v751_v53, %v3277_v58  ;;  %v1617_v15 = vmax.bf16 %v1505_v1, %v751_v53  ;;  %v1875_v21 = vmax.bf16 %v1763_v34, %v751_v53  ;;  %v756_v13 = vrot.slane %v755_v11, 4 }
  0xf1   : > { %v765_v6 = vor.u32 %v764_v17, %v760_v40  ;;  %v1765_v44 = vmax.bf16 %v1701_v35, %v3322_v28  ;;  %v774_v36 = vrot.slane %v772_v16, 4  ;;  %v3377_v58 = vsel %vm2197_vm4, %v1288_v27, %v1289_v33  ;;  %v3400_v35 = vld [vmem:[%s2175_s11 + $0x108] sm:$0xf] }
  0xf2   : > { %v1961_v37 = vmax.bf16 %v1875_v21, %v3356_v57  ;;  %v761_v61 = vsel %vm2204_vm5, %v756_v13, %v760_v40  ;;  %v780_v1 = vrot.slane %v778_v62, 5  ;;  %v3380_v38 = vmax.bf16 %v3356_v57, %v1026_v8 }
  0xf3   : > { %v1027_v7 = vmax.bf16 %v761_v61, %v3297_v41  ;;  %v1876_v43 = vmax.bf16 %v1764_v42, %v761_v61  ;;  %v766_v14 = vrot.slane %v765_v6, 4  ;;  %v1703_v10 = vmax.bf16 %v1617_v15, %v3356_v57  ;;  %v3424_v57 = vld [vmem:[%s2175_s11 + $0x10c] sm:$0xf] }
  0xf4   : > { %2026 = vst.msk [vmem:[%s2291_s15 + $0xa0] sm:$0xf] %vm1985_vm6, %v1961_v37  ;;  %v1618_v55 = vmax.bf16 %v1506_v2, %v761_v61  ;;  %v775_v25 = vor.u32 %v774_v36, %v770_v49  ;;  %v1291_v60 = vrot.slane %v1289_v33, 4  ;;  %v1292_v24 = vrot.slane %v181_v47, 5 }
  0xf5   : > { %v1962_v12 = vmax.bf16 %v1876_v43, %v3369_v0  ;;  %v771_v56 = vsel %vm2204_vm5, %v766_v14, %v770_v49  ;;  %v1766_v41 = vmax.bf16 %v1702_v4, %v3341_v45  ;;  %v3394_v19 = vmax.bf16 %v3369_v0, %v1027_v7  ;;  %v186_v43 = vld [vmem:[%s2175_s11 + $0x114] sm:$0x1] }
  0xf6   : > { %v1028_v20 = vmax.bf16 %v771_v56, %v3322_v28  ;;  %v1877_v52 = vmax.bf16 %v1765_v44, %v771_v56  ;;  %v776_v30 = vrot.slane %v775_v25, 4  ;;  %v1509_v2 = vmax.bf16 %v3380_v38, %v3384_v9 }
  0xf7   : > { %2027 = vst.msk [vmem:[%s2291_s15 + $0xa4] sm:$0xf] %vm1985_vm6, %v1962_v12  ;;  %v3407_v31 = vmax.bf16 %v1507_v29, %v771_v56  ;;  %v783_v46 = vshrl.u32 %v3384_v9, 16  ;;  %v786_v59 = vshll.u32 %v3384_v9, 16  ;;  %v1704_v22 = vmax.bf16 %v1618_v55, %v3369_v0 }
  0xf8   : > { %v3413_v48 = vmax.bf16 %v3377_v58, %v1028_v20  ;;  %v1963_v18 = vmax.bf16 %v1877_v52, %v3377_v58  ;;  %v781_v4 = vsel %vm2204_vm5, %v776_v30, %v780_v1  ;;  %v1510_v34 = vmax.bf16 %v3394_v19, %v3400_v35  ;;  %v3486_v52 = vld [vmem:[%s2175_s11 + $0x118] sm:$0xf] }
  0xf9   : > { %v1029_v3 = vmax.bf16 %v781_v4, %v3341_v45  ;;  %v3419_v50 = vmax.bf16 %v1508_v39, %v781_v4  ;;  %v1878_v28 = vmax.bf16 %v1766_v41, %v781_v4  ;;  %v785_v29 = vrot.slane %v783_v46, 4  ;;  %v3497_v4 = vld [vmem:[%s2175_s11 + $0x11c] sm:$0xf] }
  0xfa   : > { %2028 = vst.msk [vmem:[%s2291_s15 + $0xa8] sm:$0xf] %vm1985_vm6, %v1963_v18  ;;  %v3430_v63 = vsel %vm2197_vm4, %v1291_v60, %v1292_v24  ;;  %v788_v54 = vrot.slane %v786_v59, 5  ;;  %v792_v5 = vshll.u32 %v3400_v35, 16  ;;  %v1705_v45 = vmax.bf16 %v3407_v31, %v3377_v58 }
  0xfb   : > { %v1964_v39 = vmax.bf16 %v1878_v28, %v3430_v63  ;;  %v2126_v47 = vrot.slane %v3384_v9, 9  ;;  %v1296_v51 = vrot.slane %v3400_v35, 5  ;;  %v1511_v40 = vmax.bf16 %v3413_v48, %v3424_v57 }
  0xfc   : > { %v789_v42 = vor.u32 %v788_v54, %v785_v29  ;;  %v794_v11 = vrot.slane %v792_v5, 5  ;;  %v796_v17 = vshrl.u32 %v3400_v35, 16  ;;  %v3445_v27 = vmax.bf16 %v3430_v63, %v1029_v3 }
  0xfd   : > { %v1706_v33 = vmax.bf16 %v3419_v50, %v3430_v63  ;;  %2029 = vst.msk [vmem:[%s2291_s15 + $0xac] sm:$0xf] %vm1985_vm6, %v1964_v39  ;;  %v1767_v53 = vmax.bf16 %v1703_v10, %v3384_v9  ;;  %v802_v49 = vshll.u32 %v3424_v57, 16  ;;  %v1298_v8 = vrot.slane %v1296_v51, 4 }
  0xfe   : > { %v790_v16 = vrot.slane %v789_v42, 4  ;;  %v798_v62 = vrot.slane %v796_v17, 4  ;;  %v1299_v15 = vrot.slane %v3424_v57, 5  ;;  %v3456_v21 = vsel %vm2197_vm4, %v2126_v47, %v1296_v51 }
  0xff   : > { %v804_v13 = vrot.slane %v802_v49, 5  ;;  %v806_v0 = vshrl.u32 %v3424_v57, 16  ;;  %v812_v6 = vshll.u32 %v3441_v32, 16  ;;  %v1768_v37 = vmax.bf16 %v1704_v22, %v3400_v35 }
 0x100   : > { %v795_v44 = vsel %vm2204_vm5, %v790_v16, %v794_v11  ;;  %v799_v36 = vor.u32 %v798_v62, %v794_v11  ;;  %v1301_v61 = vrot.slane %v1299_v15, 4  ;;  %v1512_v14 = vmax.bf16 %v3445_v27, %v3441_v32 }
 0x101   : > { %v1030_v58 = vmax.bf16 %v795_v44, %v3384_v9  ;;  %v3464_v1 = vmax.bf16 %v1509_v2, %v795_v44  ;;  %v1879_v38 = vmax.bf16 %v1767_v53, %v795_v44  ;;  %v808_v7 = vrot.slane %v806_v0, 4 }
 0x102   : > { %v800_v10 = vrot.slane %v799_v36, 4  ;;  %v3471_v55 = vsel %vm2197_vm4, %v1298_v8, %v1299_v15  ;;  %v1302_v25 = vrot.slane %v3441_v32, 5  ;;  %v814_v56 = vrot.slane %v812_v6, 5 }
 0x103   : > { %v3475_v60 = vmax.bf16 %v3456_v21, %v1030_v58  ;;  %v1965_v9 = vmax.bf16 %v1879_v38, %v3456_v21  ;;  %v809_v12 = vor.u32 %v808_v7, %v804_v13  ;;  %v816_v19 = vshrl.u32 %v3441_v32, 16 }
 0x104   : > { %v805_v24 = vsel %vm2204_vm5, %v800_v10, %v804_v13  ;;  %v3482_v41 = vsel %vm2197_vm4, %v1301_v61, %v1302_v25  ;;  %v822_v20 = vshll.u32 %v186_v43, 16  ;;  %v1707_v30 = vmax.bf16 %v3464_v1, %v3456_v21  ;;  %v3541_v61 = vld [vmem:[%s2175_s11 + $0x124] sm:$0xf] }
 0x105   : > { %2030 = vst.msk [vmem:[%s2291_s15 + $0xb0] sm:$0xf] %vm1985_vm6, %v1965_v9  ;;  %v1031_v2 = vmax.bf16 %v805_v24, %v3400_v35  ;;  %v1880_v31 = vmax.bf16 %v1768_v37, %v805_v24  ;;  %v1769_v46 = vmax.bf16 %v1705_v45, %v3424_v57  ;;  %v1513_v59 = vmax.bf16 %v3475_v60, %v3486_v52 }
 0x106   : > { %v810_v22 = vrot.slane %v809_v12, 4  ;;  %v818_v48 = vrot.slane %v816_v19, 4  ;;  %v1304_v18 = vrot.slane %v1302_v25, 4  ;;  %v1622_v3 = vmax.bf16 %v1510_v34, %v805_v24 }
 0x107   : > { %v1966_v50 = vmax.bf16 %v1880_v31, %v3471_v55  ;;  %v824_v28 = vrot.slane %v822_v20, 5  ;;  %v1305_v29 = vrot.slane %v186_v43, 5  ;;  %v3501_v63 = vmax.bf16 %v3471_v55, %v1031_v2 }
 0x108   : > { %v815_v35 = vsel %vm2204_vm5, %v810_v22, %v814_v56  ;;  %v819_v54 = vor.u32 %v818_v48, %v814_v56  ;;  %v827_v5 = vshrl.u32 %v3486_v52, 16  ;;  %v1770_v47 = vmax.bf16 %v1706_v33, %v3441_v32  ;;  %v3526_v33 = vld [vmem:[%s2175_s11 + $0x120] sm:$0xf] }
 0x109   : > { %2031 = vst.msk [vmem:[%s2291_s15 + $0xb4] sm:$0xf] %vm1985_vm6, %v1966_v50  ;;  %v1032_v45 = vmax.bf16 %v815_v35, %v3424_v57  ;;  %v3509_v39 = vmax.bf16 %v1511_v40, %v815_v35  ;;  %v1881_v34 = vmax.bf16 %v1769_v46, %v815_v35  ;;  %v830_v11 = vshll.u32 %v3486_v52, 16  ;;  %v191_v50 = vld [vmem:[%s2175_s11 + $0x128] sm:$0x1] }
 0x10a   : > { %v820_v51 = vrot.slane %v819_v54, 4  ;;  %v829_v42 = vrot.slane %v827_v5, 4  ;;  %v836_v17 = vshll.u32 %v3497_v4, 16  ;;  %v1708_v27 = vmax.bf16 %v1622_v3, %v3471_v55 }
 0x10b   : > { %v3516_v53 = vmax.bf16 %v3482_v41, %v1032_v45  ;;  %v1967_v49 = vmax.bf16 %v1881_v34, %v3482_v41  ;;  %v3521_v57 = vsel %vm2197_vm4, %v1304_v18, %v1305_v29  ;;  %v1514_v40 = vmax.bf16 %v3501_v63, %v3497_v4  ;;  %v3587_v34 = vld [vmem:[%s2175_s11 + $0x12c] sm:$0xf] }
 0x10c   : > { %v1709_v16 = vmax.bf16 %v3509_v39, %v3482_v41  ;;  %v825_v62 = vsel %vm2204_vm5, %v820_v51, %v824_v28  ;;  %v832_v8 = vrot.slane %v830_v11, 5  ;;  %v2127_v13 = vrot.slane %v3486_v52, 9 }
 0x10d   : > { %2032 = vst.msk [vmem:[%s2291_s15 + $0xb8] sm:$0xf] %vm1985_vm6, %v1967_v49  ;;  %v1033_v15 = vmax.bf16 %v825_v62, %v3441_v32  ;;  %v1882_v21 = vmax.bf16 %v1770_v47, %v825_v62  ;;  %v1309_v0 = vrot.slane %v3497_v4, 5  ;;  %v1515_v6 = vmax.bf16 %v3516_v53, %v3526_v33 }
 0x10e   : > { %v833_v44 = vor.u32 %v832_v8, %v829_v42  ;;  %v838_v36 = vrot.slane %v836_v17, 5  ;;  %v840_v37 = vshrl.u32 %v3497_v4, 16  ;;  %v1624_v58 = vmax.bf16 %v1512_v14, %v825_v62 }
 0x10f   : > { %v1968_v1 = vmax.bf16 %v1882_v21, %v3521_v57  ;;  %v1771_v32 = vmax.bf16 %v1707_v30, %v3486_v52  ;;  %v846_v38 = vshll.u32 %v3526_v33, 16  ;;  %v3547_v7 = vmax.bf16 %v3521_v57, %v1033_v15 }
 0x110   : > { %v834_v43 = vrot.slane %v833_v44, 4  ;;  %v842_v10 = vrot.slane %v840_v37, 4  ;;  %v1312_v55 = vrot.slane %v3526_v33, 5  ;;  %v3554_v25 = vsel %vm2197_vm4, %v2127_v13, %v1309_v0 }
 0x111   : > { %2033 = vst.msk [vmem:[%s2291_s15 + $0xbc] sm:$0xf] %vm1985_vm6, %v1968_v1  ;;  %v848_v14 = vrot.slane %v846_v38, 5  ;;  %v1311_v60 = vrot.slane %v1309_v0, 4  ;;  %v850_v9 = vshrl.u32 %v3526_v33, 16  ;;  %v1772_v24 = vmax.bf16 %v1708_v27, %v3497_v4 }
 0x112   : > { %v839_v12 = vsel %vm2204_vm5, %v834_v43, %v838_v36  ;;  %v843_v56 = vor.u32 %v842_v10, %v838_v36  ;;  %v856_v41 = vshll.u32 %v3541_v61, 16  ;;  %v1516_v31 = vmax.bf16 %v3547_v7, %v3541_v61  ;;  %v3624_v10 = vld [vmem:[%s2175_s11 + $0x134] sm:$0xf] }
 0x113   : > { %v1034_v19 = vmax.bf16 %v839_v12, %v3486_v52  ;;  %v3562_v20 = vmax.bf16 %v1513_v59, %v839_v12  ;;  %v1883_v30 = vmax.bf16 %v1771_v32, %v839_v12  ;;  %v852_v2 = vrot.slane %v850_v9, 4 }
 0x114   : > { %v1710_v46 = vmax.bf16 %v1624_v58, %v3521_v57  ;;  %v844_v22 = vrot.slane %v843_v56, 4  ;;  %v1314_v48 = vrot.slane %v1312_v55, 4  ;;  %v3573_v52 = vsel %vm2197_vm4, %v1311_v60, %v1312_v55  ;;  %v3600_v57 = vld [vmem:[%s2175_s11 + $0x130] sm:$0xf] }
 0x115   : > { %v3568_v18 = vmax.bf16 %v3554_v25, %v1034_v19  ;;  %v1969_v3 = vmax.bf16 %v1883_v30, %v3554_v25  ;;  %v853_v59 = vor.u32 %v852_v2, %v848_v14  ;;  %v858_v29 = vrot.slane %v856_v41, 5  ;;  %v3635_v41 = vld [vmem:[%s2175_s11 + $0x138] sm:$0xf] }
 0x116   : > { %v849_v28 = vsel %vm2204_vm5, %v844_v22, %v848_v14  ;;  %v1315_v63 = vrot.slane %v3541_v61, 5  ;;  %v860_v35 = vshrl.u32 %v3541_v61, 16  ;;  %v1711_v54 = vmax.bf16 %v3562_v20, %v3554_v25 }
 0x117   : > { %2034 = vst.msk [vmem:[%s2291_s15 + $0xc0] sm:$0xf] %vm1985_vm6, %v1969_v3  ;;  %v1035_v5 = vmax.bf16 %v849_v28, %v3497_v4  ;;  %v1884_v45 = vmax.bf16 %v1772_v24, %v849_v28  ;;  %v1773_v39 = vmax.bf16 %v1709_v16, %v3526_v33  ;;  %v854_v47 = vrot.slane %v853_v59, 4 }
 0x118   : > { %v3591_v51 = vsel %vm2197_vm4, %v1314_v48, %v1315_v63  ;;  %v862_v42 = vrot.slane %v860_v35, 4  ;;  %v866_v11 = vshll.u32 %v191_v50, 16  ;;  %v1517_v17 = vmax.bf16 %v3568_v18, %v3587_v34 }
 0x119   : > { %v3596_v27 = vmax.bf16 %v3573_v52, %v1035_v5  ;;  %v1626_v4 = vmax.bf16 %v1514_v40, %v849_v28  ;;  %v1970_v49 = vmax.bf16 %v1884_v45, %v3573_v52  ;;  %v859_v16 = vsel %vm2204_vm5, %v854_v47, %v858_v29 }
 0x11a   : > { %v863_v62 = vor.u32 %v862_v42, %v858_v29  ;;  %v868_v8 = vrot.slane %v866_v11, 5  ;;  %v1317_v15 = vrot.slane %v1315_v63, 4  ;;  %v1036_v21 = vmax.bf16 %v859_v16, %v3526_v33  ;;  %v196_v42 = vld [vmem:[%s2175_s11 + $0x13c] sm:$0x1] }
 0x11b   : > { %2035 = vst.msk [vmem:[%s2291_s15 + $0xc4] sm:$0xf] %vm1985_vm6, %v1970_v49  ;;  %v1885_v13 = vmax.bf16 %v1773_v39, %v859_v16  ;;  %v1318_v0 = vrot.slane %v191_v50, 5  ;;  %v1774_v40 = vmax.bf16 %v1710_v46, %v3541_v61  ;;  %v1627_v44 = vmax.bf16 %v1515_v6, %v859_v16 }
 0x11c   : > { %v864_v36 = vrot.slane %v863_v62, 4  ;;  %v871_v37 = vshrl.u32 %v3587_v34, 16  ;;  %v874_v58 = vshll.u32 %v3587_v34, 16  ;;  %v1518_v1 = vmax.bf16 %v3596_v27, %v3600_v57 }
 0x11d   : > { %v1712_v32 = vmax.bf16 %v1626_v4, %v3573_v52  ;;  %v1971_v38 = vmax.bf16 %v1885_v13, %v3591_v51  ;;  %v880_v7 = vshll.u32 %v3600_v57, 16  ;;  %v3619_v43 = vmax.bf16 %v3591_v51, %v1036_v21 }
 0x11e   : > { %v869_v53 = vsel %vm2204_vm5, %v864_v36, %v868_v8  ;;  %v873_v33 = vrot.slane %v871_v37, 4  ;;  %v876_v6 = vrot.slane %v874_v58, 5  ;;  %v1319_v25 = vsel %vm2197_vm4, %v1317_v15, %v1318_v0 }
 0x11f   : > { %2036 = vst.msk [vmem:[%s2291_s15 + $0xc8] sm:$0xf] %vm1985_vm6, %v1971_v38  ;;  %v1037_v55 = vmax.bf16 %v869_v53, %v3541_v61  ;;  %v1628_v14 = vmax.bf16 %v1516_v31, %v869_v53  ;;  %v1886_v60 = vmax.bf16 %v1774_v40, %v869_v53  ;;  %v1713_v9 = vmax.bf16 %v1627_v44, %v3591_v51 }
 0x120   : > { %v877_v12 = vor.u32 %v876_v6, %v873_v33  ;;  %v2128_v56 = vrot.slane %v3587_v34, 9  ;;  %v1322_v24 = vrot.slane %v3600_v57, 5  ;;  %v882_v20 = vrot.slane %v880_v7, 5  ;;  %v197_v7 = vld [vmem:[%s2175_s11 + $0x140] sm:$0xf] }
 0x121   : > { %v1972_v19 = vmax.bf16 %v1886_v60, %v1319_v25  ;;  %v1775_v30 = vmax.bf16 %v1711_v54, %v3587_v34  ;;  %v884_v61 = vshrl.u32 %v3600_v57, 16  ;;  %v1519_v2 = vmax.bf16 %v3619_v43, %v3624_v10 }
 0x122   : > { %v3641_v31 = vmax.bf16 %v1319_v25, %v1037_v55  ;;  %v878_v46 = vrot.slane %v877_v12, 4  ;;  %v890_v22 = vshll.u32 %v3624_v10, 16  ;;  %v1714_v48 = vmax.bf16 %v1628_v14, %v1319_v25  ;;  %v3685_v14 = vld [vmem:[%s2175_s11 + $0x144] sm:$0xf] }
 0x123   : > { %2037 = vst.msk [vmem:[%s2291_s15 + $0xcc] sm:$0xf] %vm1985_vm6, %v1972_v19  ;;  %v886_v18 = vrot.slane %v884_v61, 4  ;;  %v1324_v3 = vrot.slane %v1322_v24, 4  ;;  %v1325_v52 = vrot.slane %v3624_v10, 5  ;;  %v894_v28 = vshrl.u32 %v3624_v10, 16 }
 0x124   : > { %v883_v59 = vsel %vm2204_vm5, %v878_v46, %v882_v20  ;;  %v892_v50 = vrot.slane %v890_v22, 5  ;;  %v900_v29 = vshll.u32 %v3635_v41, 16  ;;  %v1323_v35 = vsel %vm2197_vm4, %v2128_v56, %v1322_v24  ;;  %v3702_v22 = vld [vmem:[%s2175_s11 + $0x148] sm:$0xf] }
 0x125   : > { %v1038_v63 = vmax.bf16 %v883_v59, %v3587_v34  ;;  %v1887_v54 = vmax.bf16 %v1775_v30, %v883_v59  ;;  %v887_v5 = vor.u32 %v886_v18, %v882_v20  ;;  %v1520_v45 = vmax.bf16 %v3641_v31, %v3635_v41 }
 0x126   : > { %v1629_v39 = vmax.bf16 %v1517_v17, %v883_v59  ;;  %v1776_v47 = vmax.bf16 %v1712_v32, %v3600_v57  ;;  %v896_v51 = vrot.slane %v894_v28, 4  ;;  %v3660_v4 = vsel %vm2197_vm4, %v1324_v3, %v1325_v52 }
 0x127   : > { %v1973_v11 = vmax.bf16 %v1887_v54, %v1323_v35  ;;  %v888_v27 = vrot.slane %v887_v5, 4  ;;  %v902_v34 = vrot.slane %v900_v29, 5  ;;  %v1327_v16 = vrot.slane %v1325_v52, 4 }
 0x128   : > { %v897_v49 = vor.u32 %v896_v51, %v892_v50  ;;  %v1328_v62 = vrot.slane %v3635_v41, 5  ;;  %v904_v8 = vshrl.u32 %v3635_v41, 16  ;;  %v3664_v15 = vmax.bf16 %v1323_v35, %v1038_v63 }
 0x129   : > { %2038 = vst.msk [vmem:[%s2291_s15 + $0xd0] sm:$0xf] %vm1985_vm6, %v1973_v11  ;;  %v893_v17 = vsel %vm2204_vm5, %v888_v27, %v892_v50  ;;  %v1777_v21 = vmax.bf16 %v1713_v9, %v3624_v10  ;;  %v910_v13 = vshll.u32 %v196_v42, 16  ;;  %v1715_v37 = vmax.bf16 %v1629_v39, %v1323_v35  ;;  %v3726_v27 = vld [vmem:[%s2175_s11 + $0x14c] sm:$0xf] }
 0x12a   : > { %v1039_v0 = vmax.bf16 %v893_v17, %v3600_v57  ;;  %v3672_v40 = vmax.bf16 %v1518_v1, %v893_v17  ;;  %v1888_v44 = vmax.bf16 %v1776_v47, %v893_v17  ;;  %v898_v36 = vrot.slane %v897_v49, 4 }
 0x12b   : > { %v906_v58 = vrot.slane %v904_v8, 4  ;;  %v1330_v32 = vrot.slane %v1328_v62, 4  ;;  %v1331_v38 = vrot.slane %v196_v42, 5  ;;  %v3680_v33 = vsel %vm2197_vm4, %v1327_v16, %v1328_v62 }
 0x12c   : > { %v1974_v43 = vmax.bf16 %v1888_v44, %v3660_v4  ;;  %v903_v53 = vsel %vm2204_vm5, %v898_v36, %v902_v34  ;;  %v1778_v57 = vmax.bf16 %v1714_v48, %v3635_v41  ;;  %v912_v25 = vrot.slane %v910_v13, 5  ;;  %v201_v44 = vld [vmem:[%s2175_s11 + $0x150] sm:$0x1] }
 0x12d   : > { %v1040_v1 = vmax.bf16 %v903_v53, %v3624_v10  ;;  %v1889_v6 = vmax.bf16 %v1777_v21, %v903_v53  ;;  %v907_v55 = vor.u32 %v906_v58, %v902_v34  ;;  %v3688_v60 = vmax.bf16 %v3660_v4, %v1039_v0 }
 0x12e   : > { %v1716_v9 = vmax.bf16 %v3672_v40, %v3660_v4  ;;  %2039 = vst.msk [vmem:[%s2291_s15 + $0xd4] sm:$0xf] %vm1985_vm6, %v1974_v43  ;;  %v1526_v12 = vshrl.u32 %v197_v7, 16  ;;  %v1529_v56 = vshll.u32 %v197_v7, 16  ;;  %v1631_v24 = vmax.bf16 %v1519_v2, %v903_v53 }
 0x12f   : > { %v1975_v10 = vmax.bf16 %v1889_v6, %v3680_v33  ;;  %v908_v19 = vrot.slane %v907_v55, 4  ;;  %v3697_v20 = vsel %vm2197_vm4, %v1330_v32, %v1331_v38  ;;  %v1521_v30 = vmax.bf16 %v3664_v15, %v197_v7 }
 0x130   : > { %v1528_v61 = vrot.slane %v1526_v12, 4  ;;  %v1531_v31 = vrot.slane %v1529_v56, 5  ;;  %v1535_v46 = vshll.u32 %v3685_v14, 16  ;;  %v3705_v48 = vmax.bf16 %v3680_v33, %v1040_v1 }
 0x131   : > { %2040 = vst.msk [vmem:[%s2291_s15 + $0xd8] sm:$0xf] %vm1985_vm6, %v1975_v10  ;;  %v913_v2 = vsel %vm2204_vm5, %v908_v19, %v912_v25  ;;  %v2129_v18 = vrot.slane %v197_v7, 9  ;;  %v1644_v3 = vrot.slane %v3685_v14, 5  ;;  %v1779_v28 = vmax.bf16 %v1715_v37, %v197_v7  ;;  %v203_v19 = vld [vmem:[%s2175_s11 + $0x158] sm:$0xf] }
 0x132   : > { %v1041_v52 = vmax.bf16 %v913_v2, %v3635_v41  ;;  %v1890_v59 = vmax.bf16 %v1778_v57, %v913_v2  ;;  %v1532_v50 = vor.u32 %v1531_v31, %v1528_v61  ;;  %v1632_v29 = vmax.bf16 %v1520_v45, %v913_v2 }
 0x133   : > { %v1537_v63 = vrot.slane %v1535_v46, 5  ;;  %v1539_v35 = vshrl.u32 %v3685_v14, 16  ;;  %v1545_v54 = vshll.u32 %v3702_v22, 16  ;;  %v1717_v5 = vmax.bf16 %v1631_v24, %v3680_v33 }
 0x134   : > { %v1976_v39 = vmax.bf16 %v1890_v59, %v3697_v20  ;;  %v1533_v47 = vrot.slane %v1532_v50, 4  ;;  %v1522_v51 = vmax.bf16 %v3688_v60, %v3685_v14  ;;  %v3720_v41 = vmax.bf16 %v3697_v20, %v1041_v52  ;;  %v204_v50 = vld [vmem:[%s2175_s11 + $0x15c] sm:$0xf] }
 0x135   : > { %v1645_v42 = vsel %vm2197_vm4, %v2129_v18, %v1644_v3  ;;  %v1541_v45 = vrot.slane %v1539_v35, 4  ;;  %v1647_v11 = vrot.slane %v3702_v22, 5  ;;  %v1547_v34 = vrot.slane %v1545_v54, 5 }
 0x136   : > { %2041 = vst.msk [vmem:[%s2291_s15 + $0xdc] sm:$0xf] %vm1985_vm6, %v1976_v39  ;;  %v1538_v4 = vsel %vm2204_vm5, %v1533_v47, %v1537_v63  ;;  %v1646_v49 = vrot.slane %v1644_v3, 4  ;;  %v1549_v16 = vshrl.u32 %v3702_v22, 16  ;;  %v1718_v62 = vmax.bf16 %v1632_v29, %v3697_v20 }
 0x137   : > { %v1633_v8 = vmax.bf16 %v1538_v4, %v1521_v30  ;;  %v1891_v15 = vmax.bf16 %v1779_v28, %v1538_v4  ;;  %v1542_v17 = vor.u32 %v1541_v45, %v1537_v63  ;;  %v1780_v21 = vmax.bf16 %v1716_v9, %v3685_v14  ;;  %v202_v9 = vld [vmem:[%s2175_s11 + $0x154] sm:$0xf] }
 0x138   : > { %v1551_v13 = vrot.slane %v1549_v16, 4  ;;  %v1555_v0 = vshll.u32 %v3726_v27, 16  ;;  %v1649_v40 = vrot.slane %v1647_v11, 4  ;;  %v1523_v58 = vmax.bf16 %v3705_v48, %v3702_v22 }
 0x139   : > { %v1977_v36 = vmax.bf16 %v1891_v15, %v1645_v42  ;;  %v1543_v37 = vrot.slane %v1542_v17, 4  ;;  %v1650_v32 = vrot.slane %v3726_v27, 5  ;;  %v1719_v38 = vmax.bf16 %v1645_v42, %v1633_v8 }
 0x13a   : > { %v1648_v7 = vsel %vm2197_vm4, %v1646_v49, %v1647_v11  ;;  %v1552_v43 = vor.u32 %v1551_v13, %v1547_v34  ;;  %v1781_v53 = vmax.bf16 %v1717_v5, %v3702_v22  ;;  %v1557_v57 = vrot.slane %v1555_v0, 5  ;;  %v205_v49 = vld [vmem:[%s2175_s11 + $0x160] sm:$0xf] }
 0x13b   : > { %2042 = vst.msk [vmem:[%s2291_s15 + $0xe0] sm:$0xf] %vm1985_vm6, %v1977_v36  ;;  %v1548_v33 = vsel %vm2204_vm5, %v1543_v37, %v1547_v34  ;;  %v1559_v1 = vshrl.u32 %v3726_v27, 16  ;;  %v1565_v6 = vshll.u32 %v201_v44, 16  ;;  %v3750_v60 = vsel %vm2197_vm4, %v1649_v40, %v1650_v32 }
 0x13c   : > { %v1634_v55 = vmax.bf16 %v1548_v33, %v1522_v51  ;;  %v1892_v25 = vmax.bf16 %v1780_v21, %v1548_v33  ;;  %v1553_v14 = vrot.slane %v1552_v43, 4  ;;  %v1524_v12 = vmax.bf16 %v3720_v41, %v3726_v27 }
 0x13d   : > { %v1561_v56 = vrot.slane %v1559_v1, 4  ;;  %v1652_v24 = vrot.slane %v1650_v32, 4  ;;  %v1653_v10 = vrot.slane %v201_v44, 5  ;;  %v1567_v61 = vrot.slane %v1565_v6, 5 }
 0x13e   : > { %v1978_v20 = vmax.bf16 %v1892_v25, %v1648_v7  ;;  %v1558_v30 = vsel %vm2204_vm5, %v1553_v14, %v1557_v57  ;;  %v1782_v31 = vmax.bf16 %v1718_v62, %v3726_v27  ;;  %v1788_v2 = vshrl.u32 %v202_v9, 16 }
 0x13f   : > { %v1635_v46 = vmax.bf16 %v1558_v30, %v1523_v58  ;;  %v1893_v22 = vmax.bf16 %v1781_v53, %v1558_v30  ;;  %v1562_v48 = vor.u32 %v1561_v56, %v1557_v57  ;;  %v1720_v18 = vmax.bf16 %v1648_v7, %v1634_v55  ;;  %v206_v58 = vld [vmem:[%s2175_s11 + $0x164] sm:$0x1] }
 0x140   : > { %2043 = vst.msk [vmem:[%s2291_s15 + $0xe4] sm:$0xf] %vm1985_vm6, %v1978_v20  ;;  %v1783_v3 = vmax.bf16 %v1719_v38, %v202_v9  ;;  %v1791_v52 = vshll.u32 %v202_v9, 16  ;;  %v1797_v59 = vshll.u32 %v203_v19, 16  ;;  %v1790_v63 = vrot.slane %v1788_v2, 4 }
 0x141   : > { %v1979_v28 = vmax.bf16 %v1893_v22, %v3750_v60  ;;  %v1563_v29 = vrot.slane %v1562_v48, 4  ;;  %v2130_v35 = vrot.slane %v202_v9, 9  ;;  %v1721_v54 = vmax.bf16 %v3750_v60, %v1635_v46 }
 0x142   : > { %v1654_v5 = vsel %vm2197_vm4, %v1652_v24, %v1653_v10  ;;  %v1793_v39 = vrot.slane %v1791_v52, 5  ;;  %v1906_v47 = vrot.slane %v203_v19, 5  ;;  %v1799_v41 = vrot.slane %v1797_v59, 5 }
 0x143   : > { %2044 = vst.msk [vmem:[%s2291_s15 + $0xe8] sm:$0xf] %vm1985_vm6, %v1979_v28  ;;  %v1568_v51 = vsel %vm2204_vm5, %v1563_v29, %v1567_v61  ;;  %v1801_v42 = vshrl.u32 %v203_v19, 16  ;;  %v1807_v45 = vshll.u32 %v204_v50, 16  ;;  %v1909_v34 = vrot.slane %v204_v50, 5 }
 0x144   : > { %v1636_v11 = vmax.bf16 %v1568_v51, %v1524_v12  ;;  %v1894_v27 = vmax.bf16 %v1782_v31, %v1568_v51  ;;  %v1794_v4 = vor.u32 %v1793_v39, %v1790_v63  ;;  %v1907_v16 = vsel %vm2197_vm4, %v2130_v35, %v1906_v47 }
 0x145   : > { %v1803_v62 = vrot.slane %v1801_v42, 4  ;;  %v1809_v8 = vrot.slane %v1807_v45, 5  ;;  %v1811_v15 = vshrl.u32 %v204_v50, 16  ;;  %v1784_v13 = vmax.bf16 %v1720_v18, %v203_v19 }
 0x146   : > { %v1980_v17 = vmax.bf16 %v1894_v27, %v1654_v5  ;;  %v1795_v21 = vrot.slane %v1794_v4, 4  ;;  %v1908_v0 = vrot.slane %v1906_v47, 4  ;;  %v1722_v40 = vmax.bf16 %v1654_v5, %v1636_v11 }
 0x147   : > { %v1804_v44 = vor.u32 %v1803_v62, %v1799_v41  ;;  %v1813_v36 = vrot.slane %v1811_v15, 4  ;;  %v1817_v37 = vshll.u32 %v205_v49, 16  ;;  %v1911_v38 = vrot.slane %v1909_v34, 4 }
 0x148   : > { %2045 = vst.msk [vmem:[%s2291_s15 + $0xec] sm:$0xf] %vm1985_vm6, %v1980_v17  ;;  %v1800_v32 = vsel %vm2204_vm5, %v1795_v21, %v1799_v41  ;;  %v1912_v7 = vrot.slane %v205_v49, 5  ;;  %v1821_v43 = vshrl.u32 %v205_v49, 16  ;;  %v1910_v6 = vsel %vm2197_vm4, %v1908_v0, %v1909_v34 }
 0x149   : > { %v1895_v53 = vmax.bf16 %v1800_v32, %v1783_v3  ;;  %v1805_v33 = vrot.slane %v1804_v44, 4  ;;  %v1814_v57 = vor.u32 %v1813_v36, %v1809_v8  ;;  %v1819_v1 = vrot.slane %v1817_v37, 5 }
 0x14a   : > { %v1785_v55 = vmax.bf16 %v1721_v54, %v204_v50  ;;  %v1823_v25 = vrot.slane %v1821_v43, 4  ;;  %v1827_v14 = vshll.u32 %v206_v58, 16  ;;  %v1914_v56 = vrot.slane %v1912_v7, 4 }
 0x14b   : > { %v1981_v60 = vmax.bf16 %v1907_v16, %v1895_v53  ;;  %v1810_v9 = vsel %vm2204_vm5, %v1805_v33, %v1809_v8  ;;  %v1815_v12 = vrot.slane %v1814_v57, 4  ;;  %v1915_v20 = vrot.slane %v206_v58, 5 }
 0x14c   : > { %v1896_v24 = vmax.bf16 %v1810_v9, %v1784_v13  ;;  %v1824_v10 = vor.u32 %v1823_v25, %v1819_v1  ;;  %v1829_v19 = vrot.slane %v1827_v14, 5  ;;  %v1913_v61 = vsel %vm2197_vm4, %v1911_v38, %v1912_v7 }
 0x14d   : > { %2046 = vst.msk [vmem:[%s2291_s15 + $0xf0] sm:$0xf] %vm1985_vm6, %v1981_v60  ;;  %v1820_v30 = vsel %vm2204_vm5, %v1815_v12, %v1819_v1  ;;  %v1786_v31 = vmax.bf16 %v1722_v40, %v205_v49  ;;  %v1916_v3 = vsel %vm2197_vm4, %v1914_v56, %v1915_v20 }
 0x14e   : > { %v1982_v46 = vmax.bf16 %v1910_v6, %v1896_v24  ;;  %v1897_v22 = vmax.bf16 %v1820_v30, %v1785_v55  ;;  %v1825_v48 = vrot.slane %v1824_v10, 4 }
 0x150   : > { %2047 = vst.msk [vmem:[%s2291_s15 + $0xf4] sm:$0xf] %vm1985_vm6, %v1982_v46  ;;  %v1983_v2 = vmax.bf16 %v1913_v61, %v1897_v22  ;;  %v1830_v18 = vsel %vm2204_vm5, %v1825_v48, %v1829_v19 }
 0x151   : > { %v1898_v52 = vmax.bf16 %v1830_v18, %v1786_v31 }
 0x152   : > { %2048 = vst.msk [vmem:[%s2291_s15 + $0xf8] sm:$0xf] %vm1985_vm6, %v1983_v2 }
 0x153   : > { %v1984_v59 = vmax.bf16 %v1916_v3, %v1898_v52 }
 0x155   : > { %2049 = vst.msk [vmem:[%s2291_s15 + $0xfc] sm:$0xf] %vm1985_vm6, %v1984_v59 }
 0x156 PF: > { %s11_s6 = sadd.s32 1, %s2149_s6  }
 0x157   : > { %p8_p4 = scmp.ge.s32.totalorder %s11_s6, 4  }
 0x159   :  { %10 = sbr.rel (!%p8_p4) target bundleno = 1 (0x1), region = 54 }

// kernel: planner_forward.10
= control target key start
LH: loop header
LB: loop body
LE: loop exit
PB: predicated region body
PF: predicated region fallthrough
CT: control target
= control target key end

     0   :  { %s1253_s15 = smov 0   ;;  %s1460_s0 = inlined_call_operand.vmem [shape: bf16[256,384], index: 0, kind: input, shape index: {}]   ;;  %s1461_s1 = inlined_call_operand.vmem [shape: bf16[384,64], index: 1, kind: input, shape index: {}]   ;;  %s1462_s2 = inlined_call_operand.vmem [shape: f32[1,64], index: 2, kind: input, shape index: {}]   ;;  %s1463_s3 = inlined_call_operand.vmem [shape: f32[1,64], index: 3, kind: input, shape index: {}]   ;;  %s1464_s4 = inlined_call_operand.vmem [shape: bf16[256,64], index: 4, kind: output, shape index: {}]  }
   0x1 LB: > { %s950_s16 = sadd.s32 4294967295, %s1226_s15   ;;  %p954_p0 = scmp.ge.s32.totalorder %s1226_s15, 1  ;;  %s1226_s15 = sphi %s1253_s15, %s14_s15  }
   0x2   : > { %p164_p1 = scmp.lt.s32.totalorder %s1226_s15, 3 }
   0x4   : > { %p165_p2 = pnand %p954_p0, %p164_p1 }
   0x5   : > { %v1164_v0 = vld [vmem:[%s1461_s1 + $0x40] sm:$0xff] (!%p165_p2)   ;;  %v1167_v3 = vld [vmem:[%s1461_s1 + $0x48] sm:$0xff] (!%p165_p2)   ;;  %v1170_v6 = vld [vmem:[%s1461_s1 + $0x50] sm:$0xff] (!%p165_p2)   ;;  %s955_s7 = sshll.u32 (!%p165_p2), %s950_s16, 4  ;;  %vm877_vm0 = vcmask (!%p165_p2), 519168  }
   0x6   : > { %168 = sbr.rel (%p165_p2) target bundleno = 322 (0x142), region = 36  ;;  %v1165_v1 = vld [vmem:[%s1461_s1] sm:$0xff] (!%p165_p2)   ;;  %1043 = vmatprep.subr.bf16.mxu0 (!%p165_p2), %v1164_v0  ;;  %v1168_v4 = vld [vmem:[%s1461_s1 + $0x8] sm:$0xff] (!%p165_p2)   ;;  %v1171_v7 = vld [vmem:[%s1461_s1 + $0x10] sm:$0xff] (!%p165_p2)   ;;  %p192_p3 = scmp.lt.s32.totalorder (!%p165_p2), %s955_s7, 31 }
   0x7   : > { %v1166_v2 = vld [vmem:[%s1461_s1 + $0x80] sm:$0xff] (!%p165_p2)   ;;  %1044 = vmatpush3.bf16.msra.mxu0 (!%p165_p2), %v1165_v1  ;;  %v1169_v5 = vld [vmem:[%s1461_s1 + $0x88] sm:$0xff] (!%p165_p2)   ;;  %v1172_v8 = vld [vmem:[%s1461_s1 + $0x90] sm:$0xff] (!%p165_p2)  }
   0x8   : > { %1123 = vmatprep.subr.bf16.mxu1 (!%p165_p2), %v1166_v2  ;;  %1045 = vmatprep.subr.bf16.mxu0 (!%p165_p2), %v1167_v3  ;;  %v1173_v9 = vld [vmem:[%s1461_s1 + $0x58] sm:$0xff] (!%p165_p2)   ;;  %v1176_v12 = vld [vmem:[%s1461_s1 + $0x60] sm:$0xff] (!%p165_p2)   ;;  %v1179_v15 = vld [vmem:[%s1461_s1 + $0x68] sm:$0xff] (!%p165_p2)  }
   0x9   : > { %1124 = vmatpush3.bf16.msra.mxu1 (!%p165_p2), %v1166_v2  ;;  %v1174_v10 = vld [vmem:[%s1461_s1 + $0x18] sm:$0xff] (!%p165_p2)   ;;  %v1178_v13 = vld [vmem:[%s1461_s1 + $0xa0] sm:$0xff] (!%p165_p2)   ;;  %v1181_v16 = vld [vmem:[%s1461_s1 + $0xa8] sm:$0xff] (!%p165_p2)  }
   0xa   : > { %1125 = vmatprep.subr.bf16.mxu1 (!%p165_p2), %v1169_v5  ;;  %v1175_v11 = vld [vmem:[%s1461_s1 + $0x98] sm:$0xff] (!%p165_p2)   ;;  %v1177_v14 = vld [vmem:[%s1461_s1 + $0x20] sm:$0xff] (!%p165_p2)   ;;  %v1180_v17 = vld [vmem:[%s1461_s1 + $0x28] sm:$0xff] (!%p165_p2)  }
   0xb   : > { %1046 = vmatpush3.bf16.msra.mxu0 (!%p165_p2), %v1168_v4  ;;  %v1182_v18 = vld [vmem:[%s1461_s1 + $0x70] sm:$0xff] (!%p165_p2)   ;;  %v1185_v21 = vld [vmem:[%s1461_s1 + $0x78] sm:$0xff] (!%p165_p2)   ;;  %v1368_v55 = vld [vmem:[%s1462_s2] ss:$0 sm:$0xff] (!%p165_p2) }
   0xc   : > { %1047 = vmatprep.subr.bf16.mxu0 (!%p165_p2), %v1170_v6  ;;  %v1183_v19 = vld [vmem:[%s1461_s1 + $0x30] sm:$0xff] (!%p165_p2)   ;;  %v1187_v22 = vld [vmem:[%s1461_s1 + $0xb8] sm:$0xff] (!%p165_p2)   ;;  %v1373_v59 = vld [vmem:[%s1463_s3] ss:$0 sm:$0xff] (!%p165_p2) }
   0xd   : > { %1126 = vmatpush3.bf16.msra.mxu1 %v1169_v5  ;;  %s1466_s7 = smov (!%p192_p3, %s955_s7), 31  ;;  %v1184_v20 = vld [vmem:[%s1461_s1 + $0xb0] sm:$0xff]   ;;  %v1186_v25 = vld [vmem:[%s1461_s1 + $0x38] sm:$0xff]  }
   0xe   : > { %1127 = vmatprep.subr.bf16.mxu1 %v1172_v8  ;;  %s1155_s27 = smul.u32 12, %s1466_s7  ;;  %s958_s25 = sshll.u32 %s1466_s7, 2 }
   0xf   : > { %1048 = vmatpush3.bf16.msra.mxu0 %v1171_v7  ;;  %s1383_s28 = scalar_lea.vmem %s1464_s4, %s958_s25 }
  0x10   : > { %1049 = vmatprep.subr.bf16.mxu0 %v1173_v9  ;;  %s1330_s13 = scalar_lea.vmem %s1460_s0, %s1155_s27 }
  0x11   : > { %1128 = vmatpush3.bf16.msra.mxu1 %v1172_v8  ;;  %v1190_v23 = vld [vmem:[%s1330_s13 + $0x4] ss:$12 sps:$4 sm:$0xff]   ;;  %v1191_v24 = vld [vmem:[%s1330_s13 + $0x8] ss:$12 sps:$4 sm:$0xff]   ;;  %v1188_v26 = vld [vmem:[%s1330_s13] ss:$12 sps:$4 sm:$0xff]  }
  0x12   : > { %1129 = vmatprep.subr.bf16.mxu1 %v1175_v11  ;;  %589 = vmatprep.mubr.bf16.mxu0 %v1190_v23  ;;  %v1193_v27 = vld [vmem:[%s1330_s13 + $0x1c] ss:$12 sps:$4 sm:$0xff]   ;;  %v1192_v28 = vld [vmem:[%s1330_s13 + $0x20] ss:$12 sps:$4 sm:$0xff]   ;;  %v1199_v29 = vld [vmem:[%s1330_s13 + $0x38] ss:$12 sps:$4 sm:$0xff]  }
  0x13   : > { %1050 = vmatpush3.bf16.msra.mxu0 %v1174_v10  ;;  %1139 = vmatprep.mubr.bf16.mxu1 %v1191_v24  ;;  %v1195_v30 = vld [vmem:[%s1330_s13 + $0x18] ss:$12 sps:$4 sm:$0xff]   ;;  %v1196_v31 = vld [vmem:[%s1330_s13 + $0x34] ss:$12 sps:$4 sm:$0xff]   ;;  %v1200_v32 = vld [vmem:[%s1330_s13 + $0x50] ss:$12 sps:$4 sm:$0xff]  }
  0x14   : > { %1051 = vmatprep.subr.bf16.mxu0 %v1176_v12  ;;  %v1207_v33 = vld [vmem:[%s1330_s13 + $0x68] ss:$12 sps:$4 sm:$0xff]   ;;  %v1198_v34 = vld [vmem:[%s1330_s13 + $0x30] ss:$12 sps:$4 sm:$0xff]   ;;  %v1201_v35 = vld [vmem:[%s1330_s13 + $0x4c] ss:$12 sps:$4 sm:$0xff]  }
  0x15   : > { %1130 = vmatpush3.bf16.msra.mxu1 %v1175_v11  ;;  %v1208_v36 = vld [vmem:[%s1330_s13 + $0x80] ss:$12 sps:$4 sm:$0xff]   ;;  %v1215_v37 = vld [vmem:[%s1330_s13 + $0x98] ss:$12 sps:$4 sm:$0xff]   ;;  %v1203_v38 = vld [vmem:[%s1330_s13 + $0x48] ss:$12 sps:$4 sm:$0xff]  }
  0x16   : > { %1131 = vmatprep.subr.bf16.mxu1 %v1178_v13  ;;  %v1204_v39 = vld [vmem:[%s1330_s13 + $0x64] ss:$12 sps:$4 sm:$0xff]   ;;  %v1206_v41 = vld [vmem:[%s1330_s13 + $0x60] ss:$12 sps:$4 sm:$0xff]   ;;  %v1209_v42 = vld [vmem:[%s1330_s13 + $0x7c] ss:$12 sps:$4 sm:$0xff]  }
  0x17   : > { %1052 = vmatpush3.bf16.msra.mxu0 %v1177_v14  ;;  %v1216_v40 = vld [vmem:[%s1330_s13 + $0xb0] ss:$12 sps:$4 sm:$0xff]   ;;  %v1211_v43 = vld [vmem:[%s1330_s13 + $0x78] ss:$12 sps:$4 sm:$0xff]   ;;  %v1212_v44 = vld [vmem:[%s1330_s13 + $0x94] ss:$12 sps:$4 sm:$0xff]  }
  0x18   : > { %1053 = vmatprep.subr.bf16.mxu0 %v1179_v15  ;;  %v1214_v45 = vld [vmem:[%s1330_s13 + $0x90] ss:$12 sps:$4 sm:$0xff]   ;;  %v1217_v46 = vld [vmem:[%s1330_s13 + $0xac] ss:$12 sps:$4 sm:$0xff]   ;;  %v1219_v47 = vld [vmem:[%s1330_s13 + $0xa8] ss:$12 sps:$4 sm:$0xff]  }
  0x19   : > { %1132 = vmatpush3.bf16.msra.mxu1 %v1178_v13 }
  0x1a   : > { %1133 = vmatprep.subr.bf16.mxu1 %v1181_v16 }
  0x1b   : > { %1054 = vmatpush3.bf16.msra.mxu0 %v1180_v17 }
  0x1c   : > { %1055 = vmatprep.subr.bf16.mxu0 %v1182_v18 }
  0x1d   : > { %1134 = vmatpush3.bf16.msra.mxu1 %v1181_v16 }
  0x1e   : > { %1135 = vmatprep.subr.bf16.mxu1 %v1184_v20 }
  0x1f   : > { %1056 = vmatpush3.bf16.msra.mxu0 %v1183_v19 }
  0x20   : > { %1057 = vmatprep.subr.bf16.mxu0 %v1185_v21 }
  0x21   : > { %1136 = vmatpush3.bf16.msra.mxu1 %v1184_v20 }
  0x22   : > { %1137 = vmatprep.subr.bf16.mxu1 %v1187_v22 }
  0x23   : > { %1058 = vmatpush3.bf16.msra.mxu0 %v1186_v25 }
  0x25   : > { %1138 = vmatpush3.bf16.msra.mxu1 %v1187_v22 }
  0x26   : > { %590 = vmatmul.mubr.bf16.vlgmr.msra.gmra.mrb[0].mxu0 %v1188_v26 }
  0x27   : > { %597 = vmatprep.mubr.bf16.mxu0 %v1193_v27 }
  0x28   : > { %1140 = vmatmul.mubr.bf16.vlgmr.msra.gmra.mrb[0].mxu1 %v1192_v28 }
  0x29   : > { %1143 = vmatprep.mubr.bf16.mxu1 %v1199_v29 }
  0x2e   : > { %598 = vmatmul.mubr.bf16.gmra.mrb[4].mxu0 %v1195_v30 }
  0x2f   : > { %605 = vmatprep.mubr.bf16.mxu0 %v1196_v31 }
  0x30   : > { %1144 = vmatmul.mubr.bf16.gmra.mrb[4].mxu1 %v1200_v32 }
  0x31   : > { %1147 = vmatprep.mubr.bf16.mxu1 %v1207_v33 }
  0x36   : > { %606 = vmatmul.mubr.bf16.gmra.mrb[8].mxu0 %v1198_v34 }
  0x37   : > { %613 = vmatprep.mubr.bf16.mxu0 %v1201_v35 }
  0x38   : > { %1148 = vmatmul.mubr.bf16.gmra.mrb[8].mxu1 %v1208_v36 }
  0x39   : > { %1151 = vmatprep.mubr.bf16.mxu1 %v1215_v37 }
  0x3e   : > { %614 = vmatmul.mubr.bf16.gmra.mrb[12].mxu0 %v1203_v38 }
  0x3f   : > { %621 = vmatprep.mubr.bf16.mxu0 %v1204_v39 }
  0x40   : > { %1152 = vmatmul.mubr.bf16.gmra.mrb[12].mxu1 %v1216_v40 }
  0x46   : > { %622 = vmatmul.mubr.bf16.gmra.mrb[16].mxu0 %v1206_v41 }
  0x47   : > { %629 = vmatprep.mubr.bf16.mxu0 %v1209_v42 }
  0x4e   : > { %630 = vmatmul.mubr.bf16.gmra.mrb[20].mxu0 %v1211_v43 }
  0x4f   : > { %637 = vmatprep.mubr.bf16.mxu0 %v1212_v44 }
  0x56   : > { %638 = vmatmul.mubr.bf16.gmra.mrb[24].mxu0 %v1214_v45 }
  0x57   : > { %645 = vmatprep.mubr.bf16.mxu0 %v1217_v46 }
  0x5e   : > { %646 = vmatmul.mubr.bf16.gmra.mrb[28].mxu0 %v1219_v47 }
  0xf9   : > { %v1059_v48 = vpop.f32.mrb[0].mxu0 }
  0xfa   : > { %v1060_v49 = vpop.f32.mrb[1].mxu0 }
  0xfb   : > { %v1061_v50 = vadd.f32 %v1060_v49, %v1059_v48  ;;  %v1062_v51 = vpop.f32.mrb[2].mxu0  ;;  %v1141_v52 = vpop.f32.mrb[0].mxu1 }
  0xfc   : > { %v1063_v53 = vpop.f32.mrb[3].mxu0  ;;  %v688_v54 = vpop.f32.mrb[1].mxu1 }
  0xfd   : > { %v1064_v56 = vadd.f32 %v1063_v53, %v1062_v51  ;;  %v689_v57 = vadd.f32 %v1061_v50, %v688_v54  ;;  %v1142_v58 = vpop.f32.mrb[2].mxu1 }
  0xfe   : > { %v691_v60 = vpop.f32.mrb[3].mxu1 }
  0xff   : > { %v758_v61 = vmul.f32 %v1368_v55, %v689_v57  ;;  %v692_v62 = vadd.f32 %v1064_v56, %v691_v60 }
 0x101   : > { %v781_v63 = vadd.f32 %v1373_v59, %v758_v61  ;;  %v759_v0 = vmul.f32 %v1368_v55, %v692_v62  ;;  %v1065_v1 = vpop.f32.mrb[4].mxu0 }
 0x102   : > { %v1066_v2 = vpop.f32.mrb[5].mxu0 }
 0x103   : > { %v797_v3 = vmax.f32 %v781_v63, 0.0  ;;  %v782_v4 = vadd.f32 %v1373_v59, %v759_v0  ;;  %v1067_v5 = vadd.f32 %v1066_v2, %v1065_v1  ;;  %v1068_v6 = vpop.f32.mrb[6].mxu0  ;;  %v1145_v7 = vpop.f32.mrb[4].mxu1 }
 0x104   : > { %v1069_v8 = vpop.f32.mrb[7].mxu0  ;;  %v704_v9 = vpop.f32.mrb[5].mxu1 }
 0x105   : > { %v1027_v10 = vpack.c.bf16 %v797_v3, %v797_v3  ;;  %v798_v11 = vmax.f32 %v782_v4, 0.0  ;;  %v697_v12 = vadd.f32 %v1141_v52, %v1067_v5  ;;  %v1070_v13 = vadd.f32 %v1069_v8, %v1068_v6  ;;  %v1146_v14 = vpop.f32.mrb[6].mxu1 }
 0x106   : > { %v707_v15 = vpop.f32.mrb[7].mxu1 }
 0x107   : > { %878 = vst.msk [vmem:[%s1383_s28] sm:$0xf] %vm877_vm0, %v1027_v10  ;;  %v1028_v16 = vpack.c.bf16 %v798_v11, %v798_v11  ;;  %v760_v17 = vmul.f32 %v1368_v55, %v697_v12  ;;  %v700_v18 = vadd.f32 %v1142_v58, %v1070_v13 }
 0x109   : > { %879 = vst.msk [vmem:[%s1383_s28 + $0x4] sm:$0xf] %vm877_vm0, %v1028_v16  ;;  %v783_v19 = vadd.f32 %v1373_v59, %v760_v17  ;;  %v761_v20 = vmul.f32 %v1368_v55, %v700_v18  ;;  %v1071_v21 = vpop.f32.mrb[8].mxu0 }
 0x10a   : > { %v1072_v22 = vpop.f32.mrb[9].mxu0 }
 0x10b   : > { %v799_v23 = vmax.f32 %v783_v19, 0.0  ;;  %v784_v24 = vadd.f32 %v1373_v59, %v761_v20  ;;  %v1073_v25 = vadd.f32 %v1072_v22, %v1071_v21  ;;  %v1074_v26 = vpop.f32.mrb[10].mxu0  ;;  %v1393_v27 = vpop.f32.mrb[8].mxu1 }
 0x10c   : > { %v1075_v28 = vpop.f32.mrb[11].mxu0  ;;  %v720_v29 = vpop.f32.mrb[9].mxu1 }
 0x10d   : > { %v1029_v30 = vpack.c.bf16 %v799_v23, %v799_v23  ;;  %v800_v31 = vmax.f32 %v784_v24, 0.0  ;;  %v1076_v32 = vadd.f32 %v1075_v28, %v1074_v26  ;;  %v705_v33 = vadd.f32 %v1073_v25, %v704_v9  ;;  %v1395_v34 = vpop.f32.mrb[10].mxu1 }
 0x10e   : > { %v723_v35 = vpop.f32.mrb[11].mxu1 }
 0x10f   : > { %880 = vst.msk [vmem:[%s1383_s28 + $0x8] sm:$0xf] %vm877_vm0, %v1029_v30  ;;  %v1030_v36 = vpack.c.bf16 %v800_v31, %v800_v31  ;;  %v762_v37 = vmul.f32 %v1368_v55, %v705_v33  ;;  %v708_v38 = vadd.f32 %v1076_v32, %v707_v15 }
 0x111   : > { %881 = vst.msk [vmem:[%s1383_s28 + $0xc] sm:$0xf] %vm877_vm0, %v1030_v36  ;;  %v785_v39 = vadd.f32 %v1373_v59, %v762_v37  ;;  %v763_v40 = vmul.f32 %v1368_v55, %v708_v38  ;;  %v1077_v41 = vpop.f32.mrb[12].mxu0 }
 0x112   : > { %v1078_v42 = vpop.f32.mrb[13].mxu0 }
 0x113   : > { %v801_v43 = vmax.f32 %v785_v39, 0.0  ;;  %v786_v44 = vadd.f32 %v1373_v59, %v763_v40  ;;  %v1079_v45 = vadd.f32 %v1078_v42, %v1077_v41  ;;  %v1080_v46 = vpop.f32.mrb[14].mxu0  ;;  %v1405_v47 = vpop.f32.mrb[12].mxu1 }
 0x114   : > { %v1081_v48 = vpop.f32.mrb[15].mxu0  ;;  %v736_v49 = vpop.f32.mrb[13].mxu1 }
 0x115   : > { %v1031_v50 = vpack.c.bf16 %v801_v43, %v801_v43  ;;  %v802_v51 = vmax.f32 %v786_v44, 0.0  ;;  %v713_v52 = vadd.f32 %v1145_v7, %v1079_v45  ;;  %v1082_v53 = vadd.f32 %v1081_v48, %v1080_v46  ;;  %v1407_v54 = vpop.f32.mrb[14].mxu1 }
 0x116   : > { %v739_v56 = vpop.f32.mrb[15].mxu1 }
 0x117   : > { %882 = vst.msk [vmem:[%s1383_s28 + $0x10] sm:$0xf] %vm877_vm0, %v1031_v50  ;;  %v1032_v57 = vpack.c.bf16 %v802_v51, %v802_v51  ;;  %v764_v58 = vmul.f32 %v1368_v55, %v713_v52  ;;  %v716_v60 = vadd.f32 %v1146_v14, %v1082_v53 }
 0x119   : > { %883 = vst.msk [vmem:[%s1383_s28 + $0x14] sm:$0xf] %vm877_vm0, %v1032_v57  ;;  %v787_v61 = vadd.f32 %v1373_v59, %v764_v58  ;;  %v765_v62 = vmul.f32 %v1368_v55, %v716_v60  ;;  %v1083_v63 = vpop.f32.mrb[16].mxu0 }
 0x11a   : > { %v1084_v0 = vpop.f32.mrb[17].mxu0 }
 0x11b   : > { %v803_v1 = vmax.f32 %v787_v61, 0.0  ;;  %v788_v2 = vadd.f32 %v1373_v59, %v765_v62  ;;  %v1085_v3 = vadd.f32 %v1084_v0, %v1083_v63  ;;  %v1086_v4 = vpop.f32.mrb[18].mxu0 }
 0x11c   : > { %v1087_v5 = vpop.f32.mrb[19].mxu0 }
 0x11d   : > { %v1033_v6 = vpack.c.bf16 %v803_v1, %v803_v1  ;;  %v804_v7 = vmax.f32 %v788_v2, 0.0  ;;  %v1088_v8 = vadd.f32 %v1087_v5, %v1086_v4  ;;  %v721_v9 = vadd.f32 %v1085_v3, %v720_v29 }
 0x11f   : > { %884 = vst.msk [vmem:[%s1383_s28 + $0x18] sm:$0xf] %vm877_vm0, %v1033_v6  ;;  %v1034_v10 = vpack.c.bf16 %v804_v7, %v804_v7  ;;  %v766_v11 = vmul.f32 %v1368_v55, %v721_v9  ;;  %v724_v12 = vadd.f32 %v1088_v8, %v723_v35 }
 0x121   : > { %885 = vst.msk [vmem:[%s1383_s28 + $0x1c] sm:$0xf] %vm877_vm0, %v1034_v10  ;;  %v789_v13 = vadd.f32 %v1373_v59, %v766_v11  ;;  %v767_v14 = vmul.f32 %v1368_v55, %v724_v12  ;;  %v1089_v15 = vpop.f32.mrb[20].mxu0 }
 0x122   : > { %v1090_v16 = vpop.f32.mrb[21].mxu0 }
 0x123   : > { %v805_v17 = vmax.f32 %v789_v13, 0.0  ;;  %v790_v18 = vadd.f32 %v1373_v59, %v767_v14  ;;  %v1091_v19 = vadd.f32 %v1090_v16, %v1089_v15  ;;  %v1092_v20 = vpop.f32.mrb[22].mxu0 }
 0x124   : > { %v1093_v21 = vpop.f32.mrb[23].mxu0 }
 0x125   : > { %v1035_v22 = vpack.c.bf16 %v805_v17, %v805_v17  ;;  %v806_v23 = vmax.f32 %v790_v18, 0.0  ;;  %v729_v24 = vadd.f32 %v1393_v27, %v1091_v19  ;;  %v1094_v25 = vadd.f32 %v1093_v21, %v1092_v20 }
 0x127   : > { %886 = vst.msk [vmem:[%s1383_s28 + $0x20] sm:$0xf] %vm877_vm0, %v1035_v22  ;;  %v1036_v26 = vpack.c.bf16 %v806_v23, %v806_v23  ;;  %v768_v28 = vmul.f32 %v1368_v55, %v729_v24  ;;  %v732_v29 = vadd.f32 %v1395_v34, %v1094_v25 }
 0x129   : > { %887 = vst.msk [vmem:[%s1383_s28 + $0x24] sm:$0xf] %vm877_vm0, %v1036_v26  ;;  %v791_v30 = vadd.f32 %v1373_v59, %v768_v28  ;;  %v769_v31 = vmul.f32 %v1368_v55, %v732_v29  ;;  %v1095_v32 = vpop.f32.mrb[24].mxu0 }
 0x12a   : > { %v1096_v33 = vpop.f32.mrb[25].mxu0 }
 0x12b   : > { %v807_v35 = vmax.f32 %v791_v30, 0.0  ;;  %v792_v27 = vadd.f32 %v1373_v59, %v769_v31  ;;  %v1097_v36 = vadd.f32 %v1096_v33, %v1095_v32  ;;  %v1098_v37 = vpop.f32.mrb[26].mxu0 }
 0x12c   : > { %v1099_v38 = vpop.f32.mrb[27].mxu0 }
 0x12d   : > { %v1037_v39 = vpack.c.bf16 %v807_v35, %v807_v35  ;;  %v808_v40 = vmax.f32 %v792_v27, 0.0  ;;  %v1100_v41 = vadd.f32 %v1099_v38, %v1098_v37  ;;  %v737_v42 = vadd.f32 %v1097_v36, %v736_v49 }
 0x12f   : > { %888 = vst.msk [vmem:[%s1383_s28 + $0x28] sm:$0xf] %vm877_vm0, %v1037_v39  ;;  %v1038_v34 = vpack.c.bf16 %v808_v40, %v808_v40  ;;  %v770_v43 = vmul.f32 %v1368_v55, %v737_v42  ;;  %v740_v44 = vadd.f32 %v1100_v41, %v739_v56 }
 0x131   : > { %889 = vst.msk [vmem:[%s1383_s28 + $0x2c] sm:$0xf] %vm877_vm0, %v1038_v34  ;;  %v793_v45 = vadd.f32 %v1373_v59, %v770_v43  ;;  %v771_v46 = vmul.f32 %v1368_v55, %v740_v44  ;;  %v1101_v48 = vpop.f32.mrb[28].mxu0 }
 0x132   : > { %v1102_v50 = vpop.f32.mrb[29].mxu0 }
 0x133   : > { %v809_v51 = vmax.f32 %v793_v45, 0.0  ;;  %v794_v52 = vadd.f32 %v1373_v59, %v771_v46  ;;  %v1103_v49 = vadd.f32 %v1102_v50, %v1101_v48  ;;  %v1104_v53 = vpop.f32.mrb[30].mxu0 }
 0x134   : > { %v1105_v57 = vpop.f32.mrb[31].mxu0 }
 0x135   : > { %v1039_v58 = vpack.c.bf16 %v809_v51, %v809_v51  ;;  %v810_v60 = vmax.f32 %v794_v52, 0.0  ;;  %v745_v56 = vadd.f32 %v1405_v47, %v1103_v49  ;;  %v1106_v61 = vadd.f32 %v1105_v57, %v1104_v53 }
 0x137   : > { %890 = vst.msk [vmem:[%s1383_s28 + $0x30] sm:$0xf] %vm877_vm0, %v1039_v58  ;;  %v1040_v62 = vpack.c.bf16 %v810_v60, %v810_v60  ;;  %v772_v63 = vmul.f32 %v1368_v55, %v745_v56  ;;  %v748_v0 = vadd.f32 %v1407_v54, %v1106_v61 }
 0x139   : > { %891 = vst.msk [vmem:[%s1383_s28 + $0x34] sm:$0xf] %vm877_vm0, %v1040_v62  ;;  %v795_v1 = vadd.f32 %v1373_v59, %v772_v63  ;;  %v773_v2 = vmul.f32 %v1368_v55, %v748_v0 }
 0x13b   : > { %v811_v3 = vmax.f32 %v795_v1, 0.0  ;;  %v796_v4 = vadd.f32 %v1373_v59, %v773_v2 }
 0x13d   : > { %v1041_v5 = vpack.c.bf16 %v811_v3, %v811_v3  ;;  %v812_v6 = vmax.f32 %v796_v4, 0.0 }
 0x13f   : > { %892 = vst.msk [vmem:[%s1383_s28 + $0x38] sm:$0xf] %vm877_vm0, %v1041_v5  ;;  %v1042_v47 = vpack.c.bf16 %v812_v6, %v812_v6 }
 0x141   : > { %893 = vst.msk [vmem:[%s1383_s28 + $0x3c] sm:$0xf] %vm877_vm0, %v1042_v47 }
 0x142 PF: > { %s14_s15 = sadd.s32 1, %s1226_s15  }
 0x143   : > { %p11_p4 = scmp.ge.s32.totalorder %s14_s15, 4  }
 0x145   :  { %13 = sbr.rel (!%p11_p4) target bundleno = 1 (0x1), region = 66 }

// kernel: planner_forward.11
= control target key start
LH: loop header
LB: loop body
LE: loop exit
PB: predicated region body
PF: predicated region fallthrough
CT: control target
= control target key end

     0   :  { %s1102_s15 = smov 0   ;;  %s1263_s0 = inlined_call_operand.vmem [shape: bf16[64,640], index: 0, kind: input, shape index: {}]   ;;  %s1264_s1 = inlined_call_operand.vmem [shape: bf16[640,128], index: 1, kind: input, shape index: {}]   ;;  %s1265_s2 = inlined_call_operand.vmem [shape: f32[1,128], index: 2, kind: input, shape index: {}]   ;;  %s1266_s3 = inlined_call_operand.vmem [shape: f32[1,128], index: 3, kind: input, shape index: {}]   ;;  %s1267_s4 = inlined_call_operand.vmem [shape: bf16[64,128], index: 4, kind: output, shape index: {}]  }
   0x1 LB: > { %s838_s16 = sadd.s32 4294967295, %s1075_s15   ;;  %p842_p0 = scmp.ge.s32.totalorder %s1075_s15, 1  ;;  %s1075_s15 = sphi %s1102_s15, %s14_s15  }
   0x2   : > { %p164_p1 = scmp.lt.s32.totalorder %s1075_s15, 3 }
   0x4   : > { %p165_p2 = pnand %p842_p0, %p164_p1 }
   0x5   : > { %v1015_v0 = vld [vmem:[%s1264_s1 + $0x40] sm:$0xff] (!%p165_p2)   ;;  %v1019_v4 = vld [vmem:[%s1264_s1 + $0x48] sm:$0xff] (!%p165_p2)   ;;  %v1023_v8 = vld [vmem:[%s1264_s1 + $0x50] sm:$0xff] (!%p165_p2)   ;;  %s843_s23 = sshll.u32 (!%p165_p2), %s838_s16, 2 }
   0x6   : > { %168 = sbr.rel (%p165_p2) target bundleno = 297 (0x129), region = 36  ;;  %v1016_v1 = vld [vmem:[%s1264_s1 + $0xc0] sm:$0xff] (!%p165_p2)   ;;  %920 = vmatprep.subr.bf16.mxu0 (!%p165_p2), %v1015_v0  ;;  %v1020_v5 = vld [vmem:[%s1264_s1 + $0xc8] sm:$0xff] (!%p165_p2)   ;;  %v1024_v9 = vld [vmem:[%s1264_s1 + $0xd0] sm:$0xff] (!%p165_p2)   ;;  %p192_p3 = scmp.lt.s32.totalorder (!%p165_p2), %s843_s23, 7 }
   0x7   : > { %v1017_v2 = vld [vmem:[%s1264_s1] sm:$0xff] (!%p165_p2)   ;;  %948 = vmatprep.subr.bf16.mxu1 (!%p165_p2), %v1016_v1  ;;  %v1021_v6 = vld [vmem:[%s1264_s1 + $0x8] sm:$0xff] (!%p165_p2)   ;;  %v1025_v10 = vld [vmem:[%s1264_s1 + $0x10] sm:$0xff] (!%p165_p2)  }
   0x8   : > { %v1018_v3 = vld [vmem:[%s1264_s1 + $0x80] sm:$0xff] (!%p165_p2)   ;;  %921 = vmatpush3.bf16.msra.mxu0 (!%p165_p2), %v1017_v2  ;;  %v1022_v7 = vld [vmem:[%s1264_s1 + $0x88] sm:$0xff] (!%p165_p2)   ;;  %v1026_v11 = vld [vmem:[%s1264_s1 + $0x90] sm:$0xff] (!%p165_p2)  }
   0x9   : > { %949 = vmatpush3.bf16.msra.mxu1 (!%p165_p2), %v1018_v3  ;;  %922 = vmatprep.subr.bf16.mxu0 (!%p165_p2), %v1019_v4  ;;  %v1027_v12 = vld [vmem:[%s1264_s1 + $0x58] sm:$0xff] (!%p165_p2)   ;;  %v1031_v16 = vld [vmem:[%s1264_s1 + $0x60] sm:$0xff] (!%p165_p2)   ;;  %v1035_v20 = vld [vmem:[%s1264_s1 + $0x68] sm:$0xff] (!%p165_p2)  }
   0xa   : > { %950 = vmatprep.subr.bf16.mxu1 (!%p165_p2), %v1020_v5  ;;  %v1028_v13 = vld [vmem:[%s1264_s1 + $0xd8] sm:$0xff] (!%p165_p2)   ;;  %v1032_v17 = vld [vmem:[%s1264_s1 + $0xe0] sm:$0xff] (!%p165_p2)   ;;  %v1036_v21 = vld [vmem:[%s1264_s1 + $0xe8] sm:$0xff] (!%p165_p2)  }
   0xb   : > { %v1029_v14 = vld [vmem:[%s1264_s1 + $0x18] sm:$0xff] (!%p165_p2)   ;;  %v1033_v18 = vld [vmem:[%s1264_s1 + $0x20] sm:$0xff] (!%p165_p2)   ;;  %v1037_v22 = vld [vmem:[%s1264_s1 + $0x28] sm:$0xff] (!%p165_p2)  }
   0xc   : > { %923 = vmatpush3.bf16.msra.mxu0 (!%p165_p2), %v1021_v6  ;;  %v1030_v15 = vld [vmem:[%s1264_s1 + $0x98] sm:$0xff] (!%p165_p2)   ;;  %v1034_v19 = vld [vmem:[%s1264_s1 + $0xa0] sm:$0xff] (!%p165_p2)   ;;  %v1038_v23 = vld [vmem:[%s1264_s1 + $0xa8] sm:$0xff] (!%p165_p2)  }
   0xd   : > { %951 = vmatpush3.bf16.msra.mxu1 %v1022_v7  ;;  %924 = vmatprep.subr.bf16.mxu0 %v1023_v8  ;;  %s1269_s23 = smov (!%p192_p3, %s843_s23), 7  ;;  %v1039_v24 = vld [vmem:[%s1264_s1 + $0x70] sm:$0xff]   ;;  %v1043_v28 = vld [vmem:[%s1264_s1 + $0x78] sm:$0xff]   ;;  %v1053_v36 = vld [vmem:[%s1264_s1 + $0x100] sm:$0xff]  }
   0xe   : > { %952 = vmatprep.subr.bf16.mxu1 %v1024_v9  ;;  %v1040_v25 = vld [vmem:[%s1264_s1 + $0xf0] sm:$0xff]   ;;  %s1006_s21 = smul.u32 20, %s1269_s23  ;;  %v1044_v29 = vld [vmem:[%s1264_s1 + $0xf8] sm:$0xff]   ;;  %v1054_v37 = vld [vmem:[%s1264_s1 + $0x108] sm:$0xff]   ;;  %s846_s7 = sshll.u32 %s1269_s23, 2 }
   0xf   : > { %v1041_v26 = vld [vmem:[%s1264_s1 + $0x30] sm:$0xff]   ;;  %v1045_v30 = vld [vmem:[%s1264_s1 + $0x38] sm:$0xff]   ;;  %v1057_v45 = vld [vmem:[%s1264_s1 + $0x120] sm:$0xff]   ;;  %s202_s10 = scalar_lea.vmem %s1267_s4, %s846_s7 }
  0x10   : > { %925 = vmatpush3.bf16.msra.mxu0 %v1025_v10  ;;  %v1042_v27 = vld [vmem:[%s1264_s1 + $0xb0] sm:$0xff]   ;;  %s1208_s6 = scalar_lea.vmem %s1263_s0, %s1006_s21  ;;  %v1046_v31 = vld [vmem:[%s1264_s1 + $0xb8] sm:$0xff]   ;;  %v1062_v46 = vld [vmem:[%s1264_s1 + $0x128] sm:$0xff]  }
  0x11   : > { %953 = vmatpush3.bf16.msra.mxu1 %v1026_v11  ;;  %926 = vmatprep.subr.bf16.mxu0 %v1027_v12  ;;  %v1047_v32 = vld [vmem:[%s1208_s6] ss:$20 sps:$4 sm:$0xff]   ;;  %v1049_v33 = vld [vmem:[%s1208_s6 + $0x4] ss:$20 sps:$4 sm:$0xff]   ;;  %v1050_v34 = vld [vmem:[%s1208_s6 + $0x8] ss:$20 sps:$4 sm:$0xff]  }
  0x12   : > { %954 = vmatprep.subr.bf16.mxu1 %v1028_v13  ;;  %v1052_v35 = vld [vmem:[%s1208_s6 + $0xc] ss:$20 sps:$4 sm:$0xff]   ;;  %621 = vmatprep.mubr.bf16.mxu0 %v1049_v33  ;;  %v1055_v38 = vld [vmem:[%s1264_s1 + $0x110] sm:$0xff]   ;;  %v1056_v41 = vld [vmem:[%s1264_s1 + $0x118] sm:$0xff]  }
  0x13   : > { %670 = vmatprep.mubr.bf16.mxu1 %v1052_v35  ;;  %v1058_v39 = vld [vmem:[%s1208_s6 + $0x2c] ss:$20 sps:$4 sm:$0xff]   ;;  %v1060_v40 = vld [vmem:[%s1208_s6 + $0x34] ss:$20 sps:$4 sm:$0xff]   ;;  %v1064_v43 = vld [vmem:[%s1208_s6 + $0x30] ss:$20 sps:$4 sm:$0xff]  }
  0x14   : > { %927 = vmatpush3.bf16.msra.mxu0 %v1029_v14  ;;  %v1063_v42 = vld [vmem:[%s1208_s6 + $0x28] ss:$20 sps:$4 sm:$0xff]   ;;  %v1067_v44 = vld [vmem:[%s1208_s6 + $0x10] ss:$20 sps:$4 sm:$0xff]   ;;  %v1068_v49 = vld [vmem:[%s1208_s6 + $0x38] ss:$20 sps:$4 sm:$0xff]  }
  0x15   : > { %955 = vmatpush3.bf16.msra.mxu1 %v1030_v15  ;;  %928 = vmatprep.subr.bf16.mxu0 %v1031_v16  ;;  %v1065_v47 = vld [vmem:[%s1264_s1 + $0x130] sm:$0xff]   ;;  %v1066_v48 = vld [vmem:[%s1264_s1 + $0x138] sm:$0xff]   ;;  %v897_v15 = vld [vmem:[%s1265_s2] ss:$0 sm:$0xff] }
  0x16   : > { %956 = vmatprep.subr.bf16.mxu1 %v1032_v17 }
  0x18   : > { %929 = vmatpush3.bf16.msra.mxu0 %v1033_v18  ;;  %v898_v18 = vld [vmem:[%s1266_s3] ss:$0 sm:$0xff] }
  0x19   : > { %957 = vmatpush3.bf16.msra.mxu1 %v1034_v19  ;;  %930 = vmatprep.subr.bf16.mxu0 %v1035_v20 }
  0x1a   : > { %958 = vmatprep.subr.bf16.mxu1 %v1036_v21 }
  0x1c   : > { %931 = vmatpush3.bf16.msra.mxu0 %v1037_v22 }
  0x1d   : > { %959 = vmatpush3.bf16.msra.mxu1 %v1038_v23  ;;  %932 = vmatprep.subr.bf16.mxu0 %v1039_v24 }
  0x1e   : > { %960 = vmatprep.subr.bf16.mxu1 %v1040_v25 }
  0x20   : > { %933 = vmatpush3.bf16.msra.mxu0 %v1041_v26 }
  0x21   : > { %961 = vmatpush3.bf16.msra.mxu1 %v1042_v27  ;;  %934 = vmatprep.subr.bf16.mxu0 %v1043_v28 }
  0x22   : > { %962 = vmatprep.subr.bf16.mxu1 %v1044_v29 }
  0x24   : > { %935 = vmatpush3.bf16.msra.mxu0 %v1045_v30 }
  0x25   : > { %963 = vmatpush3.bf16.msra.mxu1 %v1046_v31  ;;  %986 = vmatprep.subr.bf16.mxu0 %v1053_v36 }
  0x27   : > { %622 = vmatmul.mubr.bf16.vlgmr.msra.gmra.mrb[0].mxu0 %v1047_v32 }
  0x28   : > { %671 = vmatmul.mubr.bf16.vlgmr.msra.gmra.mrb[0].mxu1 %v1050_v34  ;;  %987 = vmatpush3.bf16.msra.mxu0 %v1053_v36 }
  0x29   : > { %988 = vmatprep.subr.bf16.mxu0 %v1054_v37  ;;  %629 = vmatprep.mubr.bf16.mxu0 %v1058_v39 }
  0x2a   : > { %678 = vmatprep.mubr.bf16.mxu1 %v1060_v40 }
  0x2c   : > { %989 = vmatpush3.bf16.msra.mxu0 %v1054_v37 }
  0x2d   : > { %990 = vmatprep.subr.bf16.mxu0 %v1055_v38 }
  0x2f   : > { %630 = vmatmul.mubr.bf16.gmra.mrb[4].mxu0 %v1063_v42 }
  0x30   : > { %679 = vmatmul.mubr.bf16.gmra.mrb[4].mxu1 %v1064_v43  ;;  %991 = vmatpush3.bf16.msra.mxu0 %v1055_v38 }
  0x31   : > { %992 = vmatprep.subr.bf16.mxu0 %v1056_v41  ;;  %1002 = vmatprep.mubr.bf16.mxu0 %v1067_v44 }
  0x34   : > { %993 = vmatpush3.bf16.msra.mxu0 %v1056_v41 }
  0x35   : > { %994 = vmatprep.subr.bf16.mxu0 %v1057_v45 }
  0x38   : > { %995 = vmatpush3.bf16.msra.mxu0 %v1057_v45 }
  0x39   : > { %996 = vmatprep.subr.bf16.mxu0 %v1062_v46 }
  0x3c   : > { %997 = vmatpush3.bf16.msra.mxu0 %v1062_v46 }
  0x3d   : > { %998 = vmatprep.subr.bf16.mxu0 %v1065_v47 }
  0x40   : > { %999 = vmatpush3.bf16.msra.mxu0 %v1065_v47 }
  0x41   : > { %1000 = vmatprep.subr.bf16.mxu0 %v1066_v48 }
  0x44   : > { %1001 = vmatpush3.bf16.msra.mxu0 %v1066_v48 }
  0x47   : > { %1003 = vmatmul.mubr.bf16.vlgmr.msra.gmra.mrb[8].mxu0 %v1068_v49 }
  0xfa   : > { %v936_v50 = vpop.f32.mrb[0].mxu0 }
  0xfb   : > { %v964_v51 = vpop.f32.mrb[0].mxu1  ;;  %v937_v52 = vpop.f32.mrb[1].mxu0 }
  0xfc   : > { %v938_v53 = vadd.f32 %v937_v52, %v936_v50  ;;  %v965_v54 = vpop.f32.mrb[1].mxu1  ;;  %v939_v55 = vpop.f32.mrb[2].mxu0 }
  0xfd   : > { %v966_v56 = vadd.f32 %v965_v54, %v964_v51  ;;  %v967_v57 = vpop.f32.mrb[2].mxu1  ;;  %v940_v58 = vpop.f32.mrb[3].mxu0 }
  0xfe   : > { %v941_v59 = vadd.f32 %v940_v58, %v939_v55  ;;  %v968_v60 = vpop.f32.mrb[3].mxu1 }
  0xff   : > { %v969_v61 = vadd.f32 %v968_v60, %v967_v57  ;;  %v673_v62 = vadd.f32 %v966_v56, %v938_v53 }
 0x101   : > { %v676_v63 = vadd.f32 %v969_v61, %v941_v59 }
 0x102   : > { %v942_v0 = vpop.f32.mrb[4].mxu0 }
 0x103   : > { %v970_v1 = vpop.f32.mrb[4].mxu1  ;;  %v943_v2 = vpop.f32.mrb[5].mxu0 }
 0x104   : > { %v944_v3 = vadd.f32 %v943_v2, %v942_v0  ;;  %v971_v4 = vpop.f32.mrb[5].mxu1  ;;  %v945_v5 = vpop.f32.mrb[6].mxu0 }
 0x105   : > { %v972_v6 = vadd.f32 %v971_v4, %v970_v1  ;;  %v973_v7 = vpop.f32.mrb[6].mxu1  ;;  %v946_v8 = vpop.f32.mrb[7].mxu0 }
 0x106   : > { %v947_v9 = vadd.f32 %v946_v8, %v945_v5  ;;  %v974_v10 = vpop.f32.mrb[7].mxu1 }
 0x107   : > { %v975_v11 = vadd.f32 %v974_v10, %v973_v7  ;;  %v681_v12 = vadd.f32 %v972_v6, %v944_v3 }
 0x109   : > { %v684_v13 = vadd.f32 %v975_v11, %v947_v9 }
 0x11a   : > { %v1004_v14 = vpop.f32.mrb[8].mxu0 }
 0x11b   : > { %v730_v16 = vadd.f32 %v1004_v14, %v681_v12  ;;  %v721_v17 = vpop.f32.mrb[9].mxu0 }
 0x11c   : > { %v722_v19 = vadd.f32 %v721_v17, %v673_v62  ;;  %v1005_v20 = vpop.f32.mrb[10].mxu0 }
 0x11d   : > { %v745_v21 = vmul.f32 %v897_v15, %v730_v16  ;;  %v733_v22 = vadd.f32 %v1005_v20, %v684_v13  ;;  %v724_v23 = vpop.f32.mrb[11].mxu0 }
 0x11e   : > { %v743_v24 = vmul.f32 %v897_v15, %v722_v19  ;;  %v725_v25 = vadd.f32 %v724_v23, %v676_v63 }
 0x11f   : > { %v756_v26 = vadd.f32 %v898_v18, %v745_v21  ;;  %v746_v27 = vmul.f32 %v897_v15, %v733_v22 }
 0x120   : > { %v754_v28 = vadd.f32 %v898_v18, %v743_v24  ;;  %v744_v29 = vmul.f32 %v897_v15, %v725_v25 }
 0x121   : > { %v757_v30 = vadd.f32 %v898_v18, %v746_v27  ;;  %v760_v32 = vmax.f32 %v756_v26, 0.0 }
 0x122   : > { %v755_v31 = vadd.f32 %v898_v18, %v744_v29  ;;  %v758_v34 = vmax.f32 %v754_v28, 0.0 }
 0x123   : > { %v761_v33 = vmax.f32 %v757_v30, 0.0 }
 0x124   : > { %v759_v35 = vmax.f32 %v755_v31, 0.0 }
 0x125   : > { %v917_v36 = vpack.c.bf16 %v761_v33, %v760_v32 }
 0x126   : > { %v912_v37 = vpack.c.bf16 %v759_v35, %v758_v34 }
 0x127   : > { %919 = vst [vmem:[%s202_s10 + $0x8] sm:$0xff] %v917_v36  }
 0x128   : > { %913 = vst [vmem:[%s202_s10] sm:$0xff] %v912_v37  }
 0x129 PF: > { %s14_s15 = sadd.s32 1, %s1075_s15  }
 0x12a   : > { %p11_p4 = scmp.ge.s32.totalorder %s14_s15, 4  }
 0x12c   :  { %13 = sbr.rel (!%p11_p4) target bundleno = 1 (0x1), region = 66 }

// kernel: planner_forward.12
= control target key start
LH: loop header
LB: loop body
LE: loop exit
PB: predicated region body
PF: predicated region fallthrough
CT: control target
= control target key end

     0   :  { %s1868_s15 = smov 0   ;;  %s2340_s0 = inlined_call_operand.vmem [shape: bf16[64,512], index: 0, kind: input, shape index: {}]   ;;  %s2341_s1 = inlined_call_operand.vmem [shape: bf16[512,512], index: 1, kind: input, shape index: {}]   ;;  %s2342_s2 = inlined_call_operand.vmem [shape: f32[1,512], index: 2, kind: input, shape index: {}]   ;;  %s2343_s3 = inlined_call_operand.vmem [shape: f32[1,512], index: 3, kind: input, shape index: {}]   ;;  %s2344_s4 = inlined_call_operand.vmem [shape: bf16[64,512], index: 4, kind: output, shape index: {}]  }
   0x1 LB: > { %s1440_s16 = sadd.s32 4294967295, %s1841_s15   ;;  %p1444_p0 = scmp.ge.s32.totalorder %s1841_s15, 1  ;;  %s1841_s15 = sphi %s1868_s15, %s14_s15  }
   0x2   : > { %p164_p1 = scmp.lt.s32.totalorder %s1841_s15, 3 }
   0x4   : > { %p165_p2 = pnand %p1444_p0, %p164_p1 }
   0x5   : > { %v1631_v0 = vld [vmem:[%s2341_s1 + $0x4] ss:$16 sps:$4 sm:$0xff] (!%p165_p2)   ;;  %v1633_v1 = vld [vmem:[%s2341_s1 + $0xc] ss:$16 sps:$4 sm:$0xff] (!%p165_p2)   ;;  %v1635_v2 = vld [vmem:[%s2341_s1] ss:$16 sps:$4 sm:$0xff] (!%p165_p2)  }
   0x6   : > { %168 = sbr.rel (%p165_p2) target bundleno = 367 (0x16f), region = 36  ;;  %1022 = vmatprep.subr.bf16.mxu0 (!%p165_p2), %v1631_v0  ;;  %v1636_v3 = vld [vmem:[%s2341_s1 + $0x8] ss:$16 sps:$4 sm:$0xff] (!%p165_p2)   ;;  %1128 = vmatprep.subr.bf16.mxu1 (!%p165_p2), %v1633_v1  ;;  %v1637_v4 = vld [vmem:[%s2341_s1 + $0x24] ss:$16 sps:$4 sm:$0xff] (!%p165_p2)   ;;  %s1445_s29 = sshll.u32 (!%p165_p2), %s1440_s16, 2 }
   0x7   : > { %1023 = vmatpush1.bf16.msra.mxu0 (!%p165_p2), %v1635_v2  ;;  %1129 = vmatpush1.bf16.msra.mxu1 (!%p165_p2), %v1636_v3  ;;  %v1639_v5 = vld [vmem:[%s2341_s1 + $0x2c] ss:$16 sps:$4 sm:$0xff] (!%p165_p2)   ;;  %v1641_v6 = vld [vmem:[%s2341_s1 + $0x20] ss:$16 sps:$4 sm:$0xff] (!%p165_p2)   ;;  %v1642_v7 = vld [vmem:[%s2341_s1 + $0x28] ss:$16 sps:$4 sm:$0xff] (!%p165_p2)  }
   0x8   : > { %1024 = vmatprep.subr.bf16.mxu0 (!%p165_p2), %v1637_v4  ;;  %1130 = vmatprep.subr.bf16.mxu1 (!%p165_p2), %v1639_v5  ;;  %v1643_v8 = vld [vmem:[%s2341_s1 + $0x44] ss:$16 sps:$4 sm:$0xff] (!%p165_p2)   ;;  %v1645_v9 = vld [vmem:[%s2341_s1 + $0x4c] ss:$16 sps:$4 sm:$0xff] (!%p165_p2)   ;;  %v1647_v10 = vld [vmem:[%s2341_s1 + $0x40] ss:$16 sps:$4 sm:$0xff] (!%p165_p2)  }
   0x9   : > { %v1648_v11 = vld [vmem:[%s2341_s1 + $0x48] ss:$16 sps:$4 sm:$0xff] (!%p165_p2)   ;;  %v1649_v12 = vld [vmem:[%s2341_s1 + $0x64] ss:$16 sps:$4 sm:$0xff] (!%p165_p2)   ;;  %v1651_v13 = vld [vmem:[%s2341_s1 + $0x6c] ss:$16 sps:$4 sm:$0xff] (!%p165_p2)  }
   0xa   : > { %v1653_v14 = vld [vmem:[%s2341_s1 + $0x60] ss:$16 sps:$4 sm:$0xff] (!%p165_p2)   ;;  %v1654_v15 = vld [vmem:[%s2341_s1 + $0x68] ss:$16 sps:$4 sm:$0xff] (!%p165_p2)   ;;  %v1655_v16 = vld [vmem:[%s2341_s1 + $0x84] ss:$16 sps:$4 sm:$0xff] (!%p165_p2)  }
   0xb   : > { %1025 = vmatpush1.bf16.msra.mxu0 (!%p165_p2), %v1641_v6  ;;  %1131 = vmatpush1.bf16.msra.mxu1 (!%p165_p2), %v1642_v7  ;;  %v1657_v17 = vld [vmem:[%s2341_s1 + $0x8c] ss:$16 sps:$4 sm:$0xff] (!%p165_p2)   ;;  %v1659_v18 = vld [vmem:[%s2341_s1 + $0x80] ss:$16 sps:$4 sm:$0xff] (!%p165_p2)   ;;  %v1660_v19 = vld [vmem:[%s2341_s1 + $0x88] ss:$16 sps:$4 sm:$0xff] (!%p165_p2)  }
   0xc   : > { %1026 = vmatprep.subr.bf16.mxu0 (!%p165_p2), %v1643_v8  ;;  %1132 = vmatprep.subr.bf16.mxu1 (!%p165_p2), %v1645_v9  ;;  %v1661_v20 = vld [vmem:[%s2341_s1 + $0xa4] ss:$16 sps:$4 sm:$0xff] (!%p165_p2)   ;;  %v1663_v21 = vld [vmem:[%s2341_s1 + $0xac] ss:$16 sps:$4 sm:$0xff] (!%p165_p2)   ;;  %v1665_v22 = vld [vmem:[%s2341_s1 + $0xa0] ss:$16 sps:$4 sm:$0xff] (!%p165_p2)  }
   0xd   : > { %v1666_v23 = vld [vmem:[%s2341_s1 + $0xa8] ss:$16 sps:$4 sm:$0xff]   ;;  %v1667_v24 = vld [vmem:[%s2341_s1 + $0xc4] ss:$16 sps:$4 sm:$0xff]   ;;  %v1669_v25 = vld [vmem:[%s2341_s1 + $0xcc] ss:$16 sps:$4 sm:$0xff]  }
   0xe   : > { %v1671_v26 = vld [vmem:[%s2341_s1 + $0xc0] ss:$16 sps:$4 sm:$0xff]   ;;  %v1672_v27 = vld [vmem:[%s2341_s1 + $0xc8] ss:$16 sps:$4 sm:$0xff]   ;;  %v1673_v28 = vld [vmem:[%s2341_s1 + $0xe4] ss:$16 sps:$4 sm:$0xff]  }
   0xf   : > { %1027 = vmatpush1.bf16.msra.mxu0 %v1647_v10  ;;  %1133 = vmatpush1.bf16.msra.mxu1 %v1648_v11  ;;  %v1675_v29 = vld [vmem:[%s2341_s1 + $0xec] ss:$16 sps:$4 sm:$0xff]   ;;  %v1677_v30 = vld [vmem:[%s2341_s1 + $0xe0] ss:$16 sps:$4 sm:$0xff]   ;;  %v1678_v31 = vld [vmem:[%s2341_s1 + $0xe8] ss:$16 sps:$4 sm:$0xff]  }
  0x10   : > { %1028 = vmatprep.subr.bf16.mxu0 %v1649_v12  ;;  %1134 = vmatprep.subr.bf16.mxu1 %v1651_v13  ;;  %v1679_v32 = vld [vmem:[%s2341_s1 + $0x104] ss:$16 sps:$4 sm:$0xff]   ;;  %v1681_v33 = vld [vmem:[%s2341_s1 + $0x10c] ss:$16 sps:$4 sm:$0xff]   ;;  %p193_p3 = scmp.lt.s32.totalorder %s1445_s29, 7 }
  0x11   : > { %v1683_v34 = vld [vmem:[%s2341_s1 + $0x100] ss:$16 sps:$4 sm:$0xff]   ;;  %v1684_v35 = vld [vmem:[%s2341_s1 + $0x108] ss:$16 sps:$4 sm:$0xff]   ;;  %v1685_v36 = vld [vmem:[%s2341_s1 + $0x124] ss:$16 sps:$4 sm:$0xff]  }
  0x12   : > { %v1687_v37 = vld [vmem:[%s2341_s1 + $0x12c] ss:$16 sps:$4 sm:$0xff]   ;;  %s2346_s29 = smov (!%p193_p3, %s1445_s29), 7  ;;  %v1689_v38 = vld [vmem:[%s2341_s1 + $0x120] ss:$16 sps:$4 sm:$0xff]  }
  0x13   : > { %1029 = vmatpush1.bf16.msra.mxu0 %v1653_v14  ;;  %1135 = vmatpush1.bf16.msra.mxu1 %v1654_v15  ;;  %v1690_v39 = vld [vmem:[%s2341_s1 + $0x128] ss:$16 sps:$4 sm:$0xff]   ;;  %v1691_v40 = vld [vmem:[%s2341_s1 + $0x144] ss:$16 sps:$4 sm:$0xff]   ;;  %v1693_v41 = vld [vmem:[%s2341_s1 + $0x14c] ss:$16 sps:$4 sm:$0xff]  }
  0x14   : > { %1030 = vmatprep.subr.bf16.mxu0 %v1655_v16  ;;  %1136 = vmatprep.subr.bf16.mxu1 %v1657_v17  ;;  %s1597_s30 = sshll.u32 %s2346_s29, 4  ;;  %v1695_v42 = vld [vmem:[%s2341_s1 + $0x140] ss:$16 sps:$4 sm:$0xff]   ;;  %v1696_v43 = vld [vmem:[%s2341_s1 + $0x148] ss:$16 sps:$4 sm:$0xff]  }
  0x15   : > { %v1697_v44 = vld [vmem:[%s2341_s1 + $0x164] ss:$16 sps:$4 sm:$0xff]   ;;  %s2021_s12 = scalar_lea.vmem %s2340_s0, %s1597_s30  ;;  %v1699_v45 = vld [vmem:[%s2341_s1 + $0x16c] ss:$16 sps:$4 sm:$0xff]   ;;  %v1701_v46 = vld [vmem:[%s2341_s1 + $0x160] ss:$16 sps:$4 sm:$0xff]   ;;  %s2315_s8 = scalar_lea.vmem %s2344_s4, %s1597_s30 }
  0x16   : > { %v1702_v47 = vld [vmem:[%s2341_s1 + $0x168] ss:$16 sps:$4 sm:$0xff]   ;;  %v1729_v48 = vld [vmem:[%s2021_s12 + $0x4] ss:$16 sps:$4 sm:$0xff]   ;;  %v1705_v50 = vld [vmem:[%s2341_s1 + $0x18c] ss:$16 sps:$4 sm:$0xff]  }
  0x17   : > { %1031 = vmatpush1.bf16.msra.mxu0 %v1659_v18  ;;  %1137 = vmatpush1.bf16.msra.mxu1 %v1660_v19  ;;  %v1703_v49 = vld [vmem:[%s2341_s1 + $0x184] ss:$16 sps:$4 sm:$0xff]   ;;  %v1707_v51 = vld [vmem:[%s2341_s1 + $0x180] ss:$16 sps:$4 sm:$0xff]   ;;  %v1708_v52 = vld [vmem:[%s2341_s1 + $0x188] ss:$16 sps:$4 sm:$0xff]  }
  0x18   : > { %1032 = vmatprep.subr.bf16.mxu0 %v1661_v20  ;;  %1138 = vmatprep.subr.bf16.mxu1 %v1663_v21  ;;  %v1709_v53 = vld [vmem:[%s2341_s1 + $0x1a4] ss:$16 sps:$4 sm:$0xff]   ;;  %v1711_v54 = vld [vmem:[%s2341_s1 + $0x1ac] ss:$16 sps:$4 sm:$0xff]   ;;  %v1713_v55 = vld [vmem:[%s2341_s1 + $0x1a0] ss:$16 sps:$4 sm:$0xff]  }
  0x19   : > { %1054 = vmatprep.mubr.bf16.mxu0 %v1729_v48  ;;  %1160 = vmatprep.mubr.bf16.mxu1 %v1729_v48  ;;  %v1714_v56 = vld [vmem:[%s2341_s1 + $0x1a8] ss:$16 sps:$4 sm:$0xff]   ;;  %v1715_v57 = vld [vmem:[%s2341_s1 + $0x1c4] ss:$16 sps:$4 sm:$0xff]   ;;  %v1717_v58 = vld [vmem:[%s2341_s1 + $0x1cc] ss:$16 sps:$4 sm:$0xff]  }
  0x1a   : > { %v1719_v59 = vld [vmem:[%s2341_s1 + $0x1c0] ss:$16 sps:$4 sm:$0xff]   ;;  %v1720_v60 = vld [vmem:[%s2341_s1 + $0x1c8] ss:$16 sps:$4 sm:$0xff]   ;;  %v1721_v61 = vld [vmem:[%s2341_s1 + $0x1e4] ss:$16 sps:$4 sm:$0xff]  }
  0x1b   : > { %1033 = vmatpush1.bf16.msra.mxu0 %v1665_v22  ;;  %1139 = vmatpush1.bf16.msra.mxu1 %v1666_v23  ;;  %v1723_v62 = vld [vmem:[%s2341_s1 + $0x1ec] ss:$16 sps:$4 sm:$0xff]   ;;  %v1725_v63 = vld [vmem:[%s2341_s1 + $0x1e0] ss:$16 sps:$4 sm:$0xff]   ;;  %v1726_v0 = vld [vmem:[%s2341_s1 + $0x1e8] ss:$16 sps:$4 sm:$0xff]  }
  0x1c   : > { %1034 = vmatprep.subr.bf16.mxu0 %v1667_v24  ;;  %1140 = vmatprep.subr.bf16.mxu1 %v1669_v25  ;;  %v1732_v1 = vld [vmem:[%s2341_s1 + $0x204] ss:$16 sps:$4 sm:$0xff]   ;;  %v1735_v2 = vld [vmem:[%s2341_s1 + $0x20c] ss:$16 sps:$4 sm:$0xff]   ;;  %v1727_v3 = vld [vmem:[%s2021_s12] ss:$16 sps:$4 sm:$0xff]  }
  0x1d   : > { %v1730_v4 = vld [vmem:[%s2341_s1 + $0x200] ss:$16 sps:$4 sm:$0xff]   ;;  %v1733_v5 = vld [vmem:[%s2341_s1 + $0x208] ss:$16 sps:$4 sm:$0xff]   ;;  %v1738_v6 = vld [vmem:[%s2341_s1 + $0x224] ss:$16 sps:$4 sm:$0xff]  }
  0x1e   : > { %v1741_v7 = vld [vmem:[%s2341_s1 + $0x22c] ss:$16 sps:$4 sm:$0xff]   ;;  %v1736_v8 = vld [vmem:[%s2341_s1 + $0x220] ss:$16 sps:$4 sm:$0xff]   ;;  %v1739_v9 = vld [vmem:[%s2341_s1 + $0x228] ss:$16 sps:$4 sm:$0xff]  }
  0x1f   : > { %1035 = vmatpush1.bf16.msra.mxu0 %v1671_v26  ;;  %1141 = vmatpush1.bf16.msra.mxu1 %v1672_v27  ;;  %v1744_v10 = vld [vmem:[%s2341_s1 + $0x244] ss:$16 sps:$4 sm:$0xff]   ;;  %v1747_v11 = vld [vmem:[%s2341_s1 + $0x24c] ss:$16 sps:$4 sm:$0xff]   ;;  %v1742_v12 = vld [vmem:[%s2341_s1 + $0x240] ss:$16 sps:$4 sm:$0xff]  }
  0x20   : > { %1036 = vmatprep.subr.bf16.mxu0 %v1673_v28  ;;  %1142 = vmatprep.subr.bf16.mxu1 %v1675_v29  ;;  %v1745_v13 = vld [vmem:[%s2341_s1 + $0x248] ss:$16 sps:$4 sm:$0xff]   ;;  %v1750_v14 = vld [vmem:[%s2341_s1 + $0x264] ss:$16 sps:$4 sm:$0xff]   ;;  %v1753_v15 = vld [vmem:[%s2341_s1 + $0x26c] ss:$16 sps:$4 sm:$0xff]  }
  0x21   : > { %v1748_v16 = vld [vmem:[%s2341_s1 + $0x260] ss:$16 sps:$4 sm:$0xff]   ;;  %v1751_v17 = vld [vmem:[%s2341_s1 + $0x268] ss:$16 sps:$4 sm:$0xff]   ;;  %v1756_v18 = vld [vmem:[%s2341_s1 + $0x284] ss:$16 sps:$4 sm:$0xff]  }
  0x22   : > { %v1759_v19 = vld [vmem:[%s2341_s1 + $0x28c] ss:$16 sps:$4 sm:$0xff]   ;;  %v1754_v20 = vld [vmem:[%s2341_s1 + $0x280] ss:$16 sps:$4 sm:$0xff]   ;;  %v1757_v21 = vld [vmem:[%s2341_s1 + $0x288] ss:$16 sps:$4 sm:$0xff]  }
  0x23   : > { %1037 = vmatpush1.bf16.msra.mxu0 %v1677_v30  ;;  %1143 = vmatpush1.bf16.msra.mxu1 %v1678_v31  ;;  %v1762_v22 = vld [vmem:[%s2341_s1 + $0x2a4] ss:$16 sps:$4 sm:$0xff]   ;;  %v1765_v23 = vld [vmem:[%s2341_s1 + $0x2ac] ss:$16 sps:$4 sm:$0xff]   ;;  %v1760_v24 = vld [vmem:[%s2341_s1 + $0x2a0] ss:$16 sps:$4 sm:$0xff]  }
  0x24   : > { %1038 = vmatprep.subr.bf16.mxu0 %v1679_v32  ;;  %1144 = vmatprep.subr.bf16.mxu1 %v1681_v33  ;;  %v1814_v25 = vld [vmem:[%s2021_s12 + $0x24] ss:$16 sps:$4 sm:$0xff]   ;;  %v1763_v26 = vld [vmem:[%s2341_s1 + $0x2a8] ss:$16 sps:$4 sm:$0xff]   ;;  %v1816_v27 = vld [vmem:[%s2021_s12 + $0x20] ss:$16 sps:$4 sm:$0xff]  }
  0x25   : > { %v1768_v28 = vld [vmem:[%s2341_s1 + $0x2c4] ss:$16 sps:$4 sm:$0xff]   ;;  %v1771_v29 = vld [vmem:[%s2341_s1 + $0x2cc] ss:$16 sps:$4 sm:$0xff]   ;;  %v1766_v30 = vld [vmem:[%s2341_s1 + $0x2c0] ss:$16 sps:$4 sm:$0xff]  }
  0x26   : > { %v1769_v31 = vld [vmem:[%s2341_s1 + $0x2c8] ss:$16 sps:$4 sm:$0xff]   ;;  %v1774_v32 = vld [vmem:[%s2341_s1 + $0x2e4] ss:$16 sps:$4 sm:$0xff]   ;;  %v1777_v33 = vld [vmem:[%s2341_s1 + $0x2ec] ss:$16 sps:$4 sm:$0xff]  }
  0x27   : > { %1039 = vmatpush1.bf16.msra.mxu0 %v1683_v34  ;;  %1145 = vmatpush1.bf16.msra.mxu1 %v1684_v35  ;;  %v1831_v34 = vld [vmem:[%s2021_s12 + $0xc] ss:$16 sps:$4 sm:$0xff]   ;;  %v1772_v35 = vld [vmem:[%s2341_s1 + $0x2e0] ss:$16 sps:$4 sm:$0xff]   ;;  %v1793_v48 = vld [vmem:[%s2341_s1 + $0x348] ss:$16 sps:$4 sm:$0xff]  }
  0x28   : > { %1040 = vmatprep.subr.bf16.mxu0 %v1685_v36  ;;  %1146 = vmatprep.subr.bf16.mxu1 %v1687_v37  ;;  %v1775_v36 = vld [vmem:[%s2341_s1 + $0x2e8] ss:$16 sps:$4 sm:$0xff]   ;;  %v1780_v37 = vld [vmem:[%s2341_s1 + $0x304] ss:$16 sps:$4 sm:$0xff]  }
  0x2b   : > { %1041 = vmatpush1.bf16.msra.mxu0 %v1689_v38  ;;  %1147 = vmatpush1.bf16.msra.mxu1 %v1690_v39  ;;  %v1783_v38 = vld [vmem:[%s2341_s1 + $0x30c] ss:$16 sps:$4 sm:$0xff]   ;;  %v1778_v39 = vld [vmem:[%s2341_s1 + $0x300] ss:$16 sps:$4 sm:$0xff]  }
  0x2c   : > { %1042 = vmatprep.subr.bf16.mxu0 %v1691_v40  ;;  %1148 = vmatprep.subr.bf16.mxu1 %v1693_v41  ;;  %v1781_v40 = vld [vmem:[%s2341_s1 + $0x308] ss:$16 sps:$4 sm:$0xff]   ;;  %v1786_v41 = vld [vmem:[%s2341_s1 + $0x324] ss:$16 sps:$4 sm:$0xff]  }
  0x2f   : > { %1043 = vmatpush1.bf16.msra.mxu0 %v1695_v42  ;;  %1149 = vmatpush1.bf16.msra.mxu1 %v1696_v43  ;;  %v1789_v42 = vld [vmem:[%s2341_s1 + $0x32c] ss:$16 sps:$4 sm:$0xff]   ;;  %v1784_v43 = vld [vmem:[%s2341_s1 + $0x320] ss:$16 sps:$4 sm:$0xff]  }
  0x30   : > { %1044 = vmatprep.subr.bf16.mxu0 %v1697_v44  ;;  %1150 = vmatprep.subr.bf16.mxu1 %v1699_v45  ;;  %v1787_v44 = vld [vmem:[%s2341_s1 + $0x328] ss:$16 sps:$4 sm:$0xff]   ;;  %v1792_v45 = vld [vmem:[%s2341_s1 + $0x344] ss:$16 sps:$4 sm:$0xff]  }
  0x33   : > { %1045 = vmatpush1.bf16.msra.mxu0 %v1701_v46  ;;  %1151 = vmatpush1.bf16.msra.mxu1 %v1702_v47  ;;  %v1795_v46 = vld [vmem:[%s2341_s1 + $0x34c] ss:$16 sps:$4 sm:$0xff]   ;;  %v1790_v47 = vld [vmem:[%s2341_s1 + $0x340] ss:$16 sps:$4 sm:$0xff]  }
  0x34   : > { %1046 = vmatprep.subr.bf16.mxu0 %v1703_v49  ;;  %1152 = vmatprep.subr.bf16.mxu1 %v1705_v50  ;;  %v1798_v49 = vld [vmem:[%s2341_s1 + $0x364] ss:$16 sps:$4 sm:$0xff]   ;;  %v1801_v50 = vld [vmem:[%s2341_s1 + $0x36c] ss:$16 sps:$4 sm:$0xff]  }
  0x37   : > { %1047 = vmatpush1.bf16.msra.mxu0 %v1707_v51  ;;  %1153 = vmatpush1.bf16.msra.mxu1 %v1708_v52  ;;  %v1796_v51 = vld [vmem:[%s2341_s1 + $0x360] ss:$16 sps:$4 sm:$0xff]   ;;  %v1799_v52 = vld [vmem:[%s2341_s1 + $0x368] ss:$16 sps:$4 sm:$0xff]  }
  0x38   : > { %1048 = vmatprep.subr.bf16.mxu0 %v1709_v53  ;;  %1154 = vmatprep.subr.bf16.mxu1 %v1711_v54  ;;  %v1804_v53 = vld [vmem:[%s2341_s1 + $0x384] ss:$16 sps:$4 sm:$0xff]   ;;  %v1807_v54 = vld [vmem:[%s2341_s1 + $0x38c] ss:$16 sps:$4 sm:$0xff]  }
  0x3b   : > { %1049 = vmatpush1.bf16.msra.mxu0 %v1713_v55  ;;  %1155 = vmatpush1.bf16.msra.mxu1 %v1714_v56  ;;  %v1802_v55 = vld [vmem:[%s2341_s1 + $0x380] ss:$16 sps:$4 sm:$0xff]   ;;  %v1805_v56 = vld [vmem:[%s2341_s1 + $0x388] ss:$16 sps:$4 sm:$0xff]  }
  0x3c   : > { %1050 = vmatprep.subr.bf16.mxu0 %v1715_v57  ;;  %1156 = vmatprep.subr.bf16.mxu1 %v1717_v58  ;;  %v1810_v57 = vld [vmem:[%s2341_s1 + $0x3a4] ss:$16 sps:$4 sm:$0xff]   ;;  %v1813_v58 = vld [vmem:[%s2341_s1 + $0x3ac] ss:$16 sps:$4 sm:$0xff]  }
  0x3f   : > { %1051 = vmatpush1.bf16.msra.mxu0 %v1719_v59  ;;  %1157 = vmatpush1.bf16.msra.mxu1 %v1720_v60  ;;  %v1808_v59 = vld [vmem:[%s2341_s1 + $0x3a0] ss:$16 sps:$4 sm:$0xff]   ;;  %v1811_v60 = vld [vmem:[%s2341_s1 + $0x3a8] ss:$16 sps:$4 sm:$0xff]  }
  0x40   : > { %1052 = vmatprep.subr.bf16.mxu0 %v1721_v61  ;;  %1158 = vmatprep.subr.bf16.mxu1 %v1723_v62  ;;  %v1819_v61 = vld [vmem:[%s2341_s1 + $0x3c4] ss:$16 sps:$4 sm:$0xff]   ;;  %v1822_v62 = vld [vmem:[%s2341_s1 + $0x3cc] ss:$16 sps:$4 sm:$0xff]  }
  0x43   : > { %1053 = vmatpush1.bf16.msra.mxu0 %v1725_v63  ;;  %1159 = vmatpush1.bf16.msra.mxu1 %v1726_v0  ;;  %v1817_v63 = vld [vmem:[%s2341_s1 + $0x3c0] ss:$16 sps:$4 sm:$0xff]   ;;  %v1820_v0 = vld [vmem:[%s2341_s1 + $0x3c8] ss:$16 sps:$4 sm:$0xff]  }
  0x44   : > { %1075 = vmatprep.subr.bf16.mxu0 %v1732_v1  ;;  %1181 = vmatprep.subr.bf16.mxu1 %v1735_v2  ;;  %v1825_v1 = vld [vmem:[%s2341_s1 + $0x3e4] ss:$16 sps:$4 sm:$0xff]   ;;  %v1828_v2 = vld [vmem:[%s2341_s1 + $0x3ec] ss:$16 sps:$4 sm:$0xff]  }
  0x46   : > { %1055 = vmatmul.mubr.bf16.vlgmr.msra.gmra.mrb[0].mxu0 %v1727_v3  ;;  %1161 = vmatmul.mubr.bf16.vlgmr.msra.gmra.mrb[0].mxu1 %v1727_v3  ;;  %v1823_v3 = vld [vmem:[%s2341_s1 + $0x3e0] ss:$16 sps:$4 sm:$0xff]  }
  0x47   : > { %1076 = vmatpush1.bf16.msra.mxu0 %v1730_v4  ;;  %1182 = vmatpush1.bf16.msra.mxu1 %v1733_v5  ;;  %v1826_v4 = vld [vmem:[%s2341_s1 + $0x3e8] ss:$16 sps:$4 sm:$0xff]  }
  0x48   : > { %1077 = vmatprep.subr.bf16.mxu0 %v1738_v6  ;;  %1183 = vmatprep.subr.bf16.mxu1 %v1741_v7  ;;  %v1829_v5 = vld [vmem:[%s2021_s12 + $0x8] ss:$16 sps:$4 sm:$0xff]   ;;  %v1832_v6 = vld [vmem:[%s2021_s12 + $0x2c] ss:$16 sps:$4 sm:$0xff]  }
  0x49   : > { %1064 = vmatprep.mubr.bf16.mxu0 %v1814_v25  ;;  %1170 = vmatprep.mubr.bf16.mxu1 %v1814_v25  ;;  %v1834_v7 = vld [vmem:[%s2021_s12 + $0x28] ss:$16 sps:$4 sm:$0xff]  }
  0x4b   : > { %1078 = vmatpush1.bf16.msra.mxu0 %v1736_v8  ;;  %1184 = vmatpush1.bf16.msra.mxu1 %v1739_v9  ;;  %v1236_v8 = vlaneseq }
  0x4c   : > { %1079 = vmatprep.subr.bf16.mxu0 %v1744_v10  ;;  %1185 = vmatprep.subr.bf16.mxu1 %v1747_v11 }
  0x4d   : > { %v1237_v9 = vshrl.u32 %v1236_v8, 7 }
  0x4e   : > { %1065 = vmatmul.mubr.bf16.gmra.mrb[4].mxu0 %v1816_v27  ;;  %1171 = vmatmul.mubr.bf16.gmra.mrb[4].mxu1 %v1816_v27 }
  0x4f   : > { %1080 = vmatpush1.bf16.msra.mxu0 %v1742_v12  ;;  %1186 = vmatpush1.bf16.msra.mxu1 %v1745_v13  ;;  %v1238_v10 = vsub.s32 0, %v1237_v9  ;;  %v1246_v11 = vsub.s32 2, %v1237_v9  ;;  %v1234_v12 = vld [vmem:[%s2342_s2] sm:$0xf]  ;;  %v1242_v13 = vsub.s32 1, %v1237_v9 }
  0x50   : > { %1081 = vmatprep.subr.bf16.mxu0 %v1750_v14  ;;  %1187 = vmatprep.subr.bf16.mxu1 %v1753_v15  ;;  %v1250_v14 = vsub.s32 3, %v1237_v9  ;;  %v1272_v15 = vld [vmem:[%s2343_s3] sm:$0xf] }
  0x51   : > { %1107 = vmatprep.mubr.bf16.mxu0 %v1831_v34  ;;  %1213 = vmatprep.mubr.bf16.mxu1 %v1831_v34 }
  0x52   : > { %v2296_v25 = vrot.slane %v1272_v15, %v1250_v14 }
  0x53   : > { %1082 = vmatpush1.bf16.msra.mxu0 %v1748_v16  ;;  %1188 = vmatpush1.bf16.msra.mxu1 %v1751_v17  ;;  %v1239_v16 = vrot.slane %v1234_v12, %v1238_v10  ;;  %v1247_v17 = vrot.slane %v1234_v12, %v1246_v11 }
  0x54   : > { %1083 = vmatprep.subr.bf16.mxu0 %v1756_v18  ;;  %1189 = vmatprep.subr.bf16.mxu1 %v1759_v19  ;;  %v2286_v18 = vrot.slane %v1234_v12, %v1242_v13  ;;  %v2288_v19 = vrot.slane %v1234_v12, %v1250_v14 }
  0x57   : > { %1084 = vmatpush1.bf16.msra.mxu0 %v1754_v20  ;;  %1190 = vmatpush1.bf16.msra.mxu1 %v1757_v21  ;;  %v2290_v20 = vrot.slane %v1272_v15, %v1238_v10  ;;  %v2292_v21 = vrot.slane %v1272_v15, %v1246_v11 }
  0x58   : > { %1085 = vmatprep.subr.bf16.mxu0 %v1762_v22  ;;  %1191 = vmatprep.subr.bf16.mxu1 %v1765_v23 }
  0x5b   : > { %1086 = vmatpush1.bf16.msra.mxu0 %v1760_v24  ;;  %1192 = vmatpush1.bf16.msra.mxu1 %v1763_v26  ;;  %v2294_v24 = vrot.slane %v1272_v15, %v1242_v13 }
  0x5c   : > { %1087 = vmatprep.subr.bf16.mxu0 %v1768_v28  ;;  %1193 = vmatprep.subr.bf16.mxu1 %v1771_v29 }
  0x5f   : > { %1088 = vmatpush1.bf16.msra.mxu0 %v1766_v30  ;;  %1194 = vmatpush1.bf16.msra.mxu1 %v1769_v31 }
  0x60   : > { %1089 = vmatprep.subr.bf16.mxu0 %v1774_v32  ;;  %1195 = vmatprep.subr.bf16.mxu1 %v1777_v33 }
  0x63   : > { %1090 = vmatpush1.bf16.msra.mxu0 %v1772_v35  ;;  %1196 = vmatpush1.bf16.msra.mxu1 %v1775_v36 }
  0x64   : > { %1091 = vmatprep.subr.bf16.mxu0 %v1780_v37  ;;  %1197 = vmatprep.subr.bf16.mxu1 %v1783_v38 }
  0x67   : > { %1092 = vmatpush1.bf16.msra.mxu0 %v1778_v39  ;;  %1198 = vmatpush1.bf16.msra.mxu1 %v1781_v40 }
  0x68   : > { %1093 = vmatprep.subr.bf16.mxu0 %v1786_v41  ;;  %1199 = vmatprep.subr.bf16.mxu1 %v1789_v42 }
  0x6b   : > { %1094 = vmatpush1.bf16.msra.mxu0 %v1784_v43  ;;  %1200 = vmatpush1.bf16.msra.mxu1 %v1787_v44 }
  0x6c   : > { %1095 = vmatprep.subr.bf16.mxu0 %v1792_v45  ;;  %1201 = vmatprep.subr.bf16.mxu1 %v1795_v46 }
  0x6f   : > { %1096 = vmatpush1.bf16.msra.mxu0 %v1790_v47  ;;  %1202 = vmatpush1.bf16.msra.mxu1 %v1793_v48 }
  0x70   : > { %1097 = vmatprep.subr.bf16.mxu0 %v1798_v49  ;;  %1203 = vmatprep.subr.bf16.mxu1 %v1801_v50 }
  0x73   : > { %1098 = vmatpush1.bf16.msra.mxu0 %v1796_v51  ;;  %1204 = vmatpush1.bf16.msra.mxu1 %v1799_v52 }
  0x74   : > { %1099 = vmatprep.subr.bf16.mxu0 %v1804_v53  ;;  %1205 = vmatprep.subr.bf16.mxu1 %v1807_v54 }
  0x77   : > { %1100 = vmatpush1.bf16.msra.mxu0 %v1802_v55  ;;  %1206 = vmatpush1.bf16.msra.mxu1 %v1805_v56 }
  0x78   : > { %1101 = vmatprep.subr.bf16.mxu0 %v1810_v57  ;;  %1207 = vmatprep.subr.bf16.mxu1 %v1813_v58 }
  0x7b   : > { %1102 = vmatpush1.bf16.msra.mxu0 %v1808_v59  ;;  %1208 = vmatpush1.bf16.msra.mxu1 %v1811_v60 }
  0x7c   : > { %1103 = vmatprep.subr.bf16.mxu0 %v1819_v61  ;;  %1209 = vmatprep.subr.bf16.mxu1 %v1822_v62 }
  0x7f   : > { %1104 = vmatpush1.bf16.msra.mxu0 %v1817_v63  ;;  %1210 = vmatpush1.bf16.msra.mxu1 %v1820_v0 }
  0x80   : > { %1105 = vmatprep.subr.bf16.mxu0 %v1825_v1  ;;  %1211 = vmatprep.subr.bf16.mxu1 %v1828_v2 }
  0x83   : > { %1106 = vmatpush1.bf16.msra.mxu0 %v1823_v3  ;;  %1212 = vmatpush1.bf16.msra.mxu1 %v1826_v4 }
  0x86   : > { %1108 = vmatmul.mubr.bf16.vlgmr.msra.gmra.mrb[0].mxu0 %v1829_v5  ;;  %1214 = vmatmul.mubr.bf16.vlgmr.msra.gmra.mrb[0].mxu1 %v1829_v5 }
  0x87   : > { %1117 = vmatprep.mubr.bf16.mxu0 %v1832_v6  ;;  %1223 = vmatprep.mubr.bf16.mxu1 %v1832_v6 }
  0x8e   : > { %1118 = vmatmul.mubr.bf16.gmra.mrb[4].mxu0 %v1834_v7  ;;  %1224 = vmatmul.mubr.bf16.gmra.mrb[4].mxu1 %v1834_v7 }
 0x159   : > { %v1109_v22 = vpop.f32.mrb[0].mxu0  ;;  %v1215_v23 = vpop.f32.mrb[0].mxu1 }
 0x15a   : > { %v1256_v26 = vmul.f32 %v1239_v16, %v1109_v22  ;;  %v1258_v27 = vmul.f32 %v1247_v17, %v1215_v23  ;;  %v1111_v28 = vpop.f32.mrb[1].mxu0  ;;  %v1217_v29 = vpop.f32.mrb[1].mxu1 }
 0x15b   : > { %v1257_v30 = vmul.f32 %v2286_v18, %v1111_v28  ;;  %v1259_v31 = vmul.f32 %v2288_v19, %v1217_v29  ;;  %v1113_v32 = vpop.f32.mrb[2].mxu0  ;;  %v1219_v33 = vpop.f32.mrb[2].mxu1 }
 0x15c   : > { %v1294_v34 = vadd.f32 %v2290_v20, %v1256_v26  ;;  %v1296_v35 = vadd.f32 %v2292_v21, %v1258_v27  ;;  %v1260_v36 = vmul.f32 %v1239_v16, %v1113_v32  ;;  %v1262_v37 = vmul.f32 %v1247_v17, %v1219_v33  ;;  %v1115_v38 = vpop.f32.mrb[3].mxu0  ;;  %v1221_v39 = vpop.f32.mrb[3].mxu1 }
 0x15d   : > { %v1295_v40 = vadd.f32 %v2294_v24, %v1257_v30  ;;  %v1297_v41 = vadd.f32 %v2296_v25, %v1259_v31  ;;  %v1261_v42 = vmul.f32 %v2286_v18, %v1115_v38  ;;  %v1263_v43 = vmul.f32 %v2288_v19, %v1221_v39 }
 0x15e   : > { %v1310_v44 = vmax.f32 %v1294_v34, 0.0  ;;  %v1312_v45 = vmax.f32 %v1296_v35, 0.0  ;;  %v1298_v46 = vadd.f32 %v2290_v20, %v1260_v36  ;;  %v1300_v47 = vadd.f32 %v2292_v21, %v1262_v37 }
 0x15f   : > { %v1311_v48 = vmax.f32 %v1295_v40, 0.0  ;;  %v1313_v49 = vmax.f32 %v1297_v41, 0.0  ;;  %v1299_v50 = vadd.f32 %v2294_v24, %v1261_v42  ;;  %v1301_v51 = vadd.f32 %v2296_v25, %v1263_v43 }
 0x160   : > { %v1314_v52 = vmax.f32 %v1298_v46, 0.0  ;;  %v1316_v53 = vmax.f32 %v1300_v47, 0.0 }
 0x161   : > { %v1599_v54 = vpack.c.bf16 %v1311_v48, %v1310_v44  ;;  %v1600_v55 = vpack.c.bf16 %v1313_v49, %v1312_v45  ;;  %v1315_v56 = vmax.f32 %v1299_v50, 0.0  ;;  %v1317_v57 = vmax.f32 %v1301_v51, 0.0  ;;  %v1119_v58 = vpop.f32.mrb[4].mxu0  ;;  %v1225_v59 = vpop.f32.mrb[4].mxu1 }
 0x162   : > { %v1264_v60 = vmul.f32 %v1239_v16, %v1119_v58  ;;  %v1266_v61 = vmul.f32 %v1247_v17, %v1225_v59  ;;  %v1121_v62 = vpop.f32.mrb[5].mxu0  ;;  %v1227_v63 = vpop.f32.mrb[5].mxu1 }
 0x163   : > { %1374 = vst [vmem:[%s2315_s8] sm:$0xff] %v1599_v54  ;;  %1375 = vst [vmem:[%s2315_s8 + $0x8] sm:$0xff] %v1600_v55  ;;  %v1601_v0 = vpack.c.bf16 %v1315_v56, %v1314_v52  ;;  %v1602_v1 = vpack.c.bf16 %v1317_v57, %v1316_v53  ;;  %v1265_v2 = vmul.f32 %v2286_v18, %v1121_v62  ;;  %v1123_v4 = vpop.f32.mrb[6].mxu0  ;;  %v1229_v5 = vpop.f32.mrb[6].mxu1 }
 0x164   : > { %v1267_v3 = vmul.f32 %v2288_v19, %v1227_v63  ;;  %v1302_v6 = vadd.f32 %v2290_v20, %v1264_v60  ;;  %v1304_v7 = vadd.f32 %v2292_v21, %v1266_v61  ;;  %v1268_v8 = vmul.f32 %v1239_v16, %v1123_v4  ;;  %v1125_v10 = vpop.f32.mrb[7].mxu0  ;;  %v1231_v11 = vpop.f32.mrb[7].mxu1 }
 0x165   : > { %v1270_v9 = vmul.f32 %v1247_v17, %v1229_v5  ;;  %1376 = vst [vmem:[%s2315_s8 + $0x10] sm:$0xff] %v1601_v0  ;;  %1377 = vst [vmem:[%s2315_s8 + $0x18] sm:$0xff] %v1602_v1  ;;  %v1303_v12 = vadd.f32 %v2294_v24, %v1265_v2  ;;  %v1269_v14 = vmul.f32 %v2286_v18, %v1125_v10 }
 0x166   : > { %v1305_v13 = vadd.f32 %v2296_v25, %v1267_v3  ;;  %v1271_v15 = vmul.f32 %v2288_v19, %v1231_v11  ;;  %v1318_v22 = vmax.f32 %v1302_v6, 0.0  ;;  %v1320_v23 = vmax.f32 %v1304_v7, 0.0 }
 0x167   : > { %v1306_v26 = vadd.f32 %v2290_v20, %v1268_v8  ;;  %v1308_v16 = vadd.f32 %v2292_v21, %v1270_v9  ;;  %v1319_v17 = vmax.f32 %v1303_v12, 0.0  ;;  %v1307_v28 = vadd.f32 %v2294_v24, %v1269_v14 }
 0x168   : > { %v1321_v27 = vmax.f32 %v1305_v13, 0.0  ;;  %v1309_v29 = vadd.f32 %v2296_v25, %v1271_v15 }
 0x169   : > { %v1322_v30 = vmax.f32 %v1306_v26, 0.0  ;;  %v1324_v18 = vmax.f32 %v1308_v16, 0.0  ;;  %v1603_v31 = vpack.c.bf16 %v1319_v17, %v1318_v22  ;;  %v1323_v19 = vmax.f32 %v1307_v28, 0.0 }
 0x16a   : > { %v1604_v32 = vpack.c.bf16 %v1321_v27, %v1320_v23  ;;  %v1325_v33 = vmax.f32 %v1309_v29, 0.0 }
 0x16b   : > { %1378 = vst [vmem:[%s2315_s8 + $0x20] sm:$0xff] %v1603_v31  ;;  %v1605_v34 = vpack.c.bf16 %v1323_v19, %v1322_v30 }
 0x16c   : > { %1379 = vst [vmem:[%s2315_s8 + $0x28] sm:$0xff] %v1604_v32  ;;  %v1606_v20 = vpack.c.bf16 %v1325_v33, %v1324_v18 }
 0x16d   : > { %1380 = vst [vmem:[%s2315_s8 + $0x30] sm:$0xff] %v1605_v34 }
 0x16e   : > { %1381 = vst [vmem:[%s2315_s8 + $0x38] sm:$0xff] %v1606_v20 }
 0x16f PF: > { %s14_s15 = sadd.s32 1, %s1841_s15  }
 0x170   : > { %p11_p4 = scmp.ge.s32.totalorder %s14_s15, 4  }
 0x172   :  { %13 = sbr.rel (!%p11_p4) target bundleno = 1 (0x1), region = 66 }

// kernel: planner_forward.13
= control target key start
LH: loop header
LB: loop body
LE: loop exit
PB: predicated region body
PF: predicated region fallthrough
CT: control target
= control target key end

     0   :  { %s1658_s15 = smov 0   ;;  %s2003_s0 = inlined_call_operand.vmem [shape: bf16[256,512], index: 0, kind: input, shape index: {}]   ;;  %s2004_s1 = inlined_call_operand.vmem [shape: bf16[512,256], index: 1, kind: input, shape index: {}]   ;;  %s2005_s2 = inlined_call_operand.vmem [shape: f32[1,256], index: 2, kind: input, shape index: {}]   ;;  %s2006_s3 = inlined_call_operand.vmem [shape: f32[1,256], index: 3, kind: input, shape index: {}]   ;;  %s2007_s4 = inlined_call_operand.vmem [shape: bf16[256,256], index: 4, kind: output, shape index: {}]  }
   0x1 LB: > { %s1298_s16 = sadd.s32 4294967295, %s1631_s15   ;;  %p1302_p0 = scmp.ge.s32.totalorder %s1631_s15, 1  ;;  %s1631_s15 = sphi %s1658_s15, %s14_s15  }
   0x2   : > { %p164_p1 = scmp.lt.s32.totalorder %s1631_s15, 3 }
   0x4   : > { %p165_p2 = pnand %p1302_p0, %p164_p1 }
   0x5   : > { %v1481_v0 = vld [vmem:[%s2004_s1 + $0x4] ss:$8 sps:$4 sm:$0xff] (!%p165_p2)   ;;  %v1485_v2 = vld [vmem:[%s2004_s1] ss:$8 sps:$4 sm:$0xff] (!%p165_p2)   ;;  %v1487_v4 = vld [vmem:[%s2004_s1 + $0x14] ss:$8 sps:$4 sm:$0xff] (!%p165_p2)  }
   0x6   : > { %168 = sbr.rel (%p165_p2) target bundleno = 353 (0x161), region = 36  ;;  %v1483_v1 = vld [vmem:[%s2004_s1 + $0x104] ss:$8 sps:$4 sm:$0xff] (!%p165_p2)   ;;  %782 = vmatprep.subr.bf16.mxu1 (!%p165_p2), %v1481_v0  ;;  %v1486_v3 = vld [vmem:[%s2004_s1 + $0x100] ss:$8 sps:$4 sm:$0xff] (!%p165_p2)   ;;  %s1303_s29 = sshll.u32 (!%p165_p2), %s1298_s16, 4 }
   0x7   : > { %895 = vmatprep.subr.bf16.mxu0 (!%p165_p2), %v1483_v1  ;;  %783 = vmatpush1.bf16.msra.mxu1 (!%p165_p2), %v1485_v2  ;;  %v1489_v5 = vld [vmem:[%s2004_s1 + $0x114] ss:$8 sps:$4 sm:$0xff] (!%p165_p2)   ;;  %v1491_v6 = vld [vmem:[%s2004_s1 + $0x10] ss:$8 sps:$4 sm:$0xff] (!%p165_p2)   ;;  %v1493_v8 = vld [vmem:[%s2004_s1 + $0x24] ss:$8 sps:$4 sm:$0xff] (!%p165_p2)  }
   0x8   : > { %896 = vmatpush1.bf16.msra.mxu0 (!%p165_p2), %v1486_v3  ;;  %784 = vmatprep.subr.bf16.mxu1 (!%p165_p2), %v1487_v4  ;;  %v1492_v7 = vld [vmem:[%s2004_s1 + $0x110] ss:$8 sps:$4 sm:$0xff] (!%p165_p2)   ;;  %v1495_v9 = vld [vmem:[%s2004_s1 + $0x124] ss:$8 sps:$4 sm:$0xff] (!%p165_p2)   ;;  %v1497_v10 = vld [vmem:[%s2004_s1 + $0x20] ss:$8 sps:$4 sm:$0xff] (!%p165_p2)  }
   0x9   : > { %897 = vmatprep.subr.bf16.mxu0 (!%p165_p2), %v1489_v5  ;;  %v1498_v11 = vld [vmem:[%s2004_s1 + $0x120] ss:$8 sps:$4 sm:$0xff] (!%p165_p2)   ;;  %v1499_v12 = vld [vmem:[%s2004_s1 + $0x34] ss:$8 sps:$4 sm:$0xff] (!%p165_p2)   ;;  %v1503_v14 = vld [vmem:[%s2004_s1 + $0x30] ss:$8 sps:$4 sm:$0xff] (!%p165_p2)  }
   0xa   : > { %v1501_v13 = vld [vmem:[%s2004_s1 + $0x134] ss:$8 sps:$4 sm:$0xff] (!%p165_p2)   ;;  %v1504_v15 = vld [vmem:[%s2004_s1 + $0x130] ss:$8 sps:$4 sm:$0xff] (!%p165_p2)   ;;  %v1505_v16 = vld [vmem:[%s2004_s1 + $0x44] ss:$8 sps:$4 sm:$0xff] (!%p165_p2)  }
   0xb   : > { %785 = vmatpush1.bf16.msra.mxu1 (!%p165_p2), %v1491_v6  ;;  %v1507_v17 = vld [vmem:[%s2004_s1 + $0x144] ss:$8 sps:$4 sm:$0xff] (!%p165_p2)   ;;  %v1509_v18 = vld [vmem:[%s2004_s1 + $0x40] ss:$8 sps:$4 sm:$0xff] (!%p165_p2)   ;;  %v1511_v20 = vld [vmem:[%s2004_s1 + $0x54] ss:$8 sps:$4 sm:$0xff] (!%p165_p2)  }
   0xc   : > { %898 = vmatpush1.bf16.msra.mxu0 (!%p165_p2), %v1492_v7  ;;  %786 = vmatprep.subr.bf16.mxu1 (!%p165_p2), %v1493_v8  ;;  %v1510_v19 = vld [vmem:[%s2004_s1 + $0x140] ss:$8 sps:$4 sm:$0xff] (!%p165_p2)   ;;  %v1513_v21 = vld [vmem:[%s2004_s1 + $0x154] ss:$8 sps:$4 sm:$0xff] (!%p165_p2)   ;;  %v1515_v22 = vld [vmem:[%s2004_s1 + $0x50] ss:$8 sps:$4 sm:$0xff] (!%p165_p2)  }
   0xd   : > { %899 = vmatprep.subr.bf16.mxu0 %v1495_v9  ;;  %v1516_v23 = vld [vmem:[%s2004_s1 + $0x150] ss:$8 sps:$4 sm:$0xff]   ;;  %v1517_v24 = vld [vmem:[%s2004_s1 + $0x64] ss:$8 sps:$4 sm:$0xff]   ;;  %v1521_v26 = vld [vmem:[%s2004_s1 + $0x60] ss:$8 sps:$4 sm:$0xff]  }
   0xe   : > { %v1519_v25 = vld [vmem:[%s2004_s1 + $0x164] ss:$8 sps:$4 sm:$0xff]   ;;  %v1522_v27 = vld [vmem:[%s2004_s1 + $0x160] ss:$8 sps:$4 sm:$0xff]   ;;  %v1523_v28 = vld [vmem:[%s2004_s1 + $0x74] ss:$8 sps:$4 sm:$0xff]  }
   0xf   : > { %787 = vmatpush1.bf16.msra.mxu1 %v1497_v10  ;;  %v1525_v29 = vld [vmem:[%s2004_s1 + $0x174] ss:$8 sps:$4 sm:$0xff]   ;;  %v1527_v30 = vld [vmem:[%s2004_s1 + $0x70] ss:$8 sps:$4 sm:$0xff]   ;;  %v1529_v32 = vld [vmem:[%s2004_s1 + $0x84] ss:$8 sps:$4 sm:$0xff]  }
  0x10   : > { %900 = vmatpush1.bf16.msra.mxu0 %v1498_v11  ;;  %788 = vmatprep.subr.bf16.mxu1 %v1499_v12  ;;  %v1528_v31 = vld [vmem:[%s2004_s1 + $0x170] ss:$8 sps:$4 sm:$0xff]   ;;  %v1531_v33 = vld [vmem:[%s2004_s1 + $0x184] ss:$8 sps:$4 sm:$0xff]   ;;  %p193_p3 = scmp.lt.s32.totalorder %s1303_s29, 31 }
  0x11   : > { %901 = vmatprep.subr.bf16.mxu0 %v1501_v13  ;;  %v1533_v34 = vld [vmem:[%s2004_s1 + $0x80] ss:$8 sps:$4 sm:$0xff]   ;;  %v1535_v36 = vld [vmem:[%s2004_s1 + $0x94] ss:$8 sps:$4 sm:$0xff]   ;;  %v1539_v38 = vld [vmem:[%s2004_s1 + $0x90] ss:$8 sps:$4 sm:$0xff]  }
  0x12   : > { %v1534_v35 = vld [vmem:[%s2004_s1 + $0x180] ss:$8 sps:$4 sm:$0xff]   ;;  %v1537_v37 = vld [vmem:[%s2004_s1 + $0x194] ss:$8 sps:$4 sm:$0xff]   ;;  %s2009_s29 = smov (!%p193_p3, %s1303_s29), 31 }
  0x13   : > { %789 = vmatpush1.bf16.msra.mxu1 %v1503_v14  ;;  %v1540_v39 = vld [vmem:[%s2004_s1 + $0x190] ss:$8 sps:$4 sm:$0xff]   ;;  %v1541_v40 = vld [vmem:[%s2004_s1 + $0xa4] ss:$8 sps:$4 sm:$0xff]   ;;  %s1423_s30 = sshll.u32 %s2009_s29, 4 }
  0x14   : > { %902 = vmatpush1.bf16.msra.mxu0 %v1504_v15  ;;  %790 = vmatprep.subr.bf16.mxu1 %v1505_v16  ;;  %v1543_v41 = vld [vmem:[%s2004_s1 + $0x1a4] ss:$8 sps:$4 sm:$0xff]   ;;  %v1545_v42 = vld [vmem:[%s2004_s1 + $0xa0] ss:$8 sps:$4 sm:$0xff]   ;;  %v1547_v44 = vld [vmem:[%s2004_s1 + $0xb4] ss:$8 sps:$4 sm:$0xff]   ;;  %s1809_s12 = scalar_lea.vmem %s2003_s0, %s1423_s30 }
  0x15   : > { %903 = vmatprep.subr.bf16.mxu0 %v1507_v17  ;;  %v1546_v43 = vld [vmem:[%s2004_s1 + $0x1a0] ss:$8 sps:$4 sm:$0xff]   ;;  %v1549_v45 = vld [vmem:[%s2004_s1 + $0x1b4] ss:$8 sps:$4 sm:$0xff]   ;;  %v1551_v46 = vld [vmem:[%s2004_s1 + $0xb0] ss:$8 sps:$4 sm:$0xff]  }
  0x16   : > { %v1552_v47 = vld [vmem:[%s2004_s1 + $0x1b0] ss:$8 sps:$4 sm:$0xff]   ;;  %v1553_v48 = vld [vmem:[%s2004_s1 + $0xc4] ss:$8 sps:$4 sm:$0xff]   ;;  %v1557_v52 = vld [vmem:[%s2004_s1 + $0xc0] ss:$8 sps:$4 sm:$0xff]  }
  0x17   : > { %791 = vmatpush1.bf16.msra.mxu1 %v1509_v18  ;;  %v1579_v49 = vld [vmem:[%s1809_s12 + $0x4] ss:$16 sps:$4 sm:$0xff]   ;;  %v1582_v51 = vld [vmem:[%s1809_s12 + $0xc] ss:$16 sps:$4 sm:$0xff]   ;;  %v1558_v53 = vld [vmem:[%s2004_s1 + $0x1c0] ss:$8 sps:$4 sm:$0xff]  }
  0x18   : > { %904 = vmatpush1.bf16.msra.mxu0 %v1510_v19  ;;  %792 = vmatprep.subr.bf16.mxu1 %v1511_v20  ;;  %v1555_v50 = vld [vmem:[%s2004_s1 + $0x1c4] ss:$8 sps:$4 sm:$0xff]   ;;  %v1559_v54 = vld [vmem:[%s2004_s1 + $0xd4] ss:$8 sps:$4 sm:$0xff]   ;;  %v1563_v56 = vld [vmem:[%s2004_s1 + $0xd0] ss:$8 sps:$4 sm:$0xff]  }
  0x19   : > { %905 = vmatprep.subr.bf16.mxu0 %v1513_v21  ;;  %814 = vmatprep.mubr.bf16.mxu1 %v1579_v49  ;;  %v1561_v55 = vld [vmem:[%s2004_s1 + $0x1d4] ss:$8 sps:$4 sm:$0xff]   ;;  %v1564_v57 = vld [vmem:[%s2004_s1 + $0x1d0] ss:$8 sps:$4 sm:$0xff]   ;;  %v1565_v58 = vld [vmem:[%s2004_s1 + $0xe4] ss:$8 sps:$4 sm:$0xff]  }
  0x1a   : > { %927 = vmatprep.mubr.bf16.mxu0 %v1582_v51  ;;  %v1567_v59 = vld [vmem:[%s2004_s1 + $0x1e4] ss:$8 sps:$4 sm:$0xff]   ;;  %v1569_v60 = vld [vmem:[%s2004_s1 + $0xe0] ss:$8 sps:$4 sm:$0xff]   ;;  %v1571_v62 = vld [vmem:[%s2004_s1 + $0xf4] ss:$8 sps:$4 sm:$0xff]  }
  0x1b   : > { %793 = vmatpush1.bf16.msra.mxu1 %v1515_v22  ;;  %v1570_v61 = vld [vmem:[%s2004_s1 + $0x1e0] ss:$8 sps:$4 sm:$0xff]   ;;  %v1573_v63 = vld [vmem:[%s2004_s1 + $0x1f4] ss:$8 sps:$4 sm:$0xff]   ;;  %v1575_v0 = vld [vmem:[%s2004_s1 + $0xf0] ss:$8 sps:$4 sm:$0xff]  }
  0x1c   : > { %906 = vmatpush1.bf16.msra.mxu0 %v1516_v23  ;;  %794 = vmatprep.subr.bf16.mxu1 %v1517_v24  ;;  %v1576_v1 = vld [vmem:[%s2004_s1 + $0x1f0] ss:$8 sps:$4 sm:$0xff]   ;;  %v1583_v4 = vld [vmem:[%s1809_s12 + $0x24] ss:$16 sps:$4 sm:$0xff]   ;;  %v1585_v5 = vld [vmem:[%s1809_s12 + $0x2c] ss:$16 sps:$4 sm:$0xff]  }
  0x1d   : > { %907 = vmatprep.subr.bf16.mxu0 %v1519_v25  ;;  %v1577_v2 = vld [vmem:[%s1809_s12] ss:$16 sps:$4 sm:$0xff]   ;;  %v1580_v3 = vld [vmem:[%s1809_s12 + $0x8] ss:$16 sps:$4 sm:$0xff]   ;;  %v1589_v8 = vld [vmem:[%s1809_s12 + $0x44] ss:$16 sps:$4 sm:$0xff]  }
  0x1e   : > { %v1587_v6 = vld [vmem:[%s1809_s12 + $0x20] ss:$16 sps:$4 sm:$0xff]   ;;  %v1588_v7 = vld [vmem:[%s1809_s12 + $0x28] ss:$16 sps:$4 sm:$0xff]   ;;  %v1591_v9 = vld [vmem:[%s1809_s12 + $0x4c] ss:$16 sps:$4 sm:$0xff]  }
  0x1f   : > { %795 = vmatpush1.bf16.msra.mxu1 %v1521_v26  ;;  %v1593_v10 = vld [vmem:[%s1809_s12 + $0x40] ss:$16 sps:$4 sm:$0xff]   ;;  %v1594_v11 = vld [vmem:[%s1809_s12 + $0x48] ss:$16 sps:$4 sm:$0xff]   ;;  %v1595_v12 = vld [vmem:[%s1809_s12 + $0x64] ss:$16 sps:$4 sm:$0xff]  }
  0x20   : > { %908 = vmatpush1.bf16.msra.mxu0 %v1522_v27  ;;  %796 = vmatprep.subr.bf16.mxu1 %v1523_v28  ;;  %v1597_v13 = vld [vmem:[%s1809_s12 + $0x6c] ss:$16 sps:$4 sm:$0xff]   ;;  %v1599_v14 = vld [vmem:[%s1809_s12 + $0x60] ss:$16 sps:$4 sm:$0xff]   ;;  %v1600_v15 = vld [vmem:[%s1809_s12 + $0x68] ss:$16 sps:$4 sm:$0xff]  }
  0x21   : > { %909 = vmatprep.subr.bf16.mxu0 %v1525_v29  ;;  %v1601_v16 = vld [vmem:[%s1809_s12 + $0x84] ss:$16 sps:$4 sm:$0xff]   ;;  %v1603_v17 = vld [vmem:[%s1809_s12 + $0x8c] ss:$16 sps:$4 sm:$0xff]   ;;  %v1605_v18 = vld [vmem:[%s1809_s12 + $0x80] ss:$16 sps:$4 sm:$0xff]  }
  0x22   : > { %v1606_v19 = vld [vmem:[%s1809_s12 + $0x88] ss:$16 sps:$4 sm:$0xff]   ;;  %v1607_v20 = vld [vmem:[%s1809_s12 + $0xa4] ss:$16 sps:$4 sm:$0xff]   ;;  %v1609_v21 = vld [vmem:[%s1809_s12 + $0xac] ss:$16 sps:$4 sm:$0xff]  }
  0x23   : > { %797 = vmatpush1.bf16.msra.mxu1 %v1527_v30  ;;  %v1611_v22 = vld [vmem:[%s1809_s12 + $0xa0] ss:$16 sps:$4 sm:$0xff]   ;;  %v1612_v23 = vld [vmem:[%s1809_s12 + $0xa8] ss:$16 sps:$4 sm:$0xff]   ;;  %v1613_v24 = vld [vmem:[%s1809_s12 + $0xc4] ss:$16 sps:$4 sm:$0xff]  }
  0x24   : > { %910 = vmatpush1.bf16.msra.mxu0 %v1528_v31  ;;  %798 = vmatprep.subr.bf16.mxu1 %v1529_v32  ;;  %v1615_v25 = vld [vmem:[%s1809_s12 + $0xcc] ss:$16 sps:$4 sm:$0xff]   ;;  %v1617_v26 = vld [vmem:[%s1809_s12 + $0xc0] ss:$16 sps:$4 sm:$0xff]   ;;  %v1618_v27 = vld [vmem:[%s1809_s12 + $0xc8] ss:$16 sps:$4 sm:$0xff]   ;;  %v1010_v32 = vlaneseq }
  0x25   : > { %911 = vmatprep.subr.bf16.mxu0 %v1531_v33  ;;  %v1619_v28 = vld [vmem:[%s1809_s12 + $0xe4] ss:$16 sps:$4 sm:$0xff]   ;;  %v1621_v29 = vld [vmem:[%s1809_s12 + $0xec] ss:$16 sps:$4 sm:$0xff]   ;;  %v1623_v30 = vld [vmem:[%s1809_s12 + $0xe0] ss:$16 sps:$4 sm:$0xff]  }
  0x26   : > { %v1624_v31 = vld [vmem:[%s1809_s12 + $0xe8] ss:$16 sps:$4 sm:$0xff]   ;;  %v1011_v33 = vshrl.u32 %v1010_v32, 7  ;;  %s1424_s12 = sshll.u32 %s2009_s29, 3 }
  0x27   : > { %799 = vmatpush1.bf16.msra.mxu1 %v1533_v34  ;;  %s1926_s11 = scalar_lea.vmem %s2007_s4, %s1424_s12 }
  0x28   : > { %912 = vmatpush1.bf16.msra.mxu0 %v1534_v35  ;;  %800 = vmatprep.subr.bf16.mxu1 %v1535_v36  ;;  %v1012_v34 = vsub.s32 0, %v1011_v33  ;;  %v1008_v35 = vld [vmem:[%s2005_s2] sm:$0x3]  ;;  %v1016_v36 = vsub.s32 1, %v1011_v33 }
  0x29   : > { %913 = vmatprep.subr.bf16.mxu0 %v1537_v37  ;;  %v1052_v37 = vld [vmem:[%s2006_s3] sm:$0x3] }
  0x2b   : > { %801 = vmatpush1.bf16.msra.mxu1 %v1539_v38  ;;  %v1906_v38 = vrot.slane %v1008_v35, %v1012_v34 }
  0x2c   : > { %914 = vmatpush1.bf16.msra.mxu0 %v1540_v39  ;;  %802 = vmatprep.subr.bf16.mxu1 %v1541_v40 }
  0x2d   : > { %915 = vmatprep.subr.bf16.mxu0 %v1543_v41  ;;  %v1908_v41 = vrot.slane %v1008_v35, %v1016_v36 }
  0x2f   : > { %803 = vmatpush1.bf16.msra.mxu1 %v1545_v42 }
  0x30   : > { %916 = vmatpush1.bf16.msra.mxu0 %v1546_v43  ;;  %804 = vmatprep.subr.bf16.mxu1 %v1547_v44  ;;  %v1910_v43 = vrot.slane %v1052_v37, %v1012_v34 }
  0x31   : > { %917 = vmatprep.subr.bf16.mxu0 %v1549_v45 }
  0x33   : > { %805 = vmatpush1.bf16.msra.mxu1 %v1551_v46 }
  0x34   : > { %918 = vmatpush1.bf16.msra.mxu0 %v1552_v47  ;;  %806 = vmatprep.subr.bf16.mxu1 %v1553_v48  ;;  %v1912_v47 = vrot.slane %v1052_v37, %v1016_v36 }
  0x35   : > { %919 = vmatprep.subr.bf16.mxu0 %v1555_v50 }
  0x37   : > { %807 = vmatpush1.bf16.msra.mxu1 %v1557_v52 }
  0x38   : > { %920 = vmatpush1.bf16.msra.mxu0 %v1558_v53  ;;  %808 = vmatprep.subr.bf16.mxu1 %v1559_v54 }
  0x39   : > { %921 = vmatprep.subr.bf16.mxu0 %v1561_v55 }
  0x3b   : > { %809 = vmatpush1.bf16.msra.mxu1 %v1563_v56 }
  0x3c   : > { %922 = vmatpush1.bf16.msra.mxu0 %v1564_v57  ;;  %810 = vmatprep.subr.bf16.mxu1 %v1565_v58 }
  0x3d   : > { %923 = vmatprep.subr.bf16.mxu0 %v1567_v59 }
  0x3f   : > { %811 = vmatpush1.bf16.msra.mxu1 %v1569_v60 }
  0x40   : > { %924 = vmatpush1.bf16.msra.mxu0 %v1570_v61  ;;  %812 = vmatprep.subr.bf16.mxu1 %v1571_v62 }
  0x41   : > { %925 = vmatprep.subr.bf16.mxu0 %v1573_v63 }
  0x43   : > { %813 = vmatpush1.bf16.msra.mxu1 %v1575_v0 }
  0x44   : > { %926 = vmatpush1.bf16.msra.mxu0 %v1576_v1 }
  0x46   : > { %815 = vmatmul.mubr.bf16.vlgmr.msra.gmra.mrb[0].mxu1 %v1577_v2 }
  0x47   : > { %928 = vmatmul.mubr.bf16.vlgmr.msra.gmra.mrb[0].mxu0 %v1580_v3  ;;  %824 = vmatprep.mubr.bf16.mxu1 %v1583_v4 }
  0x48   : > { %937 = vmatprep.mubr.bf16.mxu0 %v1585_v5 }
  0x4e   : > { %825 = vmatmul.mubr.bf16.gmra.mrb[4].mxu1 %v1587_v6 }
  0x4f   : > { %938 = vmatmul.mubr.bf16.gmra.mrb[4].mxu0 %v1588_v7  ;;  %834 = vmatprep.mubr.bf16.mxu1 %v1589_v8 }
  0x50   : > { %947 = vmatprep.mubr.bf16.mxu0 %v1591_v9 }
  0x56   : > { %835 = vmatmul.mubr.bf16.gmra.mrb[8].mxu1 %v1593_v10 }
  0x57   : > { %948 = vmatmul.mubr.bf16.gmra.mrb[8].mxu0 %v1594_v11  ;;  %844 = vmatprep.mubr.bf16.mxu1 %v1595_v12 }
  0x58   : > { %957 = vmatprep.mubr.bf16.mxu0 %v1597_v13 }
  0x5e   : > { %845 = vmatmul.mubr.bf16.gmra.mrb[12].mxu1 %v1599_v14 }
  0x5f   : > { %958 = vmatmul.mubr.bf16.gmra.mrb[12].mxu0 %v1600_v15  ;;  %854 = vmatprep.mubr.bf16.mxu1 %v1601_v16 }
  0x60   : > { %967 = vmatprep.mubr.bf16.mxu0 %v1603_v17 }
  0x66   : > { %855 = vmatmul.mubr.bf16.gmra.mrb[16].mxu1 %v1605_v18 }
  0x67   : > { %968 = vmatmul.mubr.bf16.gmra.mrb[16].mxu0 %v1606_v19  ;;  %864 = vmatprep.mubr.bf16.mxu1 %v1607_v20 }
  0x68   : > { %977 = vmatprep.mubr.bf16.mxu0 %v1609_v21 }
  0x6e   : > { %865 = vmatmul.mubr.bf16.gmra.mrb[20].mxu1 %v1611_v22 }
  0x6f   : > { %978 = vmatmul.mubr.bf16.gmra.mrb[20].mxu0 %v1612_v23  ;;  %874 = vmatprep.mubr.bf16.mxu1 %v1613_v24 }
  0x70   : > { %987 = vmatprep.mubr.bf16.mxu0 %v1615_v25 }
  0x76   : > { %875 = vmatmul.mubr.bf16.gmra.mrb[24].mxu1 %v1617_v26 }
  0x77   : > { %988 = vmatmul.mubr.bf16.gmra.mrb[24].mxu0 %v1618_v27  ;;  %884 = vmatprep.mubr.bf16.mxu1 %v1619_v28 }
  0x78   : > { %997 = vmatprep.mubr.bf16.mxu0 %v1621_v29 }
  0x7e   : > { %885 = vmatmul.mubr.bf16.gmra.mrb[28].mxu1 %v1623_v30 }
  0x7f   : > { %998 = vmatmul.mubr.bf16.gmra.mrb[28].mxu0 %v1624_v31 }
 0x119   : > { %v816_v39 = vpop.f32.mrb[0].mxu1 }
 0x11a   : > { %v929_v40 = vpop.f32.mrb[0].mxu0  ;;  %v818_v44 = vpop.f32.mrb[1].mxu1 }
 0x11b   : > { %v930_v42 = vadd.f32 %v929_v40, %v816_v39  ;;  %v931_v45 = vpop.f32.mrb[1].mxu0  ;;  %v820_v48 = vpop.f32.mrb[2].mxu1 }
 0x11c   : > { %v932_v46 = vadd.f32 %v931_v45, %v818_v44  ;;  %v933_v49 = vpop.f32.mrb[2].mxu0  ;;  %v822_v52 = vpop.f32.mrb[3].mxu1 }
 0x11d   : > { %v1020_v50 = vmul.f32 %v1906_v38, %v930_v42  ;;  %v934_v51 = vadd.f32 %v933_v49, %v820_v48  ;;  %v935_v53 = vpop.f32.mrb[3].mxu0 }
 0x11e   : > { %v1021_v54 = vmul.f32 %v1908_v41, %v932_v46  ;;  %v936_v55 = vadd.f32 %v935_v53, %v822_v52 }
 0x11f   : > { %v1064_v56 = vadd.f32 %v1910_v43, %v1020_v50  ;;  %v1022_v57 = vmul.f32 %v1906_v38, %v934_v51 }
 0x120   : > { %v1065_v58 = vadd.f32 %v1912_v47, %v1021_v54  ;;  %v1023_v59 = vmul.f32 %v1908_v41, %v936_v55 }
 0x121   : > { %v1096_v60 = vmax.f32 %v1064_v56, 0.0  ;;  %v1066_v61 = vadd.f32 %v1910_v43, %v1022_v57  ;;  %v826_v0 = vpop.f32.mrb[4].mxu1 }
 0x122   : > { %v1097_v62 = vmax.f32 %v1065_v58, 0.0  ;;  %v1067_v63 = vadd.f32 %v1912_v47, %v1023_v59  ;;  %v939_v1 = vpop.f32.mrb[4].mxu0  ;;  %v828_v4 = vpop.f32.mrb[5].mxu1 }
 0x123   : > { %v1098_v2 = vmax.f32 %v1066_v61, 0.0  ;;  %v940_v3 = vadd.f32 %v939_v1, %v826_v0  ;;  %v941_v5 = vpop.f32.mrb[5].mxu0  ;;  %v830_v9 = vpop.f32.mrb[6].mxu1 }
 0x124   : > { %v1425_v6 = vpack.c.bf16 %v1097_v62, %v1096_v60  ;;  %v1099_v7 = vmax.f32 %v1067_v63, 0.0  ;;  %v942_v8 = vadd.f32 %v941_v5, %v828_v4  ;;  %v943_v10 = vpop.f32.mrb[6].mxu0  ;;  %v832_v13 = vpop.f32.mrb[7].mxu1 }
 0x125   : > { %v1024_v11 = vmul.f32 %v1906_v38, %v940_v3  ;;  %v944_v12 = vadd.f32 %v943_v10, %v830_v9  ;;  %v945_v14 = vpop.f32.mrb[7].mxu0 }
 0x126   : > { %1224 = vst [vmem:[%s1926_s11] sm:$0xff] %v1425_v6  ;;  %v1426_v15 = vpack.c.bf16 %v1099_v7, %v1098_v2  ;;  %v1025_v16 = vmul.f32 %v1908_v41, %v942_v8  ;;  %v946_v17 = vadd.f32 %v945_v14, %v832_v13 }
 0x127   : > { %v1068_v18 = vadd.f32 %v1910_v43, %v1024_v11  ;;  %v1026_v19 = vmul.f32 %v1906_v38, %v944_v12 }
 0x128   : > { %1225 = vst [vmem:[%s1926_s11 + $0x8] sm:$0xff] %v1426_v15  ;;  %v1069_v20 = vadd.f32 %v1912_v47, %v1025_v16  ;;  %v1027_v21 = vmul.f32 %v1908_v41, %v946_v17 }
 0x129   : > { %v1100_v22 = vmax.f32 %v1068_v18, 0.0  ;;  %v1070_v23 = vadd.f32 %v1910_v43, %v1026_v19  ;;  %v836_v26 = vpop.f32.mrb[8].mxu1 }
 0x12a   : > { %v1101_v24 = vmax.f32 %v1069_v20, 0.0  ;;  %v1071_v25 = vadd.f32 %v1912_v47, %v1027_v21  ;;  %v949_v27 = vpop.f32.mrb[8].mxu0  ;;  %v838_v30 = vpop.f32.mrb[9].mxu1 }
 0x12b   : > { %v1102_v28 = vmax.f32 %v1070_v23, 0.0  ;;  %v950_v29 = vadd.f32 %v949_v27, %v836_v26  ;;  %v951_v31 = vpop.f32.mrb[9].mxu0  ;;  %v840_v35 = vpop.f32.mrb[10].mxu1 }
 0x12c   : > { %v1427_v32 = vpack.c.bf16 %v1101_v24, %v1100_v22  ;;  %v1103_v33 = vmax.f32 %v1071_v25, 0.0  ;;  %v952_v34 = vadd.f32 %v951_v31, %v838_v30  ;;  %v953_v36 = vpop.f32.mrb[10].mxu0  ;;  %v842_v40 = vpop.f32.mrb[11].mxu1 }
 0x12d   : > { %v1028_v37 = vmul.f32 %v1906_v38, %v950_v29  ;;  %v954_v39 = vadd.f32 %v953_v36, %v840_v35  ;;  %v955_v42 = vpop.f32.mrb[11].mxu0 }
 0x12e   : > { %1226 = vst [vmem:[%s1926_s11 + $0x10] sm:$0xff] %v1427_v32  ;;  %v1428_v44 = vpack.c.bf16 %v1103_v33, %v1102_v28  ;;  %v1029_v45 = vmul.f32 %v1908_v41, %v952_v34  ;;  %v956_v46 = vadd.f32 %v955_v42, %v842_v40 }
 0x12f   : > { %v1072_v48 = vadd.f32 %v1910_v43, %v1028_v37  ;;  %v1030_v49 = vmul.f32 %v1906_v38, %v954_v39 }
 0x130   : > { %1227 = vst [vmem:[%s1926_s11 + $0x18] sm:$0xff] %v1428_v44  ;;  %v1073_v50 = vadd.f32 %v1912_v47, %v1029_v45  ;;  %v1031_v51 = vmul.f32 %v1908_v41, %v956_v46 }
 0x131   : > { %v1104_v52 = vmax.f32 %v1072_v48, 0.0  ;;  %v1074_v53 = vadd.f32 %v1910_v43, %v1030_v49  ;;  %v846_v56 = vpop.f32.mrb[12].mxu1 }
 0x132   : > { %v1105_v54 = vmax.f32 %v1073_v50, 0.0  ;;  %v1075_v55 = vadd.f32 %v1912_v47, %v1031_v51  ;;  %v959_v57 = vpop.f32.mrb[12].mxu0  ;;  %v848_v60 = vpop.f32.mrb[13].mxu1 }
 0x133   : > { %v1106_v58 = vmax.f32 %v1074_v53, 0.0  ;;  %v960_v59 = vadd.f32 %v959_v57, %v846_v56  ;;  %v961_v61 = vpop.f32.mrb[13].mxu0  ;;  %v850_v1 = vpop.f32.mrb[14].mxu1 }
 0x134   : > { %v1429_v62 = vpack.c.bf16 %v1105_v54, %v1104_v52  ;;  %v1107_v63 = vmax.f32 %v1075_v55, 0.0  ;;  %v962_v0 = vadd.f32 %v961_v61, %v848_v60  ;;  %v963_v2 = vpop.f32.mrb[14].mxu0  ;;  %v852_v5 = vpop.f32.mrb[15].mxu1 }
 0x135   : > { %v1032_v3 = vmul.f32 %v1906_v38, %v960_v59  ;;  %v964_v4 = vadd.f32 %v963_v2, %v850_v1  ;;  %v965_v6 = vpop.f32.mrb[15].mxu0 }
 0x136   : > { %1228 = vst [vmem:[%s1926_s11 + $0x20] sm:$0xff] %v1429_v62  ;;  %v1430_v7 = vpack.c.bf16 %v1107_v63, %v1106_v58  ;;  %v1033_v8 = vmul.f32 %v1908_v41, %v962_v0  ;;  %v966_v9 = vadd.f32 %v965_v6, %v852_v5 }
 0x137   : > { %v1076_v10 = vadd.f32 %v1910_v43, %v1032_v3  ;;  %v1034_v11 = vmul.f32 %v1906_v38, %v964_v4 }
 0x138   : > { %1229 = vst [vmem:[%s1926_s11 + $0x28] sm:$0xff] %v1430_v7  ;;  %v1077_v12 = vadd.f32 %v1912_v47, %v1033_v8  ;;  %v1035_v13 = vmul.f32 %v1908_v41, %v966_v9 }
 0x139   : > { %v1108_v14 = vmax.f32 %v1076_v10, 0.0  ;;  %v1078_v15 = vadd.f32 %v1910_v43, %v1034_v11  ;;  %v856_v18 = vpop.f32.mrb[16].mxu1 }
 0x13a   : > { %v1109_v16 = vmax.f32 %v1077_v12, 0.0  ;;  %v1079_v17 = vadd.f32 %v1912_v47, %v1035_v13  ;;  %v969_v19 = vpop.f32.mrb[16].mxu0  ;;  %v858_v22 = vpop.f32.mrb[17].mxu1 }
 0x13b   : > { %v1110_v20 = vmax.f32 %v1078_v15, 0.0  ;;  %v970_v21 = vadd.f32 %v969_v19, %v856_v18  ;;  %v971_v23 = vpop.f32.mrb[17].mxu0  ;;  %v860_v27 = vpop.f32.mrb[18].mxu1 }
 0x13c   : > { %v1431_v24 = vpack.c.bf16 %v1109_v16, %v1108_v14  ;;  %v1111_v25 = vmax.f32 %v1079_v17, 0.0  ;;  %v972_v26 = vadd.f32 %v971_v23, %v858_v22  ;;  %v973_v28 = vpop.f32.mrb[18].mxu0  ;;  %v862_v31 = vpop.f32.mrb[19].mxu1 }
 0x13d   : > { %v1036_v29 = vmul.f32 %v1906_v38, %v970_v21  ;;  %v974_v30 = vadd.f32 %v973_v28, %v860_v27  ;;  %v975_v32 = vpop.f32.mrb[19].mxu0 }
 0x13e   : > { %1230 = vst [vmem:[%s1926_s11 + $0x30] sm:$0xff] %v1431_v24  ;;  %v1432_v33 = vpack.c.bf16 %v1111_v25, %v1110_v20  ;;  %v1037_v34 = vmul.f32 %v1908_v41, %v972_v26  ;;  %v976_v35 = vadd.f32 %v975_v32, %v862_v31 }
 0x13f   : > { %v1080_v36 = vadd.f32 %v1910_v43, %v1036_v29  ;;  %v1038_v37 = vmul.f32 %v1906_v38, %v974_v30 }
 0x140   : > { %1231 = vst [vmem:[%s1926_s11 + $0x38] sm:$0xff] %v1432_v33  ;;  %v1081_v39 = vadd.f32 %v1912_v47, %v1037_v34  ;;  %v1039_v40 = vmul.f32 %v1908_v41, %v976_v35 }
 0x141   : > { %v1112_v42 = vmax.f32 %v1080_v36, 0.0  ;;  %v1082_v44 = vadd.f32 %v1910_v43, %v1038_v37  ;;  %v866_v48 = vpop.f32.mrb[20].mxu1 }
 0x142   : > { %v1113_v45 = vmax.f32 %v1081_v39, 0.0  ;;  %v1083_v46 = vadd.f32 %v1912_v47, %v1039_v40  ;;  %v979_v49 = vpop.f32.mrb[20].mxu0  ;;  %v868_v52 = vpop.f32.mrb[21].mxu1 }
 0x143   : > { %v1114_v50 = vmax.f32 %v1082_v44, 0.0  ;;  %v980_v51 = vadd.f32 %v979_v49, %v866_v48  ;;  %v981_v53 = vpop.f32.mrb[21].mxu0  ;;  %v870_v57 = vpop.f32.mrb[22].mxu1 }
 0x144   : > { %v1433_v54 = vpack.c.bf16 %v1113_v45, %v1112_v42  ;;  %v1115_v55 = vmax.f32 %v1083_v46, 0.0  ;;  %v982_v56 = vadd.f32 %v981_v53, %v868_v52  ;;  %v983_v58 = vpop.f32.mrb[22].mxu0  ;;  %v872_v61 = vpop.f32.mrb[23].mxu1 }
 0x145   : > { %v1040_v59 = vmul.f32 %v1906_v38, %v980_v51  ;;  %v984_v60 = vadd.f32 %v983_v58, %v870_v57  ;;  %v985_v62 = vpop.f32.mrb[23].mxu0 }
 0x146   : > { %1232 = vst [vmem:[%s1926_s11 + $0x40] sm:$0xff] %v1433_v54  ;;  %v1434_v63 = vpack.c.bf16 %v1115_v55, %v1114_v50  ;;  %v1041_v0 = vmul.f32 %v1908_v41, %v982_v56  ;;  %v986_v1 = vadd.f32 %v985_v62, %v872_v61 }
 0x147   : > { %v1084_v2 = vadd.f32 %v1910_v43, %v1040_v59  ;;  %v1042_v3 = vmul.f32 %v1906_v38, %v984_v60 }
 0x148   : > { %1233 = vst [vmem:[%s1926_s11 + $0x48] sm:$0xff] %v1434_v63  ;;  %v1085_v4 = vadd.f32 %v1912_v47, %v1041_v0  ;;  %v1043_v5 = vmul.f32 %v1908_v41, %v986_v1 }
 0x149   : > { %v1116_v6 = vmax.f32 %v1084_v2, 0.0  ;;  %v1086_v7 = vadd.f32 %v1910_v43, %v1042_v3  ;;  %v876_v10 = vpop.f32.mrb[24].mxu1 }
 0x14a   : > { %v1117_v8 = vmax.f32 %v1085_v4, 0.0  ;;  %v1087_v9 = vadd.f32 %v1912_v47, %v1043_v5  ;;  %v989_v11 = vpop.f32.mrb[24].mxu0  ;;  %v878_v14 = vpop.f32.mrb[25].mxu1 }
 0x14b   : > { %v1118_v12 = vmax.f32 %v1086_v7, 0.0  ;;  %v990_v13 = vadd.f32 %v989_v11, %v876_v10  ;;  %v991_v15 = vpop.f32.mrb[25].mxu0  ;;  %v880_v19 = vpop.f32.mrb[26].mxu1 }
 0x14c   : > { %v1435_v16 = vpack.c.bf16 %v1117_v8, %v1116_v6  ;;  %v1119_v17 = vmax.f32 %v1087_v9, 0.0  ;;  %v992_v18 = vadd.f32 %v991_v15, %v878_v14  ;;  %v993_v20 = vpop.f32.mrb[26].mxu0  ;;  %v882_v23 = vpop.f32.mrb[27].mxu1 }
 0x14d   : > { %v1044_v21 = vmul.f32 %v1906_v38, %v990_v13  ;;  %v994_v22 = vadd.f32 %v993_v20, %v880_v19  ;;  %v995_v24 = vpop.f32.mrb[27].mxu0 }
 0x14e   : > { %1234 = vst [vmem:[%s1926_s11 + $0x50] sm:$0xff] %v1435_v16  ;;  %v1436_v25 = vpack.c.bf16 %v1119_v17, %v1118_v12  ;;  %v1045_v26 = vmul.f32 %v1908_v41, %v992_v18  ;;  %v996_v27 = vadd.f32 %v995_v24, %v882_v23 }
 0x14f   : > { %v1088_v28 = vadd.f32 %v1910_v43, %v1044_v21  ;;  %v1046_v29 = vmul.f32 %v1906_v38, %v994_v22 }
 0x150   : > { %1235 = vst [vmem:[%s1926_s11 + $0x58] sm:$0xff] %v1436_v25  ;;  %v1089_v30 = vadd.f32 %v1912_v47, %v1045_v26  ;;  %v1047_v31 = vmul.f32 %v1908_v41, %v996_v27 }
 0x151   : > { %v1120_v32 = vmax.f32 %v1088_v28, 0.0  ;;  %v1090_v33 = vadd.f32 %v1910_v43, %v1046_v29  ;;  %v886_v36 = vpop.f32.mrb[28].mxu1 }
 0x152   : > { %v1121_v34 = vmax.f32 %v1089_v30, 0.0  ;;  %v1091_v35 = vadd.f32 %v1912_v47, %v1047_v31  ;;  %v999_v37 = vpop.f32.mrb[28].mxu0  ;;  %v888_v42 = vpop.f32.mrb[29].mxu1 }
 0x153   : > { %v1122_v39 = vmax.f32 %v1090_v33, 0.0  ;;  %v1000_v40 = vadd.f32 %v999_v37, %v886_v36  ;;  %v1001_v44 = vpop.f32.mrb[29].mxu0  ;;  %v890_v49 = vpop.f32.mrb[30].mxu1 }
 0x154   : > { %v1437_v45 = vpack.c.bf16 %v1121_v34, %v1120_v32  ;;  %v1123_v46 = vmax.f32 %v1091_v35, 0.0  ;;  %v1002_v48 = vadd.f32 %v1001_v44, %v888_v42  ;;  %v1003_v50 = vpop.f32.mrb[30].mxu0  ;;  %v892_v53 = vpop.f32.mrb[31].mxu1 }
 0x155   : > { %v1048_v51 = vmul.f32 %v1906_v38, %v1000_v40  ;;  %v1004_v52 = vadd.f32 %v1003_v50, %v890_v49  ;;  %v1005_v54 = vpop.f32.mrb[31].mxu0 }
 0x156   : > { %1236 = vst [vmem:[%s1926_s11 + $0x60] sm:$0xff] %v1437_v45  ;;  %v1438_v55 = vpack.c.bf16 %v1123_v46, %v1122_v39  ;;  %v1049_v56 = vmul.f32 %v1908_v41, %v1002_v48  ;;  %v1006_v57 = vadd.f32 %v1005_v54, %v892_v53 }
 0x157   : > { %v1092_v58 = vadd.f32 %v1910_v43, %v1048_v51  ;;  %v1050_v59 = vmul.f32 %v1906_v38, %v1004_v52 }
 0x158   : > { %1237 = vst [vmem:[%s1926_s11 + $0x68] sm:$0xff] %v1438_v55  ;;  %v1093_v60 = vadd.f32 %v1912_v47, %v1049_v56  ;;  %v1051_v61 = vmul.f32 %v1908_v41, %v1006_v57 }
 0x159   : > { %v1124_v62 = vmax.f32 %v1092_v58, 0.0  ;;  %v1094_v63 = vadd.f32 %v1910_v43, %v1050_v59 }
 0x15a   : > { %v1125_v0 = vmax.f32 %v1093_v60, 0.0  ;;  %v1095_v1 = vadd.f32 %v1912_v47, %v1051_v61 }
 0x15b   : > { %v1126_v2 = vmax.f32 %v1094_v63, 0.0 }
 0x15c   : > { %v1439_v3 = vpack.c.bf16 %v1125_v0, %v1124_v62  ;;  %v1127_v4 = vmax.f32 %v1095_v1, 0.0 }
 0x15e   : > { %1238 = vst [vmem:[%s1926_s11 + $0x70] sm:$0xff] %v1439_v3  ;;  %v1440_v5 = vpack.c.bf16 %v1127_v4, %v1126_v2 }
 0x160   : > { %1239 = vst [vmem:[%s1926_s11 + $0x78] sm:$0xff] %v1440_v5 }
 0x161 PF: > { %s14_s15 = sadd.s32 1, %s1631_s15  }
 0x162   : > { %p11_p4 = scmp.ge.s32.totalorder %s14_s15, 4  }
 0x164   :  { %13 = sbr.rel (!%p11_p4) target bundleno = 1 (0x1), region = 66 }

// kernel: planner_forward.15
= control target key start
LH: loop header
LB: loop body
LE: loop exit
PB: predicated region body
PF: predicated region fallthrough
CT: control target
= control target key end

     0   :  { %vm17_vm0 = vcmask 523264   ;;  %s456_s0 = inlined_call_operand.vmem [shape: f32[2,32,64], index: 0, kind: input, shape index: {}]   ;;  %s457_s1 = inlined_call_operand.hbm [shape: f32[2,2], index: 1, kind: output, shape index: {}]  }
   0x1   :  { %v357_v0 = vld [vmem:[%s456_s0 + $0x10] sm:$0xff]  ;;  %v9_v1 = vld [vmem:[%s456_s0] sm:$0xff]  ;;  %v365_v2 = vld [vmem:[%s456_s0 + $0x18] sm:$0xff] }
   0x2   :  { %v24_v3 = vsel %vm17_vm0, %v357_v0, -inf  ;;  %v18_v4 = vsel %vm17_vm0, %v9_v1, -inf  ;;  %v10_v5 = vld [vmem:[%s456_s0 + $0x8] sm:$0xff]  ;;  %v27_v6 = vsel %vm17_vm0, %v365_v2, -inf }
   0x3   :  { %25 = vmax.xlane.f32.xlu1 %v24_v3  ;;  %19 = vmax.xlane.f32.xlu0 %v18_v4  ;;  %v21_v7 = vsel %vm17_vm0, %v10_v5, -inf }
   0x4   :  { %6 = vsyncpa [#allocation3], 0  ;;  %v14_v8 = vld [vmem:[%s456_s0 + $0x28] sm:$0xff]  ;;  %v13_v9 = vld [vmem:[%s456_s0 + $0x20] sm:$0xff]  ;;  %vm264_vm1 = vcmask 1041409   ;;  %vm267_vm2 = vcmask 1024  }
   0x5   :  { %v33_v10 = vsel %vm17_vm0, %v14_v8, -inf  ;;  %v30_v11 = vsel %vm17_vm0, %v13_v9, -inf  ;;  %v16_v12 = vld [vmem:[%s456_s0 + $0x38] sm:$0xff]  ;;  %v15_v13 = vld [vmem:[%s456_s0 + $0x30] sm:$0xff]  ;;  %s343_s0 = smov [#allocation2]   ;;  %vm277_vm3 = vcmask 9224  }
   0x6   :  { %v39_v14 = vsel %vm17_vm0, %v16_v12, -inf  ;;  %v36_v15 = vsel %vm17_vm0, %v15_v13, -inf  ;;  %s285_s22 = sshll.u32 %s343_s0, 4  ;;  %s286_s22 = int_to_ptr.vmem [resolvable:$true] %s285_s22 }
   0x7   :  { %28 = vmax.xlane.f32.xlu1 %v27_v6  ;;  %22 = vmax.xlane.f32.xlu0 %v21_v7  ;;  %s319_s23 = scalar_lea.vmem %s286_s22, 32  ;;  %p324_p1 = scmp.lt.s32.totalorder %s286_s22, %s286_s22 }
   0x8   :  { %p320_p0 = scmp.ne.s32.totalorder %s286_s22, %s319_s23  ;;  %p325_p2 = scmp.lt.s32.totalorder %s319_s23, %s319_s23 }
   0xa   :  { %p326_p3 = por %p325_p2, %p324_p1 }
   0xb   :  { %34 = vmax.xlane.f32.xlu1 %v33_v10  ;;  %31 = vmax.xlane.f32.xlu0 %v30_v11 }
   0xc   :  { %p327_p4 = pnand %p326_p3, %p320_p0 }
   0xf   :  { %40 = vmax.xlane.f32.xlu1 %v39_v14  ;;  %37 = vmax.xlane.f32.xlu0 %v36_v15 }
  0x90   :  { %v26_v16 = vpop.xlane.xlu1 %25  ;;  %v20_v17 = vpop.xlane.xlu0 %19 }
  0x91   :  { %v42_v20 = vmax.f32 %v20_v17, %v26_v16 }
  0x94   :  { %v29_v18 = vpop.xlane.xlu1 %28  ;;  %v23_v19 = vpop.xlane.xlu0 %22 }
  0x95   :  { %v43_v21 = vmax.f32 %v23_v19, %v29_v18 }
  0x97   :  { %v44_v22 = vmax.f32 %v42_v20, %v43_v21 }
  0x98   :  { %v35_v23 = vpop.xlane.xlu1 %34  ;;  %v32_v24 = vpop.xlane.xlu0 %31 }
  0x99   :  { %v45_v25 = vrot.slane %v44_v22, 4 }
  0x9b   :  { %v46_v26 = vmax.f32 %v44_v22, %v45_v25 }
  0x9c   :  { %v41_v27 = vpop.xlane.xlu1 %40  ;;  %v38_v28 = vpop.xlane.xlu0 %37 }
  0x9d   :  { %v47_v29 = vrot.slane %v46_v26, 2  ;;  %v52_v30 = vmax.f32 %v35_v23, %v41_v27  ;;  %v51_v31 = vmax.f32 %v32_v24, %v38_v28 }
  0x9f   :  { %v48_v32 = vmax.f32 %v46_v26, %v47_v29  ;;  %v53_v33 = vmax.f32 %v51_v31, %v52_v30 }
  0xa1   :  { %v49_v34 = vrot.slane %v48_v32, 1  ;;  %v54_v35 = vrot.slane %v53_v33, 4 }
  0xa3   :  { %v50_v36 = vmax.f32 %v48_v32, %v49_v34  ;;  %v55_v37 = vmax.f32 %v53_v33, %v54_v35  ;;  %v136_v32 = vlaneseq }
  0xa5   :  { %v56_v38 = vrot.slane %v55_v37, 2  ;;  %v61_v39 = vsub.f32 %v10_v5, %v50_v36  ;;  %v60_v40 = vsub.f32 %v9_v1, %v50_v36  ;;  %v62_v46 = vsub.f32 %v357_v0, %v50_v36 }
  0xa6   :  { %v63_v55 = vsub.f32 %v365_v2, %v50_v36  ;;  %v137_v36 = vand.u32 127, %v136_v32 }
  0xa7   :  { %v57_v41 = vmax.f32 %v55_v37, %v56_v38  ;;  %v70_v42 = vmul.f32 1.442695, %v61_v39  ;;  %v68_v43 = vmul.f32 1.442695, %v60_v40  ;;  %v72_v54 = vmul.f32 1.442695, %v62_v46 }
  0xa8   :  { %v74_v60 = vmul.f32 1.442695, %v63_v55  ;;  %v142_v38 = vshrl.u32 %v136_v32, 7  ;;  %v138_v39 = vcvt.s32.f32 %v137_v36 }
  0xa9   :  { %v58_v44 = vrot.slane %v57_v41, 1  ;;  %299 = vpow2.f32 %v70_v42 }
  0xaa   :  { %301 = vpow2.f32 %v68_v43  ;;  %v143_v40 = vadd.s32 8, %v142_v38  ;;  %v146_v43 = vcvt.s32.f32 %v142_v38 }
  0xab   :  { %v59_v45 = vmax.f32 %v57_v41, %v58_v44  ;;  %v139_v41 = vmul.f32 0.031746034, %v138_v39 }
  0xac   :  { %v147_v42 = vcvt.s32.f32 %v143_v40 }
  0xad   :  { %v65_v47 = vsub.f32 %v14_v8, %v59_v45  ;;  %v64_v48 = vsub.f32 %v13_v9, %v59_v45  ;;  %v66_v49 = vsub.f32 %v15_v13, %v59_v45  ;;  %v67_v53 = vsub.f32 %v16_v12, %v59_v45 }
  0xae   :  { %v293_v45 = vadd.f32 -1.0, %v139_v41 }
  0xaf   :  { %v78_v50 = vmul.f32 1.442695, %v65_v47  ;;  %v76_v51 = vmul.f32 1.442695, %v64_v48  ;;  %v80_v52 = vmul.f32 1.442695, %v66_v49 }
  0xb0   :  { %v82_v57 = vmul.f32 1.442695, %v67_v53  ;;  %v151_v47 = vmul.f32 0.06451613, %v147_v42  ;;  %v150_v48 = vmul.f32 0.06451613, %v146_v43 }
  0xb1   :  { %303 = vpow2.f32 %v78_v50 }
  0xb2   :  { %305 = vpow2.f32 %v76_v51  ;;  %v295_v55 = vadd.f32 -1.0, %v151_v47 }
  0xb3   :  { %v394_v56 = vpop.eup %299  ;;  %307 = vpow2.f32 %v80_v52 }
  0xb4   :  { %v396_v58 = vpop.eup %301  ;;  %v87_v59 = vsel %vm17_vm0, %v394_v56, 0.0  ;;  %309 = vpow2.f32 %v72_v54 }
  0xb5   :  { %88 = vadd.xlane.f32.xlu1 %v87_v59  ;;  %v84_v61 = vsel %vm17_vm0, %v396_v58, 0.0  ;;  %311 = vpow2.f32 %v82_v57  ;;  %v294_v57 = vadd.f32 -1.0, %v150_v48  ;;  %v144_v59 = vadd.s32 16, %v142_v38 }
  0xb6   :  { %85 = vadd.xlane.f32.xlu0 %v84_v61  ;;  %313 = vpow2.f32 %v74_v60 }
  0xbb   :  { %v304_v62 = vpop.eup %303 }
  0xbc   :  { %v306_v63 = vpop.eup %305  ;;  %v99_v0 = vsel %vm17_vm0, %v304_v62, 0.0 }
  0xbd   :  { %v403_v1 = vpop.eup %307  ;;  %100 = vadd.xlane.f32.xlu1 %v99_v0  ;;  %v96_v2 = vsel %vm17_vm0, %v306_v63, 0.0 }
  0xbe   :  { %v406_v3 = vpop.eup %309  ;;  %97 = vadd.xlane.f32.xlu0 %v96_v2  ;;  %v102_v4 = vsel %vm17_vm0, %v403_v1, 0.0 }
  0xbf   :  { %v410_v5 = vpop.eup %311  ;;  %v90_v6 = vsel %vm17_vm0, %v406_v3, 0.0 }
  0xc0   :  { %v414_v7 = vpop.eup %313  ;;  %v105_v8 = vsel %vm17_vm0, %v410_v5, 0.0 }
  0xc1   :  { %103 = vadd.xlane.f32.xlu1 %v102_v4  ;;  %v93_v9 = vsel %vm17_vm0, %v414_v7, 0.0  ;;  %v148_v4 = vcvt.s32.f32 %v144_v59 }
  0xc2   :  { %91 = vadd.xlane.f32.xlu0 %v90_v6 }
  0xc5   :  { %106 = vadd.xlane.f32.xlu1 %v105_v8 }
  0xc6   :  { %94 = vadd.xlane.f32.xlu0 %v93_v9  ;;  %v152_v9 = vmul.f32 0.06451613, %v148_v4 }
 0x142   :  { %v89_v10 = vpop.xlane.xlu1 %88 }
 0x143   :  { %v86_v11 = vpop.xlane.xlu0 %85 }
 0x144   :  { %v108_v17 = vadd.f32 %v89_v10, %v86_v11  ;;  %v145_v10 = vadd.s32 24, %v142_v38 }
 0x14a   :  { %v101_v12 = vpop.xlane.xlu1 %100 }
 0x14b   :  { %v98_v13 = vpop.xlane.xlu0 %97 }
 0x14c   :  { %v117_v15 = vadd.f32 %v101_v12, %v98_v13 }
 0x14e   :  { %v104_v14 = vpop.xlane.xlu1 %103 }
 0x14f   :  { %v92_v16 = vpop.xlane.xlu0 %91  ;;  %v118_v18 = vadd.f32 %v117_v15, %v104_v14  ;;  %v296_v15 = vadd.f32 -1.0, %v152_v9 }
 0x150   :  { %v109_v19 = vadd.f32 %v108_v17, %v92_v16  ;;  %v149_v16 = vcvt.s32.f32 %v145_v10 }
 0x152   :  { %v107_v20 = vpop.xlane.xlu1 %106 }
 0x153   :  { %v119_v21 = vadd.f32 %v118_v18, %v107_v20  ;;  %v95_v22 = vpop.xlane.xlu0 %94 }
 0x154   :  { %v110_v23 = vadd.f32 %v109_v19, %v95_v22 }
 0x155   :  { %v120_v24 = vrot.slane %v119_v21, 4 }
 0x156   :  { %v111_v25 = vrot.slane %v110_v23, 4 }
 0x157   :  { %v121_v26 = vadd.f32 %v120_v24, %v119_v21  ;;  %v153_v21 = vmul.f32 0.06451613, %v149_v16 }
 0x158   :  { %v112_v27 = vadd.f32 %v111_v25, %v110_v23 }
 0x159   :  { %v122_v28 = vrot.slane %v121_v26, 2 }
 0x15a   :  { %v113_v29 = vrot.slane %v112_v27, 2 }
 0x15b   :  { %v123_v30 = vadd.f32 %v122_v28, %v121_v26  ;;  %v297_v26 = vadd.f32 -1.0, %v153_v21 }
 0x15c   :  { %v114_v31 = vadd.f32 %v113_v29, %v112_v27 }
 0x15d   :  { %v124_v33 = vrot.slane %v123_v30, 1 }
 0x15e   :  { %v115_v34 = vrot.slane %v114_v31, 1 }
 0x15f   :  { %v125_v35 = vadd.f32 %v124_v33, %v123_v30 }
 0x160   :  { %v116_v37 = vadd.f32 %v115_v34, %v114_v31 }
 0x161   :  { %315 = vrcp.f32 %v125_v35 }
 0x162   :  { %317 = vrcp.f32 %v116_v37 }
 0x16b   :  { %v316_v44 = vpop.eup %315 }
 0x16c   :  { %v318_v46 = vpop.eup %317  ;;  %v133_v51 = vmul.f32 %v316_v44, %v304_v62  ;;  %v132_v52 = vmul.f32 %v316_v44, %v306_v63  ;;  %v134_v6 = vmul.f32 %v316_v44, %v403_v1 }
 0x16d   :  { %v128_v49 = vmul.f32 %v318_v46, %v394_v56  ;;  %v127_v50 = vmul.f32 %v318_v46, %v396_v58  ;;  %v129_v8 = vmul.f32 %v318_v46, %v406_v3  ;;  %v135_v3 = vmul.f32 %v316_v44, %v410_v5 }
 0x16e   :  { %v163_v0 = vmul.f32 %v293_v45, %v133_v51  ;;  %v162_v2 = vmul.f32 %v293_v45, %v132_v52  ;;  %v213_v13 = vmul.f32 %v295_v55, %v133_v51  ;;  %v212_v14 = vmul.f32 %v294_v57, %v132_v52 }
 0x16f   :  { %v159_v53 = vmul.f32 %v293_v45, %v128_v49  ;;  %v158_v54 = vmul.f32 %v293_v45, %v127_v50  ;;  %v209_v62 = vmul.f32 %v295_v55, %v128_v49  ;;  %v208_v63 = vmul.f32 %v294_v57, %v127_v50 }
 0x170   :  { %v181_v56 = vsel %vm17_vm0, %v163_v0, 0.0  ;;  %v178_v58 = vsel %vm17_vm0, %v162_v2, 0.0  ;;  %v231_v17 = vsel %vm17_vm0, %v213_v13, 0.0  ;;  %v228_v18 = vsel %vm17_vm0, %v212_v14, 0.0 }
 0x171   :  { %v169_v60 = vsel %vm17_vm0, %v159_v53, 0.0  ;;  %v166_v61 = vsel %vm17_vm0, %v158_v54, 0.0  ;;  %v219_v11 = vsel %vm17_vm0, %v209_v62, 0.0  ;;  %v216_v12 = vsel %vm17_vm0, %v208_v63, 0.0 }
 0x172   :  { %170 = vadd.xlane.f32.xlu1 %v169_v60  ;;  %167 = vadd.xlane.f32.xlu0 %v166_v61  ;;  %v164_v19 = vmul.f32 %v293_v45, %v134_v6  ;;  %v160_v1 = vmul.f32 %v293_v45, %v129_v8  ;;  %v130_v20 = vmul.f32 %v318_v46, %v414_v7 }
 0x173   :  { %v214_v24 = vmul.f32 %v296_v15, %v134_v6  ;;  %v210_v25 = vmul.f32 %v296_v15, %v129_v8  ;;  %v165_v29 = vmul.f32 %v293_v45, %v135_v3  ;;  %v215_v31 = vmul.f32 %v297_v26, %v135_v3 }
 0x174   :  { %v184_v22 = vsel %vm17_vm0, %v164_v19, 0.0  ;;  %v172_v23 = vsel %vm17_vm0, %v160_v1, 0.0  ;;  %v161_v30 = vmul.f32 %v293_v45, %v130_v20  ;;  %v211_v32 = vmul.f32 %v297_v26, %v130_v20 }
 0x175   :  { %v234_v27 = vsel %vm17_vm0, %v214_v24, 0.0  ;;  %v222_v28 = vsel %vm17_vm0, %v210_v25, 0.0  ;;  %v187_v5 = vsel %vm17_vm0, %v165_v29, 0.0  ;;  %v237_v33 = vsel %vm17_vm0, %v215_v31, 0.0 }
 0x176   :  { %182 = vadd.xlane.f32.xlu1 %v181_v56  ;;  %179 = vadd.xlane.f32.xlu0 %v178_v58  ;;  %v175_v7 = vsel %vm17_vm0, %v161_v30, 0.0  ;;  %v225_v34 = vsel %vm17_vm0, %v211_v32, 0.0 }
 0x17a   :  { %220 = vadd.xlane.f32.xlu1 %v219_v11  ;;  %217 = vadd.xlane.f32.xlu0 %v216_v12 }
 0x17e   :  { %232 = vadd.xlane.f32.xlu1 %v231_v17  ;;  %229 = vadd.xlane.f32.xlu0 %v228_v18 }
 0x182   :  { %185 = vadd.xlane.f32.xlu1 %v184_v22  ;;  %173 = vadd.xlane.f32.xlu0 %v172_v23 }
 0x186   :  { %235 = vadd.xlane.f32.xlu1 %v234_v27  ;;  %223 = vadd.xlane.f32.xlu0 %v222_v28 }
 0x18a   :  { %188 = vadd.xlane.f32.xlu1 %v187_v5  ;;  %176 = vadd.xlane.f32.xlu0 %v175_v7 }
 0x18e   :  { %238 = vadd.xlane.f32.xlu1 %v237_v33  ;;  %226 = vadd.xlane.f32.xlu0 %v225_v34 }
 0x1ff   :  { %v171_v35 = vpop.xlane.xlu1 %170  ;;  %v168_v36 = vpop.xlane.xlu0 %167 }
 0x200   :  { %v190_v47 = vadd.f32 %v171_v35, %v168_v36 }
 0x203   :  { %v183_v37 = vpop.xlane.xlu1 %182  ;;  %v180_v38 = vpop.xlane.xlu0 %179 }
 0x204   :  { %v199_v48 = vadd.f32 %v183_v37, %v180_v38 }
 0x207   :  { %v221_v39 = vpop.xlane.xlu1 %220  ;;  %v218_v40 = vpop.xlane.xlu0 %217 }
 0x208   :  { %v240_v53 = vadd.f32 %v221_v39, %v218_v40 }
 0x20b   :  { %v233_v41 = vpop.xlane.xlu1 %232  ;;  %v230_v42 = vpop.xlane.xlu0 %229 }
 0x20c   :  { %v249_v54 = vadd.f32 %v233_v41, %v230_v42 }
 0x20f   :  { %v186_v43 = vpop.xlane.xlu1 %185  ;;  %v174_v44 = vpop.xlane.xlu0 %173 }
 0x210   :  { %v200_v49 = vadd.f32 %v199_v48, %v186_v43  ;;  %v191_v50 = vadd.f32 %v190_v47, %v174_v44 }
 0x213   :  { %v236_v45 = vpop.xlane.xlu1 %235  ;;  %v224_v46 = vpop.xlane.xlu0 %223 }
 0x214   :  { %v250_v59 = vadd.f32 %v249_v54, %v236_v45  ;;  %v241_v60 = vadd.f32 %v240_v53, %v224_v46 }
 0x217   :  { %v189_v51 = vpop.xlane.xlu1 %188  ;;  %v177_v52 = vpop.xlane.xlu0 %176 }
 0x218   :  { %v201_v55 = vadd.f32 %v200_v49, %v189_v51  ;;  %v192_v57 = vadd.f32 %v191_v50, %v177_v52 }
 0x21a   :  { %v202_v61 = vrot.slane %v201_v55, 4  ;;  %v193_v0 = vrot.slane %v192_v57, 4 }
 0x21b   :  { %v239_v2 = vpop.xlane.xlu1 %238  ;;  %v227_v4 = vpop.xlane.xlu0 %226 }
 0x21c   :  { %v203_v56 = vadd.f32 %v202_v61, %v201_v55  ;;  %v194_v58 = vadd.f32 %v193_v0, %v192_v57  ;;  %v251_v62 = vadd.f32 %v250_v59, %v239_v2  ;;  %v242_v63 = vadd.f32 %v241_v60, %v227_v4 }
 0x21e   :  { %v204_v6 = vrot.slane %v203_v56, 2  ;;  %v195_v8 = vrot.slane %v194_v58, 2  ;;  %v252_v9 = vrot.slane %v251_v62, 4  ;;  %v243_v10 = vrot.slane %v242_v63, 4 }
 0x220   :  { %v205_v11 = vadd.f32 %v204_v6, %v203_v56  ;;  %v196_v12 = vadd.f32 %v195_v8, %v194_v58  ;;  %v253_v13 = vadd.f32 %v252_v9, %v251_v62  ;;  %v244_v14 = vadd.f32 %v243_v10, %v242_v63 }
 0x222   :  { %v206_v15 = vrot.slane %v205_v11, 1  ;;  %v197_v16 = vrot.slane %v196_v12, 1  ;;  %v254_v17 = vrot.slane %v253_v13, 2  ;;  %v245_v18 = vrot.slane %v244_v14, 2 }
 0x224   :  { %v207_v19 = vadd.f32 %v206_v15, %v205_v11  ;;  %v198_v1 = vadd.f32 %v197_v16, %v196_v12  ;;  %v255_v3 = vadd.f32 %v254_v17, %v253_v13  ;;  %v246_v20 = vadd.f32 %v245_v18, %v244_v14 }
 0x226   :  { %v259_v21 = vadd.f32 1.0, %v207_v19  ;;  %v258_v22 = vadd.f32 1.0, %v198_v1  ;;  %v256_v23 = vrot.slane %v255_v3, 1  ;;  %v247_v24 = vrot.slane %v246_v20, 1 }
 0x228   :  { %v261_v25 = vmul.f32 31.5, %v259_v21  ;;  %v260_v26 = vmul.f32 31.5, %v258_v22  ;;  %v257_v27 = vadd.f32 %v256_v23, %v255_v3  ;;  %v248_v28 = vadd.f32 %v247_v24, %v246_v20 }
 0x22a   :  { %v270_v29 = vadd.f32 1.0, %v257_v27  ;;  %v269_v30 = vadd.f32 1.0, %v248_v28  ;;  %v265_v5 = vsel %vm264_vm1, %v261_v25, %v260_v26 }
 0x22b   :  { %268 = vst.msk [vmem:[#allocation2] sm:$0x3] %vm267_vm2, %v265_v5 }
 0x22c   :  { %v272_v7 = vmul.f32 15.5, %v270_v29  ;;  %v271_v31 = vmul.f32 15.5, %v269_v30 }
 0x22e   :  { %v275_v32 = vsel %vm264_vm1, %v272_v7, %v271_v31 }
 0x22f   :  { %278 = vst.msk [vmem:[#allocation2] sm:$0x3] %vm277_vm3, %v275_v32 }
 0x230   :  { %330 = shalt.err (!%p327_p4)
}
 0x231   :  { %s331_s26 = scalar_lea.hbm %s457_s1, 32 }
 0x232   :  { %p332_p5 = scmp.ne.s32.totalorder %s457_s1, %s331_s26  ;;  %p335_p6 = scmp.lt.u32.totalorder %s331_s26, %s457_s1 }
 0x234   :  { %p337_p7 = pnand %p335_p6, %p332_p5 }
 0x236   :  { %340 = shalt.err (!%p337_p7)
}
 0x237   :  { %288 = dma.vmem_to_hbm [thread:$0]  %s286_s22, 32, %s457_s1, [#allocation3]  }
 0x238   :  { %341 = dma.done.wait [#allocation3], 32  }
 0x239   :  { %342 = vsyncadd [#allocation3], 4294967264 }
 0x23a   :  { %292 = vsyncpa [#allocation3], 1 }

// kernel: planner_forward.14
= control target key start
LH: loop header
LB: loop body
LE: loop exit
PB: predicated region body
PF: predicated region fallthrough
CT: control target
= control target key end

     0   :  { %s5125_s21 = smov 0   ;;  %s6295_s0 = inlined_call_operand.vmem [shape: bf16[1024,1024], index: 0, kind: input, shape index: {}]   ;;  %s6296_s1 = inlined_call_operand.vmem [shape: bf16[1024,128], index: 1, kind: input, shape index: {}]   ;;  %s6297_s2 = inlined_call_operand.vmem [shape: f32[1,128], index: 2, kind: input, shape index: {}]   ;;  %s6298_s3 = inlined_call_operand.vmem [shape: f32[1,128], index: 3, kind: input, shape index: {}]   ;;  %s6299_s4 = inlined_call_operand.vmem [shape: bf16[128,4], index: 4, kind: input, shape index: {}]   ;;  %s6300_s5 = inlined_call_operand.vmem [shape: f32[1,4], index: 5, kind: input, shape index: {}]   ;;  %s6301_s6 = inlined_call_operand.vmem [shape: f32[1024,4], index: 6, kind: output, shape index: {}]  }
   0x1 LB: > { %s4182_s22 = sadd.s32 4294967295, %s5087_s21   ;;  %p4186_p0 = scmp.ge.s32.totalorder %s5087_s21, 1  ;;  %s5087_s21 = sphi %s5125_s21, %s16_s21  }
   0x2   : > { %p214_p1 = scmp.lt.s32.totalorder %s5087_s21, 3 }
   0x4   : > { %p215_p2 = pnand %p4186_p0, %p214_p1 }
   0x5   : > { %v5007_v0 = vld [vmem:[%s6296_s1] sm:$0xff] (!%p215_p2)   ;;  %v5089_v1 = vmov (!%p215_p2), 0   ;;  %v5009_v3 = vld [vmem:[%s6296_s1 + $0x8] sm:$0xff] (!%p215_p2)   ;;  %v5011_v5 = vld [vmem:[%s6296_s1 + $0x10] sm:$0xff] (!%p215_p2)   ;;  %s4187_s19 = sshll.u32 (!%p215_p2), %s4182_s22, 6  ;;  %vm4061_vm0 = vcmask (!%p215_p2), 31744  }
   0x6   : > { %218 = sbr.rel (%p215_p2) target bundleno = 1081 (0x439), region = 44  ;;  %2307 = vmatprep.subr.bf16.mxu1 (!%p215_p2), %v5089_v1  ;;  %2596 = vmatprep.subr.bf16.mxu0 (!%p215_p2), %v5089_v1  ;;  %v5141_v2 = vld [vmem:[%s6296_s1 + $0x80] sm:$0xff] (!%p215_p2)   ;;  %v5151_v4 = vld [vmem:[%s6296_s1 + $0x88] sm:$0xff] (!%p215_p2)   ;;  %v5162_v6 = vld [vmem:[%s6296_s1 + $0x90] sm:$0xff] (!%p215_p2)   ;;  %p246_p3 = scmp.lt.s32.totalorder (!%p215_p2), %s4187_s19, 127 }
   0x7   : > { %2308 = vmatpush1.bf16.msra.mxu1 (!%p215_p2), %v5007_v0  ;;  %2597 = vmatpush1.bf16.msra.mxu0 (!%p215_p2), %v5141_v2  ;;  %v5013_v7 = vld [vmem:[%s6296_s1 + $0x18] sm:$0xff] (!%p215_p2)   ;;  %v5015_v9 = vld [vmem:[%s6296_s1 + $0x20] sm:$0xff] (!%p215_p2)   ;;  %v5017_v11 = vld [vmem:[%s6296_s1 + $0x28] sm:$0xff] (!%p215_p2)  }
   0x8   : > { %2309 = vmatprep.subr.bf16.mxu1 (!%p215_p2), %v5089_v1  ;;  %2598 = vmatprep.subr.bf16.mxu0 (!%p215_p2), %v5089_v1  ;;  %v5173_v8 = vld [vmem:[%s6296_s1 + $0x98] sm:$0xff] (!%p215_p2)   ;;  %v5184_v10 = vld [vmem:[%s6296_s1 + $0xa0] sm:$0xff] (!%p215_p2)   ;;  %v5197_v12 = vld [vmem:[%s6296_s1 + $0xa8] sm:$0xff] (!%p215_p2)  }
   0x9   : > { %v5019_v13 = vld [vmem:[%s6296_s1 + $0x30] sm:$0xff] (!%p215_p2)   ;;  %v5021_v15 = vld [vmem:[%s6296_s1 + $0x38] sm:$0xff] (!%p215_p2)   ;;  %v5023_v17 = vld [vmem:[%s6296_s1 + $0x40] sm:$0xff] (!%p215_p2)  }
   0xa   : > { %v5210_v14 = vld [vmem:[%s6296_s1 + $0xb0] sm:$0xff] (!%p215_p2)   ;;  %v5222_v16 = vld [vmem:[%s6296_s1 + $0xb8] sm:$0xff] (!%p215_p2)   ;;  %v5238_v18 = vld [vmem:[%s6296_s1 + $0xc0] sm:$0xff] (!%p215_p2)  }
   0xb   : > { %2310 = vmatpush1.bf16.msra.mxu1 (!%p215_p2), %v5009_v3  ;;  %2599 = vmatpush1.bf16.msra.mxu0 (!%p215_p2), %v5151_v4  ;;  %v5025_v24 = vld [vmem:[%s6296_s1 + $0x48] sm:$0xff] (!%p215_p2)   ;;  %v5027_v27 = vld [vmem:[%s6296_s1 + $0x50] sm:$0xff] (!%p215_p2)   ;;  %v5029_v29 = vld [vmem:[%s6296_s1 + $0x58] sm:$0xff] (!%p215_p2)  }
   0xc   : > { %2311 = vmatprep.subr.bf16.mxu1 (!%p215_p2), %v5089_v1  ;;  %2600 = vmatprep.subr.bf16.mxu0 (!%p215_p2), %v5089_v1  ;;  %v5256_v26 = vld [vmem:[%s6296_s1 + $0xc8] sm:$0xff] (!%p215_p2)   ;;  %v5267_v28 = vld [vmem:[%s6296_s1 + $0xd0] sm:$0xff] (!%p215_p2)   ;;  %v5278_v30 = vld [vmem:[%s6296_s1 + $0xd8] sm:$0xff] (!%p215_p2)  }
   0xd   : > { %s6303_s19 = smov (!%p246_p3, %s4187_s19), 127  ;;  %v5031_v31 = vld [vmem:[%s6296_s1 + $0x60] sm:$0xff]   ;;  %v5033_v33 = vld [vmem:[%s6296_s1 + $0x68] sm:$0xff]   ;;  %v5035_v35 = vld [vmem:[%s6296_s1 + $0x70] sm:$0xff]  }
   0xe   : > { %s4525_s7 = sshll.u32 %s6303_s19, 5  ;;  %v5289_v32 = vld [vmem:[%s6296_s1 + $0xe0] sm:$0xff]   ;;  %v5300_v34 = vld [vmem:[%s6296_s1 + $0xe8] sm:$0xff]   ;;  %v5311_v36 = vld [vmem:[%s6296_s1 + $0xf0] sm:$0xff]  }
   0xf   : > { %2312 = vmatpush1.bf16.msra.mxu1 %v5011_v5  ;;  %2601 = vmatpush1.bf16.msra.mxu0 %v5162_v6  ;;  %s5228_s12 = scalar_lea.vmem %s6295_s0, %s4525_s7  ;;  %v5037_v37 = vld [vmem:[%s6296_s1 + $0x78] sm:$0xff]   ;;  %v5039_v46 = vld [vmem:[%s6296_s1 + $0x100] sm:$0xff]   ;;  %v5040_v48 = vld [vmem:[%s6296_s1 + $0x108] sm:$0xff]  }
  0x10   : > { %2313 = vmatprep.subr.bf16.mxu1 %v5089_v1  ;;  %2602 = vmatprep.subr.bf16.mxu0 %v5089_v1  ;;  %v5242_v19 = vld [vmem:[%s5228_s12] sm:$0xff]  ;;  %v260_v21 = vld [vmem:[%s5228_s12 + $0x8] sm:$0xff]  ;;  %v5320_v38 = vld [vmem:[%s6296_s1 + $0xf8] sm:$0xff]  }
  0x11   : > { %v263_v20 = vld [vmem:[%s5228_s12 + $0x20] sm:$0xff]  ;;  %v264_v23 = vld [vmem:[%s5228_s12 + $0x28] sm:$0xff]  ;;  %v5041_v56 = vld [vmem:[%s6296_s1 + $0x110] sm:$0xff]  }
  0x12   : > { %v4193_v22 = vcombine.high %v5242_v19, %v263_v20  ;;  %v4195_v25 = vcombine.high %v260_v21, %v264_v23  ;;  %v267_v39 = vld [vmem:[%s5228_s12 + $0x40] sm:$0xff]  ;;  %v268_v41 = vld [vmem:[%s5228_s12 + $0x48] sm:$0xff]  ;;  %v4192_v43 = vcombine.low %v5242_v19, %v263_v20  ;;  %v4194_v44 = vcombine.low %v260_v21, %v264_v23  ;;  %v5042_v58 = vld [vmem:[%s6296_s1 + $0x118] sm:$0xff]  }
  0x13   : > { %2314 = vmatpush1.bf16.msra.mxu1 %v5013_v7  ;;  %2603 = vmatpush1.bf16.msra.mxu0 %v5173_v8  ;;  %v271_v40 = vld [vmem:[%s5228_s12 + $0x60] sm:$0xff]  ;;  %v272_v42 = vld [vmem:[%s5228_s12 + $0x68] sm:$0xff] }
  0x14   : > { %2315 = vmatprep.subr.bf16.mxu1 %v5089_v1  ;;  %2604 = vmatprep.subr.bf16.mxu0 %v5089_v1  ;;  %v4201_v45 = vcombine.high %v267_v39, %v271_v40  ;;  %v4203_v47 = vcombine.high %v268_v41, %v272_v42  ;;  %v275_v49 = vld [vmem:[%s5228_s12 + $0x80] sm:$0xff]  ;;  %v276_v51 = vld [vmem:[%s5228_s12 + $0x88] sm:$0xff]  ;;  %v4200_v53 = vcombine.low %v267_v39, %v271_v40 }
  0x15   : > { %2339 = vmatprep.mubr.bf16.mxu1 %v4193_v22  ;;  %2628 = vmatprep.mubr.bf16.mxu0 %v4195_v25  ;;  %v279_v50 = vld [vmem:[%s5228_s12 + $0xa0] sm:$0xff]  ;;  %v280_v52 = vld [vmem:[%s5228_s12 + $0xa8] sm:$0xff]  ;;  %v4202_v54 = vcombine.low %v268_v41, %v272_v42  ;;  %v5049_v41 = vld [vmem:[%s6296_s1 + $0x150] sm:$0xff]  }
  0x16   : > { %v4209_v55 = vcombine.high %v275_v49, %v279_v50  ;;  %v4211_v57 = vcombine.high %v276_v51, %v280_v52  ;;  %v283_v59 = vld [vmem:[%s5228_s12 + $0xc0] sm:$0xff]  ;;  %v284_v61 = vld [vmem:[%s5228_s12 + $0xc8] sm:$0xff]  ;;  %v4208_v63 = vcombine.low %v275_v49, %v279_v50  ;;  %v4210_v0 = vcombine.low %v276_v51, %v280_v52 }
  0x17   : > { %2316 = vmatpush1.bf16.msra.mxu1 %v5015_v9  ;;  %2605 = vmatpush1.bf16.msra.mxu0 %v5184_v10  ;;  %v287_v60 = vld [vmem:[%s5228_s12 + $0xe0] sm:$0xff]  ;;  %v288_v62 = vld [vmem:[%s5228_s12 + $0xe8] sm:$0xff] }
  0x18   : > { %2317 = vmatprep.subr.bf16.mxu1 %v5089_v1  ;;  %2606 = vmatprep.subr.bf16.mxu0 %v5089_v1  ;;  %v4217_v3 = vcombine.high %v283_v59, %v287_v60  ;;  %v5044_v5 = vld [vmem:[%s6296_s1 + $0x128] sm:$0xff]   ;;  %v295_v7 = vld [vmem:[%s5228_s12 + $0x120] sm:$0xff] }
  0x19   : > { %v292_v9 = vld [vmem:[%s5228_s12 + $0x108] sm:$0xff]  ;;  %v299_v20 = vld [vmem:[%s5228_s12 + $0x140] sm:$0xff] }
  0x1a   : > { %v303_v21 = vld [vmem:[%s5228_s12 + $0x160] sm:$0xff]  ;;  %v300_v22 = vld [vmem:[%s5228_s12 + $0x148] sm:$0xff] }
  0x1b   : > { %2318 = vmatpush1.bf16.msra.mxu1 %v5017_v11  ;;  %2607 = vmatpush1.bf16.msra.mxu0 %v5197_v12  ;;  %v296_v11 = vld [vmem:[%s5228_s12 + $0x128] sm:$0xff]  ;;  %v4233_v25 = vcombine.high %v299_v20, %v303_v21  ;;  %v5051_v49 = vld [vmem:[%s6296_s1 + $0x160] sm:$0xff]  }
  0x1c   : > { %2319 = vmatprep.subr.bf16.mxu1 %v5089_v1  ;;  %2608 = vmatprep.subr.bf16.mxu0 %v5089_v1  ;;  %v4227_v19 = vcombine.high %v292_v9, %v296_v11  ;;  %v304_v23 = vld [vmem:[%s5228_s12 + $0x168] sm:$0xff]  ;;  %v323_v51 = vld [vmem:[%s5228_s12 + $0x200] sm:$0xff] }
  0x1d   : > { %v4234_v39 = vcombine.low %v300_v22, %v304_v23  ;;  %v327_v52 = vld [vmem:[%s5228_s12 + $0x220] sm:$0xff] }
  0x1f   : > { %2320 = vmatpush1.bf16.msra.mxu1 %v5019_v13  ;;  %2609 = vmatpush1.bf16.msra.mxu0 %v5210_v14  ;;  %v5045_v13 = vld [vmem:[%s6296_s1 + $0x130] sm:$0xff]  }
  0x20   : > { %2321 = vmatprep.subr.bf16.mxu1 %v5089_v1  ;;  %2610 = vmatprep.subr.bf16.mxu0 %v5089_v1 }
  0x23   : > { %2322 = vmatpush1.bf16.msra.mxu1 %v5021_v15  ;;  %2611 = vmatpush1.bf16.msra.mxu0 %v5222_v16  ;;  %v4218_v15 = vcombine.low %v284_v61, %v288_v62 }
  0x24   : > { %2323 = vmatprep.subr.bf16.mxu1 %v5089_v1  ;;  %2612 = vmatprep.subr.bf16.mxu0 %v5089_v1 }
  0x27   : > { %2324 = vmatpush1.bf16.msra.mxu1 %v5023_v17  ;;  %2613 = vmatpush1.bf16.msra.mxu0 %v5238_v18 }
  0x28   : > { %2325 = vmatprep.subr.bf16.mxu1 %v5089_v1  ;;  %2614 = vmatprep.subr.bf16.mxu0 %v5089_v1 }
  0x2b   : > { %2326 = vmatpush1.bf16.msra.mxu1 %v5025_v24  ;;  %2615 = vmatpush1.bf16.msra.mxu0 %v5256_v26  ;;  %v4226_v24 = vcombine.low %v292_v9, %v296_v11 }
  0x2c   : > { %2327 = vmatprep.subr.bf16.mxu1 %v5089_v1  ;;  %2616 = vmatprep.subr.bf16.mxu0 %v5089_v1 }
  0x2f   : > { %2328 = vmatpush1.bf16.msra.mxu1 %v5027_v27  ;;  %2617 = vmatpush1.bf16.msra.mxu0 %v5267_v28  ;;  %v5047_v27 = vld [vmem:[%s6296_s1 + $0x140] sm:$0xff]  }
  0x30   : > { %2329 = vmatprep.subr.bf16.mxu1 %v5089_v1  ;;  %2618 = vmatprep.subr.bf16.mxu0 %v5089_v1 }
  0x33   : > { %2330 = vmatpush1.bf16.msra.mxu1 %v5029_v29  ;;  %2619 = vmatpush1.bf16.msra.mxu0 %v5278_v30  ;;  %v4235_v29 = vcombine.high %v300_v22, %v304_v23 }
  0x34   : > { %2331 = vmatprep.subr.bf16.mxu1 %v5089_v1  ;;  %2620 = vmatprep.subr.bf16.mxu0 %v5089_v1 }
  0x37   : > { %2332 = vmatpush1.bf16.msra.mxu1 %v5031_v31  ;;  %2621 = vmatpush1.bf16.msra.mxu0 %v5289_v32  ;;  %v307_v31 = vld [vmem:[%s5228_s12 + $0x180] sm:$0xff] }
  0x38   : > { %2333 = vmatprep.subr.bf16.mxu1 %v5089_v1  ;;  %2622 = vmatprep.subr.bf16.mxu0 %v5089_v1 }
  0x3b   : > { %2334 = vmatpush1.bf16.msra.mxu1 %v5033_v33  ;;  %2623 = vmatpush1.bf16.msra.mxu0 %v5300_v34  ;;  %v311_v33 = vld [vmem:[%s5228_s12 + $0x1a0] sm:$0xff] }
  0x3c   : > { %2335 = vmatprep.subr.bf16.mxu1 %v5089_v1  ;;  %2624 = vmatprep.subr.bf16.mxu0 %v5089_v1  ;;  %v4241_v40 = vcombine.high %v307_v31, %v311_v33 }
  0x3f   : > { %2336 = vmatpush1.bf16.msra.mxu1 %v5035_v35  ;;  %2625 = vmatpush1.bf16.msra.mxu0 %v5311_v36  ;;  %v308_v35 = vld [vmem:[%s5228_s12 + $0x188] sm:$0xff] }
  0x40   : > { %2337 = vmatprep.subr.bf16.mxu1 %v5089_v1  ;;  %2626 = vmatprep.subr.bf16.mxu0 %v5089_v1 }
  0x43   : > { %2338 = vmatpush1.bf16.msra.mxu1 %v5037_v37  ;;  %2627 = vmatpush1.bf16.msra.mxu0 %v5320_v38  ;;  %v312_v37 = vld [vmem:[%s5228_s12 + $0x1a8] sm:$0xff] }
  0x44   : > { %2885 = vmatprep.subr.bf16.mxu0 %v5089_v1  ;;  %4646 = vmatprep.subr.bf16.mxu1 %v5089_v1  ;;  %v4243_v42 = vcombine.high %v308_v35, %v312_v37 }
  0x46   : > { %2340 = vmatmul.mubr.bf16.vlgmr.msra.gmra.mrb[0].mxu1 %v4192_v43  ;;  %2629 = vmatmul.mubr.bf16.vlgmr.msra.gmra.mrb[0].mxu0 %v4194_v44  ;;  %v315_v43 = vld [vmem:[%s5228_s12 + $0x1c0] sm:$0xff] }
  0x47   : > { %2347 = vmatprep.mubr.bf16.mxu1 %v4201_v45  ;;  %2886 = vmatpush1.bf16.msra.mxu0 %v5039_v46  ;;  %v319_v44 = vld [vmem:[%s5228_s12 + $0x1e0] sm:$0xff]  ;;  %v316_v45 = vld [vmem:[%s5228_s12 + $0x1c8] sm:$0xff] }
  0x48   : > { %2636 = vmatprep.mubr.bf16.mxu0 %v4203_v47  ;;  %2887 = vmatprep.subr.bf16.mxu0 %v5089_v1  ;;  %v320_v46 = vld [vmem:[%s5228_s12 + $0x1e8] sm:$0xff]  ;;  %v4242_v47 = vcombine.low %v308_v35, %v312_v37 }
  0x49   : > { %4662 = vmatpush1.bf16.msra.mxu1 %v5141_v2  ;;  %v5043_v2 = vld [vmem:[%s6296_s1 + $0x120] sm:$0xff]   ;;  %v4251_v50 = vcombine.high %v316_v45, %v320_v46 }
  0x4a   : > { %4647 = vmatprep.subr.bf16.mxu1 %v5089_v1 }
  0x4b   : > { %2888 = vmatpush1.bf16.msra.mxu0 %v5040_v48  ;;  %v4249_v48 = vcombine.high %v315_v43, %v319_v44 }
  0x4c   : > { %2889 = vmatprep.subr.bf16.mxu0 %v5089_v1 }
  0x4d   : > { %4663 = vmatpush1.bf16.msra.mxu1 %v5151_v4  ;;  %v4219_v4 = vcombine.high %v284_v61, %v288_v62  ;;  %v269_v61 = vld [vmem:[%s5228_s12 + $0x50] sm:$0xff] }
  0x4e   : > { %2348 = vmatmul.mubr.bf16.gmra.mrb[4].mxu1 %v4200_v53  ;;  %4648 = vmatprep.subr.bf16.mxu1 %v5089_v1  ;;  %v261_v53 = vld [vmem:[%s5228_s12 + $0x10] sm:$0xff] }
  0x4f   : > { %2637 = vmatmul.mubr.bf16.gmra.mrb[4].mxu0 %v4202_v54  ;;  %2355 = vmatprep.mubr.bf16.mxu1 %v4209_v55  ;;  %v265_v54 = vld [vmem:[%s5228_s12 + $0x30] sm:$0xff]  ;;  %v4250_v55 = vcombine.low %v316_v45, %v320_v46 }
  0x50   : > { %2890 = vmatpush1.bf16.msra.mxu0 %v5041_v56  ;;  %2644 = vmatprep.mubr.bf16.mxu0 %v4211_v57  ;;  %v4257_v56 = vcombine.high %v323_v51, %v327_v52  ;;  %v5053_v57 = vld [vmem:[%s6296_s1 + $0x170] sm:$0xff]  }
  0x51   : > { %2891 = vmatprep.subr.bf16.mxu0 %v5089_v1  ;;  %4664 = vmatpush1.bf16.msra.mxu1 %v5162_v6  ;;  %v291_v6 = vld [vmem:[%s5228_s12 + $0x100] sm:$0xff]  ;;  %v273_v62 = vld [vmem:[%s5228_s12 + $0x70] sm:$0xff] }
  0x52   : > { %4649 = vmatprep.subr.bf16.mxu1 %v5089_v1  ;;  %v4225_v17 = vcombine.high %v291_v6, %v295_v7 }
  0x54   : > { %2892 = vmatpush1.bf16.msra.mxu0 %v5042_v58  ;;  %v4197_v58 = vcombine.high %v261_v53, %v265_v54 }
  0x55   : > { %2893 = vmatprep.subr.bf16.mxu0 %v5089_v1  ;;  %4665 = vmatpush1.bf16.msra.mxu1 %v5173_v8  ;;  %v4216_v8 = vcombine.low %v283_v59, %v287_v60  ;;  %v331_v59 = vld [vmem:[%s5228_s12 + $0x240] sm:$0xff] }
  0x56   : > { %2356 = vmatmul.mubr.bf16.gmra.mrb[8].mxu1 %v4208_v63  ;;  %4650 = vmatprep.subr.bf16.mxu1 %v5089_v1  ;;  %v335_v60 = vld [vmem:[%s5228_s12 + $0x260] sm:$0xff]  ;;  %v4196_v63 = vcombine.low %v261_v53, %v265_v54 }
  0x57   : > { %2645 = vmatmul.mubr.bf16.gmra.mrb[8].mxu0 %v4210_v0  ;;  %2363 = vmatprep.mubr.bf16.mxu1 %v4217_v3  ;;  %v4265_v0 = vcombine.high %v331_v59, %v335_v60  ;;  %v4205_v3 = vcombine.high %v269_v61, %v273_v62  ;;  %v4264_v9 = vcombine.low %v331_v59, %v335_v60 }
  0x58   : > { %2894 = vmatpush1.bf16.msra.mxu0 %v5043_v2  ;;  %2652 = vmatprep.mubr.bf16.mxu0 %v4219_v4  ;;  %v5055_v2 = vld [vmem:[%s6296_s1 + $0x180] sm:$0xff]  }
  0x59   : > { %2895 = vmatprep.subr.bf16.mxu0 %v5089_v1  ;;  %4666 = vmatpush1.bf16.msra.mxu1 %v5184_v10  ;;  %v5046_v10 = vld [vmem:[%s6296_s1 + $0x138] sm:$0xff]   ;;  %v343_v4 = vld [vmem:[%s5228_s12 + $0x2a0] sm:$0xff] }
  0x5a   : > { %4651 = vmatprep.subr.bf16.mxu1 %v5089_v1 }
  0x5c   : > { %2896 = vmatpush1.bf16.msra.mxu0 %v5044_v5  ;;  %v5056_v5 = vld [vmem:[%s6296_s1 + $0x188] sm:$0xff]  }
  0x5d   : > { %2897 = vmatprep.subr.bf16.mxu0 %v5089_v1  ;;  %4667 = vmatpush1.bf16.msra.mxu1 %v5197_v12  ;;  %v4224_v12 = vcombine.low %v291_v6, %v295_v7  ;;  %v277_v6 = vld [vmem:[%s5228_s12 + $0x90] sm:$0xff] }
  0x5e   : > { %2364 = vmatmul.mubr.bf16.gmra.mrb[12].mxu1 %v4216_v8  ;;  %4652 = vmatprep.subr.bf16.mxu1 %v5089_v1  ;;  %v281_v7 = vld [vmem:[%s5228_s12 + $0xb0] sm:$0xff] }
  0x5f   : > { %2653 = vmatmul.mubr.bf16.gmra.mrb[12].mxu0 %v4218_v15  ;;  %2371 = vmatprep.mubr.bf16.mxu1 %v4225_v17  ;;  %v4213_v8 = vcombine.high %v277_v6, %v281_v7  ;;  %v347_v15 = vld [vmem:[%s5228_s12 + $0x2c0] sm:$0xff]  ;;  %v4212_v22 = vcombine.low %v277_v6, %v281_v7 }
  0x60   : > { %2898 = vmatpush1.bf16.msra.mxu0 %v5045_v13  ;;  %2660 = vmatprep.mubr.bf16.mxu0 %v4227_v19  ;;  %v5057_v13 = vld [vmem:[%s6296_s1 + $0x190] sm:$0xff]   ;;  %v351_v17 = vld [vmem:[%s5228_s12 + $0x2e0] sm:$0xff]  ;;  %v5058_v19 = vld [vmem:[%s6296_s1 + $0x198] sm:$0xff]  }
  0x61   : > { %2899 = vmatprep.subr.bf16.mxu0 %v5089_v1  ;;  %4668 = vmatpush1.bf16.msra.mxu1 %v5210_v14  ;;  %v5048_v14 = vld [vmem:[%s6296_s1 + $0x148] sm:$0xff]   ;;  %v4281_v23 = vcombine.high %v347_v15, %v351_v17  ;;  %v395_v7 = vld [vmem:[%s5228_s12 + $0x440] sm:$0xff] }
  0x62   : > { %4653 = vmatprep.subr.bf16.mxu1 %v5089_v1 }
  0x64   : > { %2900 = vmatpush1.bf16.msra.mxu0 %v5046_v10  ;;  %v285_v10 = vld [vmem:[%s5228_s12 + $0xd0] sm:$0xff] }
  0x65   : > { %2901 = vmatprep.subr.bf16.mxu0 %v5089_v1  ;;  %4669 = vmatpush1.bf16.msra.mxu1 %v5222_v16  ;;  %v4232_v16 = vcombine.low %v299_v20, %v303_v21  ;;  %v289_v20 = vld [vmem:[%s5228_s12 + $0xf0] sm:$0xff] }
  0x66   : > { %2372 = vmatmul.mubr.bf16.gmra.mrb[16].mxu1 %v4224_v12  ;;  %4654 = vmatprep.subr.bf16.mxu1 %v5089_v1  ;;  %v4221_v12 = vcombine.high %v285_v10, %v289_v20  ;;  %v4220_v35 = vcombine.low %v285_v10, %v289_v20  ;;  %v403_v10 = vld [vmem:[%s5228_s12 + $0x480] sm:$0xff] }
  0x67   : > { %2661 = vmatmul.mubr.bf16.gmra.mrb[16].mxu0 %v4226_v24  ;;  %2379 = vmatprep.mubr.bf16.mxu1 %v4233_v25  ;;  %v5059_v24 = vld [vmem:[%s6296_s1 + $0x1a0] sm:$0xff]  }
  0x68   : > { %2902 = vmatpush1.bf16.msra.mxu0 %v5047_v27  ;;  %2668 = vmatprep.mubr.bf16.mxu0 %v4235_v29  ;;  %v355_v25 = vld [vmem:[%s5228_s12 + $0x300] sm:$0xff]  ;;  %v5060_v29 = vld [vmem:[%s6296_s1 + $0x1a8] sm:$0xff]  }
  0x69   : > { %2903 = vmatprep.subr.bf16.mxu0 %v5089_v1  ;;  %4670 = vmatpush1.bf16.msra.mxu1 %v5238_v18  ;;  %v5050_v18 = vld [vmem:[%s6296_s1 + $0x158] sm:$0xff]   ;;  %v359_v27 = vld [vmem:[%s5228_s12 + $0x320] sm:$0xff] }
  0x6a   : > { %4655 = vmatprep.subr.bf16.mxu1 %v5089_v1  ;;  %v4289_v37 = vcombine.high %v355_v25, %v359_v27  ;;  %v407_v20 = vld [vmem:[%s5228_s12 + $0x4a0] sm:$0xff] }
  0x6c   : > { %2904 = vmatpush1.bf16.msra.mxu0 %v5048_v14  ;;  %v293_v14 = vld [vmem:[%s5228_s12 + $0x110] sm:$0xff] }
  0x6d   : > { %2905 = vmatprep.subr.bf16.mxu0 %v5089_v1  ;;  %4671 = vmatpush1.bf16.msra.mxu1 %v5256_v26  ;;  %v4240_v26 = vcombine.low %v307_v31, %v311_v33  ;;  %v297_v31 = vld [vmem:[%s5228_s12 + $0x130] sm:$0xff]  ;;  %v4280_v33 = vcombine.low %v347_v15, %v351_v17 }
  0x6e   : > { %2380 = vmatmul.mubr.bf16.gmra.mrb[20].mxu1 %v4232_v16  ;;  %4656 = vmatprep.subr.bf16.mxu1 %v5089_v1  ;;  %v4229_v16 = vcombine.high %v293_v14, %v297_v31  ;;  %v4228_v45 = vcombine.low %v293_v14, %v297_v31  ;;  %v349_v14 = vld [vmem:[%s5228_s12 + $0x2d0] sm:$0xff] }
  0x6f   : > { %2669 = vmatmul.mubr.bf16.gmra.mrb[20].mxu0 %v4234_v39  ;;  %2387 = vmatprep.mubr.bf16.mxu1 %v4241_v40  ;;  %v5061_v39 = vld [vmem:[%s6296_s1 + $0x1b0] sm:$0xff]   ;;  %v363_v40 = vld [vmem:[%s5228_s12 + $0x340] sm:$0xff] }
  0x70   : > { %2906 = vmatpush1.bf16.msra.mxu0 %v5049_v41  ;;  %2676 = vmatprep.mubr.bf16.mxu0 %v4243_v42  ;;  %v367_v41 = vld [vmem:[%s5228_s12 + $0x360] sm:$0xff]  ;;  %v5062_v42 = vld [vmem:[%s6296_s1 + $0x1b8] sm:$0xff]   ;;  %v353_v31 = vld [vmem:[%s5228_s12 + $0x2f0] sm:$0xff] }
  0x71   : > { %2907 = vmatprep.subr.bf16.mxu0 %v5089_v1  ;;  %4672 = vmatpush1.bf16.msra.mxu1 %v5267_v28  ;;  %v5052_v28 = vld [vmem:[%s6296_s1 + $0x168] sm:$0xff]   ;;  %v4297_v46 = vcombine.high %v363_v40, %v367_v41 }
  0x72   : > { %4657 = vmatprep.subr.bf16.mxu1 %v5089_v1 }
  0x74   : > { %2908 = vmatpush1.bf16.msra.mxu0 %v5050_v18  ;;  %v301_v18 = vld [vmem:[%s5228_s12 + $0x150] sm:$0xff] }
  0x75   : > { %2909 = vmatprep.subr.bf16.mxu0 %v5089_v1  ;;  %4673 = vmatpush1.bf16.msra.mxu1 %v5278_v30  ;;  %v4248_v30 = vcombine.low %v315_v43, %v319_v44  ;;  %v305_v43 = vld [vmem:[%s5228_s12 + $0x170] sm:$0xff]  ;;  %v4288_v44 = vcombine.low %v355_v25, %v359_v27  ;;  %v411_v27 = vld [vmem:[%s5228_s12 + $0x4c0] sm:$0xff] }
  0x76   : > { %2388 = vmatmul.mubr.bf16.gmra.mrb[24].mxu1 %v4240_v26  ;;  %4658 = vmatprep.subr.bf16.mxu1 %v5089_v1  ;;  %v4237_v26 = vcombine.high %v301_v18, %v305_v43  ;;  %v4236_v53 = vcombine.low %v301_v18, %v305_v43  ;;  %v361_v18 = vld [vmem:[%s5228_s12 + $0x330] sm:$0xff] }
  0x77   : > { %2677 = vmatmul.mubr.bf16.gmra.mrb[24].mxu0 %v4242_v47  ;;  %2395 = vmatprep.mubr.bf16.mxu1 %v4249_v48  ;;  %v5063_v47 = vld [vmem:[%s6296_s1 + $0x1c0] sm:$0xff]  }
  0x78   : > { %2910 = vmatpush1.bf16.msra.mxu0 %v5051_v49  ;;  %2684 = vmatprep.mubr.bf16.mxu0 %v4251_v50  ;;  %v371_v48 = vld [vmem:[%s5228_s12 + $0x380] sm:$0xff]  ;;  %v5064_v50 = vld [vmem:[%s6296_s1 + $0x1c8] sm:$0xff]  }
  0x79   : > { %2911 = vmatprep.subr.bf16.mxu0 %v5089_v1  ;;  %4674 = vmatpush1.bf16.msra.mxu1 %v5289_v32  ;;  %v5054_v32 = vld [vmem:[%s6296_s1 + $0x178] sm:$0xff]   ;;  %v375_v49 = vld [vmem:[%s5228_s12 + $0x3a0] sm:$0xff] }
  0x7a   : > { %4659 = vmatprep.subr.bf16.mxu1 %v5089_v1  ;;  %v4305_v54 = vcombine.high %v371_v48, %v375_v49  ;;  %v4304_v59 = vcombine.low %v371_v48, %v375_v49  ;;  %v365_v48 = vld [vmem:[%s5228_s12 + $0x350] sm:$0xff] }
  0x7b   : > { %v369_v49 = vld [vmem:[%s5228_s12 + $0x370] sm:$0xff] }
  0x7c   : > { %2912 = vmatpush1.bf16.msra.mxu0 %v5052_v28  ;;  %v309_v28 = vld [vmem:[%s5228_s12 + $0x190] sm:$0xff] }
  0x7d   : > { %2913 = vmatprep.subr.bf16.mxu0 %v5089_v1  ;;  %4675 = vmatpush1.bf16.msra.mxu1 %v5300_v34  ;;  %v4256_v34 = vcombine.low %v323_v51, %v327_v52  ;;  %v313_v51 = vld [vmem:[%s5228_s12 + $0x1b0] sm:$0xff]  ;;  %v4296_v52 = vcombine.low %v363_v40, %v367_v41  ;;  %v419_v40 = vld [vmem:[%s5228_s12 + $0x500] sm:$0xff] }
  0x7e   : > { %2396 = vmatmul.mubr.bf16.gmra.mrb[28].mxu1 %v4248_v30  ;;  %4660 = vmatprep.subr.bf16.mxu1 %v5089_v1  ;;  %v4245_v30 = vcombine.high %v309_v28, %v313_v51  ;;  %v4244_v60 = vcombine.low %v309_v28, %v313_v51  ;;  %v423_v41 = vld [vmem:[%s5228_s12 + $0x520] sm:$0xff] }
  0x7f   : > { %2685 = vmatmul.mubr.bf16.gmra.mrb[28].mxu0 %v4250_v55  ;;  %2403 = vmatprep.mubr.bf16.mxu1 %v4257_v56  ;;  %v5065_v55 = vld [vmem:[%s6296_s1 + $0x1d0] sm:$0xff]   ;;  %v379_v56 = vld [vmem:[%s5228_s12 + $0x3c0] sm:$0xff] }
  0x80   : > { %2914 = vmatpush1.bf16.msra.mxu0 %v5053_v57  ;;  %2917 = vmatprep.mubr.bf16.mxu0 %v4197_v58  ;;  %v383_v57 = vld [vmem:[%s5228_s12 + $0x3e0] sm:$0xff]  ;;  %v317_v58 = vld [vmem:[%s5228_s12 + $0x1d0] sm:$0xff] }
  0x81   : > { %2915 = vmatprep.subr.bf16.mxu0 %v5089_v1  ;;  %4676 = vmatpush1.bf16.msra.mxu1 %v5311_v36  ;;  %v339_v36 = vld [vmem:[%s5228_s12 + $0x280] sm:$0xff] }
  0x82   : > { %4661 = vmatprep.subr.bf16.mxu1 %v5089_v1  ;;  %v4273_v11 = vcombine.high %v339_v36, %v343_v4  ;;  %v4272_v21 = vcombine.low %v339_v36, %v343_v4  ;;  %v4312_v36 = vcombine.low %v379_v56, %v383_v57 }
  0x84   : > { %2916 = vmatpush1.bf16.msra.mxu0 %v5054_v32  ;;  %v321_v32 = vld [vmem:[%s5228_s12 + $0x1f0] sm:$0xff] }
  0x85   : > { %3174 = vmatprep.subr.bf16.mxu0 %v5089_v1  ;;  %4677 = vmatpush1.bf16.msra.mxu1 %v5320_v38  ;;  %v4204_v38 = vcombine.low %v269_v61, %v273_v62  ;;  %v4313_v61 = vcombine.high %v379_v56, %v383_v57  ;;  %v4253_v62 = vcombine.high %v317_v58, %v321_v32  ;;  %v377_v56 = vld [vmem:[%s5228_s12 + $0x3b0] sm:$0xff] }
  0x86   : > { %2404 = vmatmul.mubr.bf16.gmra.mrb[32].mxu1 %v4256_v34  ;;  %v5066_v34 = vld [vmem:[%s6296_s1 + $0x1d8] sm:$0xff]   ;;  %v4252_v4 = vcombine.low %v317_v58, %v321_v32  ;;  %v4300_v58 = vcombine.low %v365_v48, %v369_v49 }
  0x87   : > { %2918 = vmatmul.mubr.bf16.vlgmr.msra.gmra.mrb[0].mxu0 %v4196_v63  ;;  %2411 = vmatprep.mubr.bf16.mxu1 %v4265_v0  ;;  %v387_v63 = vld [vmem:[%s5228_s12 + $0x400] sm:$0xff] }
  0x88   : > { %3175 = vmatpush1.bf16.msra.mxu0 %v5055_v2  ;;  %2925 = vmatprep.mubr.bf16.mxu0 %v4205_v3  ;;  %v391_v0 = vld [vmem:[%s5228_s12 + $0x420] sm:$0xff]  ;;  %v325_v2 = vld [vmem:[%s5228_s12 + $0x210] sm:$0xff] }
  0x89   : > { %3176 = vmatprep.subr.bf16.mxu0 %v5089_v1  ;;  %v329_v3 = vld [vmem:[%s5228_s12 + $0x230] sm:$0xff] }
  0x8a   : > { %v4261_v6 = vcombine.high %v325_v2, %v329_v3 }
  0x8c   : > { %3177 = vmatpush1.bf16.msra.mxu0 %v5056_v5  ;;  %v4321_v5 = vcombine.high %v387_v63, %v391_v0 }
  0x8d   : > { %3178 = vmatprep.subr.bf16.mxu0 %v5089_v1 }
  0x8e   : > { %2412 = vmatmul.mubr.bf16.gmra.mrb[36].mxu1 %v4264_v9  ;;  %v399_v9 = vld [vmem:[%s5228_s12 + $0x460] sm:$0xff] }
  0x8f   : > { %2926 = vmatmul.mubr.bf16.gmra.mrb[4].mxu0 %v4204_v38  ;;  %2419 = vmatprep.mubr.bf16.mxu1 %v4273_v11  ;;  %v333_v38 = vld [vmem:[%s5228_s12 + $0x250] sm:$0xff]  ;;  %v4329_v15 = vcombine.high %v395_v7, %v399_v9 }
  0x90   : > { %2933 = vmatprep.mubr.bf16.mxu0 %v4213_v8  ;;  %3179 = vmatpush1.bf16.msra.mxu0 %v5057_v13  ;;  %v337_v11 = vld [vmem:[%s5228_s12 + $0x270] sm:$0xff]  ;;  %v4320_v8 = vcombine.low %v387_v63, %v391_v0  ;;  %v4260_v13 = vcombine.low %v325_v2, %v329_v3 }
  0x91   : > { %3180 = vmatprep.subr.bf16.mxu0 %v5089_v1  ;;  %v4269_v17 = vcombine.high %v333_v38, %v337_v11 }
  0x94   : > { %3181 = vmatpush1.bf16.msra.mxu0 %v5058_v19  ;;  %v5067_v19 = vld [vmem:[%s6296_s1 + $0x1e0] sm:$0xff]  }
  0x95   : > { %3182 = vmatprep.subr.bf16.mxu0 %v5089_v1 }
  0x96   : > { %2420 = vmatmul.mubr.bf16.gmra.mrb[40].mxu1 %v4272_v21  ;;  %v341_v21 = vld [vmem:[%s5228_s12 + $0x290] sm:$0xff] }
  0x97   : > { %2934 = vmatmul.mubr.bf16.gmra.mrb[8].mxu0 %v4212_v22  ;;  %2427 = vmatprep.mubr.bf16.mxu1 %v4281_v23  ;;  %v345_v22 = vld [vmem:[%s5228_s12 + $0x2b0] sm:$0xff]  ;;  %v4328_v23 = vcombine.low %v395_v7, %v399_v9 }
  0x98   : > { %2941 = vmatprep.mubr.bf16.mxu0 %v4221_v12  ;;  %3183 = vmatpush1.bf16.msra.mxu0 %v5059_v24  ;;  %v4268_v12 = vcombine.low %v333_v38, %v337_v11  ;;  %v4337_v24 = vcombine.high %v403_v10, %v407_v20  ;;  %v4277_v25 = vcombine.high %v341_v21, %v345_v22 }
  0x99   : > { %3184 = vmatprep.subr.bf16.mxu0 %v5089_v1 }
  0x9c   : > { %3185 = vmatpush1.bf16.msra.mxu0 %v5060_v29  ;;  %v415_v29 = vld [vmem:[%s5228_s12 + $0x4e0] sm:$0xff] }
  0x9d   : > { %3186 = vmatprep.subr.bf16.mxu0 %v5089_v1  ;;  %v4344_v43 = vcombine.low %v411_v27, %v415_v29 }
  0x9e   : > { %2428 = vmatmul.mubr.bf16.gmra.mrb[44].mxu1 %v4280_v33  ;;  %v4336_v33 = vcombine.low %v403_v10, %v407_v20 }
  0x9f   : > { %2942 = vmatmul.mubr.bf16.gmra.mrb[12].mxu0 %v4220_v35  ;;  %2435 = vmatprep.mubr.bf16.mxu1 %v4289_v37  ;;  %v4276_v35 = vcombine.low %v341_v21, %v345_v22  ;;  %v4345_v37 = vcombine.high %v411_v27, %v415_v29  ;;  %v467_v22 = vld [vmem:[%s5228_s12 + $0x680] sm:$0xff] }
  0xa0   : > { %2949 = vmatprep.mubr.bf16.mxu0 %v4229_v16  ;;  %3187 = vmatpush1.bf16.msra.mxu0 %v5061_v39  ;;  %v4285_v16 = vcombine.high %v349_v14, %v353_v31  ;;  %v5068_v39 = vld [vmem:[%s6296_s1 + $0x1e8] sm:$0xff]  }
  0xa1   : > { %3188 = vmatprep.subr.bf16.mxu0 %v5089_v1 }
  0xa4   : > { %3189 = vmatpush1.bf16.msra.mxu0 %v5062_v42  ;;  %v357_v42 = vld [vmem:[%s5228_s12 + $0x310] sm:$0xff] }
  0xa5   : > { %3190 = vmatprep.subr.bf16.mxu0 %v5089_v1  ;;  %v4292_v28 = vcombine.low %v357_v42, %v361_v18 }
  0xa6   : > { %2436 = vmatmul.mubr.bf16.gmra.mrb[48].mxu1 %v4288_v44  ;;  %v4284_v44 = vcombine.low %v349_v14, %v353_v31  ;;  %v475_v31 = vld [vmem:[%s5228_s12 + $0x6c0] sm:$0xff] }
  0xa7   : > { %2950 = vmatmul.mubr.bf16.gmra.mrb[16].mxu0 %v4228_v45  ;;  %2443 = vmatprep.mubr.bf16.mxu1 %v4297_v46  ;;  %v4353_v45 = vcombine.high %v419_v40, %v423_v41  ;;  %v4293_v46 = vcombine.high %v357_v42, %v361_v18  ;;  %v483_v42 = vld [vmem:[%s5228_s12 + $0x700] sm:$0xff] }
  0xa8   : > { %2957 = vmatprep.mubr.bf16.mxu0 %v4237_v26  ;;  %3191 = vmatpush1.bf16.msra.mxu0 %v5063_v47  ;;  %v427_v26 = vld [vmem:[%s5228_s12 + $0x540] sm:$0xff] }
  0xa9   : > { %3192 = vmatprep.subr.bf16.mxu0 %v5089_v1  ;;  %v431_v47 = vld [vmem:[%s5228_s12 + $0x560] sm:$0xff] }
  0xaa   : > { %v4361_v51 = vcombine.high %v427_v26, %v431_v47  ;;  %v4360_v57 = vcombine.low %v427_v26, %v431_v47  ;;  %v487_v18 = vld [vmem:[%s5228_s12 + $0x720] sm:$0xff] }
  0xac   : > { %3193 = vmatpush1.bf16.msra.mxu0 %v5064_v50  ;;  %v4352_v50 = vcombine.low %v419_v40, %v423_v41 }
  0xad   : > { %3194 = vmatprep.subr.bf16.mxu0 %v5089_v1 }
  0xae   : > { %2444 = vmatmul.mubr.bf16.gmra.mrb[52].mxu1 %v4296_v52  ;;  %v4301_v52 = vcombine.high %v365_v48, %v369_v49  ;;  %v4417_v48 = vcombine.high %v483_v42, %v487_v18 }
  0xaf   : > { %2958 = vmatmul.mubr.bf16.gmra.mrb[20].mxu0 %v4236_v53  ;;  %2451 = vmatprep.mubr.bf16.mxu1 %v4305_v54  ;;  %v5069_v53 = vld [vmem:[%s6296_s1 + $0x1f0] sm:$0xff]   ;;  %v435_v54 = vld [vmem:[%s5228_s12 + $0x580] sm:$0xff] }
  0xb0   : > { %2965 = vmatprep.mubr.bf16.mxu0 %v4245_v30  ;;  %3195 = vmatpush1.bf16.msra.mxu0 %v5065_v55  ;;  %v439_v30 = vld [vmem:[%s5228_s12 + $0x5a0] sm:$0xff]  ;;  %v373_v55 = vld [vmem:[%s5228_s12 + $0x390] sm:$0xff] }
  0xb1   : > { %3196 = vmatprep.subr.bf16.mxu0 %v5089_v1  ;;  %v4369_v32 = vcombine.high %v435_v54, %v439_v30  ;;  %v4368_v63 = vcombine.low %v435_v54, %v439_v30  ;;  %v4308_v0 = vcombine.low %v373_v55, %v377_v56  ;;  %v433_v54 = vld [vmem:[%s5228_s12 + $0x570] sm:$0xff] }
  0xb4   : > { %3197 = vmatpush1.bf16.msra.mxu0 %v5066_v34  ;;  %v385_v34 = vld [vmem:[%s5228_s12 + $0x3f0] sm:$0xff] }
  0xb5   : > { %3198 = vmatprep.subr.bf16.mxu0 %v5089_v1 }
  0xb6   : > { %2452 = vmatmul.mubr.bf16.gmra.mrb[56].mxu1 %v4304_v59  ;;  %v4309_v59 = vcombine.high %v373_v55, %v377_v56  ;;  %v4416_v55 = vcombine.low %v483_v42, %v487_v18 }
  0xb7   : > { %2966 = vmatmul.mubr.bf16.gmra.mrb[24].mxu0 %v4244_v60  ;;  %2459 = vmatprep.mubr.bf16.mxu1 %v4313_v61  ;;  %v443_v60 = vld [vmem:[%s5228_s12 + $0x5c0] sm:$0xff] }
  0xb8   : > { %2973 = vmatprep.mubr.bf16.mxu0 %v4253_v62  ;;  %3199 = vmatpush1.bf16.msra.mxu0 %v5067_v19  ;;  %v447_v61 = vld [vmem:[%s5228_s12 + $0x5e0] sm:$0xff]  ;;  %v381_v62 = vld [vmem:[%s5228_s12 + $0x3d0] sm:$0xff] }
  0xb9   : > { %3200 = vmatprep.subr.bf16.mxu0 %v5089_v1  ;;  %v4377_v2 = vcombine.high %v443_v60, %v447_v61  ;;  %v4317_v3 = vcombine.high %v381_v62, %v385_v34  ;;  %v4376_v7 = vcombine.low %v443_v60, %v447_v61  ;;  %v4316_v9 = vcombine.low %v381_v62, %v385_v34  ;;  %v499_v61 = vld [vmem:[%s5228_s12 + $0x780] sm:$0xff]  ;;  %v437_v34 = vld [vmem:[%s5228_s12 + $0x590] sm:$0xff] }
  0xba   : > { %v503_v62 = vld [vmem:[%s5228_s12 + $0x7a0] sm:$0xff] }
  0xbc   : > { %3201 = vmatpush1.bf16.msra.mxu0 %v5068_v39 }
  0xbd   : > { %3202 = vmatprep.subr.bf16.mxu0 %v5089_v1 }
  0xbe   : > { %2460 = vmatmul.mubr.bf16.gmra.mrb[60].mxu1 %v4312_v36  ;;  %v451_v36 = vld [vmem:[%s5228_s12 + $0x600] sm:$0xff] }
  0xbf   : > { %2974 = vmatmul.mubr.bf16.gmra.mrb[28].mxu0 %v4252_v4  ;;  %2467 = vmatprep.mubr.bf16.mxu1 %v4321_v5  ;;  %v455_v4 = vld [vmem:[%s5228_s12 + $0x620] sm:$0xff]  ;;  %v389_v5 = vld [vmem:[%s5228_s12 + $0x410] sm:$0xff] }
  0xc0   : > { %2981 = vmatprep.mubr.bf16.mxu0 %v4261_v6  ;;  %3203 = vmatpush1.bf16.msra.mxu0 %v5069_v53  ;;  %v393_v6 = vld [vmem:[%s5228_s12 + $0x430] sm:$0xff]  ;;  %v4385_v38 = vcombine.high %v451_v36, %v455_v4  ;;  %v4384_v19 = vcombine.low %v451_v36, %v455_v4  ;;  %v4433_v36 = vcombine.high %v499_v61, %v503_v62 }
  0xc1   : > { %3204 = vmatprep.subr.bf16.mxu0 %v5089_v1  ;;  %v5070_v1 = vld [vmem:[%s6296_s1 + $0x1f8] sm:$0xff]   ;;  %v4325_v11 = vcombine.high %v389_v5, %v393_v6  ;;  %v4324_v10 = vcombine.low %v389_v5, %v393_v6  ;;  %v429_v53 = vld [vmem:[%s5228_s12 + $0x550] sm:$0xff] }
  0xc4   : > { %3205 = vmatpush1.bf16.msra.mxu0 %v5070_v1  ;;  %v4364_v1 = vcombine.low %v429_v53, %v433_v54 }
  0xc6   : > { %2468 = vmatmul.mubr.bf16.gmra.mrb[64].mxu1 %v4320_v8  ;;  %v459_v8 = vld [vmem:[%s5228_s12 + $0x640] sm:$0xff] }
  0xc7   : > { %2982 = vmatmul.mubr.bf16.gmra.mrb[32].mxu0 %v4260_v13  ;;  %2475 = vmatprep.mubr.bf16.mxu1 %v4329_v15  ;;  %v463_v13 = vld [vmem:[%s5228_s12 + $0x660] sm:$0xff]  ;;  %v397_v15 = vld [vmem:[%s5228_s12 + $0x450] sm:$0xff] }
  0xc8   : > { %2989 = vmatprep.mubr.bf16.mxu0 %v4269_v17  ;;  %v401_v17 = vld [vmem:[%s5228_s12 + $0x470] sm:$0xff]  ;;  %v4393_v20 = vcombine.high %v459_v8, %v463_v13 }
  0xc9   : > { %v4333_v21 = vcombine.high %v397_v15, %v401_v17  ;;  %v4332_v27 = vcombine.low %v397_v15, %v401_v17 }
  0xce   : > { %2476 = vmatmul.mubr.bf16.gmra.mrb[68].mxu1 %v4328_v23  ;;  %v471_v23 = vld [vmem:[%s5228_s12 + $0x6a0] sm:$0xff] }
  0xcf   : > { %2990 = vmatmul.mubr.bf16.gmra.mrb[36].mxu0 %v4268_v12  ;;  %2483 = vmatprep.mubr.bf16.mxu1 %v4337_v24  ;;  %v405_v12 = vld [vmem:[%s5228_s12 + $0x490] sm:$0xff]  ;;  %v4401_v29 = vcombine.high %v467_v22, %v471_v23 }
  0xd0   : > { %2997 = vmatprep.mubr.bf16.mxu0 %v4277_v25  ;;  %v409_v24 = vld [vmem:[%s5228_s12 + $0x4b0] sm:$0xff]  ;;  %v4392_v25 = vcombine.low %v459_v8, %v463_v13  ;;  %v4432_v13 = vcombine.low %v499_v61, %v503_v62  ;;  %v348_v61 = vld [vmem:[%s5228_s12 + $0x2c8] sm:$0xff] }
  0xd1   : > { %v4341_v14 = vcombine.high %v405_v12, %v409_v24  ;;  %v4340_v39 = vcombine.low %v405_v12, %v409_v24  ;;  %v453_v12 = vld [vmem:[%s5228_s12 + $0x610] sm:$0xff]  ;;  %v352_v62 = vld [vmem:[%s5228_s12 + $0x2e8] sm:$0xff] }
  0xd2   : > { %v457_v24 = vld [vmem:[%s5228_s12 + $0x630] sm:$0xff] }
  0xd6   : > { %2484 = vmatmul.mubr.bf16.gmra.mrb[72].mxu1 %v4336_v33  ;;  %v479_v33 = vld [vmem:[%s5228_s12 + $0x6e0] sm:$0xff] }
  0xd7   : > { %2998 = vmatmul.mubr.bf16.gmra.mrb[40].mxu0 %v4276_v35  ;;  %2491 = vmatprep.mubr.bf16.mxu1 %v4345_v37  ;;  %v413_v35 = vld [vmem:[%s5228_s12 + $0x4d0] sm:$0xff]  ;;  %v4409_v40 = vcombine.high %v475_v31, %v479_v33 }
  0xd8   : > { %3005 = vmatprep.mubr.bf16.mxu0 %v4285_v16  ;;  %v417_v37 = vld [vmem:[%s5228_s12 + $0x4f0] sm:$0xff]  ;;  %v4400_v16 = vcombine.low %v467_v22, %v471_v23  ;;  %v324_v22 = vld [vmem:[%s5228_s12 + $0x208] sm:$0xff] }
  0xd9   : > { %v4349_v41 = vcombine.high %v413_v35, %v417_v37  ;;  %v4348_v47 = vcombine.low %v413_v35, %v417_v37  ;;  %v328_v23 = vld [vmem:[%s5228_s12 + $0x228] sm:$0xff]  ;;  %v4389_v35 = vcombine.high %v453_v12, %v457_v24 }
  0xda   : > { %v4258_v18 = vcombine.low %v324_v22, %v328_v23 }
  0xde   : > { %2492 = vmatmul.mubr.bf16.gmra.mrb[76].mxu1 %v4344_v43  ;;  %v421_v43 = vld [vmem:[%s5228_s12 + $0x510] sm:$0xff] }
  0xdf   : > { %3006 = vmatmul.mubr.bf16.gmra.mrb[44].mxu0 %v4284_v44  ;;  %2499 = vmatprep.mubr.bf16.mxu1 %v4353_v45  ;;  %v425_v44 = vld [vmem:[%s5228_s12 + $0x530] sm:$0xff] }
  0xe0   : > { %3013 = vmatprep.mubr.bf16.mxu0 %v4293_v46  ;;  %v4408_v46 = vcombine.low %v475_v31, %v479_v33  ;;  %v4259_v31 = vcombine.high %v324_v22, %v328_v23  ;;  %v364_v22 = vld [vmem:[%s5228_s12 + $0x348] sm:$0xff] }
  0xe1   : > { %v368_v23 = vld [vmem:[%s5228_s12 + $0x368] sm:$0xff] }
  0xe6   : > { %2500 = vmatmul.mubr.bf16.gmra.mrb[80].mxu1 %v4352_v50  ;;  %v4357_v50 = vcombine.high %v421_v43, %v425_v44 }
  0xe7   : > { %3014 = vmatmul.mubr.bf16.gmra.mrb[48].mxu0 %v4292_v28  ;;  %2507 = vmatprep.mubr.bf16.mxu1 %v4361_v51  ;;  %v491_v51 = vld [vmem:[%s5228_s12 + $0x740] sm:$0xff] }
  0xe8   : > { %3021 = vmatprep.mubr.bf16.mxu0 %v4301_v52  ;;  %v495_v52 = vld [vmem:[%s5228_s12 + $0x760] sm:$0xff] }
  0xee   : > { %2508 = vmatmul.mubr.bf16.gmra.mrb[84].mxu1 %v4360_v57  ;;  %v4356_v57 = vcombine.low %v421_v43, %v425_v44  ;;  %v4388_v44 = vcombine.low %v453_v12, %v457_v24  ;;  %v493_v12 = vld [vmem:[%s5228_s12 + $0x750] sm:$0xff] }
  0xef   : > { %3022 = vmatmul.mubr.bf16.gmra.mrb[52].mxu0 %v4300_v58  ;;  %2515 = vmatprep.mubr.bf16.mxu1 %v4369_v32  ;;  %v4425_v58 = vcombine.high %v491_v51, %v495_v52  ;;  %v497_v24 = vld [vmem:[%s5228_s12 + $0x770] sm:$0xff] }
  0xf0   : > { %3029 = vmatprep.mubr.bf16.mxu0 %v4309_v59  ;;  %v4365_v59 = vcombine.high %v429_v53, %v433_v54 }
  0xf6   : > { %2516 = vmatmul.mubr.bf16.gmra.mrb[88].mxu1 %v4368_v63  ;;  %v441_v63 = vld [vmem:[%s5228_s12 + $0x5b0] sm:$0xff] }
  0xf7   : > { %3030 = vmatmul.mubr.bf16.gmra.mrb[56].mxu0 %v4308_v0  ;;  %2523 = vmatprep.mubr.bf16.mxu1 %v4377_v2  ;;  %v4424_v2 = vcombine.low %v491_v51, %v495_v52  ;;  %v4373_v5 = vcombine.high %v437_v34, %v441_v63  ;;  %v4372_v17 = vcombine.low %v437_v34, %v441_v63  ;;  %v469_v51 = vld [vmem:[%s5228_s12 + $0x690] sm:$0xff] }
  0xf8   : > { %3037 = vmatprep.mubr.bf16.mxu0 %v4317_v3  ;;  %v473_v52 = vld [vmem:[%s5228_s12 + $0x6b0] sm:$0xff] }
  0xf9   : > { %v477_v34 = vld [vmem:[%s5228_s12 + $0x6d0] sm:$0xff] }
  0xfa   : > { %v481_v63 = vld [vmem:[%s5228_s12 + $0x6f0] sm:$0xff] }
  0xfe   : > { %2524 = vmatmul.mubr.bf16.gmra.mrb[92].mxu1 %v4376_v7  ;;  %v507_v7 = vld [vmem:[%s5228_s12 + $0x7c0] sm:$0xff] }
  0xff   : > { %3038 = vmatmul.mubr.bf16.gmra.mrb[60].mxu0 %v4316_v9  ;;  %2531 = vmatprep.mubr.bf16.mxu1 %v4385_v38  ;;  %v511_v9 = vld [vmem:[%s5228_s12 + $0x7e0] sm:$0xff]  ;;  %v445_v38 = vld [vmem:[%s5228_s12 + $0x5d0] sm:$0xff] }
 0x100   : > { %3045 = vmatprep.mubr.bf16.mxu0 %v4325_v11  ;;  %v449_v11 = vld [vmem:[%s5228_s12 + $0x5f0] sm:$0xff] }
 0x106   : > { %2532 = vmatmul.mubr.bf16.gmra.mrb[96].mxu1 %v4384_v19  ;;  %v4441_v19 = vcombine.high %v507_v7, %v511_v9 }
 0x107   : > { %3046 = vmatmul.mubr.bf16.gmra.mrb[64].mxu0 %v4324_v10  ;;  %2539 = vmatprep.mubr.bf16.mxu1 %v4393_v20  ;;  %v4381_v20 = vcombine.high %v445_v38, %v449_v11 }
 0x108   : > { %3053 = vmatprep.mubr.bf16.mxu0 %v4333_v21 }
 0x10e   : > { %2540 = vmatmul.mubr.bf16.gmra.mrb[100].mxu1 %v4392_v25 }
 0x10f   : > { %3054 = vmatmul.mubr.bf16.gmra.mrb[68].mxu0 %v4332_v27  ;;  %2547 = vmatprep.mubr.bf16.mxu1 %v4401_v29  ;;  %v4440_v27 = vcombine.low %v507_v7, %v511_v9  ;;  %v4413_v7 = vcombine.high %v477_v34, %v481_v63 }
 0x110   : > { %3061 = vmatprep.mubr.bf16.mxu0 %v4341_v14  ;;  %v4380_v14 = vcombine.low %v445_v38, %v449_v11  ;;  %v356_v38 = vld [vmem:[%s5228_s12 + $0x308] sm:$0xff] }
 0x111   : > { %v360_v11 = vld [vmem:[%s5228_s12 + $0x328] sm:$0xff] }
 0x116   : > { %2548 = vmatmul.mubr.bf16.gmra.mrb[104].mxu1 %v4400_v16  ;;  %v332_v16 = vld [vmem:[%s5228_s12 + $0x248] sm:$0xff] }
 0x117   : > { %3062 = vmatmul.mubr.bf16.gmra.mrb[72].mxu0 %v4340_v39  ;;  %2555 = vmatprep.mubr.bf16.mxu1 %v4409_v40  ;;  %v336_v39 = vld [vmem:[%s5228_s12 + $0x268] sm:$0xff]  ;;  %v461_v40 = vld [vmem:[%s5228_s12 + $0x650] sm:$0xff] }
 0x118   : > { %3069 = vmatprep.mubr.bf16.mxu0 %v4349_v41  ;;  %v465_v41 = vld [vmem:[%s5228_s12 + $0x670] sm:$0xff]  ;;  %v4266_v54 = vcombine.low %v332_v16, %v336_v39 }
 0x119   : > { %v5599_v45 = vpop.f32.mrb[0].mxu1 }
 0x11a   : > { %v2343_v26 = vpop.f32.mrb[1].mxu1 }
 0x11b   : > { %v5601_v49 = vpop.f32.mrb[2].mxu1 }
 0x11c   : > { %v2346_v28 = vpop.f32.mrb[3].mxu1 }
 0x11d   : > { %v344_v28 = vld [vmem:[%s5228_s12 + $0x2a8] sm:$0xff] }
 0x11e   : > { %2556 = vmatmul.mubr.bf16.gmra.mrb[108].mxu1 %v4408_v46  ;;  %v4267_v46 = vcombine.high %v332_v16, %v336_v39  ;;  %v501_v16 = vld [vmem:[%s5228_s12 + $0x790] sm:$0xff] }
 0x11f   : > { %3070 = vmatmul.mubr.bf16.gmra.mrb[76].mxu0 %v4348_v47  ;;  %2563 = vmatprep.mubr.bf16.mxu1 %v4417_v48  ;;  %v4397_v47 = vcombine.high %v461_v40, %v465_v41  ;;  %v505_v39 = vld [vmem:[%s5228_s12 + $0x7b0] sm:$0xff] }
 0x120   : > { %3077 = vmatprep.mubr.bf16.mxu0 %v4357_v50  ;;  %v340_v50 = vld [vmem:[%s5228_s12 + $0x288] sm:$0xff] }
 0x121   : > { %v5607_v30 = vpop.f32.mrb[4].mxu1 }
 0x122   : > { %v2351_v56 = vpop.f32.mrb[5].mxu1 }
 0x123   : > { %v5609_v32 = vpop.f32.mrb[6].mxu1  ;;  %v4396_v56 = vcombine.low %v461_v40, %v465_v41  ;;  %v4298_v40 = vcombine.low %v364_v22, %v368_v23  ;;  %v4428_v41 = vcombine.low %v493_v12, %v497_v24 }
 0x124   : > { %v2354_v60 = vpop.f32.mrb[7].mxu1 }
 0x126   : > { %2564 = vmatmul.mubr.bf16.gmra.mrb[112].mxu1 %v4416_v55 }
 0x127   : > { %3078 = vmatmul.mubr.bf16.gmra.mrb[80].mxu0 %v4356_v57  ;;  %2571 = vmatprep.mubr.bf16.mxu1 %v4425_v58  ;;  %v4275_v57 = vcombine.high %v340_v50, %v344_v28 }
 0x128   : > { %3085 = vmatprep.mubr.bf16.mxu0 %v4365_v59  ;;  %v4405_v59 = vcombine.high %v469_v51, %v473_v52 }
 0x129   : > { %v5615_v0 = vpop.f32.mrb[8].mxu1 }
 0x12a   : > { %v2359_v3 = vpop.f32.mrb[9].mxu1 }
 0x12b   : > { %v5617_v4 = vpop.f32.mrb[10].mxu1  ;;  %v4274_v3 = vcombine.low %v340_v50, %v344_v28  ;;  %v4436_v28 = vcombine.low %v501_v16, %v505_v39 }
 0x12c   : > { %v2362_v6 = vpop.f32.mrb[11].mxu1 }
 0x12e   : > { %2572 = vmatmul.mubr.bf16.gmra.mrb[116].mxu1 %v4424_v2 }
 0x12f   : > { %3086 = vmatmul.mubr.bf16.gmra.mrb[84].mxu0 %v4364_v1  ;;  %2579 = vmatprep.mubr.bf16.mxu1 %v4433_v36  ;;  %v4404_v36 = vcombine.low %v469_v51, %v473_v52 }
 0x130   : > { %3093 = vmatprep.mubr.bf16.mxu0 %v4373_v5  ;;  %v4283_v5 = vcombine.high %v348_v61, %v352_v62 }
 0x131   : > { %v5623_v8 = vpop.f32.mrb[12].mxu1 }
 0x132   : > { %v2367_v15 = vpop.f32.mrb[13].mxu1 }
 0x133   : > { %v5625_v10 = vpop.f32.mrb[14].mxu1  ;;  %v489_v15 = vld [vmem:[%s5228_s12 + $0x730] sm:$0xff] }
 0x134   : > { %v2370_v21 = vpop.f32.mrb[15].mxu1 }
 0x136   : > { %2580 = vmatmul.mubr.bf16.gmra.mrb[120].mxu1 %v4432_v13  ;;  %v485_v13 = vld [vmem:[%s5228_s12 + $0x710] sm:$0xff] }
 0x137   : > { %3094 = vmatmul.mubr.bf16.gmra.mrb[88].mxu0 %v4372_v17  ;;  %2587 = vmatprep.mubr.bf16.mxu1 %v4441_v19  ;;  %v4282_v17 = vcombine.low %v348_v61, %v352_v62  ;;  %v4412_v19 = vcombine.low %v477_v34, %v481_v63  ;;  %v4421_v21 = vcombine.high %v485_v13, %v489_v15  ;;  %v396_v34 = vld [vmem:[%s5228_s12 + $0x448] sm:$0xff] }
 0x138   : > { %3101 = vmatprep.mubr.bf16.mxu0 %v4381_v20  ;;  %v4291_v20 = vcombine.high %v356_v38, %v360_v11  ;;  %v400_v63 = vld [vmem:[%s5228_s12 + $0x468] sm:$0xff] }
 0x139   : > { %v5631_v25 = vpop.f32.mrb[16].mxu1 }
 0x13a   : > { %v2375_v29 = vpop.f32.mrb[17].mxu1 }
 0x13b   : > { %v5633_v33 = vpop.f32.mrb[18].mxu1  ;;  %v4420_v29 = vcombine.low %v485_v13, %v489_v15  ;;  %v278_v13 = vld [vmem:[%s5228_s12 + $0x98] sm:$0xff] }
 0x13c   : > { %v2378_v37 = vpop.f32.mrb[19].mxu1  ;;  %v282_v15 = vld [vmem:[%s5228_s12 + $0xb8] sm:$0xff] }
 0x13d   : > { %v376_v37 = vld [vmem:[%s5228_s12 + $0x3a8] sm:$0xff] }
 0x13e   : > { %2588 = vmatmul.mubr.bf16.gmra.mrb[124].mxu1 %v4440_v27  ;;  %v4290_v27 = vcombine.low %v356_v38, %v360_v11  ;;  %v404_v38 = vld [vmem:[%s5228_s12 + $0x488] sm:$0xff] }
 0x13f   : > { %3102 = vmatmul.mubr.bf16.gmra.mrb[92].mxu0 %v4380_v14  ;;  %2692 = vmatprep.mubr.bf16.mxu1 %v4259_v31  ;;  %v4299_v14 = vcombine.high %v364_v22, %v368_v23  ;;  %v4429_v31 = vcombine.high %v493_v12, %v497_v24  ;;  %v408_v11 = vld [vmem:[%s5228_s12 + $0x4a8] sm:$0xff]  ;;  %v286_v12 = vld [vmem:[%s5228_s12 + $0xd8] sm:$0xff] }
 0x140   : > { %3109 = vmatprep.mubr.bf16.mxu0 %v4389_v35  ;;  %v372_v35 = vld [vmem:[%s5228_s12 + $0x388] sm:$0xff]  ;;  %v290_v24 = vld [vmem:[%s5228_s12 + $0xf8] sm:$0xff] }
 0x141   : > { %v5639_v42 = vpop.f32.mrb[20].mxu1  ;;  %v4306_v50 = vcombine.low %v372_v35, %v376_v37  ;;  %v412_v22 = vld [vmem:[%s5228_s12 + $0x4c8] sm:$0xff] }
 0x142   : > { %v2383_v43 = vpop.f32.mrb[21].mxu1  ;;  %v416_v23 = vld [vmem:[%s5228_s12 + $0x4e8] sm:$0xff] }
 0x143   : > { %v5641_v26 = vpop.f32.mrb[22].mxu1  ;;  %v4437_v43 = vcombine.high %v501_v16, %v505_v39  ;;  %v294_v16 = vld [vmem:[%s5228_s12 + $0x118] sm:$0xff] }
 0x144   : > { %v2386_v48 = vpop.f32.mrb[23].mxu1  ;;  %v298_v39 = vld [vmem:[%s5228_s12 + $0x138] sm:$0xff] }
 0x145   : > { %v513_v48 = vld [vmem:[%s5228_s12 + $0x7f0] sm:$0xff] }
 0x146   : > { %2693 = vmatmul.mubr.bf16.vlgmr.msra.gmra.mrb[32].mxu1 %v4258_v18  ;;  %v4307_v18 = vcombine.high %v372_v35, %v376_v37  ;;  %v420_v35 = vld [vmem:[%s5228_s12 + $0x508] sm:$0xff] }
 0x147   : > { %3110 = vmatmul.mubr.bf16.gmra.mrb[96].mxu0 %v4388_v44  ;;  %2700 = vmatprep.mubr.bf16.mxu1 %v4267_v46  ;;  %v380_v44 = vld [vmem:[%s5228_s12 + $0x3c8] sm:$0xff] }
 0x148   : > { %3117 = vmatprep.mubr.bf16.mxu0 %v4397_v47  ;;  %v384_v46 = vld [vmem:[%s5228_s12 + $0x3e8] sm:$0xff]  ;;  %v509_v47 = vld [vmem:[%s5228_s12 + $0x7d0] sm:$0xff] }
 0x149   : > { %v5647_v53 = vpop.f32.mrb[24].mxu1  ;;  %v4315_v51 = vcombine.high %v380_v44, %v384_v46  ;;  %v4445_v52 = vcombine.high %v509_v47, %v513_v48  ;;  %v424_v37 = vld [vmem:[%s5228_s12 + $0x528] sm:$0xff] }
 0x14a   : > { %v2391_v55 = vpop.f32.mrb[25].mxu1 }
 0x14b   : > { %v5649_v58 = vpop.f32.mrb[26].mxu1  ;;  %v392_v55 = vld [vmem:[%s5228_s12 + $0x428] sm:$0xff] }
 0x14c   : > { %v2394_v60 = vpop.f32.mrb[27].mxu1 }
 0x14d   : > { %v4444_v60 = vcombine.low %v509_v47, %v513_v48  ;;  %v302_v47 = vld [vmem:[%s5228_s12 + $0x158] sm:$0xff] }
 0x14e   : > { %2701 = vmatmul.mubr.bf16.gmra.mrb[36].mxu1 %v4266_v54  ;;  %v388_v54 = vld [vmem:[%s5228_s12 + $0x408] sm:$0xff]  ;;  %v306_v48 = vld [vmem:[%s5228_s12 + $0x178] sm:$0xff] }
 0x14f   : > { %3118 = vmatmul.mubr.bf16.gmra.mrb[100].mxu0 %v4396_v56  ;;  %2708 = vmatprep.mubr.bf16.mxu1 %v4275_v57  ;;  %v262_v56 = vld [vmem:[%s5228_s12 + $0x18] sm:$0xff]  ;;  %v4323_v61 = vcombine.high %v388_v54, %v392_v55 }
 0x150   : > { %3125 = vmatprep.mubr.bf16.mxu0 %v4405_v59  ;;  %v266_v57 = vld [vmem:[%s5228_s12 + $0x38] sm:$0xff]  ;;  %v4314_v59 = vcombine.low %v380_v44, %v384_v46  ;;  %v428_v44 = vld [vmem:[%s5228_s12 + $0x548] sm:$0xff] }
 0x151   : > { %v5655_v2 = vpop.f32.mrb[28].mxu1  ;;  %v4199_v62 = vcombine.high %v262_v56, %v266_v57  ;;  %v432_v46 = vld [vmem:[%s5228_s12 + $0x568] sm:$0xff] }
 0x152   : > { %v2399_v1 = vpop.f32.mrb[29].mxu1 }
 0x153   : > { %v5657_v6 = vpop.f32.mrb[30].mxu1  ;;  %v274_v1 = vld [vmem:[%s5228_s12 + $0x78] sm:$0xff] }
 0x154   : > { %v2402_v9 = vpop.f32.mrb[31].mxu1 }
 0x156   : > { %2709 = vmatmul.mubr.bf16.gmra.mrb[40].mxu1 %v4274_v3  ;;  %v270_v3 = vld [vmem:[%s5228_s12 + $0x58] sm:$0xff] }
 0x157   : > { %3126 = vmatmul.mubr.bf16.gmra.mrb[104].mxu0 %v4404_v36  ;;  %2716 = vmatprep.mubr.bf16.mxu1 %v4283_v5  ;;  %v4322_v36 = vcombine.low %v388_v54, %v392_v55  ;;  %v4198_v5 = vcombine.low %v262_v56, %v266_v57  ;;  %v4207_v9 = vcombine.high %v270_v3, %v274_v1  ;;  %v5071_v54 = vld [vmem:[%s6299_s4] sm:$0xff]   ;;  %v436_v55 = vld [vmem:[%s5228_s12 + $0x588] sm:$0xff]  ;;  %v310_v57 = vld [vmem:[%s5228_s12 + $0x198] sm:$0xff] }
 0x158   : > { %3133 = vmatprep.mubr.bf16.mxu0 %v4413_v7  ;;  %v4331_v7 = vcombine.high %v396_v34, %v400_v63  ;;  %v440_v56 = vld [vmem:[%s5228_s12 + $0x5a8] sm:$0xff]  ;;  %4566 = vmatprep.subr.bf16.mxu1 %v5071_v54 }
 0x159   : > { %4567 = vmatpush3.bf16.msra.mxu1 %v5071_v54 }
 0x15e   : > { %2717 = vmatmul.mubr.bf16.gmra.mrb[44].mxu1 %v4282_v17  ;;  %v4330_v17 = vcombine.low %v396_v34, %v400_v63  ;;  %v444_v63 = vld [vmem:[%s5228_s12 + $0x5c8] sm:$0xff] }
 0x15f   : > { %3134 = vmatmul.mubr.bf16.gmra.mrb[108].mxu0 %v4412_v19  ;;  %2724 = vmatprep.mubr.bf16.mxu1 %v4291_v20  ;;  %v4206_v19 = vcombine.low %v270_v3, %v274_v1  ;;  %v4339_v20 = vcombine.high %v404_v38, %v408_v11  ;;  %v448_v3 = vld [vmem:[%s5228_s12 + $0x5e8] sm:$0xff]  ;;  %v318_v1 = vld [vmem:[%s5228_s12 + $0x1d8] sm:$0xff] }
 0x160   : > { %3141 = vmatprep.mubr.bf16.mxu0 %v4421_v21  ;;  %v4215_v21 = vcombine.high %v278_v13, %v282_v15 }
 0x166   : > { %2725 = vmatmul.mubr.bf16.gmra.mrb[48].mxu1 %v4290_v27  ;;  %v4338_v27 = vcombine.low %v404_v38, %v408_v11  ;;  %v452_v11 = vld [vmem:[%s5228_s12 + $0x608] sm:$0xff] }
 0x167   : > { %3142 = vmatmul.mubr.bf16.gmra.mrb[112].mxu0 %v4420_v29  ;;  %2732 = vmatprep.mubr.bf16.mxu1 %v4299_v14  ;;  %v4214_v29 = vcombine.low %v278_v13, %v282_v15  ;;  %v4347_v14 = vcombine.high %v412_v22, %v416_v23  ;;  %v456_v13 = vld [vmem:[%s5228_s12 + $0x628] sm:$0xff]  ;;  %v326_v15 = vld [vmem:[%s5228_s12 + $0x218] sm:$0xff] }
 0x168   : > { %3149 = vmatprep.mubr.bf16.mxu0 %v4429_v31  ;;  %v4223_v31 = vcombine.high %v286_v12, %v290_v24 }
 0x16e   : > { %2733 = vmatmul.mubr.bf16.gmra.mrb[52].mxu1 %v4298_v40  ;;  %v4346_v40 = vcombine.low %v412_v22, %v416_v23  ;;  %v5072_v23 = vld [vmem:[%s6299_s4 + $0x8] sm:$0xff]  }
 0x16f   : > { %3150 = vmatmul.mubr.bf16.gmra.mrb[116].mxu0 %v4428_v41  ;;  %2740 = vmatprep.mubr.bf16.mxu1 %v4307_v18  ;;  %v4222_v41 = vcombine.low %v286_v12, %v290_v24  ;;  %v4355_v18 = vcombine.high %v420_v35, %v424_v37  ;;  %v460_v12 = vld [vmem:[%s5228_s12 + $0x648] sm:$0xff] }
 0x170   : > { %3157 = vmatprep.mubr.bf16.mxu0 %v4437_v43  ;;  %v4231_v43 = vcombine.high %v294_v16, %v298_v39  ;;  %v464_v24 = vld [vmem:[%s5228_s12 + $0x668] sm:$0xff]  ;;  %4568 = vmatprep.subr.bf16.mxu1 %v5072_v23 }
 0x171   : > { %4569 = vmatpush3.bf16.msra.mxu1 %v5072_v23  ;;  %v374_v23 = vld [vmem:[%s5228_s12 + $0x398] sm:$0xff] }
 0x176   : > { %2741 = vmatmul.mubr.bf16.gmra.mrb[56].mxu1 %v4306_v50  ;;  %v4354_v50 = vcombine.low %v420_v35, %v424_v37  ;;  %v4395_v35 = vcombine.high %v460_v12, %v464_v24 }
 0x177   : > { %3158 = vmatmul.mubr.bf16.gmra.mrb[120].mxu0 %v4436_v28  ;;  %2748 = vmatprep.mubr.bf16.mxu1 %v4315_v51  ;;  %v4230_v28 = vcombine.low %v294_v16, %v298_v39  ;;  %v4363_v51 = vcombine.high %v428_v44, %v432_v46  ;;  %v468_v16 = vld [vmem:[%s5228_s12 + $0x688] sm:$0xff] }
 0x178   : > { %3165 = vmatprep.mubr.bf16.mxu0 %v4445_v52  ;;  %v4239_v52 = vcombine.high %v302_v47, %v306_v48  ;;  %v472_v39 = vld [vmem:[%s5228_s12 + $0x6a8] sm:$0xff] }
 0x17e   : > { %2749 = vmatmul.mubr.bf16.gmra.mrb[60].mxu1 %v4314_v59  ;;  %v314_v59 = vld [vmem:[%s5228_s12 + $0x1b8] sm:$0xff] }
 0x17f   : > { %3166 = vmatmul.mubr.bf16.gmra.mrb[124].mxu0 %v4444_v60  ;;  %2756 = vmatprep.mubr.bf16.mxu1 %v4323_v61  ;;  %v4362_v60 = vcombine.low %v428_v44, %v432_v46  ;;  %v4238_v61 = vcombine.low %v302_v47, %v306_v48  ;;  %v4247_v34 = vcombine.high %v310_v57, %v314_v59  ;;  %v476_v47 = vld [vmem:[%s5228_s12 + $0x6c8] sm:$0xff] }
 0x180   : > { %3206 = vmatprep.mubr.bf16.mxu0 %v4199_v62  ;;  %v4371_v62 = vcombine.high %v436_v55, %v440_v56  ;;  %v4403_v44 = vcombine.high %v468_v16, %v472_v39  ;;  %v480_v48 = vld [vmem:[%s5228_s12 + $0x6e8] sm:$0xff] }
 0x181   : > { %v4411_v54 = vcombine.high %v476_v47, %v480_v48 }
 0x186   : > { %2757 = vmatmul.mubr.bf16.gmra.mrb[64].mxu1 %v4322_v36  ;;  %v322_v36 = vld [vmem:[%s5228_s12 + $0x1f8] sm:$0xff] }
 0x187   : > { %3207 = vmatmul.mubr.bf16.vlgmr.msra.gmra.mrb[0].mxu0 %v4198_v5  ;;  %2764 = vmatprep.mubr.bf16.mxu1 %v4331_v7  ;;  %v4370_v5 = vcombine.low %v436_v55, %v440_v56  ;;  %v4246_v7 = vcombine.low %v310_v57, %v314_v59  ;;  %v4255_v38 = vcombine.high %v318_v1, %v322_v36  ;;  %v5073_v56 = vld [vmem:[%s6299_s4 + $0x10] sm:$0xff]   ;;  %v484_v57 = vld [vmem:[%s5228_s12 + $0x708] sm:$0xff] }
 0x188   : > { %3214 = vmatprep.mubr.bf16.mxu0 %v4207_v9  ;;  %v4379_v9 = vcombine.high %v444_v63, %v448_v3  ;;  %v488_v59 = vld [vmem:[%s5228_s12 + $0x728] sm:$0xff]  ;;  %4570 = vmatprep.subr.bf16.mxu1 %v5073_v56 }
 0x189   : > { %4571 = vmatpush3.bf16.msra.mxu1 %v5073_v56  ;;  %v410_v56 = vld [vmem:[%s5228_s12 + $0x4b8] sm:$0xff] }
 0x18e   : > { %2765 = vmatmul.mubr.bf16.gmra.mrb[68].mxu1 %v4330_v17  ;;  %v330_v17 = vld [vmem:[%s5228_s12 + $0x238] sm:$0xff] }
 0x18f   : > { %3215 = vmatmul.mubr.bf16.gmra.mrb[4].mxu0 %v4206_v19  ;;  %2772 = vmatprep.mubr.bf16.mxu1 %v4339_v20  ;;  %v4378_v19 = vcombine.low %v444_v63, %v448_v3  ;;  %v4254_v20 = vcombine.low %v318_v1, %v322_v36  ;;  %v4263_v22 = vcombine.high %v326_v15, %v330_v17  ;;  %v5075_v36 = vld [vmem:[%s6299_s4 + $0x20] sm:$0xff]  }
 0x190   : > { %3222 = vmatprep.mubr.bf16.mxu0 %v4215_v21  ;;  %v4387_v21 = vcombine.high %v452_v11, %v456_v13  ;;  %v4419_v3 = vcombine.high %v484_v57, %v488_v59 }
 0x196   : > { %2773 = vmatmul.mubr.bf16.gmra.mrb[72].mxu1 %v4338_v27  ;;  %v334_v27 = vld [vmem:[%s5228_s12 + $0x258] sm:$0xff] }
 0x197   : > { %3223 = vmatmul.mubr.bf16.gmra.mrb[8].mxu0 %v4214_v29  ;;  %2780 = vmatprep.mubr.bf16.mxu1 %v4347_v14  ;;  %v338_v29 = vld [vmem:[%s5228_s12 + $0x278] sm:$0xff]  ;;  %v4386_v14 = vcombine.low %v452_v11, %v456_v13  ;;  %v5076_v11 = vld [vmem:[%s6299_s4 + $0x28] sm:$0xff]   ;;  %v4418_v13 = vcombine.low %v484_v57, %v488_v59 }
 0x198   : > { %3230 = vmatprep.mubr.bf16.mxu0 %v4223_v31  ;;  %v4262_v31 = vcombine.low %v326_v15, %v330_v17  ;;  %v4271_v37 = vcombine.high %v334_v27, %v338_v29 }
 0x19e   : > { %2781 = vmatmul.mubr.bf16.gmra.mrb[76].mxu1 %v4346_v40  ;;  %v342_v40 = vld [vmem:[%s5228_s12 + $0x298] sm:$0xff] }
 0x19f   : > { %3231 = vmatmul.mubr.bf16.gmra.mrb[12].mxu0 %v4222_v41  ;;  %2788 = vmatprep.mubr.bf16.mxu1 %v4355_v18  ;;  %v346_v41 = vld [vmem:[%s5228_s12 + $0x2b8] sm:$0xff]  ;;  %v4394_v18 = vcombine.low %v460_v12, %v464_v24 }
 0x1a0   : > { %3238 = vmatprep.mubr.bf16.mxu0 %v4231_v43  ;;  %v4270_v43 = vcombine.low %v334_v27, %v338_v29  ;;  %v4279_v46 = vcombine.high %v342_v40, %v346_v41  ;;  %v378_v12 = vld [vmem:[%s5228_s12 + $0x3b8] sm:$0xff] }
 0x1a1   : > { %v5078_v24 = vld [vmem:[%s6299_s4 + $0x38] sm:$0xff]  }
 0x1a6   : > { %2789 = vmatmul.mubr.bf16.gmra.mrb[80].mxu1 %v4354_v50  ;;  %v350_v50 = vld [vmem:[%s5228_s12 + $0x2d8] sm:$0xff] }
 0x1a7   : > { %3239 = vmatmul.mubr.bf16.gmra.mrb[16].mxu0 %v4230_v28  ;;  %2796 = vmatprep.mubr.bf16.mxu1 %v4363_v51  ;;  %v354_v28 = vld [vmem:[%s5228_s12 + $0x2f8] sm:$0xff]  ;;  %v4402_v51 = vcombine.low %v468_v16, %v472_v39 }
 0x1a8   : > { %3246 = vmatprep.mubr.bf16.mxu0 %v4239_v52  ;;  %v4278_v52 = vcombine.low %v342_v40, %v346_v41  ;;  %v4287_v55 = vcombine.high %v350_v50, %v354_v28  ;;  %v4286_v63 = vcombine.low %v350_v50, %v354_v28  ;;  %v382_v16 = vld [vmem:[%s5228_s12 + $0x3d8] sm:$0xff]  ;;  %v4310_v41 = vcombine.low %v374_v23, %v378_v12 }
 0x1a9   : > { %v386_v39 = vld [vmem:[%s5228_s12 + $0x3f8] sm:$0xff] }
 0x1aa   : > { %v398_v28 = vld [vmem:[%s5228_s12 + $0x458] sm:$0xff] }
 0x1ae   : > { %2797 = vmatmul.mubr.bf16.gmra.mrb[84].mxu1 %v4362_v60  ;;  %v358_v60 = vld [vmem:[%s5228_s12 + $0x318] sm:$0xff] }
 0x1af   : > { %3247 = vmatmul.mubr.bf16.gmra.mrb[20].mxu0 %v4238_v61  ;;  %2804 = vmatprep.mubr.bf16.mxu1 %v4371_v62  ;;  %v362_v61 = vld [vmem:[%s5228_s12 + $0x338] sm:$0xff] }
 0x1b0   : > { %3254 = vmatprep.mubr.bf16.mxu0 %v4247_v34  ;;  %v5074_v62 = vld [vmem:[%s6299_s4 + $0x18] sm:$0xff]   ;;  %v4410_v34 = vcombine.low %v476_v47, %v480_v48  ;;  %v4295_v1 = vcombine.high %v358_v60, %v362_v61  ;;  %v4294_v15 = vcombine.low %v358_v60, %v362_v61  ;;  %v4318_v48 = vcombine.low %v382_v16, %v386_v39 }
 0x1b1   : > { %4572 = vmatprep.subr.bf16.mxu1 %v5074_v62  ;;  %v414_v60 = vld [vmem:[%s5228_s12 + $0x4d8] sm:$0xff] }
 0x1b2   : > { %4573 = vmatpush3.bf16.msra.mxu1 %v5074_v62  ;;  %v418_v61 = vld [vmem:[%s5228_s12 + $0x4f8] sm:$0xff] }
 0x1b3   : > { %4574 = vmatprep.subr.bf16.mxu1 %v5075_v36 }
 0x1b6   : > { %2805 = vmatmul.mubr.bf16.gmra.mrb[88].mxu1 %v4370_v5  ;;  %v492_v5 = vld [vmem:[%s5228_s12 + $0x748] sm:$0xff] }
 0x1b7   : > { %3255 = vmatmul.mubr.bf16.gmra.mrb[24].mxu0 %v4246_v7  ;;  %2812 = vmatprep.mubr.bf16.mxu1 %v4379_v9  ;;  %v496_v7 = vld [vmem:[%s5228_s12 + $0x768] sm:$0xff]  ;;  %v366_v9 = vld [vmem:[%s5228_s12 + $0x358] sm:$0xff] }
 0x1b8   : > { %3262 = vmatprep.mubr.bf16.mxu0 %v4255_v38  ;;  %v370_v38 = vld [vmem:[%s5228_s12 + $0x378] sm:$0xff]  ;;  %4575 = vmatpush3.bf16.msra.mxu1 %v5075_v36  ;;  %v4427_v17 = vcombine.high %v492_v5, %v496_v7  ;;  %v4426_v27 = vcombine.low %v492_v5, %v496_v7  ;;  %v4350_v7 = vcombine.low %v414_v60, %v418_v61 }
 0x1b9   : > { %4576 = vmatprep.subr.bf16.mxu1 %v5076_v11  ;;  %v4302_v29 = vcombine.low %v366_v9, %v370_v38 }
 0x1bc   : > { %4577 = vmatpush3.bf16.msra.mxu1 %v5076_v11 }
 0x1be   : > { %2813 = vmatmul.mubr.bf16.gmra.mrb[92].mxu1 %v4378_v19  ;;  %v4303_v19 = vcombine.high %v366_v9, %v370_v38 }
 0x1bf   : > { %3263 = vmatmul.mubr.bf16.gmra.mrb[28].mxu0 %v4254_v20  ;;  %2820 = vmatprep.mubr.bf16.mxu1 %v4387_v21  ;;  %v5077_v20 = vld [vmem:[%s6299_s4 + $0x30] sm:$0xff]   ;;  %v500_v21 = vld [vmem:[%s5228_s12 + $0x788] sm:$0xff] }
 0x1c0   : > { %3270 = vmatprep.mubr.bf16.mxu0 %v4263_v22  ;;  %v504_v22 = vld [vmem:[%s5228_s12 + $0x7a8] sm:$0xff]  ;;  %4578 = vmatprep.subr.bf16.mxu1 %v5077_v20 }
 0x1c1   : > { %4579 = vmatpush3.bf16.msra.mxu1 %v5077_v20  ;;  %v4434_v40 = vcombine.low %v500_v21, %v504_v22 }
 0x1c2   : > { %4580 = vmatprep.subr.bf16.mxu1 %v5078_v24 }
 0x1c5   : > { %4581 = vmatpush3.bf16.msra.mxu1 %v5078_v24  ;;  %v442_v24 = vld [vmem:[%s5228_s12 + $0x5b8] sm:$0xff] }
 0x1c6   : > { %2821 = vmatmul.mubr.bf16.gmra.mrb[96].mxu1 %v4386_v14  ;;  %v4435_v14 = vcombine.high %v500_v21, %v504_v22 }
 0x1c7   : > { %3271 = vmatmul.mubr.bf16.gmra.mrb[32].mxu0 %v4262_v31  ;;  %2828 = vmatprep.mubr.bf16.mxu1 %v4395_v35  ;;  %v4311_v31 = vcombine.high %v374_v23, %v378_v12  ;;  %v508_v35 = vld [vmem:[%s5228_s12 + $0x7c8] sm:$0xff]  ;;  %v438_v12 = vld [vmem:[%s5228_s12 + $0x598] sm:$0xff] }
 0x1c8   : > { %3278 = vmatprep.mubr.bf16.mxu0 %v4271_v37  ;;  %v512_v37 = vld [vmem:[%s5228_s12 + $0x7e8] sm:$0xff] }
 0x1c9   : > { %v4442_v47 = vcombine.low %v508_v35, %v512_v37 }
 0x1ce   : > { %2829 = vmatmul.mubr.bf16.gmra.mrb[100].mxu1 %v4394_v18  ;;  %v4443_v18 = vcombine.high %v508_v35, %v512_v37  ;;  %v4375_v35 = vcombine.high %v438_v12, %v442_v24 }
 0x1cf   : > { %3279 = vmatmul.mubr.bf16.gmra.mrb[36].mxu0 %v4270_v43  ;;  %2836 = vmatprep.mubr.bf16.mxu1 %v4403_v44  ;;  %v4319_v43 = vcombine.high %v382_v16, %v386_v39  ;;  %v390_v44 = vld [vmem:[%s5228_s12 + $0x418] sm:$0xff] }
 0x1d0   : > { %3286 = vmatprep.mubr.bf16.mxu0 %v4279_v46  ;;  %v394_v46 = vld [vmem:[%s5228_s12 + $0x438] sm:$0xff] }
 0x1d1   : > { %v4327_v50 = vcombine.high %v390_v44, %v394_v46  ;;  %v446_v16 = vld [vmem:[%s5228_s12 + $0x5d8] sm:$0xff] }
 0x1d2   : > { %v450_v39 = vld [vmem:[%s5228_s12 + $0x5f8] sm:$0xff] }
 0x1d6   : > { %2837 = vmatmul.mubr.bf16.gmra.mrb[104].mxu1 %v4402_v51  ;;  %v402_v51 = vld [vmem:[%s5228_s12 + $0x478] sm:$0xff] }
 0x1d7   : > { %3287 = vmatmul.mubr.bf16.gmra.mrb[40].mxu0 %v4278_v52  ;;  %2844 = vmatprep.mubr.bf16.mxu1 %v4411_v54  ;;  %v4326_v52 = vcombine.low %v390_v44, %v394_v46  ;;  %v4335_v54 = vcombine.high %v398_v28, %v402_v51  ;;  %v4334_v57 = vcombine.low %v398_v28, %v402_v51 }
 0x1d8   : > { %3294 = vmatprep.mubr.bf16.mxu0 %v4287_v55  ;;  %v406_v55 = vld [vmem:[%s5228_s12 + $0x498] sm:$0xff]  ;;  %v4383_v44 = vcombine.high %v446_v16, %v450_v39  ;;  %v4382_v51 = vcombine.low %v446_v16, %v450_v39 }
 0x1d9   : > { %v4343_v59 = vcombine.high %v406_v55, %v410_v56  ;;  %v4342_v62 = vcombine.low %v406_v55, %v410_v56  ;;  %v462_v56 = vld [vmem:[%s5228_s12 + $0x658] sm:$0xff] }
 0x1da   : > { %v490_v16 = vld [vmem:[%s5228_s12 + $0x738] sm:$0xff] }
 0x1de   : > { %2845 = vmatmul.mubr.bf16.gmra.mrb[108].mxu1 %v4410_v34  ;;  %v4351_v34 = vcombine.high %v414_v60, %v418_v61 }
 0x1df   : > { %3295 = vmatmul.mubr.bf16.gmra.mrb[44].mxu0 %v4286_v63  ;;  %2852 = vmatprep.mubr.bf16.mxu1 %v4419_v3  ;;  %v422_v3 = vld [vmem:[%s5228_s12 + $0x518] sm:$0xff] }
 0x1e0   : > { %3302 = vmatprep.mubr.bf16.mxu0 %v4295_v1  ;;  %v426_v1 = vld [vmem:[%s5228_s12 + $0x538] sm:$0xff] }
 0x1e1   : > { %v4359_v38 = vcombine.high %v422_v3, %v426_v1  ;;  %v4358_v20 = vcombine.low %v422_v3, %v426_v1  ;;  %v470_v1 = vld [vmem:[%s5228_s12 + $0x698] sm:$0xff] }
 0x1e6   : > { %2853 = vmatmul.mubr.bf16.gmra.mrb[112].mxu1 %v4418_v13  ;;  %v430_v13 = vld [vmem:[%s5228_s12 + $0x558] sm:$0xff] }
 0x1e7   : > { %3303 = vmatmul.mubr.bf16.gmra.mrb[48].mxu0 %v4294_v15  ;;  %2860 = vmatprep.mubr.bf16.mxu1 %v4427_v17  ;;  %v434_v15 = vld [vmem:[%s5228_s12 + $0x578] sm:$0xff] }
 0x1e8   : > { %3310 = vmatprep.mubr.bf16.mxu0 %v4303_v19  ;;  %v4367_v22 = vcombine.high %v430_v13, %v434_v15 }
 0x1ee   : > { %2861 = vmatmul.mubr.bf16.gmra.mrb[116].mxu1 %v4426_v27 }
 0x1ef   : > { %3311 = vmatmul.mubr.bf16.gmra.mrb[52].mxu0 %v4302_v29  ;;  %2868 = vmatprep.mubr.bf16.mxu1 %v4435_v14  ;;  %v4366_v14 = vcombine.low %v430_v13, %v434_v15 }
 0x1f0   : > { %3318 = vmatprep.mubr.bf16.mxu0 %v4311_v31 }
 0x1f6   : > { %2869 = vmatmul.mubr.bf16.gmra.mrb[120].mxu1 %v4434_v40 }
 0x1f7   : > { %3319 = vmatmul.mubr.bf16.gmra.mrb[56].mxu0 %v4310_v41  ;;  %2876 = vmatprep.mubr.bf16.mxu1 %v4443_v18  ;;  %v4374_v18 = vcombine.low %v438_v12, %v442_v24 }
 0x1f8   : > { %3326 = vmatprep.mubr.bf16.mxu0 %v4319_v43 }
 0x1fe   : > { %2877 = vmatmul.mubr.bf16.gmra.mrb[124].mxu1 %v4442_v47  ;;  %v454_v47 = vld [vmem:[%s5228_s12 + $0x618] sm:$0xff] }
 0x1ff   : > { %3327 = vmatmul.mubr.bf16.gmra.mrb[60].mxu0 %v4318_v48  ;;  %v458_v48 = vld [vmem:[%s5228_s12 + $0x638] sm:$0xff] }
 0x200   : > { %3334 = vmatprep.mubr.bf16.mxu0 %v4327_v50  ;;  %v4390_v61 = vcombine.low %v454_v47, %v458_v48 }
 0x207   : > { %3335 = vmatmul.mubr.bf16.gmra.mrb[64].mxu0 %v4326_v52 }
 0x208   : > { %3342 = vmatprep.mubr.bf16.mxu0 %v4335_v54  ;;  %v4391_v54 = vcombine.high %v454_v47, %v458_v48 }
 0x20f   : > { %3343 = vmatmul.mubr.bf16.gmra.mrb[68].mxu0 %v4334_v57  ;;  %v466_v57 = vld [vmem:[%s5228_s12 + $0x678] sm:$0xff] }
 0x210   : > { %3350 = vmatprep.mubr.bf16.mxu0 %v4343_v59 }
 0x217   : > { %3351 = vmatmul.mubr.bf16.gmra.mrb[72].mxu0 %v4342_v62 }
 0x218   : > { %3358 = vmatprep.mubr.bf16.mxu0 %v4351_v34  ;;  %v4399_v34 = vcombine.high %v462_v56, %v466_v57 }
 0x219   : > { %v5771_v63 = vpop.f32.mrb[32].mxu1 }
 0x21a   : > { %v2696_v36 = vpop.f32.mrb[33].mxu1 }
 0x21b   : > { %v5775_v5 = vpop.f32.mrb[34].mxu1  ;;  %v474_v36 = vld [vmem:[%s5228_s12 + $0x6b8] sm:$0xff] }
 0x21c   : > { %v2699_v9 = vpop.f32.mrb[35].mxu1  ;;  %v4407_v15 = vcombine.high %v470_v1, %v474_v36  ;;  %v4406_v24 = vcombine.low %v470_v1, %v474_v36  ;;  %v494_v1 = vld [vmem:[%s5228_s12 + $0x758] sm:$0xff] }
 0x21d   : > { %v498_v36 = vld [vmem:[%s5228_s12 + $0x778] sm:$0xff] }
 0x21f   : > { %3359 = vmatmul.mubr.bf16.gmra.mrb[76].mxu0 %v4350_v7 }
 0x220   : > { %3366 = vmatprep.mubr.bf16.mxu0 %v4359_v38  ;;  %v4398_v38 = vcombine.low %v462_v56, %v466_v57 }
 0x221   : > { %v5777_v11 = vpop.f32.mrb[36].mxu1 }
 0x222   : > { %v2704_v17 = vpop.f32.mrb[37].mxu1 }
 0x223   : > { %v5781_v19 = vpop.f32.mrb[38].mxu1 }
 0x224   : > { %v2707_v21 = vpop.f32.mrb[39].mxu1 }
 0x225   : > { %v482_v21 = vld [vmem:[%s5228_s12 + $0x6f8] sm:$0xff] }
 0x227   : > { %3367 = vmatmul.mubr.bf16.gmra.mrb[80].mxu0 %v4358_v20  ;;  %v478_v20 = vld [vmem:[%s5228_s12 + $0x6d8] sm:$0xff] }
 0x228   : > { %3374 = vmatprep.mubr.bf16.mxu0 %v4367_v22  ;;  %v4414_v48 = vcombine.low %v478_v20, %v482_v21 }
 0x229   : > { %v5783_v23 = vpop.f32.mrb[40].mxu1 }
 0x22a   : > { %v2712_v27 = vpop.f32.mrb[41].mxu1 }
 0x22b   : > { %v5787_v29 = vpop.f32.mrb[42].mxu1 }
 0x22c   : > { %v2715_v31 = vpop.f32.mrb[43].mxu1 }
 0x22f   : > { %3375 = vmatmul.mubr.bf16.gmra.mrb[84].mxu0 %v4366_v14  ;;  %v4415_v14 = vcombine.high %v478_v20, %v482_v21 }
 0x230   : > { %3382 = vmatprep.mubr.bf16.mxu0 %v4375_v35  ;;  %v486_v35 = vld [vmem:[%s5228_s12 + $0x718] sm:$0xff] }
 0x231   : > { %v5789_v37 = vpop.f32.mrb[44].mxu1 }
 0x232   : > { %v2720_v40 = vpop.f32.mrb[45].mxu1 }
 0x233   : > { %v5793_v41 = vpop.f32.mrb[46].mxu1  ;;  %v5826_v40 = vld [vmem:[%s6297_s2] ss:$0 sm:$0xff] }
 0x234   : > { %v2723_v43 = vpop.f32.mrb[47].mxu1 }
 0x237   : > { %3383 = vmatmul.mubr.bf16.gmra.mrb[88].mxu0 %v4374_v18 }
 0x238   : > { %3390 = vmatprep.mubr.bf16.mxu0 %v4383_v44 }
 0x239   : > { %v5795_v46 = vpop.f32.mrb[48].mxu1 }
 0x23a   : > { %v2728_v50 = vpop.f32.mrb[49].mxu1 }
 0x23b   : > { %v5799_v28 = vpop.f32.mrb[50].mxu1  ;;  %v5834_v50 = vld [vmem:[%s6298_s3] ss:$0 sm:$0xff] }
 0x23c   : > { %v2731_v52 = vpop.f32.mrb[51].mxu1 }
 0x23f   : > { %3391 = vmatmul.mubr.bf16.gmra.mrb[92].mxu0 %v4382_v51 }
 0x240   : > { %3398 = vmatprep.mubr.bf16.mxu0 %v4391_v54  ;;  %v4423_v54 = vcombine.high %v486_v35, %v490_v16 }
 0x241   : > { %v5801_v55 = vpop.f32.mrb[52].mxu1 }
 0x242   : > { %v2736_v59 = vpop.f32.mrb[53].mxu1 }
 0x243   : > { %v5805_v60 = vpop.f32.mrb[54].mxu1 }
 0x244   : > { %v2739_v62 = vpop.f32.mrb[55].mxu1 }
 0x247   : > { %3399 = vmatmul.mubr.bf16.gmra.mrb[96].mxu0 %v4390_v61 }
 0x248   : > { %3406 = vmatprep.mubr.bf16.mxu0 %v4399_v34 }
 0x249   : > { %v5807_v3 = vpop.f32.mrb[56].mxu1 }
 0x24a   : > { %v2744_v7 = vpop.f32.mrb[57].mxu1 }
 0x24b   : > { %v5811_v9 = vpop.f32.mrb[58].mxu1 }
 0x24c   : > { %v2747_v13 = vpop.f32.mrb[59].mxu1 }
 0x24f   : > { %3407 = vmatmul.mubr.bf16.gmra.mrb[100].mxu0 %v4398_v38 }
 0x250   : > { %3414 = vmatprep.mubr.bf16.mxu0 %v4407_v15 }
 0x251   : > { %v5813_v17 = vpop.f32.mrb[60].mxu1 }
 0x252   : > { %v2752_v22 = vpop.f32.mrb[61].mxu1 }
 0x253   : > { %v5817_v12 = vpop.f32.mrb[62].mxu1  ;;  %v4422_v22 = vcombine.low %v486_v35, %v490_v16  ;;  %v502_v16 = vld [vmem:[%s5228_s12 + $0x798] sm:$0xff] }
 0x254   : > { %v2755_v27 = vpop.f32.mrb[63].mxu1 }
 0x257   : > { %3415 = vmatmul.mubr.bf16.gmra.mrb[104].mxu0 %v4406_v24 }
 0x258   : > { %3422 = vmatprep.mubr.bf16.mxu0 %v4415_v14  ;;  %v4431_v14 = vcombine.high %v494_v1, %v498_v36 }
 0x259   : > { %v5819_v31 = vpop.f32.mrb[64].mxu1 }
 0x25a   : > { %v3208_v39 = vpop.f32.mrb[0].mxu0  ;;  %v2760_v18 = vpop.f32.mrb[65].mxu1 }
 0x25b   : > { %v4678_v43 = vadd.f32 %v3208_v39, %v5599_v45  ;;  %v3210_v44 = vpop.f32.mrb[1].mxu0  ;;  %v5829_v47 = vpop.f32.mrb[66].mxu1 }
 0x25c   : > { %v3211_v51 = vpop.f32.mrb[2].mxu0  ;;  %v2763_v52 = vpop.f32.mrb[67].mxu1 }
 0x25d   : > { %v3470_v56 = vmul.f32 %v4678_v43, %v5826_v40  ;;  %v4679_v57 = vadd.f32 %v3211_v51, %v5601_v49  ;;  %v3213_v59 = vpop.f32.mrb[3].mxu0  ;;  %v506_v52 = vld [vmem:[%s5228_s12 + $0x7b8] sm:$0xff] }
 0x25f   : > { %v3541_v45 = vadd.f32 %v5834_v50, %v3470_v56  ;;  %v3471_v61 = vmul.f32 %v4679_v57, %v5826_v40  ;;  %3423 = vmatmul.mubr.bf16.gmra.mrb[108].mxu0 %v4414_v48 }
 0x260   : > { %3430 = vmatprep.mubr.bf16.mxu0 %v4423_v54 }
 0x261   : > { %v3542_v62 = vadd.f32 %v5834_v50, %v3471_v61  ;;  %v5841_v34 = vpop.f32.mrb[68].mxu1  ;;  %v3605_v13 = vmax.f32 %v3541_v45, 0.0 }
 0x262   : > { %v3216_v7 = vpop.f32.mrb[4].mxu0  ;;  %v2768_v38 = vpop.f32.mrb[69].mxu1 }
 0x263   : > { %v3606_v15 = vmax.f32 %v3542_v62, 0.0  ;;  %v4680_v20 = vadd.f32 %v3216_v7, %v5607_v30  ;;  %v3218_v49 = vpop.f32.mrb[5].mxu0  ;;  %v5846_v21 = vpop.f32.mrb[70].mxu1  ;;  %v4430_v62 = vcombine.low %v494_v1, %v498_v36  ;;  %v510_v36 = vld [vmem:[%s5228_s12 + $0x7d8] sm:$0xff] }
 0x264   : > { %v3219_v24 = vpop.f32.mrb[6].mxu0  ;;  %v2771_v27 = vpop.f32.mrb[71].mxu1 }
 0x265   : > { %v3472_v39 = vmul.f32 %v4680_v20, %v5826_v40  ;;  %v4681_v18 = vadd.f32 %v3219_v24, %v5609_v32  ;;  %v3221_v43 = vpop.f32.mrb[7].mxu0  ;;  %v3669_v44 = vpack.c.bf16 %v3606_v15, %v3605_v13  ;;  %v4439_v13 = vcombine.high %v502_v16, %v506_v52 }
 0x267   : > { %v3543_v48 = vadd.f32 %v5834_v50, %v3472_v39  ;;  %v3473_v51 = vmul.f32 %v4681_v18, %v5826_v40  ;;  %3431 = vmatmul.mubr.bf16.gmra.mrb[112].mxu0 %v4422_v22  ;;  %4582 = vmatprep.mubr.bf16.mxu1 %v3669_v44 }
 0x268   : > { %3438 = vmatprep.mubr.bf16.mxu0 %v4431_v14  ;;  %v514_v14 = vld [vmem:[%s5228_s12 + $0x7f8] sm:$0xff]  ;;  %s4191_s12 = sshll.u32 %s6303_s19, 3 }
 0x269   : > { %v3544_v30 = vadd.f32 %v5834_v50, %v3473_v51  ;;  %v5853_v35 = vpop.f32.mrb[72].mxu1  ;;  %v3607_v57 = vmax.f32 %v3543_v48, 0.0  ;;  %s6084_s30 = scalar_lea.vmem %s6301_s6, %s4191_s12 }
 0x26a   : > { %v3224_v54 = vpop.f32.mrb[8].mxu0  ;;  %v2776_v56 = vpop.f32.mrb[73].mxu1 }
 0x26b   : > { %v3608_v59 = vmax.f32 %v3544_v30, 0.0  ;;  %v4682_v32 = vadd.f32 %v3224_v54, %v5615_v0  ;;  %v3226_v45 = vpop.f32.mrb[9].mxu0  ;;  %v5858_v61 = vpop.f32.mrb[74].mxu1  ;;  %v4438_v30 = vcombine.low %v502_v16, %v506_v52 }
 0x26c   : > { %v3227_v7 = vpop.f32.mrb[10].mxu0  ;;  %v2779_v38 = vpop.f32.mrb[75].mxu1 }
 0x26d   : > { %v3670_v15 = vpack.c.bf16 %v3608_v59, %v3607_v57  ;;  %v3474_v20 = vmul.f32 %v4682_v32, %v5826_v40  ;;  %v4683_v49 = vadd.f32 %v3227_v7, %v5617_v4  ;;  %v3229_v22 = vpop.f32.mrb[11].mxu0  ;;  %v4447_v57 = vcombine.high %v510_v36, %v514_v14 }
 0x26f   : > { %v3545_v24 = vadd.f32 %v5834_v50, %v3474_v20  ;;  %v3475_v27 = vmul.f32 %v4683_v49, %v5826_v40  ;;  %3439 = vmatmul.mubr.bf16.gmra.mrb[116].mxu0 %v4430_v62  ;;  %4583 = vmatmul.mubr.bf16.vlgmr.msra.gmra.mrb[128].mxu1 %v3670_v15 }
 0x270   : > { %3446 = vmatprep.mubr.bf16.mxu0 %v4439_v13 }
 0x271   : > { %v3546_v0 = vadd.f32 %v5834_v50, %v3475_v27  ;;  %v5865_v1 = vpop.f32.mrb[76].mxu1  ;;  %v3609_v43 = vmax.f32 %v3545_v24, 0.0  ;;  %v4446_v24 = vcombine.low %v510_v36, %v514_v14 }
 0x272   : > { %v3232_v39 = vpop.f32.mrb[12].mxu0  ;;  %v2784_v18 = vpop.f32.mrb[77].mxu1 }
 0x273   : > { %v3610_v44 = vmax.f32 %v3546_v0, 0.0  ;;  %v4684_v4 = vadd.f32 %v3232_v39, %v5623_v8  ;;  %v3234_v48 = vpop.f32.mrb[13].mxu0  ;;  %v5870_v51 = vpop.f32.mrb[78].mxu1 }
 0x274   : > { %v3235_v54 = vpop.f32.mrb[14].mxu0  ;;  %v2787_v56 = vpop.f32.mrb[79].mxu1 }
 0x275   : > { %v3476_v59 = vmul.f32 %v4684_v4, %v5826_v40  ;;  %v4685_v32 = vadd.f32 %v3235_v54, %v5625_v10  ;;  %v3237_v45 = vpop.f32.mrb[15].mxu0  ;;  %v3671_v62 = vpack.c.bf16 %v3610_v44, %v3609_v43 }
 0x277   : > { %v3547_v7 = vadd.f32 %v5834_v50, %v3476_v59  ;;  %v3477_v38 = vmul.f32 %v4685_v32, %v5826_v40  ;;  %3447 = vmatmul.mubr.bf16.gmra.mrb[120].mxu0 %v4438_v30  ;;  %4586 = vmatprep.mubr.bf16.mxu1 %v3671_v62 }
 0x278   : > { %3454 = vmatprep.mubr.bf16.mxu0 %v4447_v57 }
 0x279   : > { %v3548_v8 = vadd.f32 %v5834_v50, %v3477_v38  ;;  %v5877_v13 = vpop.f32.mrb[80].mxu1  ;;  %v3611_v15 = vmax.f32 %v3547_v7, 0.0 }
 0x27a   : > { %v3240_v16 = vpop.f32.mrb[16].mxu0  ;;  %v2792_v52 = vpop.f32.mrb[81].mxu1 }
 0x27b   : > { %v3612_v20 = vmax.f32 %v3548_v8, 0.0  ;;  %v4686_v49 = vadd.f32 %v3240_v16, %v5631_v25  ;;  %v3242_v10 = vpop.f32.mrb[17].mxu0  ;;  %v5880_v22 = vpop.f32.mrb[82].mxu1 }
 0x27c   : > { %v3243_v27 = vpop.f32.mrb[18].mxu0  ;;  %v2795_v0 = vpop.f32.mrb[83].mxu1 }
 0x27d   : > { %v3478_v39 = vmul.f32 %v4686_v49, %v5826_v40  ;;  %v4687_v18 = vadd.f32 %v3243_v27, %v5633_v33  ;;  %v3245_v43 = vpop.f32.mrb[19].mxu0  ;;  %v3672_v44 = vpack.c.bf16 %v3612_v20, %v3611_v15 }
 0x27f   : > { %v3549_v4 = vadd.f32 %v5834_v50, %v3478_v39  ;;  %v3479_v48 = vmul.f32 %v4687_v18, %v5826_v40  ;;  %3455 = vmatmul.mubr.bf16.gmra.mrb[124].mxu0 %v4446_v24  ;;  %4587 = vmatmul.mubr.bf16.gmra.mrb[132].mxu1 %v3672_v44 }
 0x281   : > { %v3550_v25 = vadd.f32 %v5834_v50, %v3479_v48  ;;  %v5887_v30 = vpop.f32.mrb[84].mxu1  ;;  %v3613_v14 = vmax.f32 %v3549_v4, 0.0 }
 0x282   : > { %v3248_v54 = vpop.f32.mrb[20].mxu0  ;;  %v2800_v36 = vpop.f32.mrb[85].mxu1 }
 0x283   : > { %v3614_v56 = vmax.f32 %v3550_v25, 0.0  ;;  %v4688_v57 = vadd.f32 %v3248_v54, %v5639_v42  ;;  %v3250_v59 = vpop.f32.mrb[21].mxu0  ;;  %v5890_v33 = vpop.f32.mrb[86].mxu1 }
 0x284   : > { %v3251_v32 = vpop.f32.mrb[22].mxu0  ;;  %v2803_v45 = vpop.f32.mrb[87].mxu1 }
 0x285   : > { %v3480_v62 = vmul.f32 %v4688_v57, %v5826_v40  ;;  %v4689_v7 = vadd.f32 %v3251_v32, %v5641_v26  ;;  %v3253_v38 = vpop.f32.mrb[23].mxu0  ;;  %v3673_v8 = vpack.c.bf16 %v3614_v56, %v3613_v14 }
 0x287   : > { %v3551_v16 = vadd.f32 %v5834_v50, %v3480_v62  ;;  %v3481_v52 = vmul.f32 %v4689_v7, %v5826_v40  ;;  %4590 = vmatprep.mubr.bf16.mxu1 %v3673_v8 }
 0x289   : > { %v3552_v15 = vadd.f32 %v5834_v50, %v3481_v52  ;;  %v5897_v20 = vpop.f32.mrb[88].mxu1  ;;  %v3615_v10 = vmax.f32 %v3551_v16, 0.0 }
 0x28a   : > { %v3256_v42 = vpop.f32.mrb[24].mxu0  ;;  %v2808_v49 = vpop.f32.mrb[89].mxu1 }
 0x28b   : > { %v3616_v24 = vmax.f32 %v3552_v15, 0.0  ;;  %v4690_v27 = vadd.f32 %v3256_v42, %v5647_v53  ;;  %v3258_v0 = vpop.f32.mrb[25].mxu0  ;;  %v5900_v39 = vpop.f32.mrb[90].mxu1 }
 0x28c   : > { %v3259_v26 = vpop.f32.mrb[26].mxu0  ;;  %v2811_v18 = vpop.f32.mrb[91].mxu1 }
 0x28d   : > { %v3482_v43 = vmul.f32 %v4690_v27, %v5826_v40  ;;  %v4691_v44 = vadd.f32 %v3259_v26, %v5649_v58  ;;  %v3261_v4 = vpop.f32.mrb[27].mxu0  ;;  %v3674_v48 = vpack.c.bf16 %v3616_v24, %v3615_v10 }
 0x28f   : > { %v3553_v25 = vadd.f32 %v5834_v50, %v3482_v43  ;;  %v3483_v54 = vmul.f32 %v4691_v44, %v5826_v40  ;;  %4591 = vmatmul.mubr.bf16.gmra.mrb[136].mxu1 %v3674_v48 }
 0x291   : > { %v3554_v36 = vadd.f32 %v5834_v50, %v3483_v54  ;;  %v5907_v14 = vpop.f32.mrb[92].mxu1  ;;  %v3617_v57 = vmax.f32 %v3553_v25, 0.0 }
 0x292   : > { %v3264_v53 = vpop.f32.mrb[28].mxu0  ;;  %v2816_v56 = vpop.f32.mrb[93].mxu1 }
 0x293   : > { %v3618_v59 = vmax.f32 %v3554_v36, 0.0  ;;  %v4692_v32 = vadd.f32 %v3264_v53, %v5655_v2  ;;  %v3266_v45 = vpop.f32.mrb[29].mxu0  ;;  %v5910_v62 = vpop.f32.mrb[94].mxu1 }
 0x294   : > { %v3267_v58 = vpop.f32.mrb[30].mxu0  ;;  %v2819_v7 = vpop.f32.mrb[95].mxu1 }
 0x295   : > { %v3484_v38 = vmul.f32 %v4692_v32, %v5826_v40  ;;  %v4693_v8 = vadd.f32 %v3267_v58, %v5657_v6  ;;  %v3269_v16 = vpop.f32.mrb[31].mxu0  ;;  %v3675_v52 = vpack.c.bf16 %v3618_v59, %v3617_v57 }
 0x297   : > { %v3555_v15 = vadd.f32 %v5834_v50, %v3484_v38  ;;  %v3485_v42 = vmul.f32 %v4693_v8, %v5826_v40  ;;  %4594 = vmatprep.mubr.bf16.mxu1 %v3675_v52 }
 0x299   : > { %v3556_v49 = vadd.f32 %v5834_v50, %v3485_v42  ;;  %v5917_v10 = vpop.f32.mrb[96].mxu1  ;;  %v3619_v27 = vmax.f32 %v3555_v15, 0.0 }
 0x29a   : > { %v3272_v2 = vpop.f32.mrb[32].mxu0  ;;  %v2824_v24 = vpop.f32.mrb[97].mxu1 }
 0x29b   : > { %v3620_v0 = vmax.f32 %v3556_v49, 0.0  ;;  %v4694_v26 = vadd.f32 %v3272_v2, %v5771_v63  ;;  %v3274_v18 = vpop.f32.mrb[33].mxu0  ;;  %v5920_v43 = vpop.f32.mrb[98].mxu1 }
 0x29c   : > { %v3275_v6 = vpop.f32.mrb[34].mxu0  ;;  %v2827_v44 = vpop.f32.mrb[99].mxu1 }
 0x29d   : > { %v3486_v4 = vmul.f32 %v4694_v26, %v5826_v40  ;;  %v4695_v48 = vadd.f32 %v3275_v6, %v5775_v5  ;;  %v3277_v25 = vpop.f32.mrb[35].mxu0  ;;  %v3676_v54 = vpack.c.bf16 %v3620_v0, %v3619_v27 }
 0x29f   : > { %v3557_v36 = vadd.f32 %v5834_v50, %v3486_v4  ;;  %v3487_v53 = vmul.f32 %v4695_v48, %v5826_v40  ;;  %4595 = vmatmul.mubr.bf16.gmra.mrb[140].mxu1 %v3676_v54 }
 0x2a1   : > { %v3558_v56 = vadd.f32 %v5834_v50, %v3487_v53  ;;  %v5927_v57 = vpop.f32.mrb[100].mxu1  ;;  %v3621_v32 = vmax.f32 %v3557_v36, 0.0 }
 0x2a2   : > { %v3280_v63 = vpop.f32.mrb[36].mxu0  ;;  %v2832_v59 = vpop.f32.mrb[101].mxu1 }
 0x2a3   : > { %v3622_v45 = vmax.f32 %v3558_v56, 0.0  ;;  %v4696_v58 = vadd.f32 %v3280_v63, %v5777_v11  ;;  %v3282_v7 = vpop.f32.mrb[37].mxu0  ;;  %v5930_v38 = vpop.f32.mrb[102].mxu1 }
 0x2a4   : > { %v3283_v5 = vpop.f32.mrb[38].mxu0  ;;  %v2835_v8 = vpop.f32.mrb[103].mxu1 }
 0x2a5   : > { %v3488_v16 = vmul.f32 %v4696_v58, %v5826_v40  ;;  %v4697_v52 = vadd.f32 %v3283_v5, %v5781_v19  ;;  %v3285_v15 = vpop.f32.mrb[39].mxu0  ;;  %v3677_v42 = vpack.c.bf16 %v3622_v45, %v3621_v32 }
 0x2a7   : > { %v3559_v49 = vadd.f32 %v5834_v50, %v3488_v16  ;;  %v3489_v2 = vmul.f32 %v4697_v52, %v5826_v40  ;;  %4598 = vmatprep.mubr.bf16.mxu1 %v3677_v42 }
 0x2a9   : > { %v3560_v24 = vadd.f32 %v5834_v50, %v3489_v2  ;;  %v5937_v27 = vpop.f32.mrb[104].mxu1  ;;  %v3623_v26 = vmax.f32 %v3559_v49, 0.0 }
 0x2aa   : > { %v3288_v11 = vpop.f32.mrb[40].mxu0  ;;  %v2840_v0 = vpop.f32.mrb[105].mxu1 }
 0x2ab   : > { %v3624_v18 = vmax.f32 %v3560_v24, 0.0  ;;  %v4698_v6 = vadd.f32 %v3288_v11, %v5783_v23  ;;  %v3290_v44 = vpop.f32.mrb[41].mxu0  ;;  %v5940_v4 = vpop.f32.mrb[106].mxu1 }
 0x2ac   : > { %v3291_v19 = vpop.f32.mrb[42].mxu0  ;;  %v2843_v48 = vpop.f32.mrb[107].mxu1 }
 0x2ad   : > { %v3490_v25 = vmul.f32 %v4698_v6, %v5826_v40  ;;  %v4699_v54 = vadd.f32 %v3291_v19, %v5787_v29  ;;  %v3293_v36 = vpop.f32.mrb[43].mxu0  ;;  %v3678_v53 = vpack.c.bf16 %v3624_v18, %v3623_v26 }
 0x2af   : > { %v3561_v56 = vadd.f32 %v5834_v50, %v3490_v25  ;;  %v3491_v63 = vmul.f32 %v4699_v54, %v5826_v40  ;;  %4599 = vmatmul.mubr.bf16.gmra.mrb[144].mxu1 %v3678_v53 }
 0x2b1   : > { %v3562_v59 = vadd.f32 %v5834_v50, %v3491_v63  ;;  %v5947_v32 = vpop.f32.mrb[108].mxu1  ;;  %v3625_v58 = vmax.f32 %v3561_v56, 0.0 }
 0x2b2   : > { %v3296_v23 = vpop.f32.mrb[44].mxu0  ;;  %v2848_v45 = vpop.f32.mrb[109].mxu1 }
 0x2b3   : > { %v3626_v7 = vmax.f32 %v3562_v59, 0.0  ;;  %v4700_v5 = vadd.f32 %v3296_v23, %v5789_v37  ;;  %v3298_v8 = vpop.f32.mrb[45].mxu0  ;;  %v5950_v16 = vpop.f32.mrb[110].mxu1 }
 0x2b4   : > { %v3299_v29 = vpop.f32.mrb[46].mxu0  ;;  %v2851_v52 = vpop.f32.mrb[111].mxu1 }
 0x2b5   : > { %v3492_v15 = vmul.f32 %v4700_v5, %v5826_v40  ;;  %v4701_v42 = vadd.f32 %v3299_v29, %v5793_v41  ;;  %v3301_v49 = vpop.f32.mrb[47].mxu0  ;;  %v3679_v2 = vpack.c.bf16 %v3626_v7, %v3625_v58 }
 0x2b7   : > { %v3563_v24 = vadd.f32 %v5834_v50, %v3492_v15  ;;  %v3493_v11 = vmul.f32 %v4701_v42, %v5826_v40  ;;  %4602 = vmatprep.mubr.bf16.mxu1 %v3679_v2 }
 0x2b9   : > { %v3564_v0 = vadd.f32 %v5834_v50, %v3493_v11  ;;  %v5957_v26 = vpop.f32.mrb[112].mxu1  ;;  %v3627_v6 = vmax.f32 %v3563_v24, 0.0 }
 0x2ba   : > { %v3304_v37 = vpop.f32.mrb[48].mxu0  ;;  %v2856_v18 = vpop.f32.mrb[113].mxu1 }
 0x2bb   : > { %v3628_v44 = vmax.f32 %v3564_v0, 0.0  ;;  %v4702_v19 = vadd.f32 %v3304_v37, %v5795_v46  ;;  %v3306_v48 = vpop.f32.mrb[49].mxu0  ;;  %v5960_v25 = vpop.f32.mrb[114].mxu1 }
 0x2bc   : > { %v3307_v41 = vpop.f32.mrb[50].mxu0  ;;  %v2859_v54 = vpop.f32.mrb[115].mxu1 }
 0x2bd   : > { %v3494_v36 = vmul.f32 %v4702_v19, %v5826_v40  ;;  %v4703_v53 = vadd.f32 %v3307_v41, %v5799_v28  ;;  %v3309_v56 = vpop.f32.mrb[51].mxu0  ;;  %v3680_v63 = vpack.c.bf16 %v3628_v44, %v3627_v6 }
 0x2bf   : > { %v3565_v59 = vadd.f32 %v5834_v50, %v3494_v36  ;;  %v3495_v23 = vmul.f32 %v4703_v53, %v5826_v40  ;;  %4603 = vmatmul.mubr.bf16.gmra.mrb[148].mxu1 %v3680_v63 }
 0x2c1   : > { %v3566_v45 = vadd.f32 %v5834_v50, %v3495_v23  ;;  %v5967_v58 = vpop.f32.mrb[116].mxu1  ;;  %v3629_v5 = vmax.f32 %v3565_v59, 0.0 }
 0x2c2   : > { %v3312_v46 = vpop.f32.mrb[52].mxu0  ;;  %v2864_v7 = vpop.f32.mrb[117].mxu1 }
 0x2c3   : > { %v3630_v8 = vmax.f32 %v3566_v45, 0.0  ;;  %v4704_v29 = vadd.f32 %v3312_v46, %v5801_v55  ;;  %v3314_v52 = vpop.f32.mrb[53].mxu0  ;;  %v5970_v15 = vpop.f32.mrb[118].mxu1 }
 0x2c4   : > { %v3315_v28 = vpop.f32.mrb[54].mxu0  ;;  %v2867_v42 = vpop.f32.mrb[119].mxu1 }
 0x2c5   : > { %v3496_v49 = vmul.f32 %v4704_v29, %v5826_v40  ;;  %v4705_v2 = vadd.f32 %v3315_v28, %v5805_v60  ;;  %v3317_v24 = vpop.f32.mrb[55].mxu0  ;;  %v3681_v11 = vpack.c.bf16 %v3630_v8, %v3629_v5 }
 0x2c7   : > { %v3567_v0 = vadd.f32 %v5834_v50, %v3496_v49  ;;  %v3497_v37 = vmul.f32 %v4705_v2, %v5826_v40  ;;  %4606 = vmatprep.mubr.bf16.mxu1 %v3681_v11 }
 0x2c9   : > { %v3568_v18 = vadd.f32 %v5834_v50, %v3497_v37  ;;  %v5977_v6 = vpop.f32.mrb[120].mxu1  ;;  %v3631_v19 = vmax.f32 %v3567_v0, 0.0 }
 0x2ca   : > { %v3320_v55 = vpop.f32.mrb[56].mxu0  ;;  %v2872_v44 = vpop.f32.mrb[121].mxu1 }
 0x2cb   : > { %v3632_v48 = vmax.f32 %v3568_v18, 0.0  ;;  %v4706_v41 = vadd.f32 %v3320_v55, %v5807_v3  ;;  %v3322_v54 = vpop.f32.mrb[57].mxu0  ;;  %v5980_v36 = vpop.f32.mrb[122].mxu1 }
 0x2cc   : > { %v3323_v60 = vpop.f32.mrb[58].mxu0  ;;  %v2875_v53 = vpop.f32.mrb[123].mxu1 }
 0x2cd   : > { %v3498_v56 = vmul.f32 %v4706_v41, %v5826_v40  ;;  %v4707_v63 = vadd.f32 %v3323_v60, %v5811_v9  ;;  %v3325_v59 = vpop.f32.mrb[59].mxu0  ;;  %v3682_v23 = vpack.c.bf16 %v3632_v48, %v3631_v19 }
 0x2cf   : > { %v3569_v45 = vadd.f32 %v5834_v50, %v3498_v56  ;;  %v3499_v46 = vmul.f32 %v4707_v63, %v5826_v40  ;;  %4607 = vmatmul.mubr.bf16.gmra.mrb[152].mxu1 %v3682_v23 }
 0x2d1   : > { %v3570_v7 = vadd.f32 %v5834_v50, %v3499_v46  ;;  %v5987_v5 = vpop.f32.mrb[124].mxu1  ;;  %v3633_v29 = vmax.f32 %v3569_v45, 0.0 }
 0x2d2   : > { %v3328_v3 = vpop.f32.mrb[60].mxu0  ;;  %v2880_v8 = vpop.f32.mrb[125].mxu1 }
 0x2d3   : > { %v3634_v52 = vmax.f32 %v3570_v7, 0.0  ;;  %v4708_v28 = vadd.f32 %v3328_v3, %v5813_v17  ;;  %v3330_v42 = vpop.f32.mrb[61].mxu0  ;;  %v5990_v49 = vpop.f32.mrb[126].mxu1 }
 0x2d4   : > { %v3331_v9 = vpop.f32.mrb[62].mxu0  ;;  %v2883_v2 = vpop.f32.mrb[127].mxu1 }
 0x2d5   : > { %v3500_v24 = vmul.f32 %v4708_v28, %v5826_v40  ;;  %v4709_v11 = vadd.f32 %v3331_v9, %v5817_v12  ;;  %v3333_v0 = vpop.f32.mrb[63].mxu0  ;;  %v3683_v37 = vpack.c.bf16 %v3634_v52, %v3633_v29 }
 0x2d7   : > { %v3571_v18 = vadd.f32 %v5834_v50, %v3500_v24  ;;  %v3501_v55 = vmul.f32 %v4709_v11, %v5826_v40  ;;  %4610 = vmatprep.mubr.bf16.mxu1 %v3683_v37 }
 0x2d9   : > { %v3572_v44 = vadd.f32 %v5834_v50, %v3501_v55  ;;  %v3635_v17 = vmax.f32 %v3571_v18, 0.0 }
 0x2da   : > { %v3336_v19 = vpop.f32.mrb[64].mxu0 }
 0x2db   : > { %v3636_v48 = vmax.f32 %v3572_v44, 0.0  ;;  %v4710_v41 = vadd.f32 %v3336_v19, %v5819_v31  ;;  %v3338_v54 = vpop.f32.mrb[65].mxu0 }
 0x2dc   : > { %v3339_v60 = vpop.f32.mrb[66].mxu0 }
 0x2dd   : > { %v3502_v53 = vmul.f32 %v4710_v41, %v5826_v40  ;;  %v4711_v12 = vadd.f32 %v3339_v60, %v5829_v47  ;;  %v3341_v56 = vpop.f32.mrb[67].mxu0  ;;  %v3684_v63 = vpack.c.bf16 %v3636_v48, %v3635_v17 }
 0x2df   : > { %v3573_v59 = vadd.f32 %v5834_v50, %v3502_v53  ;;  %v3503_v23 = vmul.f32 %v4711_v12, %v5826_v40  ;;  %4611 = vmatmul.mubr.bf16.gmra.mrb[156].mxu1 %v3684_v63 }
 0x2e1   : > { %v3574_v45 = vadd.f32 %v5834_v50, %v3503_v23  ;;  %v3637_v7 = vmax.f32 %v3573_v59, 0.0 }
 0x2e2   : > { %v3344_v46 = vpop.f32.mrb[68].mxu0 }
 0x2e3   : > { %v3638_v3 = vmax.f32 %v3574_v45, 0.0  ;;  %v4712_v31 = vadd.f32 %v3344_v46, %v5841_v34  ;;  %v3346_v8 = vpop.f32.mrb[69].mxu0 }
 0x2e4   : > { %v3347_v29 = vpop.f32.mrb[70].mxu0 }
 0x2e5   : > { %v3504_v52 = vmul.f32 %v4712_v31, %v5826_v40  ;;  %v4713_v47 = vadd.f32 %v3347_v29, %v5846_v21  ;;  %v3349_v28 = vpop.f32.mrb[71].mxu0  ;;  %v3685_v42 = vpack.c.bf16 %v3638_v3, %v3637_v7 }
 0x2e7   : > { %v3575_v9 = vadd.f32 %v5834_v50, %v3504_v52  ;;  %v3505_v2 = vmul.f32 %v4713_v47, %v5826_v40  ;;  %4614 = vmatprep.mubr.bf16.mxu1 %v3685_v42 }
 0x2e9   : > { %v3576_v24 = vadd.f32 %v5834_v50, %v3505_v2  ;;  %v3639_v0 = vmax.f32 %v3575_v9, 0.0 }
 0x2ea   : > { %v3352_v11 = vpop.f32.mrb[72].mxu0 }
 0x2eb   : > { %v3640_v37 = vmax.f32 %v3576_v24, 0.0  ;;  %v4714_v34 = vadd.f32 %v3352_v11, %v5853_v35  ;;  %v3354_v18 = vpop.f32.mrb[73].mxu0 }
 0x2ec   : > { %v3355_v55 = vpop.f32.mrb[74].mxu0 }
 0x2ed   : > { %v3506_v44 = vmul.f32 %v4714_v34, %v5826_v40  ;;  %v4715_v21 = vadd.f32 %v3355_v55, %v5858_v61  ;;  %v3357_v19 = vpop.f32.mrb[75].mxu0  ;;  %v3686_v17 = vpack.c.bf16 %v3640_v37, %v3639_v0 }
 0x2ef   : > { %v3577_v48 = vadd.f32 %v5834_v50, %v3506_v44  ;;  %v3507_v41 = vmul.f32 %v4715_v21, %v5826_v40  ;;  %4615 = vmatmul.mubr.bf16.gmra.mrb[160].mxu1 %v3686_v17 }
 0x2f1   : > { %v3578_v54 = vadd.f32 %v5834_v50, %v3507_v41  ;;  %v3641_v53 = vmax.f32 %v3577_v48, 0.0 }
 0x2f2   : > { %v3360_v60 = vpop.f32.mrb[76].mxu0 }
 0x2f3   : > { %v3642_v12 = vmax.f32 %v3578_v54, 0.0  ;;  %v4716_v35 = vadd.f32 %v3360_v60, %v5865_v1  ;;  %v3362_v56 = vpop.f32.mrb[77].mxu0 }
 0x2f4   : > { %v3363_v63 = vpop.f32.mrb[78].mxu0 }
 0x2f5   : > { %v3508_v59 = vmul.f32 %v4716_v35, %v5826_v40  ;;  %v4717_v61 = vadd.f32 %v3363_v63, %v5870_v51  ;;  %v3365_v23 = vpop.f32.mrb[79].mxu0  ;;  %v3687_v45 = vpack.c.bf16 %v3642_v12, %v3641_v53 }
 0x2f7   : > { %v3579_v46 = vadd.f32 %v5834_v50, %v3508_v59  ;;  %v3509_v7 = vmul.f32 %v4717_v61, %v5826_v40  ;;  %4618 = vmatprep.mubr.bf16.mxu1 %v3687_v45 }
 0x2f9   : > { %v3580_v3 = vadd.f32 %v5834_v50, %v3509_v7  ;;  %v3643_v8 = vmax.f32 %v3579_v46, 0.0 }
 0x2fa   : > { %v3368_v31 = vpop.f32.mrb[80].mxu0 }
 0x2fb   : > { %v3644_v29 = vmax.f32 %v3580_v3, 0.0  ;;  %v4718_v1 = vadd.f32 %v3368_v31, %v5877_v13  ;;  %v3370_v52 = vpop.f32.mrb[81].mxu0 }
 0x2fc   : > { %v3371_v47 = vpop.f32.mrb[82].mxu0 }
 0x2fd   : > { %v3510_v28 = vmul.f32 %v4718_v1, %v5826_v40  ;;  %v4719_v51 = vadd.f32 %v3371_v47, %v5880_v22  ;;  %v3373_v42 = vpop.f32.mrb[83].mxu0  ;;  %v3688_v9 = vpack.c.bf16 %v3644_v29, %v3643_v8 }
 0x2ff   : > { %v3581_v2 = vadd.f32 %v5834_v50, %v3510_v28  ;;  %v3511_v24 = vmul.f32 %v4719_v51, %v5826_v40  ;;  %4619 = vmatmul.mubr.bf16.gmra.mrb[164].mxu1 %v3688_v9 }
 0x301   : > { %v3582_v11 = vadd.f32 %v5834_v50, %v3511_v24  ;;  %v3645_v37 = vmax.f32 %v3581_v2, 0.0 }
 0x302   : > { %v3376_v0 = vpop.f32.mrb[84].mxu0 }
 0x303   : > { %v3646_v34 = vmax.f32 %v3582_v11, 0.0  ;;  %v4720_v13 = vadd.f32 %v3376_v0, %v5887_v30  ;;  %v3378_v18 = vpop.f32.mrb[85].mxu0 }
 0x304   : > { %v3379_v55 = vpop.f32.mrb[86].mxu0 }
 0x305   : > { %v3512_v44 = vmul.f32 %v4720_v13, %v5826_v40  ;;  %v4721_v22 = vadd.f32 %v3379_v55, %v5890_v33  ;;  %v3381_v21 = vpop.f32.mrb[87].mxu0  ;;  %v3689_v19 = vpack.c.bf16 %v3646_v34, %v3645_v37 }
 0x307   : > { %v3583_v17 = vadd.f32 %v5834_v50, %v3512_v44  ;;  %v3513_v48 = vmul.f32 %v4721_v22, %v5826_v40  ;;  %4622 = vmatprep.mubr.bf16.mxu1 %v3689_v19 }
 0x309   : > { %v3584_v41 = vadd.f32 %v5834_v50, %v3513_v48  ;;  %v3647_v60 = vmax.f32 %v3583_v17, 0.0 }
 0x30a   : > { %v3384_v54 = vpop.f32.mrb[88].mxu0 }
 0x30b   : > { %v3648_v53 = vmax.f32 %v3584_v41, 0.0  ;;  %v4722_v30 = vadd.f32 %v3384_v54, %v5897_v20  ;;  %v3386_v12 = vpop.f32.mrb[89].mxu0 }
 0x30c   : > { %v3387_v35 = vpop.f32.mrb[90].mxu0 }
 0x30d   : > { %v3514_v56 = vmul.f32 %v4722_v30, %v5826_v40  ;;  %v4723_v33 = vadd.f32 %v3387_v35, %v5900_v39  ;;  %v3389_v63 = vpop.f32.mrb[91].mxu0  ;;  %v3690_v59 = vpack.c.bf16 %v3648_v53, %v3647_v60 }
 0x30f   : > { %v3585_v61 = vadd.f32 %v5834_v50, %v3514_v56  ;;  %v3515_v23 = vmul.f32 %v4723_v33, %v5826_v40  ;;  %4623 = vmatmul.mubr.bf16.gmra.mrb[168].mxu1 %v3690_v59 }
 0x311   : > { %v3586_v45 = vadd.f32 %v5834_v50, %v3515_v23  ;;  %v3649_v7 = vmax.f32 %v3585_v61, 0.0 }
 0x312   : > { %v3392_v46 = vpop.f32.mrb[92].mxu0 }
 0x313   : > { %v3650_v3 = vmax.f32 %v3586_v45, 0.0  ;;  %v4724_v20 = vadd.f32 %v3392_v46, %v5907_v14  ;;  %v3394_v31 = vpop.f32.mrb[93].mxu0 }
 0x314   : > { %v3395_v8 = vpop.f32.mrb[94].mxu0 }
 0x315   : > { %v3516_v29 = vmul.f32 %v4724_v20, %v5826_v40  ;;  %v4725_v39 = vadd.f32 %v3395_v8, %v5910_v62  ;;  %v3397_v1 = vpop.f32.mrb[95].mxu0  ;;  %v3691_v52 = vpack.c.bf16 %v3650_v3, %v3649_v7 }
 0x317   : > { %v3587_v47 = vadd.f32 %v5834_v50, %v3516_v29  ;;  %v3517_v28 = vmul.f32 %v4725_v39, %v5826_v40  ;;  %4626 = vmatprep.mubr.bf16.mxu1 %v3691_v52 }
 0x319   : > { %v3588_v51 = vadd.f32 %v5834_v50, %v3517_v28  ;;  %v3651_v9 = vmax.f32 %v3587_v47, 0.0 }
 0x31a   : > { %v3400_v42 = vpop.f32.mrb[96].mxu0 }
 0x31b   : > { %v3652_v2 = vmax.f32 %v3588_v51, 0.0  ;;  %v4726_v14 = vadd.f32 %v3400_v42, %v5917_v10  ;;  %v3402_v24 = vpop.f32.mrb[97].mxu0 }
 0x31c   : > { %v3403_v11 = vpop.f32.mrb[98].mxu0 }
 0x31d   : > { %v3518_v0 = vmul.f32 %v4726_v14, %v5826_v40  ;;  %v4727_v62 = vadd.f32 %v3403_v11, %v5920_v43  ;;  %v3405_v37 = vpop.f32.mrb[99].mxu0  ;;  %v3692_v34 = vpack.c.bf16 %v3652_v2, %v3651_v9 }
 0x31f   : > { %v3589_v13 = vadd.f32 %v5834_v50, %v3518_v0  ;;  %v3519_v18 = vmul.f32 %v4727_v62, %v5826_v40  ;;  %4627 = vmatmul.mubr.bf16.gmra.mrb[172].mxu1 %v3692_v34 }
 0x321   : > { %v3590_v55 = vadd.f32 %v5834_v50, %v3519_v18  ;;  %v3653_v22 = vmax.f32 %v3589_v13, 0.0  ;;  %v6078_v13 = vld [vmem:[%s6300_s5] ss:$0 sm:$0xff] }
 0x322   : > { %v3408_v44 = vpop.f32.mrb[100].mxu0 }
 0x323   : > { %v3654_v21 = vmax.f32 %v3590_v55, 0.0  ;;  %v4728_v10 = vadd.f32 %v3408_v44, %v5927_v57  ;;  %v3410_v19 = vpop.f32.mrb[101].mxu0 }
 0x324   : > { %v3411_v17 = vpop.f32.mrb[102].mxu0 }
 0x325   : > { %v3520_v48 = vmul.f32 %v4728_v10, %v5826_v40  ;;  %v4729_v43 = vadd.f32 %v3411_v17, %v5930_v38  ;;  %v3413_v41 = vpop.f32.mrb[103].mxu0  ;;  %v3693_v54 = vpack.c.bf16 %v3654_v21, %v3653_v22 }
 0x327   : > { %v3591_v60 = vadd.f32 %v5834_v50, %v3520_v48  ;;  %v3521_v53 = vmul.f32 %v4729_v43, %v5826_v40  ;;  %4630 = vmatprep.mubr.bf16.mxu1 %v3693_v54 }
 0x329   : > { %v3592_v30 = vadd.f32 %v5834_v50, %v3521_v53  ;;  %v3655_v35 = vmax.f32 %v3591_v60, 0.0 }
 0x32a   : > { %v3416_v12 = vpop.f32.mrb[104].mxu0 }
 0x32b   : > { %v3656_v56 = vmax.f32 %v3592_v30, 0.0  ;;  %v4730_v57 = vadd.f32 %v3416_v12, %v5937_v27  ;;  %v3418_v33 = vpop.f32.mrb[105].mxu0 }
 0x32c   : > { %v3419_v63 = vpop.f32.mrb[106].mxu0 }
 0x32d   : > { %v3522_v59 = vmul.f32 %v4730_v57, %v5826_v40  ;;  %v4731_v38 = vadd.f32 %v3419_v63, %v5940_v4  ;;  %v3421_v61 = vpop.f32.mrb[107].mxu0  ;;  %v3694_v23 = vpack.c.bf16 %v3656_v56, %v3655_v35  ;;  %v5079_v56 = vld [vmem:[%s6297_s2] ss:$0 sm:$0xff] }
 0x32f   : > { %v3593_v45 = vadd.f32 %v5834_v50, %v3522_v59  ;;  %v3523_v46 = vmul.f32 %v4731_v38, %v5826_v40  ;;  %4631 = vmatmul.mubr.bf16.gmra.mrb[176].mxu1 %v3694_v23 }
 0x331   : > { %v3594_v7 = vadd.f32 %v5834_v50, %v3523_v46  ;;  %v3657_v20 = vmax.f32 %v3593_v45, 0.0 }
 0x332   : > { %v3424_v3 = vpop.f32.mrb[108].mxu0 }
 0x333   : > { %v3658_v31 = vmax.f32 %v3594_v7, 0.0  ;;  %v4732_v27 = vadd.f32 %v3424_v3, %v5947_v32  ;;  %v3426_v8 = vpop.f32.mrb[109].mxu0 }
 0x334   : > { %v3427_v29 = vpop.f32.mrb[110].mxu0 }
 0x335   : > { %v3524_v39 = vmul.f32 %v4732_v27, %v5826_v40  ;;  %v4733_v4 = vadd.f32 %v3427_v29, %v5950_v16  ;;  %v3429_v1 = vpop.f32.mrb[111].mxu0  ;;  %v3695_v52 = vpack.c.bf16 %v3658_v31, %v3657_v20 }
 0x337   : > { %v3595_v47 = vadd.f32 %v5834_v50, %v3524_v39  ;;  %v3525_v28 = vmul.f32 %v4733_v4, %v5826_v40  ;;  %4634 = vmatprep.mubr.bf16.mxu1 %v3695_v52 }
 0x339   : > { %v3596_v51 = vadd.f32 %v5834_v50, %v3525_v28  ;;  %v3659_v9 = vmax.f32 %v3595_v47, 0.0 }
 0x33a   : > { %v3432_v42 = vpop.f32.mrb[112].mxu0 }
 0x33b   : > { %v3660_v2 = vmax.f32 %v3596_v51, 0.0  ;;  %v4734_v32 = vadd.f32 %v3432_v42, %v5957_v26  ;;  %v3434_v14 = vpop.f32.mrb[113].mxu0 }
 0x33c   : > { %v3435_v24 = vpop.f32.mrb[114].mxu0 }
 0x33d   : > { %v3526_v11 = vmul.f32 %v4734_v32, %v5826_v40  ;;  %v4735_v16 = vadd.f32 %v3435_v24, %v5960_v25  ;;  %v3437_v0 = vpop.f32.mrb[115].mxu0  ;;  %v3696_v62 = vpack.c.bf16 %v3660_v2, %v3659_v9 }
 0x33f   : > { %v3597_v37 = vadd.f32 %v5834_v50, %v3526_v11  ;;  %v3527_v34 = vmul.f32 %v4735_v16, %v5826_v40  ;;  %4635 = vmatmul.mubr.bf16.gmra.mrb[180].mxu1 %v3696_v62 }
 0x341   : > { %v3598_v26 = vadd.f32 %v5834_v50, %v3527_v34  ;;  %v3661_v55 = vmax.f32 %v3597_v37, 0.0 }
 0x342   : > { %v3440_v18 = vpop.f32.mrb[116].mxu0  ;;  %v4584_v25 = vpop.f32.mrb[128].mxu1 }
 0x343   : > { %v3662_v44 = vmax.f32 %v3598_v26, 0.0  ;;  %v4736_v22 = vadd.f32 %v3440_v18, %v5967_v58  ;;  %v3815_v21 = vadd.f32 %v4584_v25, %v6078_v13  ;;  %v3442_v10 = vpop.f32.mrb[117].mxu0  ;;  %v3806_v19 = vpop.f32.mrb[129].mxu1 }
 0x344   : > { %v3807_v17 = vadd.f32 %v6078_v13, %v3806_v19  ;;  %v3443_v48 = vpop.f32.mrb[118].mxu0  ;;  %v4585_v43 = vpop.f32.mrb[130].mxu1 }
 0x345   : > { %v3528_v41 = vmul.f32 %v4736_v22, %v5826_v40  ;;  %4064 = vst.msk [vmem:[%s6084_s30 + $0x10] sm:$0xff] %vm4061_vm0, %v3815_v21  ;;  %v4737_v54 = vadd.f32 %v3443_v48, %v5970_v15  ;;  %v3818_v60 = vadd.f32 %v4585_v43, %v6078_v13  ;;  %v3445_v53 = vpop.f32.mrb[119].mxu0  ;;  %v3809_v58 = vpop.f32.mrb[131].mxu1  ;;  %v3697_v30 = vpack.c.bf16 %v3662_v44, %v3661_v55  ;;  %v5080_v15 = vld [vmem:[%s6298_s3] ss:$0 sm:$0xff] }
 0x346   : > { %4062 = vst.msk [vmem:[%s6084_s30] sm:$0xff] %vm4061_vm0, %v3807_v17  ;;  %v3810_v12 = vadd.f32 %v6078_v13, %v3809_v58 }
 0x347   : > { %v3599_v35 = vadd.f32 %v5834_v50, %v3528_v41  ;;  %v3529_v40 = vmul.f32 %v5079_v56, %v4737_v54  ;;  %4065 = vst.msk [vmem:[%s6084_s30 + $0x18] sm:$0xff] %vm4061_vm0, %v3818_v60  ;;  %4638 = vmatprep.mubr.bf16.mxu1 %v3697_v30 }
 0x348   : > { %4063 = vst.msk [vmem:[%s6084_s30 + $0x8] sm:$0xff] %vm4061_vm0, %v3810_v12 }
 0x349   : > { %v3600_v57 = vadd.f32 %v5080_v15, %v3529_v40  ;;  %v3663_v63 = vmax.f32 %v3599_v35, 0.0 }
 0x34a   : > { %v3448_v33 = vpop.f32.mrb[120].mxu0 }
 0x34b   : > { %v3664_v59 = vmax.f32 %v3600_v57, 0.0  ;;  %v4738_v50 = vadd.f32 %v3448_v33, %v5977_v6  ;;  %v3450_v38 = vpop.f32.mrb[121].mxu0 }
 0x34c   : > { %v3451_v61 = vpop.f32.mrb[122].mxu0 }
 0x34d   : > { %v3530_v23 = vmul.f32 %v5079_v56, %v4738_v50  ;;  %v4739_v45 = vadd.f32 %v3451_v61, %v5980_v36  ;;  %v3453_v46 = vpop.f32.mrb[123].mxu0  ;;  %v3698_v7 = vpack.c.bf16 %v3664_v59, %v3663_v63 }
 0x34f   : > { %v3601_v3 = vadd.f32 %v5080_v15, %v3530_v23  ;;  %v3531_v20 = vmul.f32 %v5079_v56, %v4739_v45  ;;  %4639 = vmatmul.mubr.bf16.gmra.mrb[184].mxu1 %v3698_v7 }
 0x351   : > { %v3602_v31 = vadd.f32 %v5080_v15, %v3531_v20  ;;  %v3665_v29 = vmax.f32 %v3601_v3, 0.0 }
 0x352   : > { %v3456_v27 = vpop.f32.mrb[124].mxu0  ;;  %v4588_v8 = vpop.f32.mrb[132].mxu1 }
 0x353   : > { %v3666_v39 = vmax.f32 %v3602_v31, 0.0  ;;  %v4740_v4 = vadd.f32 %v3456_v27, %v5987_v5  ;;  %v3831_v6 = vadd.f32 %v4588_v8, %v6078_v13  ;;  %v3458_v1 = vpop.f32.mrb[125].mxu0  ;;  %v3822_v52 = vpop.f32.mrb[133].mxu1 }
 0x354   : > { %v3823_v36 = vadd.f32 %v6078_v13, %v3822_v52  ;;  %v3459_v47 = vpop.f32.mrb[126].mxu0  ;;  %v4589_v28 = vpop.f32.mrb[134].mxu1 }
 0x355   : > { %v3532_v51 = vmul.f32 %v5079_v56, %v4740_v4  ;;  %4068 = vst.msk [vmem:[%s6084_s30 + $0x30] sm:$0xff] %vm4061_vm0, %v3831_v6  ;;  %v4741_v42 = vadd.f32 %v3459_v47, %v5990_v49  ;;  %v3834_v9 = vadd.f32 %v4589_v28, %v6078_v13  ;;  %v3461_v2 = vpop.f32.mrb[127].mxu0  ;;  %v3825_v32 = vpop.f32.mrb[135].mxu1  ;;  %v3699_v5 = vpack.c.bf16 %v3666_v39, %v3665_v29 }
 0x356   : > { %4066 = vst.msk [vmem:[%s6084_s30 + $0x20] sm:$0xff] %vm4061_vm0, %v3823_v36  ;;  %v3826_v14 = vadd.f32 %v6078_v13, %v3825_v32 }
 0x357   : > { %v3603_v24 = vadd.f32 %v5080_v15, %v3532_v51  ;;  %v3533_v11 = vmul.f32 %v5079_v56, %v4741_v42  ;;  %4069 = vst.msk [vmem:[%s6084_s30 + $0x38] sm:$0xff] %vm4061_vm0, %v3834_v9  ;;  %4642 = vmatprep.mubr.bf16.mxu1 %v3699_v5 }
 0x358   : > { %4067 = vst.msk [vmem:[%s6084_s30 + $0x28] sm:$0xff] %vm4061_vm0, %v3826_v14 }
 0x359   : > { %v3604_v49 = vadd.f32 %v5080_v15, %v3533_v11  ;;  %v3667_v16 = vmax.f32 %v3603_v24, 0.0 }
 0x35b   : > { %v3668_v0 = vmax.f32 %v3604_v49, 0.0 }
 0x35d   : > { %v3700_v62 = vpack.c.bf16 %v3668_v0, %v3667_v16 }
 0x35f   : > { %4643 = vmatmul.mubr.bf16.gmra.mrb[188].mxu1 %v3700_v62 }
 0x362   : > { %v4592_v37 = vpop.f32.mrb[136].mxu1 }
 0x363   : > { %v3847_v34 = vadd.f32 %v4592_v37, %v6078_v13  ;;  %v3838_v26 = vpop.f32.mrb[137].mxu1 }
 0x364   : > { %v3839_v18 = vadd.f32 %v6078_v13, %v3838_v26  ;;  %v4593_v25 = vpop.f32.mrb[138].mxu1 }
 0x365   : > { %4072 = vst.msk [vmem:[%s6084_s30 + $0x50] sm:$0xff] %vm4061_vm0, %v3847_v34  ;;  %v3850_v55 = vadd.f32 %v4593_v25, %v6078_v13  ;;  %v3841_v44 = vpop.f32.mrb[139].mxu1 }
 0x366   : > { %4070 = vst.msk [vmem:[%s6084_s30 + $0x40] sm:$0xff] %vm4061_vm0, %v3839_v18  ;;  %v3842_v22 = vadd.f32 %v6078_v13, %v3841_v44 }
 0x367   : > { %4073 = vst.msk [vmem:[%s6084_s30 + $0x58] sm:$0xff] %vm4061_vm0, %v3850_v55 }
 0x368   : > { %4071 = vst.msk [vmem:[%s6084_s30 + $0x48] sm:$0xff] %vm4061_vm0, %v3842_v22 }
 0x372   : > { %v4596_v21 = vpop.f32.mrb[140].mxu1 }
 0x373   : > { %v3863_v10 = vadd.f32 %v4596_v21, %v6078_v13  ;;  %v3854_v19 = vpop.f32.mrb[141].mxu1 }
 0x374   : > { %v3855_v17 = vadd.f32 %v6078_v13, %v3854_v19  ;;  %v4597_v48 = vpop.f32.mrb[142].mxu1 }
 0x375   : > { %4076 = vst.msk [vmem:[%s6084_s30 + $0x70] sm:$0xff] %vm4061_vm0, %v3863_v10  ;;  %v3866_v43 = vadd.f32 %v4597_v48, %v6078_v13  ;;  %v3857_v41 = vpop.f32.mrb[143].mxu1 }
 0x376   : > { %4074 = vst.msk [vmem:[%s6084_s30 + $0x60] sm:$0xff] %vm4061_vm0, %v3855_v17  ;;  %v3858_v54 = vadd.f32 %v6078_v13, %v3857_v41 }
 0x377   : > { %4077 = vst.msk [vmem:[%s6084_s30 + $0x78] sm:$0xff] %vm4061_vm0, %v3866_v43 }
 0x378   : > { %4075 = vst.msk [vmem:[%s6084_s30 + $0x68] sm:$0xff] %vm4061_vm0, %v3858_v54 }
 0x382   : > { %v4600_v60 = vpop.f32.mrb[144].mxu1 }
 0x383   : > { %v3879_v53 = vadd.f32 %v4600_v60, %v6078_v13  ;;  %v3870_v58 = vpop.f32.mrb[145].mxu1 }
 0x384   : > { %v3871_v30 = vadd.f32 %v6078_v13, %v3870_v58  ;;  %v4601_v12 = vpop.f32.mrb[146].mxu1 }
 0x385   : > { %4080 = vst.msk [vmem:[%s6084_s30 + $0x90] sm:$0xff] %vm4061_vm0, %v3879_v53  ;;  %v3882_v35 = vadd.f32 %v4601_v12, %v6078_v13  ;;  %v3873_v56 = vpop.f32.mrb[147].mxu1 }
 0x386   : > { %4078 = vst.msk [vmem:[%s6084_s30 + $0x80] sm:$0xff] %vm4061_vm0, %v3871_v30  ;;  %v3874_v40 = vadd.f32 %v6078_v13, %v3873_v56 }
 0x387   : > { %4081 = vst.msk [vmem:[%s6084_s30 + $0x98] sm:$0xff] %vm4061_vm0, %v3882_v35 }
 0x388   : > { %4079 = vst.msk [vmem:[%s6084_s30 + $0x88] sm:$0xff] %vm4061_vm0, %v3874_v40 }
 0x392   : > { %v4604_v15 = vpop.f32.mrb[148].mxu1 }
 0x393   : > { %v3895_v57 = vadd.f32 %v4604_v15, %v6078_v13  ;;  %v3886_v33 = vpop.f32.mrb[149].mxu1 }
 0x394   : > { %v3887_v63 = vadd.f32 %v6078_v13, %v3886_v33  ;;  %v4605_v59 = vpop.f32.mrb[150].mxu1 }
 0x395   : > { %4084 = vst.msk [vmem:[%s6084_s30 + $0xb0] sm:$0xff] %vm4061_vm0, %v3895_v57  ;;  %v3898_v50 = vadd.f32 %v4605_v59, %v6078_v13  ;;  %v3889_v38 = vpop.f32.mrb[151].mxu1 }
 0x396   : > { %4082 = vst.msk [vmem:[%s6084_s30 + $0xa0] sm:$0xff] %vm4061_vm0, %v3887_v63  ;;  %v3890_v61 = vadd.f32 %v6078_v13, %v3889_v38 }
 0x397   : > { %4085 = vst.msk [vmem:[%s6084_s30 + $0xb8] sm:$0xff] %vm4061_vm0, %v3898_v50 }
 0x398   : > { %4083 = vst.msk [vmem:[%s6084_s30 + $0xa8] sm:$0xff] %vm4061_vm0, %v3890_v61 }
 0x3a2   : > { %v4608_v23 = vpop.f32.mrb[152].mxu1 }
 0x3a3   : > { %v3911_v45 = vadd.f32 %v4608_v23, %v6078_v13  ;;  %v3902_v46 = vpop.f32.mrb[153].mxu1 }
 0x3a4   : > { %v3903_v7 = vadd.f32 %v6078_v13, %v3902_v46  ;;  %v4609_v3 = vpop.f32.mrb[154].mxu1 }
 0x3a5   : > { %4088 = vst.msk [vmem:[%s6084_s30 + $0xd0] sm:$0xff] %vm4061_vm0, %v3911_v45  ;;  %v3914_v20 = vadd.f32 %v4609_v3, %v6078_v13  ;;  %v3905_v31 = vpop.f32.mrb[155].mxu1 }
 0x3a6   : > { %4086 = vst.msk [vmem:[%s6084_s30 + $0xc0] sm:$0xff] %vm4061_vm0, %v3903_v7  ;;  %v3906_v27 = vadd.f32 %v6078_v13, %v3905_v31 }
 0x3a7   : > { %4089 = vst.msk [vmem:[%s6084_s30 + $0xd8] sm:$0xff] %vm4061_vm0, %v3914_v20 }
 0x3a8   : > { %4087 = vst.msk [vmem:[%s6084_s30 + $0xc8] sm:$0xff] %vm4061_vm0, %v3906_v27 }
 0x3b2   : > { %v4612_v8 = vpop.f32.mrb[156].mxu1 }
 0x3b3   : > { %v3927_v29 = vadd.f32 %v4612_v8, %v6078_v13  ;;  %v3918_v39 = vpop.f32.mrb[157].mxu1 }
 0x3b4   : > { %v3919_v4 = vadd.f32 %v6078_v13, %v3918_v39  ;;  %v4613_v6 = vpop.f32.mrb[158].mxu1 }
 0x3b5   : > { %4092 = vst.msk [vmem:[%s6084_s30 + $0xf0] sm:$0xff] %vm4061_vm0, %v3927_v29  ;;  %v3930_v1 = vadd.f32 %v4613_v6, %v6078_v13  ;;  %v3921_v52 = vpop.f32.mrb[159].mxu1 }
 0x3b6   : > { %4090 = vst.msk [vmem:[%s6084_s30 + $0xe0] sm:$0xff] %vm4061_vm0, %v3919_v4  ;;  %v3922_v36 = vadd.f32 %v6078_v13, %v3921_v52 }
 0x3b7   : > { %4093 = vst.msk [vmem:[%s6084_s30 + $0xf8] sm:$0xff] %vm4061_vm0, %v3930_v1 }
 0x3b8   : > { %4091 = vst.msk [vmem:[%s6084_s30 + $0xe8] sm:$0xff] %vm4061_vm0, %v3922_v36 }
 0x3c2   : > { %v4616_v47 = vpop.f32.mrb[160].mxu1 }
 0x3c3   : > { %v3943_v28 = vadd.f32 %v4616_v47, %v6078_v13  ;;  %v3934_v51 = vpop.f32.mrb[161].mxu1 }
 0x3c4   : > { %v3935_v42 = vadd.f32 %v6078_v13, %v3934_v51  ;;  %v4617_v9 = vpop.f32.mrb[162].mxu1 }
 0x3c5   : > { %4096 = vst.msk [vmem:[%s6084_s30 + $0x110] sm:$0xff] %vm4061_vm0, %v3943_v28  ;;  %v3946_v2 = vadd.f32 %v4617_v9, %v6078_v13  ;;  %v3937_v32 = vpop.f32.mrb[163].mxu1 }
 0x3c6   : > { %4094 = vst.msk [vmem:[%s6084_s30 + $0x100] sm:$0xff] %vm4061_vm0, %v3935_v42  ;;  %v3938_v5 = vadd.f32 %v6078_v13, %v3937_v32 }
 0x3c7   : > { %4097 = vst.msk [vmem:[%s6084_s30 + $0x118] sm:$0xff] %vm4061_vm0, %v3946_v2 }
 0x3c8   : > { %4095 = vst.msk [vmem:[%s6084_s30 + $0x108] sm:$0xff] %vm4061_vm0, %v3938_v5 }
 0x3d2   : > { %v4620_v14 = vpop.f32.mrb[164].mxu1 }
 0x3d3   : > { %v3959_v24 = vadd.f32 %v4620_v14, %v6078_v13  ;;  %v3950_v11 = vpop.f32.mrb[165].mxu1 }
 0x3d4   : > { %v3951_v49 = vadd.f32 %v6078_v13, %v3950_v11  ;;  %v4621_v16 = vpop.f32.mrb[166].mxu1 }
 0x3d5   : > { %4100 = vst.msk [vmem:[%s6084_s30 + $0x130] sm:$0xff] %vm4061_vm0, %v3959_v24  ;;  %v3962_v0 = vadd.f32 %v4621_v16, %v6078_v13  ;;  %v3953_v62 = vpop.f32.mrb[167].mxu1 }
 0x3d6   : > { %4098 = vst.msk [vmem:[%s6084_s30 + $0x120] sm:$0xff] %vm4061_vm0, %v3951_v49  ;;  %v3954_v37 = vadd.f32 %v6078_v13, %v3953_v62 }
 0x3d7   : > { %4101 = vst.msk [vmem:[%s6084_s30 + $0x138] sm:$0xff] %vm4061_vm0, %v3962_v0 }
 0x3d8   : > { %4099 = vst.msk [vmem:[%s6084_s30 + $0x128] sm:$0xff] %vm4061_vm0, %v3954_v37 }
 0x3e2   : > { %v4624_v34 = vpop.f32.mrb[168].mxu1 }
 0x3e3   : > { %v3975_v26 = vadd.f32 %v4624_v34, %v6078_v13  ;;  %v3966_v18 = vpop.f32.mrb[169].mxu1 }
 0x3e4   : > { %v3967_v25 = vadd.f32 %v6078_v13, %v3966_v18  ;;  %v4625_v55 = vpop.f32.mrb[170].mxu1 }
 0x3e5   : > { %4104 = vst.msk [vmem:[%s6084_s30 + $0x150] sm:$0xff] %vm4061_vm0, %v3975_v26  ;;  %v3978_v44 = vadd.f32 %v4625_v55, %v6078_v13  ;;  %v3969_v22 = vpop.f32.mrb[171].mxu1 }
 0x3e6   : > { %4102 = vst.msk [vmem:[%s6084_s30 + $0x140] sm:$0xff] %vm4061_vm0, %v3967_v25  ;;  %v3970_v21 = vadd.f32 %v6078_v13, %v3969_v22 }
 0x3e7   : > { %4105 = vst.msk [vmem:[%s6084_s30 + $0x158] sm:$0xff] %vm4061_vm0, %v3978_v44 }
 0x3e8   : > { %4103 = vst.msk [vmem:[%s6084_s30 + $0x148] sm:$0xff] %vm4061_vm0, %v3970_v21 }
 0x3f2   : > { %v4628_v10 = vpop.f32.mrb[172].mxu1 }
 0x3f3   : > { %v3991_v19 = vadd.f32 %v4628_v10, %v6078_v13  ;;  %v3982_v17 = vpop.f32.mrb[173].mxu1 }
 0x3f4   : > { %v3983_v48 = vadd.f32 %v6078_v13, %v3982_v17  ;;  %v4629_v43 = vpop.f32.mrb[174].mxu1 }
 0x3f5   : > { %4108 = vst.msk [vmem:[%s6084_s30 + $0x170] sm:$0xff] %vm4061_vm0, %v3991_v19  ;;  %v3994_v41 = vadd.f32 %v4629_v43, %v6078_v13  ;;  %v3985_v54 = vpop.f32.mrb[175].mxu1 }
 0x3f6   : > { %4106 = vst.msk [vmem:[%s6084_s30 + $0x160] sm:$0xff] %vm4061_vm0, %v3983_v48  ;;  %v3986_v60 = vadd.f32 %v6078_v13, %v3985_v54 }
 0x3f7   : > { %4109 = vst.msk [vmem:[%s6084_s30 + $0x178] sm:$0xff] %vm4061_vm0, %v3994_v41 }
 0x3f8   : > { %4107 = vst.msk [vmem:[%s6084_s30 + $0x168] sm:$0xff] %vm4061_vm0, %v3986_v60 }
 0x402   : > { %v4632_v53 = vpop.f32.mrb[176].mxu1 }
 0x403   : > { %v4007_v58 = vadd.f32 %v4632_v53, %v6078_v13  ;;  %v3998_v30 = vpop.f32.mrb[177].mxu1 }
 0x404   : > { %v3999_v12 = vadd.f32 %v6078_v13, %v3998_v30  ;;  %v4633_v35 = vpop.f32.mrb[178].mxu1 }
 0x405   : > { %4112 = vst.msk [vmem:[%s6084_s30 + $0x190] sm:$0xff] %vm4061_vm0, %v4007_v58  ;;  %v4010_v56 = vadd.f32 %v4633_v35, %v6078_v13  ;;  %v4001_v40 = vpop.f32.mrb[179].mxu1 }
 0x406   : > { %4110 = vst.msk [vmem:[%s6084_s30 + $0x180] sm:$0xff] %vm4061_vm0, %v3999_v12  ;;  %v4002_v15 = vadd.f32 %v6078_v13, %v4001_v40 }
 0x407   : > { %4113 = vst.msk [vmem:[%s6084_s30 + $0x198] sm:$0xff] %vm4061_vm0, %v4010_v56 }
 0x408   : > { %4111 = vst.msk [vmem:[%s6084_s30 + $0x188] sm:$0xff] %vm4061_vm0, %v4002_v15 }
 0x412   : > { %v4636_v57 = vpop.f32.mrb[180].mxu1 }
 0x413   : > { %v4023_v33 = vadd.f32 %v4636_v57, %v6078_v13  ;;  %v4014_v63 = vpop.f32.mrb[181].mxu1 }
 0x414   : > { %v4015_v59 = vadd.f32 %v6078_v13, %v4014_v63  ;;  %v4637_v50 = vpop.f32.mrb[182].mxu1 }
 0x415   : > { %4116 = vst.msk [vmem:[%s6084_s30 + $0x1b0] sm:$0xff] %vm4061_vm0, %v4023_v33  ;;  %v4026_v38 = vadd.f32 %v4637_v50, %v6078_v13  ;;  %v4017_v61 = vpop.f32.mrb[183].mxu1 }
 0x416   : > { %4114 = vst.msk [vmem:[%s6084_s30 + $0x1a0] sm:$0xff] %vm4061_vm0, %v4015_v59  ;;  %v4018_v23 = vadd.f32 %v6078_v13, %v4017_v61 }
 0x417   : > { %4117 = vst.msk [vmem:[%s6084_s30 + $0x1b8] sm:$0xff] %vm4061_vm0, %v4026_v38 }
 0x418   : > { %4115 = vst.msk [vmem:[%s6084_s30 + $0x1a8] sm:$0xff] %vm4061_vm0, %v4018_v23 }
 0x422   : > { %v4640_v45 = vpop.f32.mrb[184].mxu1 }
 0x423   : > { %v4039_v46 = vadd.f32 %v4640_v45, %v6078_v13  ;;  %v4030_v7 = vpop.f32.mrb[185].mxu1 }
 0x424   : > { %v4031_v3 = vadd.f32 %v6078_v13, %v4030_v7  ;;  %v4641_v20 = vpop.f32.mrb[186].mxu1 }
 0x425   : > { %4120 = vst.msk [vmem:[%s6084_s30 + $0x1d0] sm:$0xff] %vm4061_vm0, %v4039_v46  ;;  %v4042_v31 = vadd.f32 %v4641_v20, %v6078_v13  ;;  %v4033_v27 = vpop.f32.mrb[187].mxu1 }
 0x426   : > { %4118 = vst.msk [vmem:[%s6084_s30 + $0x1c0] sm:$0xff] %vm4061_vm0, %v4031_v3  ;;  %v4034_v8 = vadd.f32 %v6078_v13, %v4033_v27 }
 0x427   : > { %4121 = vst.msk [vmem:[%s6084_s30 + $0x1d8] sm:$0xff] %vm4061_vm0, %v4042_v31 }
 0x428   : > { %4119 = vst.msk [vmem:[%s6084_s30 + $0x1c8] sm:$0xff] %vm4061_vm0, %v4034_v8 }
 0x432   : > { %v4644_v29 = vpop.f32.mrb[188].mxu1 }
 0x433   : > { %v4055_v39 = vadd.f32 %v4644_v29, %v6078_v13  ;;  %v4046_v4 = vpop.f32.mrb[189].mxu1 }
 0x434   : > { %v4047_v6 = vadd.f32 %v6078_v13, %v4046_v4  ;;  %v4645_v1 = vpop.f32.mrb[190].mxu1 }
 0x435   : > { %4124 = vst.msk [vmem:[%s6084_s30 + $0x1f0] sm:$0xff] %vm4061_vm0, %v4055_v39  ;;  %v4058_v52 = vadd.f32 %v4645_v1, %v6078_v13  ;;  %v4049_v36 = vpop.f32.mrb[191].mxu1 }
 0x436   : > { %4122 = vst.msk [vmem:[%s6084_s30 + $0x1e0] sm:$0xff] %vm4061_vm0, %v4047_v6  ;;  %v4050_v47 = vadd.f32 %v6078_v13, %v4049_v36 }
 0x437   : > { %4125 = vst.msk [vmem:[%s6084_s30 + $0x1f8] sm:$0xff] %vm4061_vm0, %v4058_v52 }
 0x438   : > { %4123 = vst.msk [vmem:[%s6084_s30 + $0x1e8] sm:$0xff] %vm4061_vm0, %v4050_v47 }
 0x439 PF: > { %s16_s21 = sadd.s32 1, %s5087_s21  }
 0x43a   : > { %p13_p4 = scmp.ge.s32.totalorder %s16_s21, 4  }
 0x43c   :  { %15 = sbr.rel (!%p13_p4) target bundleno = 1 (0x1), region = 74 }

</bundles_post_ra>
